<compile_context>
chip_gen: v7x
topology: tpu7x:2x2x1
jax: 0.10.0
libtpu: 0.0.40
codegen_flags: <defaults>
</compile_context>

<pallas_src>
import numpy as np
import jax
import jax.numpy as jnp
from jax.experimental import pallas as pl
from jax.experimental.pallas import tpu as pltpu

_BN_EPS = 1e-5


# ----------------------------- fused Pallas kernel --------------------------

def _build_kernel(layer_cfgs):
    """Build the fused forward kernel.

    Ref order: x, then (sel, w, b) per layer, then pb, pt, then the output.
      x   : (B*L0, Cin0)                     channels-last activation
      sel : (K, rows_out, rows_in)           0/1 selection (im2col / col2im)
      w   : (K, Cin, Cout)                   per-tap weight slices
      b   : (1, Cout)                        bias
      pb  : (B, B*Tf), pt : (B*Tf, clip)     final lane-dense fold matrices
    """
    n_layers = len(layer_cfgs)

    def kernel(*refs):
        x_ref = refs[0]
        pb_ref = refs[1 + 3 * n_layers]
        pt_ref = refs[2 + 3 * n_layers]
        out_ref = refs[3 + 3 * n_layers]

        h = x_ref[...]                                    # (B*L, Cin) in VMEM
        for li, cfg in enumerate(layer_cfgs):
            sel_ref = refs[1 + 3 * li]
            w_ref = refs[2 + 3 * li]
            b_ref = refs[3 + 3 * li]

            acc = None
            for k in range(cfg["K"]):
                if cfg["cin"] == 1:
                    # degenerate contraction dim -> broadcast multiply (VPU)
                    xw = h * w_ref[k]                     # (rows_in, Cout)
                else:
                    xw = jnp.dot(h, w_ref[k],
                                 preferred_element_type=jnp.float32)
                term = jnp.dot(sel_ref[k], xw,
                               preferred_element_type=jnp.float32)
                acc = term if acc is None else acc + term
            y = acc + b_ref[...]

            if cfg["norm"]:
                # TODO(synk): 'fixedbn' assumed to be affine-free BatchNorm with
                # train-mode (biased) batch statistics, eps=1e-5.  Stats are
                # computed over all batch*length rows (single block -> global).
                mean = jnp.mean(y, axis=0, keepdims=True)
                var = jnp.mean((y - mean) ** 2, axis=0, keepdims=True)
                y = (y - mean) * jax.lax.rsqrt(var + _BN_EPS)
            if cfg["act"]:
                y = jnp.maximum(y, 0.0)
            h = y

        # Lane-dense fold of the (B*Tf, 1) head output into (B, clip):
        #   out[b, t] = h[b*Tf + t, 0]  for t < clip.
        out_ref[...] = jnp.dot(pb_ref[...], h * pt_ref[...],
                               preferred_element_type=jnp.float32)

    return kernel


# ------------------- constant selection matrices (host-side) ----------------

def _conv_selection(B, Lin, K, stride):
    """Sel_k for Conv1d: Sel_k[b*T+t, b*Lin + t*stride + k] = 1."""
    Tout = (Lin - K) // stride + 1
    sel = np.zeros((K, B * Tout, B * Lin), np.float32)
    for k in range(K):
        for b in range(B):
            for t in range(Tout):
                sel[k, b * Tout + t, b * Lin + t * stride + k] = 1.0
    return sel, Tout


def _convT_selection(B, Tin, K, stride):
    """Sel_k for ConvTranspose1d: Sel_k[b*Lout + t*stride + k, b*Tin + t] = 1."""
    Lout = (Tin - 1) * stride + K
    sel = np.zeros((K, B * Lout, B * Tin), np.float32)
    for k in range(K):
        for b in range(B):
            for t in range(Tin):
                sel[k, b * Lout + t * stride + k, b * Tin + t] = 1.0
    return sel, Lout


# ------------------------------- plan builder --------------------------------

def _build_plan(params, B, L0, clip_length):
    cfgs = []
    operands = []
    flops = 0
    trans = 0
    L = L0

    def add_layer(sel, w_k, bias, K, norm, act, cin, cout, rows_in, rows_out):
        nonlocal flops, trans
        cfgs.append(dict(K=K, norm=norm, act=act, cin=cin))
        operands.extend([
            jnp.asarray(sel, dtype=jnp.float32),
            jnp.asarray(w_k, dtype=jnp.float32),
            jnp.asarray(jnp.reshape(bias, (1, cout)), dtype=jnp.float32),
        ])
        flops += K * (2 * rows_in * cin * cout + 2 * rows_out * rows_in * cout)
        if norm:
            trans += cout                       # one rsqrt per channel

    # encoder: Conv1d(k=2, s=2) -> fixedbn -> relu
    for w, b in params["enc"]:
        Cout, Cin, K = w.shape
        sel, T = _conv_selection(B, L, K, 2)
        w_k = jnp.stack([w[:, :, k].T for k in range(K)], axis=0)   # (K,Cin,Cout)
        add_layer(sel, w_k, b, K, True, True, Cin, Cout, B * L, B * T)
        L = T

    # decoder: ConvTranspose1d(k=3, s=2) -> fixedbn -> relu
    for w, b in params["dec"]:
        Cin, Cout, K = w.shape
        sel, Lout = _convT_selection(B, L, K, 2)
        w_k = jnp.stack([w[:, :, k] for k in range(K)], axis=0)
        add_layer(sel, w_k, b, K, True, True, Cin, Cout, B * L, B * Lout)
        L = Lout

    # head: ConvTranspose1d(k=2, s=2) -> fixedbn -> relu
    w, b = params["head_ct"]
    Cin, Cout, K = w.shape
    sel, Lout = _convT_selection(B, L, K, 2)
    w_k = jnp.stack([w[:, :, k] for k in range(K)], axis=0)
    add_layer(sel, w_k, b, K, True, True, Cin, Cout, B * L, B * Lout)
    L = Lout

    # head: plain Conv1d(k=2, s=1), no norm / act
    w, b = params["head_conv"]
    Cout, Cin, K = w.shape
    sel, Tf = _conv_selection(B, L, K, 1)
    w_k = jnp.stack([w[:, :, k].T for k in range(K)], axis=0)
    add_layer(sel, w_k, b, K, False, False, Cin, Cout, B * L, B * Tf)

    # output fold:  out[b, t] = h[b*Tf + t, 0],  t < clip
    clip = min(clip_length, Tf)
    pb = np.zeros((B, B * Tf), np.float32)
    pt = np.zeros((B * Tf, clip), np.float32)
    for b_ in range(B):
        for t in range(Tf):
            pb[b_, b_ * Tf + t] = 1.0
            if t < clip:
                pt[b_ * Tf + t, t] = 1.0
    operands.extend([jnp.asarray(pb), jnp.asarray(pt)])
    flops += 2 * B * (B * Tf) * clip + B * Tf * clip

    return tuple(cfgs), operands, clip, int(flops), int(trans)


# -------------------------------- forward ------------------------------------

def make_forward(params, B, L0=40, clip_length=40):
    cfgs, consts, clip, flops, trans = _build_plan(params, B, L0, clip_length)
    kernel = _build_kernel(cfgs)

    cin0 = int(params["enc"][0][0].shape[1])
    in_shapes = [(B * L0, cin0)] + [tuple(int(d) for d in a.shape) for a in consts]
    out_shape = jax.ShapeDtypeStruct((B, clip), jnp.float32)

    def _full_spec(shape):
        nd = len(shape)
        return pl.BlockSpec(shape, lambda i, nd=nd: (0,) * nd)

    bytes_accessed = 4 * (sum(int(np.prod(s)) for s in in_shapes) + B * clip)

    call = pl.pallas_call(
        kernel,
        out_shape=out_shape,
        grid=(1,),
        in_specs=[_full_spec(s) for s in in_shapes],
        out_specs=_full_spec((B, clip)),
        compiler_params=pltpu.CompilerParams(
            dimension_semantics=("arbitrary",)),
        cost_estimate=pl.CostEstimate(flops=flops,
                                      transcendentals=trans,
                                      bytes_accessed=int(bytes_accessed)),
    )

    def forward(x):
        if x.ndim == 2:
            x = x[:, None, :]                                  # (B, 1, L0)
        # channels-last column layout expected by the kernel: row = b*L0 + l
        x2d = jnp.transpose(x, (0, 2, 1)).reshape(B * L0, cin0)
        return call(x2d.astype(jnp.float32), *consts)

    return jax.jit(forward)


# --------------------------- parameters (deterministic) ----------------------

def init_params(key, hidden=(8, 16, 32, 64), real_in=1):
    """Deterministic parameter init matching the module's layer shapes."""
    channels = [real_in] + list(hidden)
    rev = list(reversed(channels))
    keys = iter(jax.random.split(key, 32))

    def conv_init(cout, cin, k):
        kw, kb = jax.random.split(next(keys))
        bound = 1.0 / (cin * k) ** 0.5
        w = jax.random.uniform(kw, (cout, cin, k), jnp.float32, -bound, bound)
        b = jax.random.uniform(kb, (cout,), jnp.float32, -bound, bound)
        return w, b

    def convT_init(cin, cout, k):
        kw, kb = jax.random.split(next(keys))
        bound = 1.0 / (cout * k) ** 0.5
        w = jax.random.uniform(kw, (cin, cout, k), jnp.float32, -bound, bound)
        b = jax.random.uniform(kb, (cout,), jnp.float32, -bound, bound)
        return w, b

    return {
        "enc": [conv_init(o, i, 2) for i, o in zip(channels[:-1], channels[1:])],
        "dec": [convT_init(i, o, 3) for i, o in zip(rev[:-2], rev[1:-1])],
        "head_ct": convT_init(rev[-2], rev[-2], 2),
        "head_conv": conv_init(1, rev[-2], 2),   # real_out=None -> 1 channel
    }


# ---------------------- plain-JAX reference (for checking) -------------------

def _ref_conv1d(x, w, b, stride):
    B, Cin, L = x.shape
    Cout, _, K = w.shape
    T = (L - K) // stride + 1
    y = jnp.zeros((B, Cout, T), jnp.float32)
    for k in range(K):
        xs = x[:, :, k:k + (T - 1) * stride + 1:stride]
        y = y + jnp.einsum("bct,oc->bot", xs, w[:, :, k])
    return y + b[None, :, None]


def _ref_convT1d(x, w, b, stride):
    B, Cin, T = x.shape
    _, Cout, K = w.shape
    Lout = (T - 1) * stride + K
    y = jnp.zeros((B, Cout, Lout), jnp.float32)
    for k in range(K):
        contrib = jnp.einsum("bct,co->bot", x, w[:, :, k])
        y = y.at[:, :, k:k + (T - 1) * stride + 1:stride].add(contrib)
    return y + b[None, :, None]


def _ref_bn_act(y, norm, act):
    if norm:
        mean = jnp.mean(y, axis=(0, 2), keepdims=True)
        var = jnp.mean((y - mean) ** 2, axis=(0, 2), keepdims=True)
        y = (y - mean) * jax.lax.rsqrt(var + _BN_EPS)
    if act:
        y = jnp.maximum(y, 0.0)
    return y


def reference_forward(x, params, clip_length=40):
    if x.ndim == 2:
        x = x[:, None, :]
    h = x.astype(jnp.float32)
    for w, b in params["enc"]:
        h = _ref_bn_act(_ref_conv1d(h, w, b, 2), True, True)
    for w, b in params["dec"]:
        h = _ref_bn_act(_ref_convT1d(h, w, b, 2), True, True)
    w, b = params["head_ct"]
    h = _ref_bn_act(_ref_convT1d(h, w, b, 2), True, True)
    w, b = params["head_conv"]
    h = _ref_conv1d(h, w, b, 1)
    return h[:, :, :clip_length][:, 0]


# ----------------------------------- main -------------------------------------

if __name__ == "__main__":
    key = jax.random.PRNGKey(0)
    kx, kp = jax.random.split(key)

    B, L = 4, 40                       # MNIST-1D length = 40 (== clip_length)
    x = jax.random.normal(kx, (B, L), jnp.float32)
    params = init_params(kp, hidden=(8, 16, 32, 64))

    fwd = make_forward(params, B=B, L0=L, clip_length=40)
    out = jax.block_until_ready(fwd(x))

    assert out.shape == (B, 40), out.shape
    assert bool(jnp.all(jnp.isfinite(out)))

    # sanity-check the fused kernel against a straightforward jnp implementation
    ref = reference_forward(x, params, clip_length=40)
    max_err = float(jnp.max(jnp.abs(out - ref)))
    assert max_err < 1e-1, f"kernel/reference mismatch: max_err={max_err}"

    print("KERNEL_OK")
</pallas_src>

<mosaic_0001>
module attributes {stable_mosaic.version = 11 : i64} {
  func.func @kernel(%arg0: i32, %arg1: memref<160x1xf32, #tpu.memory_space<vmem>>, %arg2: memref<2x80x160xf32, #tpu.memory_space<vmem>>, %arg3: memref<2x1x8xf32, #tpu.memory_space<vmem>>, %arg4: memref<1x8xf32, #tpu.memory_space<vmem>>, %arg5: memref<2x40x80xf32, #tpu.memory_space<vmem>>, %arg6: memref<2x8x16xf32, #tpu.memory_space<vmem>>, %arg7: memref<1x16xf32, #tpu.memory_space<vmem>>, %arg8: memref<2x20x40xf32, #tpu.memory_space<vmem>>, %arg9: memref<2x16x32xf32, #tpu.memory_space<vmem>>, %arg10: memref<1x32xf32, #tpu.memory_space<vmem>>, %arg11: memref<2x8x20xf32, #tpu.memory_space<vmem>>, %arg12: memref<2x32x64xf32, #tpu.memory_space<vmem>>, %arg13: memref<1x64xf32, #tpu.memory_space<vmem>>, %arg14: memref<3x20x8xf32, #tpu.memory_space<vmem>>, %arg15: memref<3x64x32xf32, #tpu.memory_space<vmem>>, %arg16: memref<1x32xf32, #tpu.memory_space<vmem>>, %arg17: memref<3x44x20xf32, #tpu.memory_space<vmem>>, %arg18: memref<3x32x16xf32, #tpu.memory_space<vmem>>, %arg19: memref<1x16xf32, #tpu.memory_space<vmem>>, %arg20: memref<3x92x44xf32, #tpu.memory_space<vmem>>, %arg21: memref<3x16x8xf32, #tpu.memory_space<vmem>>, %arg22: memref<1x8xf32, #tpu.memory_space<vmem>>, %arg23: memref<2x184x92xf32, #tpu.memory_space<vmem>>, %arg24: memref<2x8x8xf32, #tpu.memory_space<vmem>>, %arg25: memref<1x8xf32, #tpu.memory_space<vmem>>, %arg26: memref<2x180x184xf32, #tpu.memory_space<vmem>>, %arg27: memref<2x8x1xf32, #tpu.memory_space<vmem>>, %arg28: memref<1x1xf32, #tpu.memory_space<vmem>>, %arg29: memref<4x180xf32, #tpu.memory_space<vmem>>, %arg30: memref<180x40xf32, #tpu.memory_space<vmem>>, %arg31: memref<4x40xf32, #tpu.memory_space<vmem>>) attributes {dimension_semantics = [#tpu.dimension_semantics<arbitrary>], iteration_bounds = array<i64: 1>, scalar_prefetch = 0 : i64, scratch_operands = 0 : i64, tpu.core_type = #tpu.core_type<tc>, window_params = [{pipeline_mode = #tpu.pipeline_mode<synchronous>, transform_indices = @transform_0, window_bounds = array<i64: 160, 1>}, {pipeline_mode = #tpu.pipeline_mode<synchronous>, transform_indices = @transform_1, window_bounds = array<i64: 2, 80, 160>}, {pipeline_mode = #tpu.pipeline_mode<synchronous>, transform_indices = @transform_2, window_bounds = array<i64: 2, 1, 8>}, {pipeline_mode = #tpu.pipeline_mode<synchronous>, transform_indices = @transform_3, window_bounds = array<i64: 1, 8>}, {pipeline_mode = #tpu.pipeline_mode<synchronous>, transform_indices = @transform_4, window_bounds = array<i64: 2, 40, 80>}, {pipeline_mode = #tpu.pipeline_mode<synchronous>, transform_indices = @transform_5, window_bounds = array<i64: 2, 8, 16>}, {pipeline_mode = #tpu.pipeline_mode<synchronous>, transform_indices = @transform_6, window_bounds = array<i64: 1, 16>}, {pipeline_mode = #tpu.pipeline_mode<synchronous>, transform_indices = @transform_7, window_bounds = array<i64: 2, 20, 40>}, {pipeline_mode = #tpu.pipeline_mode<synchronous>, transform_indices = @transform_8, window_bounds = array<i64: 2, 16, 32>}, {pipeline_mode = #tpu.pipeline_mode<synchronous>, transform_indices = @transform_9, window_bounds = array<i64: 1, 32>}, {pipeline_mode = #tpu.pipeline_mode<synchronous>, transform_indices = @transform_10, window_bounds = array<i64: 2, 8, 20>}, {pipeline_mode = #tpu.pipeline_mode<synchronous>, transform_indices = @transform_11, window_bounds = array<i64: 2, 32, 64>}, {pipeline_mode = #tpu.pipeline_mode<synchronous>, transform_indices = @transform_12, window_bounds = array<i64: 1, 64>}, {pipeline_mode = #tpu.pipeline_mode<synchronous>, transform_indices = @transform_13, window_bounds = array<i64: 3, 20, 8>}, {pipeline_mode = #tpu.pipeline_mode<synchronous>, transform_indices = @transform_14, window_bounds = array<i64: 3, 64, 32>}, {pipeline_mode = #tpu.pipeline_mode<synchronous>, transform_indices = @transform_15, window_bounds = array<i64: 1, 32>}, {pipeline_mode = #tpu.pipeline_mode<synchronous>, transform_indices = @transform_16, window_bounds = array<i64: 3, 44, 20>}, {pipeline_mode = #tpu.pipeline_mode<synchronous>, transform_indices = @transform_17, window_bounds = array<i64: 3, 32, 16>}, {pipeline_mode = #tpu.pipeline_mode<synchronous>, transform_indices = @transform_18, window_bounds = array<i64: 1, 16>}, {pipeline_mode = #tpu.pipeline_mode<synchronous>, transform_indices = @transform_19, window_bounds = array<i64: 3, 92, 44>}, {pipeline_mode = #tpu.pipeline_mode<synchronous>, transform_indices = @transform_20, window_bounds = array<i64: 3, 16, 8>}, {pipeline_mode = #tpu.pipeline_mode<synchronous>, transform_indices = @transform_21, window_bounds = array<i64: 1, 8>}, {pipeline_mode = #tpu.pipeline_mode<synchronous>, transform_indices = @transform_22, window_bounds = array<i64: 2, 184, 92>}, {pipeline_mode = #tpu.pipeline_mode<synchronous>, transform_indices = @transform_23, window_bounds = array<i64: 2, 8, 8>}, {pipeline_mode = #tpu.pipeline_mode<synchronous>, transform_indices = @transform_24, window_bounds = array<i64: 1, 8>}, {pipeline_mode = #tpu.pipeline_mode<synchronous>, transform_indices = @transform_25, window_bounds = array<i64: 2, 180, 184>}, {pipeline_mode = #tpu.pipeline_mode<synchronous>, transform_indices = @transform_26, window_bounds = array<i64: 2, 8, 1>}, {pipeline_mode = #tpu.pipeline_mode<synchronous>, transform_indices = @transform_27, window_bounds = array<i64: 1, 1>}, {pipeline_mode = #tpu.pipeline_mode<synchronous>, transform_indices = @transform_28, window_bounds = array<i64: 4, 180>}, {pipeline_mode = #tpu.pipeline_mode<synchronous>, transform_indices = @transform_29, window_bounds = array<i64: 180, 40>}, {pipeline_mode = #tpu.pipeline_mode<synchronous>, transform_indices = @transform_30, window_bounds = array<i64: 4, 40>}]} {
    %c0 = arith.constant 0 : index
    %c0_0 = arith.constant 0 : index
    %0 = vector.load %arg1[%c0, %c0_0] : memref<160x1xf32, #tpu.memory_space<vmem>>, vector<160x1xf32>
    %c0_1 = arith.constant 0 : index
    %c0_2 = arith.constant 0 : index
    %c0_3 = arith.constant 0 : index
    %1 = vector.load %arg3[%c0_1, %c0_2, %c0_3] : memref<2x1x8xf32, #tpu.memory_space<vmem>>, vector<1x1x8xf32>
    %2 = vector.shape_cast %1 : vector<1x1x8xf32> to vector<1x8xf32>
    %3 = vector.broadcast %0 : vector<160x1xf32> to vector<160x8xf32>
    %4 = vector.broadcast %2 : vector<1x8xf32> to vector<160x8xf32>
    %5 = arith.mulf %3, %4 : vector<160x8xf32>
    %c0_4 = arith.constant 0 : index
    %c0_5 = arith.constant 0 : index
    %c0_6 = arith.constant 0 : index
    %6 = vector.load %arg2[%c0_4, %c0_5, %c0_6] : memref<2x80x160xf32, #tpu.memory_space<vmem>>, vector<1x80x160xf32>
    %7 = vector.shape_cast %6 : vector<1x80x160xf32> to vector<80x160xf32>
    %cst = arith.constant dense<0.000000e+00> : vector<80x8xf32>
    %8 = tpu.matmul %7, %5, %cst {dimension_numbers = #tpu.dot_dimension_numbers<[1], [0], [0], [1], [0, 0, 1, 1], [], []>} : vector<80x160xf32>, vector<160x8xf32>, vector<80x8xf32> -> vector<80x8xf32>
    %c1 = arith.constant 1 : index
    %c0_7 = arith.constant 0 : index
    %c0_8 = arith.constant 0 : index
    %9 = vector.load %arg3[%c1, %c0_7, %c0_8] : memref<2x1x8xf32, #tpu.memory_space<vmem>>, vector<1x1x8xf32>
    %10 = vector.shape_cast %9 : vector<1x1x8xf32> to vector<1x8xf32>
    %11 = vector.broadcast %0 : vector<160x1xf32> to vector<160x8xf32>
    %12 = vector.broadcast %10 : vector<1x8xf32> to vector<160x8xf32>
    %13 = arith.mulf %11, %12 : vector<160x8xf32>
    %c1_9 = arith.constant 1 : index
    %c0_10 = arith.constant 0 : index
    %c0_11 = arith.constant 0 : index
    %14 = vector.load %arg2[%c1_9, %c0_10, %c0_11] : memref<2x80x160xf32, #tpu.memory_space<vmem>>, vector<1x80x160xf32>
    %15 = vector.shape_cast %14 : vector<1x80x160xf32> to vector<80x160xf32>
    %cst_12 = arith.constant dense<0.000000e+00> : vector<80x8xf32>
    %16 = tpu.matmul %15, %13, %cst_12 {dimension_numbers = #tpu.dot_dimension_numbers<[1], [0], [0], [1], [0, 0, 1, 1], [], []>} : vector<80x160xf32>, vector<160x8xf32>, vector<80x8xf32> -> vector<80x8xf32>
    %17 = arith.addf %8, %16 : vector<80x8xf32>
    %c0_13 = arith.constant 0 : index
    %c0_14 = arith.constant 0 : index
    %18 = vector.load %arg4[%c0_13, %c0_14] : memref<1x8xf32, #tpu.memory_space<vmem>>, vector<1x8xf32>
    %19 = vector.broadcast %18 : vector<1x8xf32> to vector<80x8xf32>
    %20 = arith.addf %17, %19 : vector<80x8xf32>
    %cst_15 = arith.constant dense<0.000000e+00> : vector<8xf32>
    %21 = vector.multi_reduction <add>, %20, %cst_15 [0] : vector<80x8xf32> to vector<8xf32>
    %22 = vector.shape_cast %21 : vector<8xf32> to vector<1x8xf32>
    %cst_16 = arith.constant 8.000000e+01 : f32
    %23 = vector.broadcast %cst_16 : f32 to vector<1x8xf32>
    %24 = arith.divf %22, %23 : vector<1x8xf32>
    %25 = vector.broadcast %24 : vector<1x8xf32> to vector<80x8xf32>
    %26 = arith.subf %20, %25 : vector<80x8xf32>
    %27 = arith.mulf %26, %26 : vector<80x8xf32>
    %cst_17 = arith.constant dense<0.000000e+00> : vector<8xf32>
    %28 = vector.multi_reduction <add>, %27, %cst_17 [0] : vector<80x8xf32> to vector<8xf32>
    %29 = vector.shape_cast %28 : vector<8xf32> to vector<1x8xf32>
    %cst_18 = arith.constant 8.000000e+01 : f32
    %30 = vector.broadcast %cst_18 : f32 to vector<1x8xf32>
    %31 = arith.divf %29, %30 : vector<1x8xf32>
    %32 = vector.broadcast %24 : vector<1x8xf32> to vector<80x8xf32>
    %33 = arith.subf %20, %32 : vector<80x8xf32>
    %cst_19 = arith.constant 9.99999974E-6 : f32
    %34 = vector.broadcast %cst_19 : f32 to vector<1x8xf32>
    %35 = arith.addf %31, %34 : vector<1x8xf32>
    %36 = math.rsqrt %35 : vector<1x8xf32>
    %37 = vector.broadcast %36 : vector<1x8xf32> to vector<80x8xf32>
    %38 = arith.mulf %33, %37 : vector<80x8xf32>
    %cst_20 = arith.constant 0.000000e+00 : f32
    %39 = vector.broadcast %cst_20 : f32 to vector<80x8xf32>
    %40 = arith.maximumf %38, %39 : vector<80x8xf32>
    %c0_21 = arith.constant 0 : index
    %c0_22 = arith.constant 0 : index
    %c0_23 = arith.constant 0 : index
    %41 = vector.load %arg6[%c0_21, %c0_22, %c0_23] : memref<2x8x16xf32, #tpu.memory_space<vmem>>, vector<1x8x16xf32>
    %42 = vector.shape_cast %41 : vector<1x8x16xf32> to vector<8x16xf32>
    %cst_24 = arith.constant dense<0.000000e+00> : vector<80x16xf32>
    %43 = tpu.matmul %40, %42, %cst_24 {dimension_numbers = #tpu.dot_dimension_numbers<[1], [0], [0], [1], [0, 0, 1, 1], [], []>} : vector<80x8xf32>, vector<8x16xf32>, vector<80x16xf32> -> vector<80x16xf32>
    %c0_25 = arith.constant 0 : index
    %c0_26 = arith.constant 0 : index
    %c0_27 = arith.constant 0 : index
    %44 = vector.load %arg5[%c0_25, %c0_26, %c0_27] : memref<2x40x80xf32, #tpu.memory_space<vmem>>, vector<1x40x80xf32>
    %45 = vector.shape_cast %44 : vector<1x40x80xf32> to vector<40x80xf32>
    %cst_28 = arith.constant dense<0.000000e+00> : vector<40x16xf32>
    %46 = tpu.matmul %45, %43, %cst_28 {dimension_numbers = #tpu.dot_dimension_numbers<[1], [0], [0], [1], [0, 0, 1, 1], [], []>} : vector<40x80xf32>, vector<80x16xf32>, vector<40x16xf32> -> vector<40x16xf32>
    %c1_29 = arith.constant 1 : index
    %c0_30 = arith.constant 0 : index
    %c0_31 = arith.constant 0 : index
    %47 = vector.load %arg6[%c1_29, %c0_30, %c0_31] : memref<2x8x16xf32, #tpu.memory_space<vmem>>, vector<1x8x16xf32>
    %48 = vector.shape_cast %47 : vector<1x8x16xf32> to vector<8x16xf32>
    %cst_32 = arith.constant dense<0.000000e+00> : vector<80x16xf32>
    %49 = tpu.matmul %40, %48, %cst_32 {dimension_numbers = #tpu.dot_dimension_numbers<[1], [0], [0], [1], [0, 0, 1, 1], [], []>} : vector<80x8xf32>, vector<8x16xf32>, vector<80x16xf32> -> vector<80x16xf32>
    %c1_33 = arith.constant 1 : index
    %c0_34 = arith.constant 0 : index
    %c0_35 = arith.constant 0 : index
    %50 = vector.load %arg5[%c1_33, %c0_34, %c0_35] : memref<2x40x80xf32, #tpu.memory_space<vmem>>, vector<1x40x80xf32>
    %51 = vector.shape_cast %50 : vector<1x40x80xf32> to vector<40x80xf32>
    %cst_36 = arith.constant dense<0.000000e+00> : vector<40x16xf32>
    %52 = tpu.matmul %51, %49, %cst_36 {dimension_numbers = #tpu.dot_dimension_numbers<[1], [0], [0], [1], [0, 0, 1, 1], [], []>} : vector<40x80xf32>, vector<80x16xf32>, vector<40x16xf32> -> vector<40x16xf32>
    %53 = arith.addf %46, %52 : vector<40x16xf32>
    %c0_37 = arith.constant 0 : index
    %c0_38 = arith.constant 0 : index
    %54 = vector.load %arg7[%c0_37, %c0_38] : memref<1x16xf32, #tpu.memory_space<vmem>>, vector<1x16xf32>
    %55 = vector.broadcast %54 : vector<1x16xf32> to vector<40x16xf32>
    %56 = arith.addf %53, %55 : vector<40x16xf32>
    %cst_39 = arith.constant dense<0.000000e+00> : vector<16xf32>
    %57 = vector.multi_reduction <add>, %56, %cst_39 [0] : vector<40x16xf32> to vector<16xf32>
    %58 = vector.shape_cast %57 : vector<16xf32> to vector<1x16xf32>
    %cst_40 = arith.constant 4.000000e+01 : f32
    %59 = vector.broadcast %cst_40 : f32 to vector<1x16xf32>
    %60 = arith.divf %58, %59 : vector<1x16xf32>
    %61 = vector.broadcast %60 : vector<1x16xf32> to vector<40x16xf32>
    %62 = arith.subf %56, %61 : vector<40x16xf32>
    %63 = arith.mulf %62, %62 : vector<40x16xf32>
    %cst_41 = arith.constant dense<0.000000e+00> : vector<16xf32>
    %64 = vector.multi_reduction <add>, %63, %cst_41 [0] : vector<40x16xf32> to vector<16xf32>
    %65 = vector.shape_cast %64 : vector<16xf32> to vector<1x16xf32>
    %cst_42 = arith.constant 4.000000e+01 : f32
    %66 = vector.broadcast %cst_42 : f32 to vector<1x16xf32>
    %67 = arith.divf %65, %66 : vector<1x16xf32>
    %68 = vector.broadcast %60 : vector<1x16xf32> to vector<40x16xf32>
    %69 = arith.subf %56, %68 : vector<40x16xf32>
    %cst_43 = arith.constant 9.99999974E-6 : f32
    %70 = vector.broadcast %cst_43 : f32 to vector<1x16xf32>
    %71 = arith.addf %67, %70 : vector<1x16xf32>
    %72 = math.rsqrt %71 : vector<1x16xf32>
    %73 = vector.broadcast %72 : vector<1x16xf32> to vector<40x16xf32>
    %74 = arith.mulf %69, %73 : vector<40x16xf32>
    %cst_44 = arith.constant 0.000000e+00 : f32
    %75 = vector.broadcast %cst_44 : f32 to vector<40x16xf32>
    %76 = arith.maximumf %74, %75 : vector<40x16xf32>
    %c0_45 = arith.constant 0 : index
    %c0_46 = arith.constant 0 : index
    %c0_47 = arith.constant 0 : index
    %77 = vector.load %arg9[%c0_45, %c0_46, %c0_47] : memref<2x16x32xf32, #tpu.memory_space<vmem>>, vector<1x16x32xf32>
    %78 = vector.shape_cast %77 : vector<1x16x32xf32> to vector<16x32xf32>
    %cst_48 = arith.constant dense<0.000000e+00> : vector<40x32xf32>
    %79 = tpu.matmul %76, %78, %cst_48 {dimension_numbers = #tpu.dot_dimension_numbers<[1], [0], [0], [1], [0, 0, 1, 1], [], []>} : vector<40x16xf32>, vector<16x32xf32>, vector<40x32xf32> -> vector<40x32xf32>
    %c0_49 = arith.constant 0 : index
    %c0_50 = arith.constant 0 : index
    %c0_51 = arith.constant 0 : index
    %80 = vector.load %arg8[%c0_49, %c0_50, %c0_51] : memref<2x20x40xf32, #tpu.memory_space<vmem>>, vector<1x20x40xf32>
    %81 = vector.shape_cast %80 : vector<1x20x40xf32> to vector<20x40xf32>
    %cst_52 = arith.constant dense<0.000000e+00> : vector<20x32xf32>
    %82 = tpu.matmul %81, %79, %cst_52 {dimension_numbers = #tpu.dot_dimension_numbers<[1], [0], [0], [1], [0, 0, 1, 1], [], []>} : vector<20x40xf32>, vector<40x32xf32>, vector<20x32xf32> -> vector<20x32xf32>
    %c1_53 = arith.constant 1 : index
    %c0_54 = arith.constant 0 : index
    %c0_55 = arith.constant 0 : index
    %83 = vector.load %arg9[%c1_53, %c0_54, %c0_55] : memref<2x16x32xf32, #tpu.memory_space<vmem>>, vector<1x16x32xf32>
    %84 = vector.shape_cast %83 : vector<1x16x32xf32> to vector<16x32xf32>
    %cst_56 = arith.constant dense<0.000000e+00> : vector<40x32xf32>
    %85 = tpu.matmul %76, %84, %cst_56 {dimension_numbers = #tpu.dot_dimension_numbers<[1], [0], [0], [1], [0, 0, 1, 1], [], []>} : vector<40x16xf32>, vector<16x32xf32>, vector<40x32xf32> -> vector<40x32xf32>
    %c1_57 = arith.constant 1 : index
    %c0_58 = arith.constant 0 : index
    %c0_59 = arith.constant 0 : index
    %86 = vector.load %arg8[%c1_57, %c0_58, %c0_59] : memref<2x20x40xf32, #tpu.memory_space<vmem>>, vector<1x20x40xf32>
    %87 = vector.shape_cast %86 : vector<1x20x40xf32> to vector<20x40xf32>
    %cst_60 = arith.constant dense<0.000000e+00> : vector<20x32xf32>
    %88 = tpu.matmul %87, %85, %cst_60 {dimension_numbers = #tpu.dot_dimension_numbers<[1], [0], [0], [1], [0, 0, 1, 1], [], []>} : vector<20x40xf32>, vector<40x32xf32>, vector<20x32xf32> -> vector<20x32xf32>
    %89 = arith.addf %82, %88 : vector<20x32xf32>
    %c0_61 = arith.constant 0 : index
    %c0_62 = arith.constant 0 : index
    %90 = vector.load %arg10[%c0_61, %c0_62] : memref<1x32xf32, #tpu.memory_space<vmem>>, vector<1x32xf32>
    %91 = vector.broadcast %90 : vector<1x32xf32> to vector<20x32xf32>
    %92 = arith.addf %89, %91 : vector<20x32xf32>
    %cst_63 = arith.constant dense<0.000000e+00> : vector<32xf32>
    %93 = vector.multi_reduction <add>, %92, %cst_63 [0] : vector<20x32xf32> to vector<32xf32>
    %94 = vector.shape_cast %93 : vector<32xf32> to vector<1x32xf32>
    %cst_64 = arith.constant 2.000000e+01 : f32
    %95 = vector.broadcast %cst_64 : f32 to vector<1x32xf32>
    %96 = arith.divf %94, %95 : vector<1x32xf32>
    %97 = vector.broadcast %96 : vector<1x32xf32> to vector<20x32xf32>
    %98 = arith.subf %92, %97 : vector<20x32xf32>
    %99 = arith.mulf %98, %98 : vector<20x32xf32>
    %cst_65 = arith.constant dense<0.000000e+00> : vector<32xf32>
    %100 = vector.multi_reduction <add>, %99, %cst_65 [0] : vector<20x32xf32> to vector<32xf32>
    %101 = vector.shape_cast %100 : vector<32xf32> to vector<1x32xf32>
    %cst_66 = arith.constant 2.000000e+01 : f32
    %102 = vector.broadcast %cst_66 : f32 to vector<1x32xf32>
    %103 = arith.divf %101, %102 : vector<1x32xf32>
    %104 = vector.broadcast %96 : vector<1x32xf32> to vector<20x32xf32>
    %105 = arith.subf %92, %104 : vector<20x32xf32>
    %cst_67 = arith.constant 9.99999974E-6 : f32
    %106 = vector.broadcast %cst_67 : f32 to vector<1x32xf32>
    %107 = arith.addf %103, %106 : vector<1x32xf32>
    %108 = math.rsqrt %107 : vector<1x32xf32>
    %109 = vector.broadcast %108 : vector<1x32xf32> to vector<20x32xf32>
    %110 = arith.mulf %105, %109 : vector<20x32xf32>
    %cst_68 = arith.constant 0.000000e+00 : f32
    %111 = vector.broadcast %cst_68 : f32 to vector<20x32xf32>
    %112 = arith.maximumf %110, %111 : vector<20x32xf32>
    %c0_69 = arith.constant 0 : index
    %c0_70 = arith.constant 0 : index
    %c0_71 = arith.constant 0 : index
    %113 = vector.load %arg12[%c0_69, %c0_70, %c0_71] : memref<2x32x64xf32, #tpu.memory_space<vmem>>, vector<1x32x64xf32>
    %114 = vector.shape_cast %113 : vector<1x32x64xf32> to vector<32x64xf32>
    %cst_72 = arith.constant dense<0.000000e+00> : vector<20x64xf32>
    %115 = tpu.matmul %112, %114, %cst_72 {dimension_numbers = #tpu.dot_dimension_numbers<[1], [0], [0], [1], [0, 0, 1, 1], [], []>} : vector<20x32xf32>, vector<32x64xf32>, vector<20x64xf32> -> vector<20x64xf32>
    %c0_73 = arith.constant 0 : index
    %c0_74 = arith.constant 0 : index
    %c0_75 = arith.constant 0 : index
    %116 = vector.load %arg11[%c0_73, %c0_74, %c0_75] : memref<2x8x20xf32, #tpu.memory_space<vmem>>, vector<1x8x20xf32>
    %117 = vector.shape_cast %116 : vector<1x8x20xf32> to vector<8x20xf32>
    %cst_76 = arith.constant dense<0.000000e+00> : vector<8x64xf32>
    %118 = tpu.matmul %117, %115, %cst_76 {dimension_numbers = #tpu.dot_dimension_numbers<[1], [0], [0], [1], [0, 0, 1, 1], [], []>} : vector<8x20xf32>, vector<20x64xf32>, vector<8x64xf32> -> vector<8x64xf32>
    %c1_77 = arith.constant 1 : index
    %c0_78 = arith.constant 0 : index
    %c0_79 = arith.constant 0 : index
    %119 = vector.load %arg12[%c1_77, %c0_78, %c0_79] : memref<2x32x64xf32, #tpu.memory_space<vmem>>, vector<1x32x64xf32>
    %120 = vector.shape_cast %119 : vector<1x32x64xf32> to vector<32x64xf32>
    %cst_80 = arith.constant dense<0.000000e+00> : vector<20x64xf32>
    %121 = tpu.matmul %112, %120, %cst_80 {dimension_numbers = #tpu.dot_dimension_numbers<[1], [0], [0], [1], [0, 0, 1, 1], [], []>} : vector<20x32xf32>, vector<32x64xf32>, vector<20x64xf32> -> vector<20x64xf32>
    %c1_81 = arith.constant 1 : index
    %c0_82 = arith.constant 0 : index
    %c0_83 = arith.constant 0 : index
    %122 = vector.load %arg11[%c1_81, %c0_82, %c0_83] : memref<2x8x20xf32, #tpu.memory_space<vmem>>, vector<1x8x20xf32>
    %123 = vector.shape_cast %122 : vector<1x8x20xf32> to vector<8x20xf32>
    %cst_84 = arith.constant dense<0.000000e+00> : vector<8x64xf32>
    %124 = tpu.matmul %123, %121, %cst_84 {dimension_numbers = #tpu.dot_dimension_numbers<[1], [0], [0], [1], [0, 0, 1, 1], [], []>} : vector<8x20xf32>, vector<20x64xf32>, vector<8x64xf32> -> vector<8x64xf32>
    %125 = arith.addf %118, %124 : vector<8x64xf32>
    %c0_85 = arith.constant 0 : index
    %c0_86 = arith.constant 0 : index
    %126 = vector.load %arg13[%c0_85, %c0_86] : memref<1x64xf32, #tpu.memory_space<vmem>>, vector<1x64xf32>
    %127 = vector.broadcast %126 : vector<1x64xf32> to vector<8x64xf32>
    %128 = arith.addf %125, %127 : vector<8x64xf32>
    %cst_87 = arith.constant dense<0.000000e+00> : vector<64xf32>
    %129 = vector.multi_reduction <add>, %128, %cst_87 [0] : vector<8x64xf32> to vector<64xf32>
    %130 = vector.shape_cast %129 : vector<64xf32> to vector<1x64xf32>
    %cst_88 = arith.constant 8.000000e+00 : f32
    %131 = vector.broadcast %cst_88 : f32 to vector<1x64xf32>
    %132 = arith.divf %130, %131 : vector<1x64xf32>
    %133 = vector.broadcast %132 : vector<1x64xf32> to vector<8x64xf32>
    %134 = arith.subf %128, %133 : vector<8x64xf32>
    %135 = arith.mulf %134, %134 : vector<8x64xf32>
    %cst_89 = arith.constant dense<0.000000e+00> : vector<64xf32>
    %136 = vector.multi_reduction <add>, %135, %cst_89 [0] : vector<8x64xf32> to vector<64xf32>
    %137 = vector.shape_cast %136 : vector<64xf32> to vector<1x64xf32>
    %cst_90 = arith.constant 8.000000e+00 : f32
    %138 = vector.broadcast %cst_90 : f32 to vector<1x64xf32>
    %139 = arith.divf %137, %138 : vector<1x64xf32>
    %140 = vector.broadcast %132 : vector<1x64xf32> to vector<8x64xf32>
    %141 = arith.subf %128, %140 : vector<8x64xf32>
    %cst_91 = arith.constant 9.99999974E-6 : f32
    %142 = vector.broadcast %cst_91 : f32 to vector<1x64xf32>
    %143 = arith.addf %139, %142 : vector<1x64xf32>
    %144 = math.rsqrt %143 : vector<1x64xf32>
    %145 = vector.broadcast %144 : vector<1x64xf32> to vector<8x64xf32>
    %146 = arith.mulf %141, %145 : vector<8x64xf32>
    %cst_92 = arith.constant 0.000000e+00 : f32
    %147 = vector.broadcast %cst_92 : f32 to vector<8x64xf32>
    %148 = arith.maximumf %146, %147 : vector<8x64xf32>
    %c0_93 = arith.constant 0 : index
    %c0_94 = arith.constant 0 : index
    %c0_95 = arith.constant 0 : index
    %149 = vector.load %arg15[%c0_93, %c0_94, %c0_95] : memref<3x64x32xf32, #tpu.memory_space<vmem>>, vector<1x64x32xf32>
    %150 = vector.shape_cast %149 : vector<1x64x32xf32> to vector<64x32xf32>
    %cst_96 = arith.constant dense<0.000000e+00> : vector<8x32xf32>
    %151 = tpu.matmul %148, %150, %cst_96 {dimension_numbers = #tpu.dot_dimension_numbers<[1], [0], [0], [1], [0, 0, 1, 1], [], []>} : vector<8x64xf32>, vector<64x32xf32>, vector<8x32xf32> -> vector<8x32xf32>
    %c0_97 = arith.constant 0 : index
    %c0_98 = arith.constant 0 : index
    %c0_99 = arith.constant 0 : index
    %152 = vector.load %arg14[%c0_97, %c0_98, %c0_99] : memref<3x20x8xf32, #tpu.memory_space<vmem>>, vector<1x20x8xf32>
    %153 = vector.shape_cast %152 : vector<1x20x8xf32> to vector<20x8xf32>
    %cst_100 = arith.constant dense<0.000000e+00> : vector<20x32xf32>
    %154 = tpu.matmul %153, %151, %cst_100 {dimension_numbers = #tpu.dot_dimension_numbers<[1], [0], [0], [1], [0, 0, 1, 1], [], []>} : vector<20x8xf32>, vector<8x32xf32>, vector<20x32xf32> -> vector<20x32xf32>
    %c1_101 = arith.constant 1 : index
    %c0_102 = arith.constant 0 : index
    %c0_103 = arith.constant 0 : index
    %155 = vector.load %arg15[%c1_101, %c0_102, %c0_103] : memref<3x64x32xf32, #tpu.memory_space<vmem>>, vector<1x64x32xf32>
    %156 = vector.shape_cast %155 : vector<1x64x32xf32> to vector<64x32xf32>
    %cst_104 = arith.constant dense<0.000000e+00> : vector<8x32xf32>
    %157 = tpu.matmul %148, %156, %cst_104 {dimension_numbers = #tpu.dot_dimension_numbers<[1], [0], [0], [1], [0, 0, 1, 1], [], []>} : vector<8x64xf32>, vector<64x32xf32>, vector<8x32xf32> -> vector<8x32xf32>
    %c1_105 = arith.constant 1 : index
    %c0_106 = arith.constant 0 : index
    %c0_107 = arith.constant 0 : index
    %158 = vector.load %arg14[%c1_105, %c0_106, %c0_107] : memref<3x20x8xf32, #tpu.memory_space<vmem>>, vector<1x20x8xf32>
    %159 = vector.shape_cast %158 : vector<1x20x8xf32> to vector<20x8xf32>
    %cst_108 = arith.constant dense<0.000000e+00> : vector<20x32xf32>
    %160 = tpu.matmul %159, %157, %cst_108 {dimension_numbers = #tpu.dot_dimension_numbers<[1], [0], [0], [1], [0, 0, 1, 1], [], []>} : vector<20x8xf32>, vector<8x32xf32>, vector<20x32xf32> -> vector<20x32xf32>
    %161 = arith.addf %154, %160 : vector<20x32xf32>
    %c2 = arith.constant 2 : index
    %c0_109 = arith.constant 0 : index
    %c0_110 = arith.constant 0 : index
    %162 = vector.load %arg15[%c2, %c0_109, %c0_110] : memref<3x64x32xf32, #tpu.memory_space<vmem>>, vector<1x64x32xf32>
    %163 = vector.shape_cast %162 : vector<1x64x32xf32> to vector<64x32xf32>
    %cst_111 = arith.constant dense<0.000000e+00> : vector<8x32xf32>
    %164 = tpu.matmul %148, %163, %cst_111 {dimension_numbers = #tpu.dot_dimension_numbers<[1], [0], [0], [1], [0, 0, 1, 1], [], []>} : vector<8x64xf32>, vector<64x32xf32>, vector<8x32xf32> -> vector<8x32xf32>
    %c2_112 = arith.constant 2 : index
    %c0_113 = arith.constant 0 : index
    %c0_114 = arith.constant 0 : index
    %165 = vector.load %arg14[%c2_112, %c0_113, %c0_114] : memref<3x20x8xf32, #tpu.memory_space<vmem>>, vector<1x20x8xf32>
    %166 = vector.shape_cast %165 : vector<1x20x8xf32> to vector<20x8xf32>
    %cst_115 = arith.constant dense<0.000000e+00> : vector<20x32xf32>
    %167 = tpu.matmul %166, %164, %cst_115 {dimension_numbers = #tpu.dot_dimension_numbers<[1], [0], [0], [1], [0, 0, 1, 1], [], []>} : vector<20x8xf32>, vector<8x32xf32>, vector<20x32xf32> -> vector<20x32xf32>
    %168 = arith.addf %161, %167 : vector<20x32xf32>
    %c0_116 = arith.constant 0 : index
    %c0_117 = arith.constant 0 : index
    %169 = vector.load %arg16[%c0_116, %c0_117] : memref<1x32xf32, #tpu.memory_space<vmem>>, vector<1x32xf32>
    %170 = vector.broadcast %169 : vector<1x32xf32> to vector<20x32xf32>
    %171 = arith.addf %168, %170 : vector<20x32xf32>
    %cst_118 = arith.constant dense<0.000000e+00> : vector<32xf32>
    %172 = vector.multi_reduction <add>, %171, %cst_118 [0] : vector<20x32xf32> to vector<32xf32>
    %173 = vector.shape_cast %172 : vector<32xf32> to vector<1x32xf32>
    %cst_119 = arith.constant 2.000000e+01 : f32
    %174 = vector.broadcast %cst_119 : f32 to vector<1x32xf32>
    %175 = arith.divf %173, %174 : vector<1x32xf32>
    %176 = vector.broadcast %175 : vector<1x32xf32> to vector<20x32xf32>
    %177 = arith.subf %171, %176 : vector<20x32xf32>
    %178 = arith.mulf %177, %177 : vector<20x32xf32>
    %cst_120 = arith.constant dense<0.000000e+00> : vector<32xf32>
    %179 = vector.multi_reduction <add>, %178, %cst_120 [0] : vector<20x32xf32> to vector<32xf32>
    %180 = vector.shape_cast %179 : vector<32xf32> to vector<1x32xf32>
    %cst_121 = arith.constant 2.000000e+01 : f32
    %181 = vector.broadcast %cst_121 : f32 to vector<1x32xf32>
    %182 = arith.divf %180, %181 : vector<1x32xf32>
    %183 = vector.broadcast %175 : vector<1x32xf32> to vector<20x32xf32>
    %184 = arith.subf %171, %183 : vector<20x32xf32>
    %cst_122 = arith.constant 9.99999974E-6 : f32
    %185 = vector.broadcast %cst_122 : f32 to vector<1x32xf32>
    %186 = arith.addf %182, %185 : vector<1x32xf32>
    %187 = math.rsqrt %186 : vector<1x32xf32>
    %188 = vector.broadcast %187 : vector<1x32xf32> to vector<20x32xf32>
    %189 = arith.mulf %184, %188 : vector<20x32xf32>
    %cst_123 = arith.constant 0.000000e+00 : f32
    %190 = vector.broadcast %cst_123 : f32 to vector<20x32xf32>
    %191 = arith.maximumf %189, %190 : vector<20x32xf32>
    %c0_124 = arith.constant 0 : index
    %c0_125 = arith.constant 0 : index
    %c0_126 = arith.constant 0 : index
    %192 = vector.load %arg18[%c0_124, %c0_125, %c0_126] : memref<3x32x16xf32, #tpu.memory_space<vmem>>, vector<1x32x16xf32>
    %193 = vector.shape_cast %192 : vector<1x32x16xf32> to vector<32x16xf32>
    %cst_127 = arith.constant dense<0.000000e+00> : vector<20x16xf32>
    %194 = tpu.matmul %191, %193, %cst_127 {dimension_numbers = #tpu.dot_dimension_numbers<[1], [0], [0], [1], [0, 0, 1, 1], [], []>} : vector<20x32xf32>, vector<32x16xf32>, vector<20x16xf32> -> vector<20x16xf32>
    %c0_128 = arith.constant 0 : index
    %c0_129 = arith.constant 0 : index
    %c0_130 = arith.constant 0 : index
    %195 = vector.load %arg17[%c0_128, %c0_129, %c0_130] : memref<3x44x20xf32, #tpu.memory_space<vmem>>, vector<1x44x20xf32>
    %196 = vector.shape_cast %195 : vector<1x44x20xf32> to vector<44x20xf32>
    %cst_131 = arith.constant dense<0.000000e+00> : vector<44x16xf32>
    %197 = tpu.matmul %196, %194, %cst_131 {dimension_numbers = #tpu.dot_dimension_numbers<[1], [0], [0], [1], [0, 0, 1, 1], [], []>} : vector<44x20xf32>, vector<20x16xf32>, vector<44x16xf32> -> vector<44x16xf32>
    %c1_132 = arith.constant 1 : index
    %c0_133 = arith.constant 0 : index
    %c0_134 = arith.constant 0 : index
    %198 = vector.load %arg18[%c1_132, %c0_133, %c0_134] : memref<3x32x16xf32, #tpu.memory_space<vmem>>, vector<1x32x16xf32>
    %199 = vector.shape_cast %198 : vector<1x32x16xf32> to vector<32x16xf32>
    %cst_135 = arith.constant dense<0.000000e+00> : vector<20x16xf32>
    %200 = tpu.matmul %191, %199, %cst_135 {dimension_numbers = #tpu.dot_dimension_numbers<[1], [0], [0], [1], [0, 0, 1, 1], [], []>} : vector<20x32xf32>, vector<32x16xf32>, vector<20x16xf32> -> vector<20x16xf32>
    %c1_136 = arith.constant 1 : index
    %c0_137 = arith.constant 0 : index
    %c0_138 = arith.constant 0 : index
    %201 = vector.load %arg17[%c1_136, %c0_137, %c0_138] : memref<3x44x20xf32, #tpu.memory_space<vmem>>, vector<1x44x20xf32>
    %202 = vector.shape_cast %201 : vector<1x44x20xf32> to vector<44x20xf32>
    %cst_139 = arith.constant dense<0.000000e+00> : vector<44x16xf32>
    %203 = tpu.matmul %202, %200, %cst_139 {dimension_numbers = #tpu.dot_dimension_numbers<[1], [0], [0], [1], [0, 0, 1, 1], [], []>} : vector<44x20xf32>, vector<20x16xf32>, vector<44x16xf32> -> vector<44x16xf32>
    %204 = arith.addf %197, %203 : vector<44x16xf32>
    %c2_140 = arith.constant 2 : index
    %c0_141 = arith.constant 0 : index
    %c0_142 = arith.constant 0 : index
    %205 = vector.load %arg18[%c2_140, %c0_141, %c0_142] : memref<3x32x16xf32, #tpu.memory_space<vmem>>, vector<1x32x16xf32>
    %206 = vector.shape_cast %205 : vector<1x32x16xf32> to vector<32x16xf32>
    %cst_143 = arith.constant dense<0.000000e+00> : vector<20x16xf32>
    %207 = tpu.matmul %191, %206, %cst_143 {dimension_numbers = #tpu.dot_dimension_numbers<[1], [0], [0], [1], [0, 0, 1, 1], [], []>} : vector<20x32xf32>, vector<32x16xf32>, vector<20x16xf32> -> vector<20x16xf32>
    %c2_144 = arith.constant 2 : index
    %c0_145 = arith.constant 0 : index
    %c0_146 = arith.constant 0 : index
    %208 = vector.load %arg17[%c2_144, %c0_145, %c0_146] : memref<3x44x20xf32, #tpu.memory_space<vmem>>, vector<1x44x20xf32>
    %209 = vector.shape_cast %208 : vector<1x44x20xf32> to vector<44x20xf32>
    %cst_147 = arith.constant dense<0.000000e+00> : vector<44x16xf32>
    %210 = tpu.matmul %209, %207, %cst_147 {dimension_numbers = #tpu.dot_dimension_numbers<[1], [0], [0], [1], [0, 0, 1, 1], [], []>} : vector<44x20xf32>, vector<20x16xf32>, vector<44x16xf32> -> vector<44x16xf32>
    %211 = arith.addf %204, %210 : vector<44x16xf32>
    %c0_148 = arith.constant 0 : index
    %c0_149 = arith.constant 0 : index
    %212 = vector.load %arg19[%c0_148, %c0_149] : memref<1x16xf32, #tpu.memory_space<vmem>>, vector<1x16xf32>
    %213 = vector.broadcast %212 : vector<1x16xf32> to vector<44x16xf32>
    %214 = arith.addf %211, %213 : vector<44x16xf32>
    %cst_150 = arith.constant dense<0.000000e+00> : vector<16xf32>
    %215 = vector.multi_reduction <add>, %214, %cst_150 [0] : vector<44x16xf32> to vector<16xf32>
    %216 = vector.shape_cast %215 : vector<16xf32> to vector<1x16xf32>
    %cst_151 = arith.constant 4.400000e+01 : f32
    %217 = vector.broadcast %cst_151 : f32 to vector<1x16xf32>
    %218 = arith.divf %216, %217 : vector<1x16xf32>
    %219 = vector.broadcast %218 : vector<1x16xf32> to vector<44x16xf32>
    %220 = arith.subf %214, %219 : vector<44x16xf32>
    %221 = arith.mulf %220, %220 : vector<44x16xf32>
    %cst_152 = arith.constant dense<0.000000e+00> : vector<16xf32>
    %222 = vector.multi_reduction <add>, %221, %cst_152 [0] : vector<44x16xf32> to vector<16xf32>
    %223 = vector.shape_cast %222 : vector<16xf32> to vector<1x16xf32>
    %cst_153 = arith.constant 4.400000e+01 : f32
    %224 = vector.broadcast %cst_153 : f32 to vector<1x16xf32>
    %225 = arith.divf %223, %224 : vector<1x16xf32>
    %226 = vector.broadcast %218 : vector<1x16xf32> to vector<44x16xf32>
    %227 = arith.subf %214, %226 : vector<44x16xf32>
    %cst_154 = arith.constant 9.99999974E-6 : f32
    %228 = vector.broadcast %cst_154 : f32 to vector<1x16xf32>
    %229 = arith.addf %225, %228 : vector<1x16xf32>
    %230 = math.rsqrt %229 : vector<1x16xf32>
    %231 = vector.broadcast %230 : vector<1x16xf32> to vector<44x16xf32>
    %232 = arith.mulf %227, %231 : vector<44x16xf32>
    %cst_155 = arith.constant 0.000000e+00 : f32
    %233 = vector.broadcast %cst_155 : f32 to vector<44x16xf32>
    %234 = arith.maximumf %232, %233 : vector<44x16xf32>
    %c0_156 = arith.constant 0 : index
    %c0_157 = arith.constant 0 : index
    %c0_158 = arith.constant 0 : index
    %235 = vector.load %arg21[%c0_156, %c0_157, %c0_158] : memref<3x16x8xf32, #tpu.memory_space<vmem>>, vector<1x16x8xf32>
    %236 = vector.shape_cast %235 : vector<1x16x8xf32> to vector<16x8xf32>
    %cst_159 = arith.constant dense<0.000000e+00> : vector<44x8xf32>
    %237 = tpu.matmul %234, %236, %cst_159 {dimension_numbers = #tpu.dot_dimension_numbers<[1], [0], [0], [1], [0, 0, 1, 1], [], []>} : vector<44x16xf32>, vector<16x8xf32>, vector<44x8xf32> -> vector<44x8xf32>
    %c0_160 = arith.constant 0 : index
    %c0_161 = arith.constant 0 : index
    %c0_162 = arith.constant 0 : index
    %238 = vector.load %arg20[%c0_160, %c0_161, %c0_162] : memref<3x92x44xf32, #tpu.memory_space<vmem>>, vector<1x92x44xf32>
    %239 = vector.shape_cast %238 : vector<1x92x44xf32> to vector<92x44xf32>
    %cst_163 = arith.constant dense<0.000000e+00> : vector<92x8xf32>
    %240 = tpu.matmul %239, %237, %cst_163 {dimension_numbers = #tpu.dot_dimension_numbers<[1], [0], [0], [1], [0, 0, 1, 1], [], []>} : vector<92x44xf32>, vector<44x8xf32>, vector<92x8xf32> -> vector<92x8xf32>
    %c1_164 = arith.constant 1 : index
    %c0_165 = arith.constant 0 : index
    %c0_166 = arith.constant 0 : index
    %241 = vector.load %arg21[%c1_164, %c0_165, %c0_166] : memref<3x16x8xf32, #tpu.memory_space<vmem>>, vector<1x16x8xf32>
    %242 = vector.shape_cast %241 : vector<1x16x8xf32> to vector<16x8xf32>
    %cst_167 = arith.constant dense<0.000000e+00> : vector<44x8xf32>
    %243 = tpu.matmul %234, %242, %cst_167 {dimension_numbers = #tpu.dot_dimension_numbers<[1], [0], [0], [1], [0, 0, 1, 1], [], []>} : vector<44x16xf32>, vector<16x8xf32>, vector<44x8xf32> -> vector<44x8xf32>
    %c1_168 = arith.constant 1 : index
    %c0_169 = arith.constant 0 : index
    %c0_170 = arith.constant 0 : index
    %244 = vector.load %arg20[%c1_168, %c0_169, %c0_170] : memref<3x92x44xf32, #tpu.memory_space<vmem>>, vector<1x92x44xf32>
    %245 = vector.shape_cast %244 : vector<1x92x44xf32> to vector<92x44xf32>
    %cst_171 = arith.constant dense<0.000000e+00> : vector<92x8xf32>
    %246 = tpu.matmul %245, %243, %cst_171 {dimension_numbers = #tpu.dot_dimension_numbers<[1], [0], [0], [1], [0, 0, 1, 1], [], []>} : vector<92x44xf32>, vector<44x8xf32>, vector<92x8xf32> -> vector<92x8xf32>
    %247 = arith.addf %240, %246 : vector<92x8xf32>
    %c2_172 = arith.constant 2 : index
    %c0_173 = arith.constant 0 : index
    %c0_174 = arith.constant 0 : index
    %248 = vector.load %arg21[%c2_172, %c0_173, %c0_174] : memref<3x16x8xf32, #tpu.memory_space<vmem>>, vector<1x16x8xf32>
    %249 = vector.shape_cast %248 : vector<1x16x8xf32> to vector<16x8xf32>
    %cst_175 = arith.constant dense<0.000000e+00> : vector<44x8xf32>
    %250 = tpu.matmul %234, %249, %cst_175 {dimension_numbers = #tpu.dot_dimension_numbers<[1], [0], [0], [1], [0, 0, 1, 1], [], []>} : vector<44x16xf32>, vector<16x8xf32>, vector<44x8xf32> -> vector<44x8xf32>
    %c2_176 = arith.constant 2 : index
    %c0_177 = arith.constant 0 : index
    %c0_178 = arith.constant 0 : index
    %251 = vector.load %arg20[%c2_176, %c0_177, %c0_178] : memref<3x92x44xf32, #tpu.memory_space<vmem>>, vector<1x92x44xf32>
    %252 = vector.shape_cast %251 : vector<1x92x44xf32> to vector<92x44xf32>
    %cst_179 = arith.constant dense<0.000000e+00> : vector<92x8xf32>
    %253 = tpu.matmul %252, %250, %cst_179 {dimension_numbers = #tpu.dot_dimension_numbers<[1], [0], [0], [1], [0, 0, 1, 1], [], []>} : vector<92x44xf32>, vector<44x8xf32>, vector<92x8xf32> -> vector<92x8xf32>
    %254 = arith.addf %247, %253 : vector<92x8xf32>
    %c0_180 = arith.constant 0 : index
    %c0_181 = arith.constant 0 : index
    %255 = vector.load %arg22[%c0_180, %c0_181] : memref<1x8xf32, #tpu.memory_space<vmem>>, vector<1x8xf32>
    %256 = vector.broadcast %255 : vector<1x8xf32> to vector<92x8xf32>
    %257 = arith.addf %254, %256 : vector<92x8xf32>
    %cst_182 = arith.constant dense<0.000000e+00> : vector<8xf32>
    %258 = vector.multi_reduction <add>, %257, %cst_182 [0] : vector<92x8xf32> to vector<8xf32>
    %259 = vector.shape_cast %258 : vector<8xf32> to vector<1x8xf32>
    %cst_183 = arith.constant 9.200000e+01 : f32
    %260 = vector.broadcast %cst_183 : f32 to vector<1x8xf32>
    %261 = arith.divf %259, %260 : vector<1x8xf32>
    %262 = vector.broadcast %261 : vector<1x8xf32> to vector<92x8xf32>
    %263 = arith.subf %257, %262 : vector<92x8xf32>
    %264 = arith.mulf %263, %263 : vector<92x8xf32>
    %cst_184 = arith.constant dense<0.000000e+00> : vector<8xf32>
    %265 = vector.multi_reduction <add>, %264, %cst_184 [0] : vector<92x8xf32> to vector<8xf32>
    %266 = vector.shape_cast %265 : vector<8xf32> to vector<1x8xf32>
    %cst_185 = arith.constant 9.200000e+01 : f32
    %267 = vector.broadcast %cst_185 : f32 to vector<1x8xf32>
    %268 = arith.divf %266, %267 : vector<1x8xf32>
    %269 = vector.broadcast %261 : vector<1x8xf32> to vector<92x8xf32>
    %270 = arith.subf %257, %269 : vector<92x8xf32>
    %cst_186 = arith.constant 9.99999974E-6 : f32
    %271 = vector.broadcast %cst_186 : f32 to vector<1x8xf32>
    %272 = arith.addf %268, %271 : vector<1x8xf32>
    %273 = math.rsqrt %272 : vector<1x8xf32>
    %274 = vector.broadcast %273 : vector<1x8xf32> to vector<92x8xf32>
    %275 = arith.mulf %270, %274 : vector<92x8xf32>
    %cst_187 = arith.constant 0.000000e+00 : f32
    %276 = vector.broadcast %cst_187 : f32 to vector<92x8xf32>
    %277 = arith.maximumf %275, %276 : vector<92x8xf32>
    %c0_188 = arith.constant 0 : index
    %c0_189 = arith.constant 0 : index
    %c0_190 = arith.constant 0 : index
    %278 = vector.load %arg24[%c0_188, %c0_189, %c0_190] : memref<2x8x8xf32, #tpu.memory_space<vmem>>, vector<1x8x8xf32>
    %279 = vector.shape_cast %278 : vector<1x8x8xf32> to vector<8x8xf32>
    %cst_191 = arith.constant dense<0.000000e+00> : vector<92x8xf32>
    %280 = tpu.matmul %277, %279, %cst_191 {dimension_numbers = #tpu.dot_dimension_numbers<[1], [0], [0], [1], [0, 0, 1, 1], [], []>} : vector<92x8xf32>, vector<8x8xf32>, vector<92x8xf32> -> vector<92x8xf32>
    %c0_192 = arith.constant 0 : index
    %c0_193 = arith.constant 0 : index
    %c0_194 = arith.constant 0 : index
    %281 = vector.load %arg23[%c0_192, %c0_193, %c0_194] : memref<2x184x92xf32, #tpu.memory_space<vmem>>, vector<1x184x92xf32>
    %282 = vector.shape_cast %281 : vector<1x184x92xf32> to vector<184x92xf32>
    %cst_195 = arith.constant dense<0.000000e+00> : vector<184x8xf32>
    %283 = tpu.matmul %282, %280, %cst_195 {dimension_numbers = #tpu.dot_dimension_numbers<[1], [0], [0], [1], [0, 0, 1, 1], [], []>} : vector<184x92xf32>, vector<92x8xf32>, vector<184x8xf32> -> vector<184x8xf32>
    %c1_196 = arith.constant 1 : index
    %c0_197 = arith.constant 0 : index
    %c0_198 = arith.constant 0 : index
    %284 = vector.load %arg24[%c1_196, %c0_197, %c0_198] : memref<2x8x8xf32, #tpu.memory_space<vmem>>, vector<1x8x8xf32>
    %285 = vector.shape_cast %284 : vector<1x8x8xf32> to vector<8x8xf32>
    %cst_199 = arith.constant dense<0.000000e+00> : vector<92x8xf32>
    %286 = tpu.matmul %277, %285, %cst_199 {dimension_numbers = #tpu.dot_dimension_numbers<[1], [0], [0], [1], [0, 0, 1, 1], [], []>} : vector<92x8xf32>, vector<8x8xf32>, vector<92x8xf32> -> vector<92x8xf32>
    %c1_200 = arith.constant 1 : index
    %c0_201 = arith.constant 0 : index
    %c0_202 = arith.constant 0 : index
    %287 = vector.load %arg23[%c1_200, %c0_201, %c0_202] : memref<2x184x92xf32, #tpu.memory_space<vmem>>, vector<1x184x92xf32>
    %288 = vector.shape_cast %287 : vector<1x184x92xf32> to vector<184x92xf32>
    %cst_203 = arith.constant dense<0.000000e+00> : vector<184x8xf32>
    %289 = tpu.matmul %288, %286, %cst_203 {dimension_numbers = #tpu.dot_dimension_numbers<[1], [0], [0], [1], [0, 0, 1, 1], [], []>} : vector<184x92xf32>, vector<92x8xf32>, vector<184x8xf32> -> vector<184x8xf32>
    %290 = arith.addf %283, %289 : vector<184x8xf32>
    %c0_204 = arith.constant 0 : index
    %c0_205 = arith.constant 0 : index
    %291 = vector.load %arg25[%c0_204, %c0_205] : memref<1x8xf32, #tpu.memory_space<vmem>>, vector<1x8xf32>
    %292 = vector.broadcast %291 : vector<1x8xf32> to vector<184x8xf32>
    %293 = arith.addf %290, %292 : vector<184x8xf32>
    %cst_206 = arith.constant dense<0.000000e+00> : vector<8xf32>
    %294 = vector.multi_reduction <add>, %293, %cst_206 [0] : vector<184x8xf32> to vector<8xf32>
    %295 = vector.shape_cast %294 : vector<8xf32> to vector<1x8xf32>
    %cst_207 = arith.constant 1.840000e+02 : f32
    %296 = vector.broadcast %cst_207 : f32 to vector<1x8xf32>
    %297 = arith.divf %295, %296 : vector<1x8xf32>
    %298 = vector.broadcast %297 : vector<1x8xf32> to vector<184x8xf32>
    %299 = arith.subf %293, %298 : vector<184x8xf32>
    %300 = arith.mulf %299, %299 : vector<184x8xf32>
    %cst_208 = arith.constant dense<0.000000e+00> : vector<8xf32>
    %301 = vector.multi_reduction <add>, %300, %cst_208 [0] : vector<184x8xf32> to vector<8xf32>
    %302 = vector.shape_cast %301 : vector<8xf32> to vector<1x8xf32>
    %cst_209 = arith.constant 1.840000e+02 : f32
    %303 = vector.broadcast %cst_209 : f32 to vector<1x8xf32>
    %304 = arith.divf %302, %303 : vector<1x8xf32>
    %305 = vector.broadcast %297 : vector<1x8xf32> to vector<184x8xf32>
    %306 = arith.subf %293, %305 : vector<184x8xf32>
    %cst_210 = arith.constant 9.99999974E-6 : f32
    %307 = vector.broadcast %cst_210 : f32 to vector<1x8xf32>
    %308 = arith.addf %304, %307 : vector<1x8xf32>
    %309 = math.rsqrt %308 : vector<1x8xf32>
    %310 = vector.broadcast %309 : vector<1x8xf32> to vector<184x8xf32>
    %311 = arith.mulf %306, %310 : vector<184x8xf32>
    %cst_211 = arith.constant 0.000000e+00 : f32
    %312 = vector.broadcast %cst_211 : f32 to vector<184x8xf32>
    %313 = arith.maximumf %311, %312 : vector<184x8xf32>
    %c0_212 = arith.constant 0 : index
    %c0_213 = arith.constant 0 : index
    %c0_214 = arith.constant 0 : index
    %314 = vector.load %arg27[%c0_212, %c0_213, %c0_214] : memref<2x8x1xf32, #tpu.memory_space<vmem>>, vector<1x8x1xf32>
    %315 = vector.shape_cast %314 : vector<1x8x1xf32> to vector<8x1xf32>
    %cst_215 = arith.constant dense<0.000000e+00> : vector<184x1xf32>
    %316 = tpu.matmul %313, %315, %cst_215 {dimension_numbers = #tpu.dot_dimension_numbers<[1], [0], [0], [1], [0, 0, 1, 1], [], []>} : vector<184x8xf32>, vector<8x1xf32>, vector<184x1xf32> -> vector<184x1xf32>
    %c0_216 = arith.constant 0 : index
    %c0_217 = arith.constant 0 : index
    %c0_218 = arith.constant 0 : index
    %317 = vector.load %arg26[%c0_216, %c0_217, %c0_218] : memref<2x180x184xf32, #tpu.memory_space<vmem>>, vector<1x180x184xf32>
    %318 = vector.shape_cast %317 : vector<1x180x184xf32> to vector<180x184xf32>
    %cst_219 = arith.constant dense<0.000000e+00> : vector<180x1xf32>
    %319 = tpu.matmul %318, %316, %cst_219 {dimension_numbers = #tpu.dot_dimension_numbers<[1], [0], [0], [1], [0, 0, 1, 1], [], []>} : vector<180x184xf32>, vector<184x1xf32>, vector<180x1xf32> -> vector<180x1xf32>
    %c1_220 = arith.constant 1 : index
    %c0_221 = arith.constant 0 : index
    %c0_222 = arith.constant 0 : index
    %320 = vector.load %arg27[%c1_220, %c0_221, %c0_222] : memref<2x8x1xf32, #tpu.memory_space<vmem>>, vector<1x8x1xf32>
    %321 = vector.shape_cast %320 : vector<1x8x1xf32> to vector<8x1xf32>
    %cst_223 = arith.constant dense<0.000000e+00> : vector<184x1xf32>
    %322 = tpu.matmul %313, %321, %cst_223 {dimension_numbers = #tpu.dot_dimension_numbers<[1], [0], [0], [1], [0, 0, 1, 1], [], []>} : vector<184x8xf32>, vector<8x1xf32>, vector<184x1xf32> -> vector<184x1xf32>
    %c1_224 = arith.constant 1 : index
    %c0_225 = arith.constant 0 : index
    %c0_226 = arith.constant 0 : index
    %323 = vector.load %arg26[%c1_224, %c0_225, %c0_226] : memref<2x180x184xf32, #tpu.memory_space<vmem>>, vector<1x180x184xf32>
    %324 = vector.shape_cast %323 : vector<1x180x184xf32> to vector<180x184xf32>
    %cst_227 = arith.constant dense<0.000000e+00> : vector<180x1xf32>
    %325 = tpu.matmul %324, %322, %cst_227 {dimension_numbers = #tpu.dot_dimension_numbers<[1], [0], [0], [1], [0, 0, 1, 1], [], []>} : vector<180x184xf32>, vector<184x1xf32>, vector<180x1xf32> -> vector<180x1xf32>
    %326 = arith.addf %319, %325 : vector<180x1xf32>
    %c0_228 = arith.constant 0 : index
    %c0_229 = arith.constant 0 : index
    %327 = vector.load %arg28[%c0_228, %c0_229] : memref<1x1xf32, #tpu.memory_space<vmem>>, vector<1x1xf32>
    %328 = vector.broadcast %327 : vector<1x1xf32> to vector<180x1xf32>
    %329 = arith.addf %326, %328 : vector<180x1xf32>
    %c0_230 = arith.constant 0 : index
    %c0_231 = arith.constant 0 : index
    %330 = vector.load %arg29[%c0_230, %c0_231] : memref<4x180xf32, #tpu.memory_space<vmem>>, vector<4x180xf32>
    %c0_232 = arith.constant 0 : index
    %c0_233 = arith.constant 0 : index
    %331 = vector.load %arg30[%c0_232, %c0_233] : memref<180x40xf32, #tpu.memory_space<vmem>>, vector<180x40xf32>
    %332 = vector.broadcast %329 : vector<180x1xf32> to vector<180x40xf32>
    %333 = arith.mulf %332, %331 : vector<180x40xf32>
    %cst_234 = arith.constant dense<0.000000e+00> : vector<4x40xf32>
    %334 = tpu.matmul %330, %333, %cst_234 {dimension_numbers = #tpu.dot_dimension_numbers<[1], [0], [0], [1], [0, 0, 1, 1], [], []>} : vector<4x180xf32>, vector<180x40xf32>, vector<4x40xf32> -> vector<4x40xf32>
    %c0_235 = arith.constant 0 : index
    %c0_236 = arith.constant 0 : index
    %335 = vector.load %arg31[%c0_235, %c0_236] : memref<4x40xf32, #tpu.memory_space<vmem>>, vector<4x40xf32>
    tpu.vector_store %arg31[%c0_235, %c0_236], %334 {strides = array<i32>} : memref<4x40xf32, #tpu.memory_space<vmem>>, vector<4x40xf32>,
    return
  }
  func.func @transform_0(%arg0: i32) -> (i32, i32) {
    %c0_i32 = arith.constant 0 : i32
    %c0_i32_0 = arith.constant 0 : i32
    %c0_i32_1 = arith.constant 0 : i32
    return %c0_i32, %c0_i32_0 : i32, i32
  }
  func.func @transform_1(%arg0: i32) -> (i32, i32, i32) {
    %c0_i32 = arith.constant 0 : i32
    %c0_i32_0 = arith.constant 0 : i32
    %c0_i32_1 = arith.constant 0 : i32
    %c0_i32_2 = arith.constant 0 : i32
    return %c0_i32, %c0_i32_0, %c0_i32_1 : i32, i32, i32
  }
  func.func @transform_2(%arg0: i32) -> (i32, i32, i32) {
    %c0_i32 = arith.constant 0 : i32
    %c0_i32_0 = arith.constant 0 : i32
    %c0_i32_1 = arith.constant 0 : i32
    %c0_i32_2 = arith.constant 0 : i32
    return %c0_i32, %c0_i32_0, %c0_i32_1 : i32, i32, i32
  }
  func.func @transform_3(%arg0: i32) -> (i32, i32) {
    %c0_i32 = arith.constant 0 : i32
    %c0_i32_0 = arith.constant 0 : i32
    %c0_i32_1 = arith.constant 0 : i32
    return %c0_i32, %c0_i32_0 : i32, i32
  }
  func.func @transform_4(%arg0: i32) -> (i32, i32, i32) {
    %c0_i32 = arith.constant 0 : i32
    %c0_i32_0 = arith.constant 0 : i32
    %c0_i32_1 = arith.constant 0 : i32
    %c0_i32_2 = arith.constant 0 : i32
    return %c0_i32, %c0_i32_0, %c0_i32_1 : i32, i32, i32
  }
  func.func @transform_5(%arg0: i32) -> (i32, i32, i32) {
    %c0_i32 = arith.constant 0 : i32
    %c0_i32_0 = arith.constant 0 : i32
    %c0_i32_1 = arith.constant 0 : i32
    %c0_i32_2 = arith.constant 0 : i32
    return %c0_i32, %c0_i32_0, %c0_i32_1 : i32, i32, i32
  }
  func.func @transform_6(%arg0: i32) -> (i32, i32) {
    %c0_i32 = arith.constant 0 : i32
    %c0_i32_0 = arith.constant 0 : i32
    %c0_i32_1 = arith.constant 0 : i32
    return %c0_i32, %c0_i32_0 : i32, i32
  }
  func.func @transform_7(%arg0: i32) -> (i32, i32, i32) {
    %c0_i32 = arith.constant 0 : i32
    %c0_i32_0 = arith.constant 0 : i32
    %c0_i32_1 = arith.constant 0 : i32
    %c0_i32_2 = arith.constant 0 : i32
    return %c0_i32, %c0_i32_0, %c0_i32_1 : i32, i32, i32
  }
  func.func @transform_8(%arg0: i32) -> (i32, i32, i32) {
    %c0_i32 = arith.constant 0 : i32
    %c0_i32_0 = arith.constant 0 : i32
    %c0_i32_1 = arith.constant 0 : i32
    %c0_i32_2 = arith.constant 0 : i32
    return %c0_i32, %c0_i32_0, %c0_i32_1 : i32, i32, i32
  }
  func.func @transform_9(%arg0: i32) -> (i32, i32) {
    %c0_i32 = arith.constant 0 : i32
    %c0_i32_0 = arith.constant 0 : i32
    %c0_i32_1 = arith.constant 0 : i32
    return %c0_i32, %c0_i32_0 : i32, i32
  }
  func.func @transform_10(%arg0: i32) -> (i32, i32, i32) {
    %c0_i32 = arith.constant 0 : i32
    %c0_i32_0 = arith.constant 0 : i32
    %c0_i32_1 = arith.constant 0 : i32
    %c0_i32_2 = arith.constant 0 : i32
    return %c0_i32, %c0_i32_0, %c0_i32_1 : i32, i32, i32
  }
  func.func @transform_11(%arg0: i32) -> (i32, i32, i32) {
    %c0_i32 = arith.constant 0 : i32
    %c0_i32_0 = arith.constant 0 : i32
    %c0_i32_1 = arith.constant 0 : i32
    %c0_i32_2 = arith.constant 0 : i32
    return %c0_i32, %c0_i32_0, %c0_i32_1 : i32, i32, i32
  }
  func.func @transform_12(%arg0: i32) -> (i32, i32) {
    %c0_i32 = arith.constant 0 : i32
    %c0_i32_0 = arith.constant 0 : i32
    %c0_i32_1 = arith.constant 0 : i32
    return %c0_i32, %c0_i32_0 : i32, i32
  }
  func.func @transform_13(%arg0: i32) -> (i32, i32, i32) {
    %c0_i32 = arith.constant 0 : i32
    %c0_i32_0 = arith.constant 0 : i32
    %c0_i32_1 = arith.constant 0 : i32
    %c0_i32_2 = arith.constant 0 : i32
    return %c0_i32, %c0_i32_0, %c0_i32_1 : i32, i32, i32
  }
  func.func @transform_14(%arg0: i32) -> (i32, i32, i32) {
    %c0_i32 = arith.constant 0 : i32
    %c0_i32_0 = arith.constant 0 : i32
    %c0_i32_1 = arith.constant 0 : i32
    %c0_i32_2 = arith.constant 0 : i32
    return %c0_i32, %c0_i32_0, %c0_i32_1 : i32, i32, i32
  }
  func.func @transform_15(%arg0: i32) -> (i32, i32) {
    %c0_i32 = arith.constant 0 : i32
    %c0_i32_0 = arith.constant 0 : i32
    %c0_i32_1 = arith.constant 0 : i32
    return %c0_i32, %c0_i32_0 : i32, i32
  }
  func.func @transform_16(%arg0: i32) -> (i32, i32, i32) {
    %c0_i32 = arith.constant 0 : i32
    %c0_i32_0 = arith.constant 0 : i32
    %c0_i32_1 = arith.constant 0 : i32
    %c0_i32_2 = arith.constant 0 : i32
    return %c0_i32, %c0_i32_0, %c0_i32_1 : i32, i32, i32
  }
  func.func @transform_17(%arg0: i32) -> (i32, i32, i32) {
    %c0_i32 = arith.constant 0 : i32
    %c0_i32_0 = arith.constant 0 : i32
    %c0_i32_1 = arith.constant 0 : i32
    %c0_i32_2 = arith.constant 0 : i32
    return %c0_i32, %c0_i32_0, %c0_i32_1 : i32, i32, i32
  }
  func.func @transform_18(%arg0: i32) -> (i32, i32) {
    %c0_i32 = arith.constant 0 : i32
    %c0_i32_0 = arith.constant 0 : i32
    %c0_i32_1 = arith.constant 0 : i32
    return %c0_i32, %c0_i32_0 : i32, i32
  }
  func.func @transform_19(%arg0: i32) -> (i32, i32, i32) {
    %c0_i32 = arith.constant 0 : i32
    %c0_i32_0 = arith.constant 0 : i32
    %c0_i32_1 = arith.constant 0 : i32
    %c0_i32_2 = arith.constant 0 : i32
    return %c0_i32, %c0_i32_0, %c0_i32_1 : i32, i32, i32
  }
  func.func @transform_20(%arg0: i32) -> (i32, i32, i32) {
    %c0_i32 = arith.constant 0 : i32
    %c0_i32_0 = arith.constant 0 : i32
    %c0_i32_1 = arith.constant 0 : i32
    %c0_i32_2 = arith.constant 0 : i32
    return %c0_i32, %c0_i32_0, %c0_i32_1 : i32, i32, i32
  }
  func.func @transform_21(%arg0: i32) -> (i32, i32) {
    %c0_i32 = arith.constant 0 : i32
    %c0_i32_0 = arith.constant 0 : i32
    %c0_i32_1 = arith.constant 0 : i32
    return %c0_i32, %c0_i32_0 : i32, i32
  }
  func.func @transform_22(%arg0: i32) -> (i32, i32, i32) {
    %c0_i32 = arith.constant 0 : i32
    %c0_i32_0 = arith.constant 0 : i32
    %c0_i32_1 = arith.constant 0 : i32
    %c0_i32_2 = arith.constant 0 : i32
    return %c0_i32, %c0_i32_0, %c0_i32_1 : i32, i32, i32
  }
  func.func @transform_23(%arg0: i32) -> (i32, i32, i32) {
    %c0_i32 = arith.constant 0 : i32
    %c0_i32_0 = arith.constant 0 : i32
    %c0_i32_1 = arith.constant 0 : i32
    %c0_i32_2 = arith.constant 0 : i32
    return %c0_i32, %c0_i32_0, %c0_i32_1 : i32, i32, i32
  }
  func.func @transform_24(%arg0: i32) -> (i32, i32) {
    %c0_i32 = arith.constant 0 : i32
    %c0_i32_0 = arith.constant 0 : i32
    %c0_i32_1 = arith.constant 0 : i32
    return %c0_i32, %c0_i32_0 : i32, i32
  }
  func.func @transform_25(%arg0: i32) -> (i32, i32, i32) {
    %c0_i32 = arith.constant 0 : i32
    %c0_i32_0 = arith.constant 0 : i32
    %c0_i32_1 = arith.constant 0 : i32
    %c0_i32_2 = arith.constant 0 : i32
    return %c0_i32, %c0_i32_0, %c0_i32_1 : i32, i32, i32
  }
  func.func @transform_26(%arg0: i32) -> (i32, i32, i32) {
    %c0_i32 = arith.constant 0 : i32
    %c0_i32_0 = arith.constant 0 : i32
    %c0_i32_1 = arith.constant 0 : i32
    %c0_i32_2 = arith.constant 0 : i32
    return %c0_i32, %c0_i32_0, %c0_i32_1 : i32, i32, i32
  }
  func.func @transform_27(%arg0: i32) -> (i32, i32) {
    %c0_i32 = arith.constant 0 : i32
    %c0_i32_0 = arith.constant 0 : i32
    %c0_i32_1 = arith.constant 0 : i32
    return %c0_i32, %c0_i32_0 : i32, i32
  }
  func.func @transform_28(%arg0: i32) -> (i32, i32) {
    %c0_i32 = arith.constant 0 : i32
    %c0_i32_0 = arith.constant 0 : i32
    %c0_i32_1 = arith.constant 0 : i32
    return %c0_i32, %c0_i32_0 : i32, i32
  }
  func.func @transform_29(%arg0: i32) -> (i32, i32) {
    %c0_i32 = arith.constant 0 : i32
    %c0_i32_0 = arith.constant 0 : i32
    %c0_i32_1 = arith.constant 0 : i32
    return %c0_i32, %c0_i32_0 : i32, i32
  }
  func.func @transform_30(%arg0: i32) -> (i32, i32) {
    %c0_i32 = arith.constant 0 : i32
    %c0_i32_0 = arith.constant 0 : i32
    %c0_i32_1 = arith.constant 0 : i32
    return %c0_i32, %c0_i32_0 : i32, i32
  }
}

</mosaic_0001>

<bundles_post_ra>
// kernel: forward.1
= control target key start
LH: loop header
LB: loop body
LE: loop exit
PB: predicated region body
PF: predicated region fallthrough
CT: control target
= control target key end

     0   :  { %s9813_s6 = smov 1   ;;  %s9814_s10 = smov 2   ;;  %s11481_s0 = inlined_call_operand.smem [shape: u32[31], index: -1, kind: input, shape index: {}] }
   0x1   :  { %s9884_s5 = sld [smem:[%s11481_s0]]   ;;  %s9815_s14 = smov 3  }
   0x2   :  { %s9889_s9 = sld [smem:[%s11481_s0 + %s9813_s6]]   ;;  %s9816_s18 = smov 4  }
   0x3   :  { %s9894_s13 = sld [smem:[%s11481_s0 + %s9814_s10]]   ;;  %s9817_s22 = smov 5  }
   0x4   :  { %s9899_s17 = sld [smem:[%s11481_s0 + %s9815_s14]]   ;;  %s9818_s26 = smov 6  }
   0x5   :  { %s9904_s21 = sld [smem:[%s11481_s0 + %s9816_s18]]   ;;  %s9819_s30 = smov 7  }
   0x6   :  { %s9909_s25 = sld [smem:[%s11481_s0 + %s9817_s22]]   ;;  %s9820_s4 = smov 8  }
   0x7   :  { %11493 = sst [smem:[#allocation52_spill]] %s9884_s5  ;;  %s9821_s10 = smov 9  }
   0x8   :  { %s9914_s29 = sld [smem:[%s11481_s0 + %s9818_s26]]   ;;  %s9822_s15 = smov 10  }
   0x9   :  { %s9919_s3 = sld [smem:[%s11481_s0 + %s9819_s30]]   ;;  %s9823_s20 = smov 11  }
   0xa   :  { %s9924_s8 = sld [smem:[%s11481_s0 + %s9820_s4]]   ;;  %s9824_s26 = smov 12  }
   0xb   :  { %s9929_s14 = sld [smem:[%s11481_s0 + %s9821_s10]]   ;;  %s9825_s1 = smov 13  }
   0xc   :  { %s9934_s19 = sld [smem:[%s11481_s0 + %s9822_s15]]   ;;  %s9826_s7 = smov 14  }
   0xd   :  { %s9939_s24 = sld [smem:[%s11481_s0 + %s9823_s20]]   ;;  %s9827_s15 = smov 15  }
   0xe   :  { %s9944_s30 = sld [smem:[%s11481_s0 + %s9824_s26]]   ;;  %s9828_s22 = smov 16  }
   0xf   :  { %s9949_s6 = sld [smem:[%s11481_s0 + %s9825_s1]]   ;;  %s9829_s28 = smov 17  }
  0x10   :  { %s9954_s12 = sld [smem:[%s11481_s0 + %s9826_s7]]   ;;  %s9830_s7 = smov 18  }
  0x11   :  { %11494 = sst [smem:[#allocation53_spill]] %s9929_s14  ;;  %s9840_s23 = smov 28  }
  0x12   :  { %s9959_s20 = sld [smem:[%s11481_s0 + %s9827_s15]]   ;;  %s9831_s15 = smov 19  }
  0x13   :  { %11495 = sst [smem:[#allocation54_spill]] %s9939_s24  ;;  %s9841_s1 = smov 29  }
  0x14   :  { %s9964_s27 = sld [smem:[%s11481_s0 + %s9828_s22]]   ;;  %s9832_s22 = smov 20  }
  0x15   :  { %11496 = sst [smem:[#allocation55_spill]] %s9949_s6  ;;  %s9842_s10 = smov 30  }
  0x16   :  { %11497 = sst [smem:[#allocation56_spill]] %s9954_s12 }
  0x17   :  { %s9969_s4 = sld [smem:[%s11481_s0 + %s9829_s28]]   ;;  %s9833_s28 = smov 21  }
  0x18   :  { %s9974_s12 = sld [smem:[%s11481_s0 + %s9830_s7]]   ;;  %s9834_s7 = smov 22  }
  0x19   :  { %s9979_s5 = sld [smem:[%s11481_s0 + %s9831_s15]]   ;;  %s9835_s15 = smov 23  }
  0x1a   :  { %11498 = sst [smem:[#allocation57_spill]] %s9964_s27 }
  0x1b   :  { %s9984_s27 = sld [smem:[%s11481_s0 + %s9832_s22]]   ;;  %s9836_s22 = smov 24  }
  0x1c   :  { %s9989_s6 = sld [smem:[%s11481_s0 + %s9833_s28]]   ;;  %s9837_s28 = smov 25  }
  0x1d   :  { %s9999_s24 = sld [smem:[%s11481_s0 + %s9835_s15]]   ;;  %s9839_s15 = smov 27  }
  0x1e   :  { %11499 = sst [smem:[#allocation58_spill]] %s9974_s12 }
  0x1f   :  { %s9994_s12 = sld [smem:[%s11481_s0 + %s9834_s7]]   ;;  %s9838_s7 = smov 26  }
  0x20   :  { %s10014_s14 = sld [smem:[%s11481_s0 + %s9838_s7]]  }
  0x21   :  { %11500 = sst [smem:[#allocation59_spill]] %s9984_s27 }
  0x22   :  { %11501 = sst [smem:[#allocation60_spill]] %s9989_s6 }
  0x23   :  { %11502 = sst [smem:[#allocation61_spill]] %s9999_s24 }
  0x24   :  { %s10004_s27 = sld [smem:[%s11481_s0 + %s9836_s22]]  }
  0x25   :  { %s10009_s6 = sld [smem:[%s11481_s0 + %s9837_s28]]  }
  0x26   :  { %11505 = sst [smem:[#allocation64_spill]] %s10014_s14 }
  0x27   :  { %s7076_s24 = sld [smem:[%s11481_s0 + %s9839_s15]]  }
  0x28   :  { %s10032_s14 = sld [smem:[%s11481_s0 + %s9842_s10]]  }
  0x2a   :  { %11503 = sst [smem:[#allocation62_spill]] %s10004_s27 }
  0x2b   :  { %11504 = sst [smem:[#allocation63_spill]] %s10009_s6 }
  0x2c   :  { %s10022_s27 = sld [smem:[%s11481_s0 + %s9840_s23]]  }
  0x2d   :  { %s10027_s6 = sld [smem:[%s11481_s0 + %s9841_s1]]   ;;  %v66_v0 = vstv %s7076_s24 }
  0x2e   :  { %67 = vst [vmem:[#allocation2] sm:$0x1] %v66_v0 }
  0x2f   :  { %68 = vsyncpa [#allocation4], 0 }
  0x30   :  { %69 = vsyncpa [#allocation7], 0 }
  0x31   :  { %70 = vsyncpa [#allocation10], 0 }
  0x32   :  { %71 = vsyncpa [#allocation13], 0 }
  0x33   :  { %72 = vsyncpa [#allocation16], 0 }
  0x34   :  { %73 = vsyncpa [#allocation19], 0 }
  0x35   :  { %74 = vsyncpa [#allocation22], 0 }
  0x36   :  { %75 = vsyncpa [#allocation25], 0 }
  0x37   :  { %76 = vsyncpa [#allocation28], 0 }
  0x38   :  { %77 = vsyncpa [#allocation31], 0 }
  0x39   :  { %78 = vsyncpa [#allocation34], 0 }
  0x3a   :  { %79 = vsyncpa [#allocation37], 0 }
  0x3b   :  { %80 = vsyncpa [#allocation5], 0  ;;  %s9843_s0 = smov [#allocation6]   ;;  %s9281_s24 = scalar_lea.hbm %s9894_s13, 32 }
  0x3c   :  { %s100_s15 = sshll.u32 %s9843_s0, 4  ;;  %p9282_p0 = scmp.ne.s32.totalorder %s9894_s13, %s9281_s24  ;;  %s101_s15 = int_to_ptr.vmem [resolvable:$true] %s100_s15 }
  0x3d   :  { %p9285_p1 = scmp.lt.u32.totalorder %s9281_s24, %s9894_s13 }
  0x3f   :  { %p9287_p2 = pnand %p9285_p1, %p9282_p0 }
  0x41   :  { %9290 = shalt.err (!%p9287_p2)
}
  0x42   :  { %s9291_s16 = scalar_lea.vmem %s101_s15, 32  ;;  %p9296_p4 = scmp.lt.s32.totalorder %s101_s15, %s101_s15 }
  0x43   :  { %p9292_p3 = scmp.ne.s32.totalorder %s101_s15, %s9291_s16  ;;  %p9297_p5 = scmp.lt.s32.totalorder %s9291_s16, %s9291_s16 }
  0x45   :  { %p9298_p6 = por %p9297_p5, %p9296_p4 }
  0x47   :  { %p9299_p7 = pnand %p9298_p6, %p9292_p3 }
  0x49   :  { %9302 = shalt.err (!%p9299_p7)
}
  0x4a   :  { %s9844_s18 = smov 16   ;;  %s9845_s23 = smov 1  }
  0x4b   :  { %106 = dma.hbm_to_vmem [thread:$0]  %s9894_s13, 32, %s101_s15, [#allocation7], %s9844_s18, %s9844_s18, %s9845_s23  }
  0x4c   :  { %s9846_s22 = smov [#allocation9]   ;;  %s9303_s1 = scalar_lea.hbm %s9904_s21, 1280 }
  0x4d   :  { %s122_s26 = sshll.u32 %s9846_s22, 4  ;;  %p9304_p8 = scmp.ne.s32.totalorder %s9904_s21, %s9303_s1  ;;  %s123_s26 = int_to_ptr.vmem [resolvable:$true] %s122_s26 }
  0x4e   :  { %p9307_p9 = scmp.lt.u32.totalorder %s9303_s1, %s9904_s21 }
  0x50   :  { %p9309_p10 = pnand %p9307_p9, %p9304_p8 }
  0x52   :  { %9312 = shalt.err (!%p9309_p10)
}
  0x53   :  { %s9313_s28 = scalar_lea.vmem %s123_s26, 1280  ;;  %p9318_p12 = scmp.lt.s32.totalorder %s123_s26, %s123_s26 }
  0x54   :  { %p9314_p11 = scmp.ne.s32.totalorder %s123_s26, %s9313_s28  ;;  %p9319_p13 = scmp.lt.s32.totalorder %s9313_s28, %s9313_s28 }
  0x56   :  { %p9320_p0 = por %p9319_p13, %p9318_p12 }
  0x58   :  { %p9321_p1 = pnand %p9320_p0, %p9314_p11 }
  0x5a   :  { %9324 = shalt.err (!%p9321_p1)
}
  0x5b   :  { %s9847_s2 = smov 128   ;;  %s9848_s13 = smov 8  }
  0x5c   :  { %128 = dma.hbm_to_vmem [thread:$0]  %s9904_s21, 1280, %s123_s26, [#allocation10], %s9847_s2, %s9847_s2, %s9848_s13  }
  0x5d   :  { %s9849_s10 = smov [#allocation12]   ;;  %s9850_s11 = smov [#allocation15]  }
  0x5e   :  { %s147_s7 = sshll.u32 %s9849_s10, 4  ;;  %s168_s0 = sshll.u32 %s9850_s11, 4  ;;  %s148_s7 = int_to_ptr.vmem [resolvable:$true] %s147_s7  ;;  %s10047_s0 = int_to_ptr.vmem [resolvable:$true] %s168_s0 }
  0x5f   :  { %s9325_s15 = scalar_lea.hbm %s9914_s29, 16 }
  0x60   :  { %p9326_p2 = scmp.ne.s32.totalorder %s9914_s29, %s9325_s15  ;;  %p9329_p3 = scmp.lt.u32.totalorder %s9325_s15, %s9914_s29 }
  0x62   :  { %p9331_p4 = pnand %p9329_p3, %p9326_p2 }
  0x64   :  { %9334 = shalt.err (!%p9331_p4)
}
  0x65   :  { %s9335_s24 = scalar_lea.vmem %s148_s7, 16  ;;  %s9339_s16 = scalar_lea.vmem %s148_s7, 32 }
  0x66   :  { %p9336_p5 = scmp.ne.s32.totalorder %s148_s7, %s9335_s24  ;;  %p9340_p6 = scmp.lt.s32.totalorder %s148_s7, %s148_s7 }
  0x67   :  { %p9341_p7 = scmp.lt.s32.totalorder %s9339_s16, %s9335_s24 }
  0x69   :  { %p9342_p8 = por %p9341_p7, %p9340_p6 }
  0x6b   :  { %p9343_p9 = pnand %p9342_p8, %p9336_p5 }
  0x6d   :  { %9346 = shalt.err (!%p9343_p9)
}
  0x6e   :  { %150 = dma.hbm_to_vmem [thread:$0]  %s9914_s29, 16, %s148_s7, [#allocation13]  }
  0x6f   :  { %s9347_s21 = scalar_lea.hbm %s9924_s8, 512 }
  0x70   :  { %p9348_p10 = scmp.ne.s32.totalorder %s9924_s8, %s9347_s21  ;;  %p9351_p11 = scmp.lt.u32.totalorder %s9347_s21, %s9924_s8 }
  0x72   :  { %p9353_p12 = pnand %p9351_p11, %p9348_p10 }
  0x74   :  { %9356 = shalt.err (!%p9353_p12)
}
  0x75   :  { %s9357_s23 = scalar_lea.vmem %s10047_s0, 512  ;;  %p9362_p0 = scmp.lt.s32.totalorder %s10047_s0, %s10047_s0 }
  0x76   :  { %p9358_p13 = scmp.ne.s32.totalorder %s10047_s0, %s9357_s23  ;;  %p9363_p1 = scmp.lt.s32.totalorder %s9357_s23, %s9357_s23 }
  0x78   :  { %p9364_p2 = por %p9363_p1, %p9362_p0 }
  0x7a   :  { %p9365_p3 = pnand %p9364_p2, %p9358_p13 }
  0x7c   :  { %9368 = shalt.err (!%p9365_p3)
}
  0x7d   :  { %174 = dma.hbm_to_vmem [thread:$0]  %s9924_s8, 512, %s10047_s0, [#allocation16], %s9847_s2, %s9847_s2, %s9848_s13  }
  0x7e   :  { %s9851_s29 = smov [#allocation18]   ;;  %s9852_s26 = smov [#allocation21]  }
  0x7f   :  { %s190_s22 = sshll.u32 %s9851_s29, 4  ;;  %s215_s1 = sshll.u32 %s9852_s26, 4  ;;  %s191_s22 = int_to_ptr.vmem [resolvable:$true] %s190_s22  ;;  %s216_s1 = int_to_ptr.vmem [resolvable:$true] %s215_s1 }
  0x80   :  { %s9369_s28 = scalar_lea.hbm %s9934_s19, 256 }
  0x81   :  { %p9370_p4 = scmp.ne.s32.totalorder %s9934_s19, %s9369_s28  ;;  %p9373_p5 = scmp.lt.u32.totalorder %s9369_s28, %s9934_s19 }
  0x83   :  { %p9375_p6 = pnand %p9373_p5, %p9370_p4 }
  0x85   :  { %9378 = shalt.err (!%p9375_p6)
}
  0x86   :  { %s9379_s10 = scalar_lea.vmem %s191_s22, 256  ;;  %p9384_p8 = scmp.lt.s32.totalorder %s191_s22, %s191_s22 }
  0x87   :  { %p9380_p7 = scmp.ne.s32.totalorder %s191_s22, %s9379_s10  ;;  %p9385_p9 = scmp.lt.s32.totalorder %s9379_s10, %s9379_s10 }
  0x89   :  { %p9386_p10 = por %p9385_p9, %p9384_p8 }
  0x8b   :  { %p9387_p11 = pnand %p9386_p10, %p9380_p7 }
  0x8d   :  { %9390 = shalt.err (!%p9387_p11)
}
  0x8e   :  { %196 = dma.hbm_to_vmem [thread:$0]  %s9934_s19, 256, %s191_s22, [#allocation19], %s9847_s2, %s9847_s2, %s9848_s13  }
  0x8f   :  { %s9391_s8 = scalar_lea.hbm %s9944_s30, 16 }
  0x90   :  { %p9392_p12 = scmp.ne.s32.totalorder %s9944_s30, %s9391_s8  ;;  %p9395_p13 = scmp.lt.u32.totalorder %s9391_s8, %s9944_s30 }
  0x92   :  { %p9397_p0 = pnand %p9395_p13, %p9392_p12 }
  0x94   :  { %9400 = shalt.err (!%p9397_p0)
}
  0x95   :  { %s9401_s7 = scalar_lea.vmem %s216_s1, 16  ;;  %s9405_s11 = scalar_lea.vmem %s216_s1, 32 }
  0x96   :  { %p9402_p1 = scmp.ne.s32.totalorder %s216_s1, %s9401_s7  ;;  %p9406_p2 = scmp.lt.s32.totalorder %s216_s1, %s216_s1 }
  0x97   :  { %p9407_p3 = scmp.lt.s32.totalorder %s9405_s11, %s9401_s7 }
  0x99   :  { %p9408_p4 = por %p9407_p3, %p9406_p2 }
  0x9b   :  { %p9409_p5 = pnand %p9408_p4, %p9402_p1 }
  0x9d   :  { %9412 = shalt.err (!%p9409_p5)
}
  0x9e   :  { %218 = dma.hbm_to_vmem [thread:$0]  %s9944_s30, 16, %s216_s1, [#allocation22]  }
  0x9f   :  { %s9853_s0 = smov [#allocation24]   ;;  %s9854_s15 = smov [#allocation27]  }
  0xa0   :  { %s239_s19 = sshll.u32 %s9853_s0, 4  ;;  %s260_s24 = sshll.u32 %s9854_s15, 4  ;;  %s240_s19 = int_to_ptr.vmem [resolvable:$true] %s239_s19  ;;  %s10076_s24 = int_to_ptr.vmem [resolvable:$true] %s260_s24 }
  0xa1   :  { %s9413_s16 = scalar_lea.hbm %s9959_s20, 16 }
  0xa2   :  { %p9414_p6 = scmp.ne.s32.totalorder %s9959_s20, %s9413_s16  ;;  %p9417_p7 = scmp.lt.u32.totalorder %s9413_s16, %s9959_s20 }
  0xa4   :  { %p9419_p8 = pnand %p9417_p7, %p9414_p6 }
  0xa6   :  { %9422 = shalt.err (!%p9419_p8)
}
  0xa7   :  { %s9423_s21 = scalar_lea.vmem %s240_s19, 16  ;;  %s9427_s23 = scalar_lea.vmem %s240_s19, 32 }
  0xa8   :  { %p9424_p9 = scmp.ne.s32.totalorder %s240_s19, %s9423_s21  ;;  %p9428_p10 = scmp.lt.s32.totalorder %s240_s19, %s240_s19 }
  0xa9   :  { %p9429_p11 = scmp.lt.s32.totalorder %s9427_s23, %s9423_s21 }
  0xab   :  { %p9430_p12 = por %p9429_p11, %p9428_p10 }
  0xad   :  { %p9431_p13 = pnand %p9430_p12, %p9424_p9 }
  0xaf   :  { %9434 = shalt.err (!%p9431_p13)
}
  0xb0   :  { %242 = dma.hbm_to_vmem [thread:$0]  %s9959_s20, 16, %s240_s19, [#allocation25]  }
  0xb1   :  { %s9435_s30 = scalar_lea.hbm %s9969_s4, 1536 }
  0xb2   :  { %p9436_p0 = scmp.ne.s32.totalorder %s9969_s4, %s9435_s30  ;;  %p9439_p1 = scmp.lt.u32.totalorder %s9435_s30, %s9969_s4 }
  0xb4   :  { %p9441_p2 = pnand %p9439_p1, %p9436_p0 }
  0xb6   :  { %9444 = shalt.err (!%p9441_p2)
}
  0xb7   :  { %s9445_s29 = scalar_lea.vmem %s10076_s24, 1536  ;;  %p9450_p4 = scmp.lt.s32.totalorder %s10076_s24, %s10076_s24 }
  0xb8   :  { %p9446_p3 = scmp.ne.s32.totalorder %s10076_s24, %s9445_s29  ;;  %p9451_p5 = scmp.lt.s32.totalorder %s9445_s29, %s9445_s29 }
  0xba   :  { %p9452_p6 = por %p9451_p5, %p9450_p4 }
  0xbc   :  { %p9453_p7 = pnand %p9452_p6, %p9446_p3 }
  0xbe   :  { %9456 = shalt.err (!%p9453_p7)
}
  0xbf   :  { %266 = dma.hbm_to_vmem [thread:$0]  %s9969_s4, 1536, %s10076_s24, [#allocation28], %s9847_s2, %s9847_s2, %s9848_s13  }
  0xc0   :  { %s9855_s20 = smov [#allocation30]   ;;  %s9856_s26 = smov [#allocation33]  }
  0xc1   :  { %s282_s22 = sshll.u32 %s9855_s20, 4  ;;  %s308_s1 = sshll.u32 %s9856_s26, 4  ;;  %s283_s22 = int_to_ptr.vmem [resolvable:$true] %s282_s22  ;;  %s10094_s1 = int_to_ptr.vmem [resolvable:$true] %s308_s1 }
  0xc2   :  { %s9457_s28 = scalar_lea.hbm %s9979_s5, 4608 }
  0xc3   :  { %p9458_p8 = scmp.ne.s32.totalorder %s9979_s5, %s9457_s28  ;;  %p9461_p9 = scmp.lt.u32.totalorder %s9457_s28, %s9979_s5 }
  0xc5   :  { %p9463_p10 = pnand %p9461_p9, %p9458_p8 }
  0xc7   :  { %9466 = shalt.err (!%p9463_p10)
}
  0xc8   :  { %s9467_s10 = scalar_lea.vmem %s283_s22, 4608  ;;  %p9472_p12 = scmp.lt.s32.totalorder %s283_s22, %s283_s22 }
  0xc9   :  { %p9468_p11 = scmp.ne.s32.totalorder %s283_s22, %s9467_s10  ;;  %p9473_p13 = scmp.lt.s32.totalorder %s9467_s10, %s9467_s10 }
  0xcb   :  { %p9474_p0 = por %p9473_p13, %p9472_p12 }
  0xcd   :  { %p9475_p1 = pnand %p9474_p0, %p9468_p11 }
  0xcf   :  { %9478 = shalt.err (!%p9475_p1)
}
  0xd0   :  { %288 = dma.hbm_to_vmem [thread:$0]  %s9979_s5, 4608, %s283_s22, [#allocation31], %s9847_s2, %s9847_s2, %s9848_s13  }
  0xd1   :  { %s9479_s4 = scalar_lea.hbm %s9994_s12, 5888 }
  0xd2   :  { %p9480_p2 = scmp.ne.s32.totalorder %s9994_s12, %s9479_s4  ;;  %p9483_p3 = scmp.lt.u32.totalorder %s9479_s4, %s9994_s12 }
  0xd4   :  { %p9485_p4 = pnand %p9483_p3, %p9480_p2 }
  0xd6   :  { %9488 = shalt.err (!%p9485_p4)
}
  0xd7   :  { %s9489_s8 = scalar_lea.vmem %s10094_s1, 5888  ;;  %p9494_p6 = scmp.lt.s32.totalorder %s10094_s1, %s10094_s1 }
  0xd8   :  { %p9490_p5 = scmp.ne.s32.totalorder %s10094_s1, %s9489_s8  ;;  %p9495_p7 = scmp.lt.s32.totalorder %s9489_s8, %s9489_s8 }
  0xda   :  { %p9496_p8 = por %p9495_p7, %p9494_p6 }
  0xdc   :  { %p9497_p9 = pnand %p9496_p8, %p9490_p5 }
  0xde   :  { %9500 = shalt.err (!%p9497_p9)
}
  0xdf   :  { %314 = dma.hbm_to_vmem [thread:$0]  %s9994_s12, 5888, %s10094_s1, [#allocation34], %s9847_s2, %s9847_s2, %s9848_s13  }
  0xe0   :  { %s9857_s5 = smov [#allocation3]   ;;  %s9858_s11 = smov [#allocation8]  }
  0xe1   :  { %s88_s7 = sshll.u32 %s9857_s5, 4  ;;  %s113_s0 = sshll.u32 %s9858_s11, 4  ;;  %s89_s7 = int_to_ptr.vmem [resolvable:$true] %s88_s7  ;;  %s114_s0 = int_to_ptr.vmem [resolvable:$true] %s113_s0 }
  0xe2   :  { %s9501_s19 = scalar_lea.hbm %s9889_s9, 5120 }
  0xe3   :  { %p9502_p10 = scmp.ne.s32.totalorder %s9889_s9, %s9501_s19  ;;  %p9505_p11 = scmp.lt.u32.totalorder %s9501_s19, %s9889_s9 }
  0xe5   :  { %p9507_p12 = pnand %p9505_p11, %p9502_p10 }
  0xe7   :  { %9510 = shalt.err (!%p9507_p12)
}
  0xe8   :  { %s9511_s15 = scalar_lea.vmem %s89_s7, 5120  ;;  %p9516_p0 = scmp.lt.s32.totalorder %s89_s7, %s89_s7 }
  0xe9   :  { %p9512_p13 = scmp.ne.s32.totalorder %s89_s7, %s9511_s15  ;;  %p9517_p1 = scmp.lt.s32.totalorder %s9511_s15, %s9511_s15 }
  0xeb   :  { %p9518_p2 = por %p9517_p1, %p9516_p0 }
  0xed   :  { %p9519_p3 = pnand %p9518_p2, %p9512_p13 }
  0xef   :  { %9522 = shalt.err (!%p9519_p3)
}
  0xf0   :  { %s9859_s24 = smov 256   ;;  %s9523_s12 = scalar_lea.hbm %s9899_s17, 16 }
  0xf1   :  { %94 = dma.hbm_to_vmem [thread:$0]  %s9889_s9, 5120, %s89_s7, [#allocation4], %s9859_s24, %s9859_s24, %s9844_s18  }
  0xf2   :  { %p9524_p4 = scmp.ne.s32.totalorder %s9899_s17, %s9523_s12  ;;  %p9527_p5 = scmp.lt.u32.totalorder %s9523_s12, %s9899_s17 }
  0xf4   :  { %p9529_p6 = pnand %p9527_p5, %p9524_p4 }
  0xf6   :  { %9532 = shalt.err (!%p9529_p6)
}
  0xf7   :  { %s9533_s16 = scalar_lea.vmem %s114_s0, 16  ;;  %s9537_s21 = scalar_lea.vmem %s114_s0, 32 }
  0xf8   :  { %p9534_p7 = scmp.ne.s32.totalorder %s114_s0, %s9533_s16  ;;  %p9538_p8 = scmp.lt.s32.totalorder %s114_s0, %s114_s0 }
  0xf9   :  { %p9539_p9 = scmp.lt.s32.totalorder %s9537_s21, %s9533_s16 }
  0xfb   :  { %p9540_p10 = por %p9539_p9, %p9538_p8 }
  0xfd   :  { %p9541_p11 = pnand %p9540_p10, %p9534_p7 }
  0xff   :  { %9544 = shalt.err (!%p9541_p11)
}
 0x100   :  { %116 = dma.hbm_to_vmem [thread:$0]  %s9899_s17, 16, %s114_s0, [#allocation7]  }
 0x101   :  { %s9860_s9 = smov [#allocation11]   ;;  %s9861_s30 = smov [#allocation14]  }
 0x102   :  { %s134_s23 = sshll.u32 %s9860_s9, 4  ;;  %s156_s29 = sshll.u32 %s9861_s30, 4  ;;  %s135_s23 = int_to_ptr.vmem [resolvable:$true] %s134_s23  ;;  %s157_s29 = int_to_ptr.vmem [resolvable:$true] %s156_s29 }
 0x103   :  { %s9545_s20 = scalar_lea.hbm %s9909_s25, 256 }
 0x104   :  { %p9546_p12 = scmp.ne.s32.totalorder %s9909_s25, %s9545_s20  ;;  %p9549_p13 = scmp.lt.u32.totalorder %s9545_s20, %s9909_s25 }
 0x106   :  { %p9551_p0 = pnand %p9549_p13, %p9546_p12 }
 0x108   :  { %9554 = shalt.err (!%p9551_p0)
}
 0x109   :  { %s9555_s22 = scalar_lea.vmem %s135_s23, 256  ;;  %p9560_p2 = scmp.lt.s32.totalorder %s135_s23, %s135_s23 }
 0x10a   :  { %p9556_p1 = scmp.ne.s32.totalorder %s135_s23, %s9555_s22  ;;  %p9561_p3 = scmp.lt.s32.totalorder %s9555_s22, %s9555_s22 }
 0x10c   :  { %p9562_p4 = por %p9561_p3, %p9560_p2 }
 0x10e   :  { %p9563_p5 = pnand %p9562_p4, %p9556_p1 }
 0x110   :  { %9566 = shalt.err (!%p9563_p5)
}
 0x111   :  { %140 = dma.hbm_to_vmem [thread:$0]  %s9909_s25, 256, %s135_s23, [#allocation10], %s9847_s2, %s9847_s2, %s9848_s13  }
 0x112   :  { %s9567_s17 = scalar_lea.hbm %s9919_s3, 768 }
 0x113   :  { %p9568_p6 = scmp.ne.s32.totalorder %s9919_s3, %s9567_s17  ;;  %p9571_p7 = scmp.lt.u32.totalorder %s9567_s17, %s9919_s3 }
 0x115   :  { %p9573_p8 = pnand %p9571_p7, %p9568_p6 }
 0x117   :  { %9576 = shalt.err (!%p9573_p8)
}
 0x118   :  { %s9577_s26 = scalar_lea.vmem %s157_s29, 768  ;;  %p9582_p10 = scmp.lt.s32.totalorder %s157_s29, %s157_s29 }
 0x119   :  { %p9578_p9 = scmp.ne.s32.totalorder %s157_s29, %s9577_s26  ;;  %p9583_p11 = scmp.lt.s32.totalorder %s9577_s26, %s9577_s26 }
 0x11b   :  { %p9584_p12 = por %p9583_p11, %p9582_p10 }
 0x11d   :  { %p9585_p13 = pnand %p9584_p12, %p9578_p9 }
 0x11f   :  { %9588 = shalt.err (!%p9585_p13)
}
 0x120   :  { %s11506_s1 = sld [smem:[#allocation53_spill]]  ;;  %s9862_s25 = smov [#allocation17]  }
 0x121   :  { %162 = dma.hbm_to_vmem [thread:$0]  %s9919_s3, 768, %s157_s29, [#allocation13], %s9847_s2, %s9847_s2, %s9848_s13  }
 0x122   :  { %s181_s28 = sshll.u32 %s9862_s25, 4  ;;  %s9863_s10 = smov [#allocation20]   ;;  %s182_s28 = int_to_ptr.vmem [resolvable:$true] %s181_s28 }
 0x123   :  { %s202_s4 = sshll.u32 %s9863_s10, 4  ;;  %s203_s4 = int_to_ptr.vmem [resolvable:$true] %s202_s4 }
 0x126   :  { %s9589_s8 = scalar_lea.hbm %s11506_s1, 16 }
 0x127   :  { %p9590_p0 = scmp.ne.s32.totalorder %s11506_s1, %s9589_s8  ;;  %p9593_p1 = scmp.lt.u32.totalorder %s9589_s8, %s11506_s1 }
 0x129   :  { %p9595_p2 = pnand %p9593_p1, %p9590_p0 }
 0x12b   :  { %9598 = shalt.err (!%p9595_p2)
}
 0x12c   :  { %s9599_s5 = scalar_lea.vmem %s182_s28, 16  ;;  %s9603_s7 = scalar_lea.vmem %s182_s28, 32 }
 0x12d   :  { %p9600_p3 = scmp.ne.s32.totalorder %s182_s28, %s9599_s5  ;;  %p9604_p4 = scmp.lt.s32.totalorder %s182_s28, %s182_s28 }
 0x12e   :  { %p9605_p5 = scmp.lt.s32.totalorder %s9603_s7, %s9599_s5 }
 0x130   :  { %p9606_p6 = por %p9605_p5, %p9604_p4 }
 0x132   :  { %p9607_p7 = pnand %p9606_p6, %p9600_p3 }
 0x134   :  { %9610 = shalt.err (!%p9607_p7)
}
 0x135   :  { %s11507_s3 = sld [smem:[#allocation54_spill]] }
 0x136   :  { %184 = dma.hbm_to_vmem [thread:$0]  %s11506_s1, 16, %s182_s28, [#allocation16]  }
 0x13b   :  { %s9611_s11 = scalar_lea.hbm %s11507_s3, 1024 }
 0x13c   :  { %p9612_p8 = scmp.ne.s32.totalorder %s11507_s3, %s9611_s11  ;;  %p9615_p9 = scmp.lt.u32.totalorder %s9611_s11, %s11507_s3 }
 0x13e   :  { %p9617_p10 = pnand %p9615_p9, %p9612_p8 }
 0x140   :  { %9620 = shalt.err (!%p9617_p10)
}
 0x141   :  { %s9621_s0 = scalar_lea.vmem %s203_s4, 1024  ;;  %p9626_p12 = scmp.lt.s32.totalorder %s203_s4, %s203_s4 }
 0x142   :  { %p9622_p11 = scmp.ne.s32.totalorder %s203_s4, %s9621_s0  ;;  %p9627_p13 = scmp.lt.s32.totalorder %s9621_s0, %s9621_s0 }
 0x144   :  { %p9628_p0 = por %p9627_p13, %p9626_p12 }
 0x146   :  { %p9629_p1 = pnand %p9628_p0, %p9622_p11 }
 0x148   :  { %9632 = shalt.err (!%p9629_p1)
}
 0x149   :  { %s11508_s19 = sld [smem:[#allocation55_spill]]  ;;  %s9864_s15 = smov [#allocation23]  }
 0x14a   :  { %208 = dma.hbm_to_vmem [thread:$0]  %s11507_s3, 1024, %s203_s4, [#allocation19], %s9847_s2, %s9847_s2, %s9848_s13  }
 0x14b   :  { %s224_s12 = sshll.u32 %s9864_s15, 4  ;;  %s9865_s16 = smov [#allocation26]   ;;  %s225_s12 = int_to_ptr.vmem [resolvable:$true] %s224_s12 }
 0x14c   :  { %s248_s21 = sshll.u32 %s9865_s16, 4  ;;  %s249_s21 = int_to_ptr.vmem [resolvable:$true] %s248_s21 }
 0x14f   :  { %s9633_s9 = scalar_lea.hbm %s11508_s19, 1152 }
 0x150   :  { %p9634_p2 = scmp.ne.s32.totalorder %s11508_s19, %s9633_s9  ;;  %p9637_p3 = scmp.lt.u32.totalorder %s9633_s9, %s11508_s19 }
 0x152   :  { %p9639_p4 = pnand %p9637_p3, %p9634_p2 }
 0x154   :  { %9642 = shalt.err (!%p9639_p4)
}
 0x155   :  { %s9643_s23 = scalar_lea.vmem %s225_s12, 1152  ;;  %p9648_p6 = scmp.lt.s32.totalorder %s225_s12, %s225_s12 }
 0x156   :  { %p9644_p5 = scmp.ne.s32.totalorder %s225_s12, %s9643_s23  ;;  %p9649_p7 = scmp.lt.s32.totalorder %s9643_s23, %s9643_s23 }
 0x158   :  { %p9650_p8 = por %p9649_p7, %p9648_p6 }
 0x15a   :  { %p9651_p9 = pnand %p9650_p8, %p9644_p5 }
 0x15c   :  { %9654 = shalt.err (!%p9651_p9)
}
 0x15d   :  { %s11509_s30 = sld [smem:[#allocation57_spill]] }
 0x15e   :  { %230 = dma.hbm_to_vmem [thread:$0]  %s11508_s19, 1152, %s225_s12, [#allocation22], %s9847_s2, %s9847_s2, %s9848_s13  }
 0x163   :  { %s9655_s29 = scalar_lea.hbm %s11509_s30, 2304 }
 0x164   :  { %p9656_p10 = scmp.ne.s32.totalorder %s11509_s30, %s9655_s29  ;;  %p9659_p11 = scmp.lt.u32.totalorder %s9655_s29, %s11509_s30 }
 0x166   :  { %p9661_p12 = pnand %p9659_p11, %p9656_p10 }
 0x168   :  { %9664 = shalt.err (!%p9661_p12)
}
 0x169   :  { %s9665_s20 = scalar_lea.vmem %s249_s21, 2304  ;;  %p9670_p0 = scmp.lt.s32.totalorder %s249_s21, %s249_s21 }
 0x16a   :  { %p9666_p13 = scmp.ne.s32.totalorder %s249_s21, %s9665_s20  ;;  %p9671_p1 = scmp.lt.s32.totalorder %s9665_s20, %s9665_s20 }
 0x16c   :  { %p9672_p2 = por %p9671_p1, %p9670_p0 }
 0x16e   :  { %p9673_p3 = pnand %p9672_p2, %p9666_p13 }
 0x170   :  { %9676 = shalt.err (!%p9673_p3)
}
 0x171   :  { %s11510_s22 = sld [smem:[#allocation58_spill]]  ;;  %s9866_s17 = smov [#allocation29]  }
 0x172   :  { %254 = dma.hbm_to_vmem [thread:$0]  %s11509_s30, 2304, %s249_s21, [#allocation25], %s9847_s2, %s9847_s2, %s9848_s13  }
 0x173   :  { %s273_s26 = sshll.u32 %s9866_s17, 4  ;;  %s9867_s1 = smov [#allocation32]   ;;  %s274_s26 = int_to_ptr.vmem [resolvable:$true] %s273_s26 }
 0x174   :  { %s294_s25 = sshll.u32 %s9867_s1, 4  ;;  %s295_s25 = int_to_ptr.vmem [resolvable:$true] %s294_s25 }
 0x177   :  { %s9677_s28 = scalar_lea.hbm %s11510_s22, 16 }
 0x178   :  { %p9678_p4 = scmp.ne.s32.totalorder %s11510_s22, %s9677_s28  ;;  %p9681_p5 = scmp.lt.u32.totalorder %s9677_s28, %s11510_s22 }
 0x17a   :  { %p9683_p6 = pnand %p9681_p5, %p9678_p4 }
 0x17c   :  { %9686 = shalt.err (!%p9683_p6)
}
 0x17d   :  { %s9687_s10 = scalar_lea.vmem %s274_s26, 16  ;;  %s9691_s4 = scalar_lea.vmem %s274_s26, 32 }
 0x17e   :  { %p9688_p7 = scmp.ne.s32.totalorder %s274_s26, %s9687_s10  ;;  %p9692_p8 = scmp.lt.s32.totalorder %s274_s26, %s274_s26 }
 0x17f   :  { %p9693_p9 = scmp.lt.s32.totalorder %s9691_s4, %s9687_s10 }
 0x181   :  { %p9694_p10 = por %p9693_p9, %p9692_p8 }
 0x183   :  { %p9695_p11 = pnand %p9694_p10, %p9688_p7 }
 0x185   :  { %9698 = shalt.err (!%p9695_p11)
}
 0x186   :  { %s11511_s8 = sld [smem:[#allocation59_spill]] }
 0x187   :  { %276 = dma.hbm_to_vmem [thread:$0]  %s11510_s22, 16, %s274_s26, [#allocation28]  }
 0x18c   :  { %s9699_s5 = scalar_lea.hbm %s11511_s8, 768 }
 0x18d   :  { %p9700_p12 = scmp.ne.s32.totalorder %s11511_s8, %s9699_s5  ;;  %p9703_p13 = scmp.lt.u32.totalorder %s9699_s5, %s11511_s8 }
 0x18f   :  { %p9705_p0 = pnand %p9703_p13, %p9700_p12 }
 0x191   :  { %9708 = shalt.err (!%p9705_p0)
}
 0x192   :  { %s9709_s7 = scalar_lea.vmem %s295_s25, 768  ;;  %p9714_p2 = scmp.lt.s32.totalorder %s295_s25, %s295_s25 }
 0x193   :  { %p9710_p1 = scmp.ne.s32.totalorder %s295_s25, %s9709_s7  ;;  %p9715_p3 = scmp.lt.s32.totalorder %s9709_s7, %s9709_s7 }
 0x195   :  { %p9716_p4 = por %p9715_p3, %p9714_p2 }
 0x197   :  { %p9717_p5 = pnand %p9716_p4, %p9710_p1 }
 0x199   :  { %9720 = shalt.err (!%p9717_p5)
}
 0x19a   :  { %s11512_s3 = sld [smem:[#allocation63_spill]]  ;;  %s9868_s11 = smov [#allocation35]  }
 0x19b   :  { %300 = dma.hbm_to_vmem [thread:$0]  %s11511_s8, 768, %s295_s25, [#allocation31], %s9847_s2, %s9847_s2, %s9848_s13  }
 0x19c   :  { %s324_s0 = sshll.u32 %s9868_s11, 4  ;;  %s9869_s19 = smov [#allocation36]   ;;  %s325_s0 = int_to_ptr.vmem [resolvable:$true] %s324_s0 }
 0x19d   :  { %s342_s15 = sshll.u32 %s9869_s19, 4  ;;  %s343_s15 = int_to_ptr.vmem [resolvable:$true] %s342_s15 }
 0x1a0   :  { %s9721_s12 = scalar_lea.hbm %s11512_s3, 11776 }
 0x1a1   :  { %p9722_p6 = scmp.ne.s32.totalorder %s11512_s3, %s9721_s12  ;;  %p9725_p7 = scmp.lt.u32.totalorder %s9721_s12, %s11512_s3 }
 0x1a3   :  { %p9727_p8 = pnand %p9725_p7, %p9722_p6 }
 0x1a5   :  { %9730 = shalt.err (!%p9727_p8)
}
 0x1a6   :  { %s9731_s16 = scalar_lea.vmem %s325_s0, 11776  ;;  %p9736_p10 = scmp.lt.s32.totalorder %s325_s0, %s325_s0 }
 0x1a7   :  { %p9732_p9 = scmp.ne.s32.totalorder %s325_s0, %s9731_s16  ;;  %p9737_p11 = scmp.lt.s32.totalorder %s9731_s16, %s9731_s16 }
 0x1a9   :  { %p9738_p12 = por %p9737_p11, %p9736_p10 }
 0x1ab   :  { %p9739_p13 = pnand %p9738_p12, %p9732_p9 }
 0x1ad   :  { %9742 = shalt.err (!%p9739_p13)
}
 0x1ae   :  { %330 = dma.hbm_to_vmem [thread:$0]  %s11512_s3, 11776, %s325_s0, [#allocation34], %s9859_s24, %s9859_s24, %s9844_s18  }
 0x1af   :  { %s9743_s21 = scalar_lea.hbm %s10027_s6, 2944 }
 0x1b0   :  { %p9744_p0 = scmp.ne.s32.totalorder %s10027_s6, %s9743_s21  ;;  %p9747_p1 = scmp.lt.u32.totalorder %s9743_s21, %s10027_s6 }
 0x1b2   :  { %p9749_p2 = pnand %p9747_p1, %p9744_p0 }
 0x1b4   :  { %9752 = shalt.err (!%p9749_p2)
}
 0x1b5   :  { %s9753_s9 = scalar_lea.vmem %s343_s15, 2944  ;;  %p9758_p4 = scmp.lt.s32.totalorder %s343_s15, %s343_s15 }
 0x1b6   :  { %p9754_p3 = scmp.ne.s32.totalorder %s343_s15, %s9753_s9  ;;  %p9759_p5 = scmp.lt.s32.totalorder %s9753_s9, %s9753_s9 }
 0x1b8   :  { %p9760_p6 = por %p9759_p5, %p9758_p4 }
 0x1ba   :  { %p9761_p7 = pnand %p9760_p6, %p9754_p3 }
 0x1bc   :  { %9764 = shalt.err (!%p9761_p7)
}
 0x1bd   :  { %348 = dma.hbm_to_vmem [thread:$0]  %s10027_s6, 2944, %s343_s15, [#allocation37], %s9847_s2, %s9847_s2, %s9848_s13  }
 0x1be   :  { %9787 = dma.done.wait [#allocation4], 5120  }
 0x1bf   :  { %9788 = vsyncadd [#allocation4], 4294962176 }
 0x1c0   :  { %9789 = dma.done.wait [#allocation7], 48  }
 0x1c1   :  { %9790 = vsyncadd [#allocation7], 4294967248 }
 0x1c2   :  { %9791 = dma.done.wait [#allocation10], 1536  }
 0x1c3   :  { %9792 = vsyncadd [#allocation10], 4294965760 }
 0x1c4   :  { %9793 = dma.done.wait [#allocation13], 784  }
 0x1c5   :  { %9794 = vsyncadd [#allocation13], 4294966512 }
 0x1c6   :  { %9795 = dma.done.wait [#allocation16], 528  }
 0x1c7   :  { %9796 = vsyncadd [#allocation16], 4294966768 }
 0x1c8   :  { %9797 = dma.done.wait [#allocation19], 1280  }
 0x1c9   :  { %9798 = vsyncadd [#allocation19], 4294966016 }
 0x1ca   :  { %9799 = dma.done.wait [#allocation22], 1168  }
 0x1cb   :  { %9800 = vsyncadd [#allocation22], 4294966128 }
 0x1cc   :  { %9801 = dma.done.wait [#allocation25], 2320  }
 0x1cd   :  { %9802 = vsyncadd [#allocation25], 4294964976 }
 0x1ce   :  { %9803 = dma.done.wait [#allocation28], 1552  }
 0x1cf   :  { %9804 = vsyncadd [#allocation28], 4294965744 }
 0x1d0   :  { %9805 = dma.done.wait [#allocation31], 5376  }
 0x1d1   :  { %9806 = vsyncadd [#allocation31], 4294961920 }
 0x1d2   :  { %9807 = dma.done.wait [#allocation34], 17664  }
 0x1d3   :  { %9808 = vsyncadd [#allocation34], 4294949632 }
 0x1d4   :  { %9809 = dma.done.wait [#allocation37], 2944  }
 0x1d5   :  { %9810 = vsyncadd [#allocation37], 4294964352  ;;  %s11513_s6 = sld [smem:[#allocation52_spill]]  ;;  %v9870_v1 = vmov 0   ;;  %v9871_v8 = vmov 0.0|0.0   ;;  %v612_v23 = vld [vmem:[#allocation3 + $0xa8] sm:$0xff] }
 0x1d6   :  { %9263 = vset.pattern.permute.xlu1 %v9870_v1  ;;  %9262 = vset.pattern.permute.xlu0 %v9870_v1  ;;  %vm631_vm0 = vcmask 261120   ;;  %v563_v24 = vld [vmem:[#allocation3 + $0x8] sm:$0xff]  ;;  %v10214_v27 = vld [vmem:[#allocation6] ss:$0 sm:$0xff]  ;;  %v10216_v28 = vld [vmem:[#allocation6 + $0x1] ss:$0 sm:$0xff] }
 0x1d7   :  { %8778 = vmatprep.subr.bf16.mxu0 %v9871_v8  ;;  %8808 = vmatprep.subr.bf16.mxu1 %v9871_v8  ;;  %vm939_vm1 = vcmask 64512   ;;  %vm9872_vm2 = vmmov 0   ;;  %vm1309_vm3 = vcmask 654336   ;;  %vm1532_vm4 = vcmask 130048   ;;  %s11514_s18 = sld [smem:[#allocation56_spill]]  ;;  %s11517_s2 = sld [smem:[#allocation61_spill]] }
 0x1d8   :  { %7082 = vmatprep.mubr.msk.f32.mxu0 %vm631_vm0, %v612_v23  ;;  %7092 = vmatprep.mubr.msk.f32.mxu1 %vm631_vm0, %v563_v24  ;;  %vm1795_vm5 = vcmask 326656   ;;  %vm1987_vm6 = vcmask 257024   ;;  %vm2209_vm7 = vcmask 1043456   ;;  %vm2205_vm8 = vcmask 162816   ;;  %s11518_s13 = sld [smem:[#allocation60_spill]]  ;;  %s11519_s24 = sld [smem:[#allocation62_spill]] }
 0x1d9   :  { %vm2367_vm9 = vcmask 523264   ;;  %vm3618_vm10 = vcmask 125952   ;;  %vm3911_vm11 = vcmask 359424   ;;  %vm9874_vm12 = vmmov 1   ;;  %s11520_s23 = sld [smem:[#allocation64_spill]] }
 0x1da   :  { %vm10681_vm13 = vmpackc.low %vm2209_vm7, %vm9874_vm12  ;;  %vm4567_vm14 = vcmask 60416   ;;  %vm4994_vm15 = vcmask 752640  }
 0x1db   :  { %v417_v2 = vld [vmem:[%s11513_s6 + $0x10] sm:$0xff]  ;;  %v415_v3 = vld [vmem:[%s11513_s6] sm:$0xff]  ;;  %v418_v4 = vld [vmem:[%s11513_s6 + $0x18] sm:$0xff] }
 0x1dc   :  { %448 = vperm.xlu1 %9263, %v417_v2   ;;  %438 = vperm.xlu0 %9262, %v415_v3   ;;  %v416_v5 = vld [vmem:[%s11513_s6 + $0x8] sm:$0xff]  ;;  %v419_v7 = vld [vmem:[%s11513_s6 + $0x20] sm:$0xff]  ;;  %v422_v9 = vld [vmem:[%s11513_s6 + $0x38] sm:$0xff] }
 0x1dd   :  { %v420_v6 = vld [vmem:[%s11513_s6 + $0x28] sm:$0xff]  ;;  %v421_v10 = vld [vmem:[%s11513_s6 + $0x30] sm:$0xff]  ;;  %v423_v12 = vld [vmem:[%s11513_s6 + $0x40] sm:$0xff] }
 0x1de   :  { %v424_v11 = vld [vmem:[%s11513_s6 + $0x48] sm:$0xff]  ;;  %v426_v13 = vld [vmem:[%s11513_s6 + $0x58] sm:$0xff]  ;;  %v425_v14 = vld [vmem:[%s11513_s6 + $0x50] sm:$0xff] }
 0x1df   :  { %v428_v15 = vld [vmem:[%s11513_s6 + $0x68] sm:$0xff]  ;;  %v427_v16 = vld [vmem:[%s11513_s6 + $0x60] sm:$0xff]  ;;  %v430_v17 = vld [vmem:[%s11513_s6 + $0x78] sm:$0xff] }
 0x1e0   :  { %453 = vperm.xlu1 %9263, %v418_v4   ;;  %443 = vperm.xlu0 %9262, %v416_v5   ;;  %v429_v18 = vld [vmem:[%s11513_s6 + $0x70] sm:$0xff]  ;;  %v432_v19 = vld [vmem:[%s11513_s6 + $0x88] sm:$0xff]  ;;  %v431_v20 = vld [vmem:[%s11513_s6 + $0x80] sm:$0xff] }
 0x1e1   :  { %v434_v21 = vld [vmem:[%s11513_s6 + $0x98] sm:$0xff]  ;;  %v433_v22 = vld [vmem:[%s11513_s6 + $0x90] sm:$0xff] }
 0x1e4   :  { %463 = vperm.xlu1 %9263, %v420_v6   ;;  %458 = vperm.xlu0 %9262, %v419_v7  }
 0x1e8   :  { %473 = vperm.xlu1 %9263, %v422_v9   ;;  %468 = vperm.xlu0 %9262, %v421_v10  }
 0x1ec   :  { %483 = vperm.xlu1 %9263, %v424_v11   ;;  %478 = vperm.xlu0 %9262, %v423_v12  }
 0x1f0   :  { %493 = vperm.xlu1 %9263, %v426_v13   ;;  %488 = vperm.xlu0 %9262, %v425_v14  }
 0x1f4   :  { %503 = vperm.xlu1 %9263, %v428_v15   ;;  %498 = vperm.xlu0 %9262, %v427_v16  }
 0x1f8   :  { %513 = vperm.xlu1 %9263, %v430_v17   ;;  %508 = vperm.xlu0 %9262, %v429_v18  }
 0x1fc   :  { %523 = vperm.xlu1 %9263, %v432_v19   ;;  %518 = vperm.xlu0 %9262, %v431_v20  }
 0x200   :  { %533 = vperm.xlu1 %9263, %v434_v21   ;;  %528 = vperm.xlu0 %9262, %v433_v22  }
 0x25b   :  { %v449_v25 = vpop.permute.xlu1 %448  ;;  %v439_v26 = vpop.permute.xlu0 %438 }
 0x25c   :  { %v542_v31 = vmul.f32 %v10214_v27, %v439_v26  ;;  %v590_v32 = vmul.f32 %v10216_v28, %v439_v26  ;;  %v592_v35 = vmul.f32 %v10216_v28, %v449_v25  ;;  %v544_v39 = vmul.f32 %v10214_v27, %v449_v25 }
 0x25f   :  { %v454_v29 = vpop.permute.xlu1 %453  ;;  %v444_v30 = vpop.permute.xlu0 %443 }
 0x260   :  { %v543_v33 = vmul.f32 %v10214_v27, %v444_v30  ;;  %v591_v34 = vmul.f32 %v10216_v28, %v444_v30  ;;  %v593_v36 = vmul.f32 %v10216_v28, %v454_v29  ;;  %v545_v40 = vmul.f32 %v10214_v27, %v454_v29 }
 0x262   :  { %v8779_v37 = vpack.c.bf16 %v591_v34, %v590_v32  ;;  %v8809_v38 = vpack.c.bf16 %v543_v33, %v542_v31  ;;  %v8782_v43 = vpack.c.bf16 %v593_v36, %v592_v35  ;;  %v8812_v46 = vpack.c.bf16 %v545_v40, %v544_v39 }
 0x263   :  { %v464_v41 = vpop.permute.xlu1 %463  ;;  %v459_v42 = vpop.permute.xlu0 %458 }
 0x264   :  { %8780 = vmatpush1.bf16.msra.mxu0 %v8779_v37  ;;  %8810 = vmatpush1.bf16.msra.mxu1 %v8809_v38  ;;  %v595_v44 = vmul.f32 %v10216_v28, %v464_v41  ;;  %v594_v45 = vmul.f32 %v10216_v28, %v459_v42  ;;  %v547_v47 = vmul.f32 %v10214_v27, %v464_v41 }
 0x265   :  { %8781 = vmatprep.subr.bf16.mxu0 %v9871_v8  ;;  %8811 = vmatprep.subr.bf16.mxu1 %v9871_v8  ;;  %v546_v48 = vmul.f32 %v10214_v27, %v459_v42 }
 0x266   :  { %v8785_v51 = vpack.c.bf16 %v595_v44, %v594_v45 }
 0x267   :  { %v474_v49 = vpop.permute.xlu1 %473  ;;  %v469_v50 = vpop.permute.xlu0 %468  ;;  %v8815_v54 = vpack.c.bf16 %v547_v47, %v546_v48  ;;  %v562_v47 = vld [vmem:[#allocation3] sm:$0xff]  ;;  %v565_v48 = vld [vmem:[#allocation3 + $0x18] sm:$0xff] }
 0x268   :  { %8783 = vmatpush1.bf16.msra.mxu0 %v8782_v43  ;;  %8813 = vmatpush1.bf16.msra.mxu1 %v8812_v46  ;;  %v597_v52 = vmul.f32 %v10216_v28, %v474_v49  ;;  %v596_v53 = vmul.f32 %v10216_v28, %v469_v50  ;;  %v549_v55 = vmul.f32 %v10214_v27, %v474_v49  ;;  %v611_v46 = vld [vmem:[#allocation3 + $0xa0] sm:$0xff]  ;;  %v613_v49 = vld [vmem:[#allocation3 + $0xb0] sm:$0xff] }
 0x269   :  { %8784 = vmatprep.subr.bf16.mxu0 %v9871_v8  ;;  %8814 = vmatprep.subr.bf16.mxu1 %v9871_v8  ;;  %v548_v56 = vmul.f32 %v10214_v27, %v469_v50  ;;  %v616_v50 = vld [vmem:[#allocation3 + $0xc8] sm:$0xff] }
 0x26a   :  { %v8788_v59 = vpack.c.bf16 %v597_v52, %v596_v53  ;;  %v615_v52 = vld [vmem:[#allocation3 + $0xc0] sm:$0xff] }
 0x26b   :  { %v484_v57 = vpop.permute.xlu1 %483  ;;  %v479_v58 = vpop.permute.xlu0 %478  ;;  %v8818_v62 = vpack.c.bf16 %v549_v55, %v548_v56  ;;  %v566_v53 = vld [vmem:[#allocation3 + $0x20] sm:$0xff]  ;;  %v569_v55 = vld [vmem:[#allocation3 + $0x38] sm:$0xff]  ;;  %v617_v56 = vld [vmem:[#allocation3 + $0xd0] sm:$0xff] }
 0x26c   :  { %8786 = vmatpush1.bf16.msra.mxu0 %v8785_v51  ;;  %8816 = vmatpush1.bf16.msra.mxu1 %v8815_v54  ;;  %v599_v60 = vmul.f32 %v10216_v28, %v484_v57  ;;  %v598_v61 = vmul.f32 %v10216_v28, %v479_v58  ;;  %v551_v63 = vmul.f32 %v10214_v27, %v484_v57  ;;  %v567_v51 = vld [vmem:[#allocation3 + $0x28] sm:$0xff]  ;;  %v618_v54 = vld [vmem:[#allocation3 + $0xd8] sm:$0xff]  ;;  %v568_v57 = vld [vmem:[#allocation3 + $0x30] sm:$0xff] }
 0x26d   :  { %8787 = vmatprep.subr.bf16.mxu0 %v9871_v8  ;;  %8817 = vmatprep.subr.bf16.mxu1 %v9871_v8  ;;  %v550_v0 = vmul.f32 %v10214_v27, %v479_v58  ;;  %v620_v58 = vld [vmem:[#allocation3 + $0xe8] sm:$0xff] }
 0x26e   :  { %v8791_v3 = vpack.c.bf16 %v599_v60, %v598_v61  ;;  %v619_v60 = vld [vmem:[#allocation3 + $0xe0] sm:$0xff] }
 0x26f   :  { %v494_v1 = vpop.permute.xlu1 %493  ;;  %v489_v2 = vpop.permute.xlu0 %488  ;;  %v8821_v6 = vpack.c.bf16 %v551_v63, %v550_v0  ;;  %v570_v61 = vld [vmem:[#allocation3 + $0x40] sm:$0xff]  ;;  %v573_v63 = vld [vmem:[#allocation3 + $0x58] sm:$0xff]  ;;  %v621_v0 = vld [vmem:[#allocation3 + $0xf0] sm:$0xff] }
 0x270   :  { %8789 = vmatpush1.bf16.msra.mxu0 %v8788_v59  ;;  %8819 = vmatpush1.bf16.msra.mxu1 %v8818_v62  ;;  %v601_v4 = vmul.f32 %v10216_v28, %v494_v1  ;;  %v600_v5 = vmul.f32 %v10216_v28, %v489_v2  ;;  %v553_v7 = vmul.f32 %v10214_v27, %v494_v1  ;;  %v571_v59 = vld [vmem:[#allocation3 + $0x48] sm:$0xff]  ;;  %v622_v62 = vld [vmem:[#allocation3 + $0xf8] sm:$0xff]  ;;  %v572_v1 = vld [vmem:[#allocation3 + $0x50] sm:$0xff] }
 0x271   :  { %8790 = vmatprep.subr.bf16.mxu0 %v9871_v8  ;;  %8820 = vmatprep.subr.bf16.mxu1 %v9871_v8  ;;  %v552_v9 = vmul.f32 %v10214_v27, %v489_v2  ;;  %v624_v2 = vld [vmem:[#allocation3 + $0x108] sm:$0xff] }
 0x272   :  { %v8794_v12 = vpack.c.bf16 %v601_v4, %v600_v5  ;;  %v623_v4 = vld [vmem:[#allocation3 + $0x100] sm:$0xff] }
 0x273   :  { %v504_v10 = vpop.permute.xlu1 %503  ;;  %v499_v11 = vpop.permute.xlu0 %498  ;;  %v8824_v15 = vpack.c.bf16 %v553_v7, %v552_v9  ;;  %v574_v5 = vld [vmem:[#allocation3 + $0x60] sm:$0xff]  ;;  %v577_v7 = vld [vmem:[#allocation3 + $0x78] sm:$0xff]  ;;  %v625_v9 = vld [vmem:[#allocation3 + $0x110] sm:$0xff] }
 0x274   :  { %8792 = vmatpush1.bf16.msra.mxu0 %v8791_v3  ;;  %8822 = vmatpush1.bf16.msra.mxu1 %v8821_v6  ;;  %v603_v13 = vmul.f32 %v10216_v28, %v504_v10  ;;  %v602_v14 = vmul.f32 %v10216_v28, %v499_v11  ;;  %v555_v16 = vmul.f32 %v10214_v27, %v504_v10  ;;  %v575_v3 = vld [vmem:[#allocation3 + $0x68] sm:$0xff]  ;;  %v626_v6 = vld [vmem:[#allocation3 + $0x118] sm:$0xff]  ;;  %v576_v10 = vld [vmem:[#allocation3 + $0x70] sm:$0xff] }
 0x275   :  { %8793 = vmatprep.subr.bf16.mxu0 %v9871_v8  ;;  %8823 = vmatprep.subr.bf16.mxu1 %v9871_v8  ;;  %v554_v17 = vmul.f32 %v10214_v27, %v499_v11  ;;  %v628_v11 = vld [vmem:[#allocation3 + $0x128] sm:$0xff] }
 0x276   :  { %v8797_v20 = vpack.c.bf16 %v603_v13, %v602_v14  ;;  %v627_v13 = vld [vmem:[#allocation3 + $0x120] sm:$0xff] }
 0x277   :  { %v514_v18 = vpop.permute.xlu1 %513  ;;  %v509_v19 = vpop.permute.xlu0 %508  ;;  %v8827_v23 = vpack.c.bf16 %v555_v16, %v554_v17  ;;  %v578_v14 = vld [vmem:[#allocation3 + $0x80] sm:$0xff]  ;;  %v581_v16 = vld [vmem:[#allocation3 + $0x98] sm:$0xff]  ;;  %v629_v17 = vld [vmem:[#allocation3 + $0x130] sm:$0xff] }
 0x278   :  { %8795 = vmatpush1.bf16.msra.mxu0 %v8794_v12  ;;  %8825 = vmatpush1.bf16.msra.mxu1 %v8824_v15  ;;  %v605_v21 = vmul.f32 %v10216_v28, %v514_v18  ;;  %v604_v22 = vmul.f32 %v10216_v28, %v509_v19  ;;  %v557_v24 = vmul.f32 %v10214_v27, %v514_v18  ;;  %v579_v12 = vld [vmem:[#allocation3 + $0x88] sm:$0xff]  ;;  %v630_v15 = vld [vmem:[#allocation3 + $0x138] sm:$0xff]  ;;  %v580_v18 = vld [vmem:[#allocation3 + $0x90] sm:$0xff] }
 0x279   :  { %8796 = vmatprep.subr.bf16.mxu0 %v9871_v8  ;;  %8826 = vmatprep.subr.bf16.mxu1 %v9871_v8  ;;  %v556_v25 = vmul.f32 %v10214_v27, %v509_v19  ;;  %v1035_v19 = vld [vmem:[#allocation11] sm:$0xff] }
 0x27a   :  { %v8800_v30 = vpack.c.bf16 %v605_v21, %v604_v22 }
 0x27b   :  { %v524_v26 = vpop.permute.xlu1 %523  ;;  %v519_v29 = vpop.permute.xlu0 %518  ;;  %v8830_v33 = vpack.c.bf16 %v557_v24, %v556_v25 }
 0x27c   :  { %8798 = vmatpush1.bf16.msra.mxu0 %v8797_v20  ;;  %8828 = vmatpush1.bf16.msra.mxu1 %v8827_v23  ;;  %v607_v31 = vmul.f32 %v10216_v28, %v524_v26  ;;  %v606_v32 = vmul.f32 %v10216_v28, %v519_v29  ;;  %v559_v34 = vmul.f32 %v10214_v27, %v524_v26  ;;  %v1187_v20 = vld [vmem:[#allocation11 + $0x8] sm:$0xff] }
 0x27d   :  { %8799 = vmatprep.subr.bf16.mxu0 %v9871_v8  ;;  %8829 = vmatprep.subr.bf16.mxu1 %v9871_v8  ;;  %v558_v35 = vmul.f32 %v10214_v27, %v519_v29  ;;  %v10296_v26 = vld [vmem:[#allocation8] ss:$0 sm:$0xff] }
 0x27e   :  { %v8803_v38 = vpack.c.bf16 %v607_v31, %v606_v32 }
 0x27f   :  { %v534_v36 = vpop.permute.xlu1 %533  ;;  %v529_v37 = vpop.permute.xlu0 %528  ;;  %v8833_v41 = vpack.c.bf16 %v559_v34, %v558_v35 }
 0x280   :  { %8801 = vmatpush1.bf16.msra.mxu0 %v8800_v30  ;;  %8831 = vmatpush1.bf16.msra.mxu1 %v8830_v33  ;;  %v609_v39 = vmul.f32 %v10216_v28, %v534_v36  ;;  %v608_v40 = vmul.f32 %v10216_v28, %v529_v37  ;;  %v561_v42 = vmul.f32 %v10214_v27, %v534_v36  ;;  %v614_v28 = vld [vmem:[#allocation3 + $0xb8] sm:$0xff] }
 0x281   :  { %8802 = vmatprep.subr.bf16.mxu0 %v9871_v8  ;;  %8832 = vmatprep.subr.bf16.mxu1 %v9871_v8  ;;  %v560_v43 = vmul.f32 %v10214_v27, %v529_v37  ;;  %v564_v27 = vld [vmem:[#allocation3 + $0x10] sm:$0xff] }
 0x282   :  { %v8806_v44 = vpack.c.bf16 %v609_v39, %v608_v40 }
 0x283   :  { %v8836_v45 = vpack.c.bf16 %v561_v42, %v560_v43 }
 0x284   :  { %8804 = vmatpush1.bf16.msra.mxu0 %v8803_v38  ;;  %8834 = vmatpush1.bf16.msra.mxu1 %v8833_v41 }
 0x285   :  { %8805 = vmatprep.subr.bf16.mxu0 %v9871_v8  ;;  %8835 = vmatprep.subr.bf16.mxu1 %v9871_v8 }
 0x288   :  { %8807 = vmatpush1.bf16.msra.mxu0 %v8806_v44  ;;  %8837 = vmatpush1.bf16.msra.mxu1 %v8836_v45 }
 0x289   :  { %7863 = vmatprep.subr.mxu0 %v1035_v19  ;;  %7880 = vmatprep.subr.mxu1 %v1187_v20 }
 0x28b   :  { %727 = vmatmul.mubr.f32.vlgmr.msra.gmra.mrb[0].mxu0 %v611_v46  ;;  %872 = vmatmul.mubr.f32.vlgmr.msra.gmra.mrb[0].mxu1 %v562_v47 }
 0x28c   :  { %7083 = vmatprep.mubr.msk.f32.mxu0 %vm631_vm0, %v614_v28  ;;  %7093 = vmatprep.mubr.msk.f32.mxu1 %vm631_vm0, %v565_v48 }
 0x28d   :  { %7864 = vmatpush3.msra.mxu0 %v1035_v19  ;;  %7881 = vmatpush3.msra.mxu1 %v1187_v20 }
 0x28e   :  { %8838 = vmatprep.subr.bf16.mxu0 %v9871_v8  ;;  %8853 = vmatprep.subr.bf16.mxu1 %v9871_v8 }
 0x28f   :  { %732 = vmatmul.mubr.f32.gmra.mrb[2].mxu0 %v613_v49  ;;  %877 = vmatmul.mubr.f32.gmra.mrb[2].mxu1 %v564_v27 }
 0x290   :  { %7084 = vmatprep.mubr.msk.f32.mxu0 %vm631_vm0, %v616_v50  ;;  %7094 = vmatprep.mubr.msk.f32.mxu1 %vm631_vm0, %v567_v51 }
 0x293   :  { %737 = vmatmul.mubr.f32.gmra.mrb[4].mxu0 %v615_v52  ;;  %882 = vmatmul.mubr.f32.gmra.mrb[4].mxu1 %v566_v53 }
 0x294   :  { %7085 = vmatprep.mubr.msk.f32.mxu0 %vm631_vm0, %v618_v54  ;;  %7095 = vmatprep.mubr.msk.f32.mxu1 %vm631_vm0, %v569_v55 }
 0x297   :  { %742 = vmatmul.mubr.f32.gmra.mrb[6].mxu0 %v617_v56  ;;  %887 = vmatmul.mubr.f32.gmra.mrb[6].mxu1 %v568_v57 }
 0x298   :  { %7086 = vmatprep.mubr.msk.f32.mxu0 %vm631_vm0, %v620_v58  ;;  %7096 = vmatprep.mubr.msk.f32.mxu1 %vm631_vm0, %v571_v59 }
 0x29b   :  { %747 = vmatmul.mubr.f32.gmra.mrb[8].mxu0 %v619_v60  ;;  %892 = vmatmul.mubr.f32.gmra.mrb[8].mxu1 %v570_v61 }
 0x29c   :  { %7087 = vmatprep.mubr.msk.f32.mxu0 %vm631_vm0, %v622_v62  ;;  %7097 = vmatprep.mubr.msk.f32.mxu1 %vm631_vm0, %v573_v63 }
 0x29f   :  { %752 = vmatmul.mubr.f32.gmra.mrb[10].mxu0 %v621_v0  ;;  %897 = vmatmul.mubr.f32.gmra.mrb[10].mxu1 %v572_v1 }
 0x2a0   :  { %7088 = vmatprep.mubr.msk.f32.mxu0 %vm631_vm0, %v624_v2  ;;  %7098 = vmatprep.mubr.msk.f32.mxu1 %vm631_vm0, %v575_v3 }
 0x2a3   :  { %757 = vmatmul.mubr.f32.gmra.mrb[12].mxu0 %v623_v4  ;;  %902 = vmatmul.mubr.f32.gmra.mrb[12].mxu1 %v574_v5 }
 0x2a4   :  { %7089 = vmatprep.mubr.msk.f32.mxu0 %vm631_vm0, %v626_v6  ;;  %7099 = vmatprep.mubr.msk.f32.mxu1 %vm631_vm0, %v577_v7 }
 0x2a7   :  { %762 = vmatmul.mubr.f32.gmra.mrb[14].mxu0 %v625_v9  ;;  %907 = vmatmul.mubr.f32.gmra.mrb[14].mxu1 %v576_v10 }
 0x2a8   :  { %7090 = vmatprep.mubr.msk.f32.mxu0 %vm631_vm0, %v628_v11  ;;  %7100 = vmatprep.mubr.msk.f32.mxu1 %vm631_vm0, %v579_v12 }
 0x2ab   :  { %767 = vmatmul.mubr.f32.gmra.mrb[16].mxu0 %v627_v13  ;;  %912 = vmatmul.mubr.f32.gmra.mrb[16].mxu1 %v578_v14 }
 0x2ac   :  { %7091 = vmatprep.mubr.msk.f32.mxu0 %vm631_vm0, %v630_v15  ;;  %7101 = vmatprep.mubr.msk.f32.mxu1 %vm631_vm0, %v581_v16 }
 0x2af   :  { %772 = vmatmul.mubr.f32.gmra.mrb[18].mxu0 %v629_v17  ;;  %917 = vmatmul.mubr.f32.gmra.mrb[18].mxu1 %v580_v18 }
 0x35e   :  { %v728_v21 = vpop.f32.mrb[0].mxu0  ;;  %v873_v22 = vpop.f32.mrb[0].mxu1 }
 0x35f   :  { %v730_v23 = vpop.f32.mrb[1].mxu0  ;;  %v874_v24 = vadd.f32 %v873_v22, %v728_v21  ;;  %v875_v25 = vpop.f32.mrb[1].mxu1 }
 0x361   :  { %v10299_v32 = vadd.f32 %v10296_v26, %v874_v24 }
 0x362   :  { %v733_v29 = vpop.f32.mrb[2].mxu0  ;;  %v878_v30 = vpop.f32.mrb[2].mxu1 }
 0x363   :  { %v735_v31 = vpop.f32.mrb[3].mxu0  ;;  %v879_v33 = vadd.f32 %v878_v30, %v733_v29  ;;  %v880_v34 = vpop.f32.mrb[3].mxu1  ;;  %v940_v39 = vsel %vm939_vm1, %v10299_v32, 0.0 }
 0x365   :  { %v10302_v35 = vadd.f32 %v10296_v26, %v879_v33 }
 0x366   :  { %v738_v36 = vpop.f32.mrb[4].mxu0  ;;  %v883_v37 = vpop.f32.mrb[4].mxu1 }
 0x367   :  { %v740_v38 = vpop.f32.mrb[5].mxu0  ;;  %v941_v40 = vsel %vm939_vm1, %v10302_v35, 0.0  ;;  %v884_v41 = vadd.f32 %v883_v37, %v738_v36  ;;  %v885_v42 = vpop.f32.mrb[5].mxu1 }
 0x368   :  { %v942_v43 = vadd.f32 %v941_v40, %v940_v39 }
 0x369   :  { %v10309_v44 = vadd.f32 %v10296_v26, %v884_v41 }
 0x36a   :  { %v743_v45 = vpop.f32.mrb[6].mxu0  ;;  %v888_v46 = vpop.f32.mrb[6].mxu1 }
 0x36b   :  { %v745_v47 = vpop.f32.mrb[7].mxu0  ;;  %v943_v28 = vsel %vm939_vm1, %v10309_v44, 0.0  ;;  %v889_v48 = vadd.f32 %v888_v46, %v743_v45  ;;  %v890_v49 = vpop.f32.mrb[7].mxu1 }
 0x36c   :  { %v944_v27 = vadd.f32 %v943_v28, %v942_v43 }
 0x36d   :  { %v932_v50 = vadd.f32 %v10296_v26, %v889_v48 }
 0x36e   :  { %v748_v51 = vpop.f32.mrb[8].mxu0  ;;  %v893_v52 = vpop.f32.mrb[8].mxu1 }
 0x36f   :  { %v750_v53 = vpop.f32.mrb[9].mxu0  ;;  %v945_v54 = vsel %vm939_vm1, %v932_v50, 0.0  ;;  %v894_v55 = vadd.f32 %v893_v52, %v748_v51  ;;  %v895_v56 = vpop.f32.mrb[9].mxu1 }
 0x370   :  { %v946_v57 = vadd.f32 %v945_v54, %v944_v27 }
 0x371   :  { %v933_v58 = vadd.f32 %v10296_v26, %v894_v55 }
 0x372   :  { %v753_v59 = vpop.f32.mrb[10].mxu0  ;;  %v898_v60 = vpop.f32.mrb[10].mxu1 }
 0x373   :  { %v755_v61 = vpop.f32.mrb[11].mxu0  ;;  %v947_v62 = vsel %vm939_vm1, %v933_v58, 0.0  ;;  %v899_v63 = vadd.f32 %v898_v60, %v753_v59  ;;  %v900_v0 = vpop.f32.mrb[11].mxu1 }
 0x374   :  { %v948_v1 = vadd.f32 %v947_v62, %v946_v57 }
 0x375   :  { %v934_v2 = vadd.f32 %v10296_v26, %v899_v63 }
 0x376   :  { %v758_v3 = vpop.f32.mrb[12].mxu0  ;;  %v903_v4 = vpop.f32.mrb[12].mxu1 }
 0x377   :  { %v760_v5 = vpop.f32.mrb[13].mxu0  ;;  %v949_v6 = vsel %vm939_vm1, %v934_v2, 0.0  ;;  %v904_v7 = vadd.f32 %v903_v4, %v758_v3  ;;  %v905_v9 = vpop.f32.mrb[13].mxu1 }
 0x378   :  { %v950_v10 = vadd.f32 %v949_v6, %v948_v1 }
 0x379   :  { %v935_v11 = vadd.f32 %v10296_v26, %v904_v7 }
 0x37a   :  { %v763_v12 = vpop.f32.mrb[14].mxu0  ;;  %v908_v13 = vpop.f32.mrb[14].mxu1 }
 0x37b   :  { %v765_v14 = vpop.f32.mrb[15].mxu0  ;;  %v951_v15 = vsel %vm939_vm1, %v935_v11, 0.0  ;;  %v909_v16 = vadd.f32 %v908_v13, %v763_v12  ;;  %v910_v17 = vpop.f32.mrb[15].mxu1 }
 0x37c   :  { %v952_v18 = vadd.f32 %v951_v15, %v950_v10 }
 0x37d   :  { %v936_v19 = vadd.f32 %v10296_v26, %v909_v16 }
 0x37e   :  { %v768_v20 = vpop.f32.mrb[16].mxu0  ;;  %v913_v21 = vpop.f32.mrb[16].mxu1 }
 0x37f   :  { %v770_v22 = vpop.f32.mrb[17].mxu0  ;;  %v953_v23 = vsel %vm939_vm1, %v936_v19, 0.0  ;;  %v914_v24 = vadd.f32 %v913_v21, %v768_v20  ;;  %v915_v25 = vpop.f32.mrb[17].mxu1 }
 0x380   :  { %v954_v29 = vadd.f32 %v953_v23, %v952_v18 }
 0x381   :  { %v937_v30 = vadd.f32 %v10296_v26, %v914_v24 }
 0x382   :  { %v773_v31 = vpop.f32.mrb[18].mxu0  ;;  %v918_v33 = vpop.f32.mrb[18].mxu1 }
 0x383   :  { %v775_v34 = vpop.f32.mrb[19].mxu0  ;;  %v955_v36 = vsel %vm939_vm1, %v937_v30, 0.0  ;;  %v919_v37 = vadd.f32 %v918_v33, %v773_v31  ;;  %v920_v38 = vpop.f32.mrb[19].mxu1 }
 0x384   :  { %v956_v39 = vadd.f32 %v955_v36, %v954_v29 }
 0x385   :  { %v938_v40 = vadd.f32 %v10296_v26, %v919_v37 }
 0x387   :  { %v957_v41 = vsel %vm939_vm1, %v938_v40, 0.0 }
 0x388   :  { %v958_v42 = vadd.f32 %v957_v41, %v956_v39 }
 0x38a   :  { %v959_v43 = vrot.slane %v958_v42, 4 }
 0x38c   :  { %v960_v45 = vadd.f32 %v959_v43, %v958_v42 }
 0x38e   :  { %v961_v46 = vrot.slane %v960_v45, 2 }
 0x390   :  { %v962_v47 = vadd.f32 %v961_v46, %v960_v45 }
 0x392   :  { %v963_v28 = vrot.slane %v962_v47, 1 }
 0x394   :  { %v964_v48 = vadd.f32 %v963_v28, %v962_v47 }
 0x396   :  { %v966_v49 = vmul.f32 0.0125, %v964_v48 }
 0x398   :  { %v967_v27 = vsub.f32 %v10299_v32, %v966_v49  ;;  %v968_v51 = vsub.f32 %v10302_v35, %v966_v49  ;;  %v969_v52 = vsub.f32 %v10309_v44, %v966_v49  ;;  %v970_v53 = vsub.f32 %v932_v50, %v966_v49 }
 0x399   :  { %v971_v54 = vsub.f32 %v933_v58, %v966_v49  ;;  %v972_v55 = vsub.f32 %v934_v2, %v966_v49  ;;  %v973_v26 = vsub.f32 %v935_v11, %v966_v49  ;;  %v974_v56 = vsub.f32 %v936_v19, %v966_v49 }
 0x39a   :  { %v975_v57 = vsub.f32 %v937_v30, %v966_v49  ;;  %v976_v59 = vsub.f32 %v938_v40, %v966_v49  ;;  %v977_v60 = vmul.f32 %v967_v27, %v967_v27  ;;  %v978_v61 = vmul.f32 %v968_v51, %v968_v51 }
 0x39b   :  { %v979_v62 = vmul.f32 %v969_v52, %v969_v52  ;;  %v980_v63 = vmul.f32 %v970_v53, %v970_v53  ;;  %v981_v3 = vmul.f32 %v971_v54, %v971_v54  ;;  %v982_v50 = vmul.f32 %v972_v55, %v972_v55 }
 0x39c   :  { %v987_v0 = vsel %vm939_vm1, %v977_v60, 0.0  ;;  %v988_v1 = vsel %vm939_vm1, %v978_v61, 0.0  ;;  %v983_v4 = vmul.f32 %v973_v26, %v973_v26  ;;  %v984_v7 = vmul.f32 %v974_v56, %v974_v56 }
 0x39d   :  { %v989_v32 = vadd.f32 %v988_v1, %v987_v0  ;;  %v990_v35 = vsel %vm939_vm1, %v979_v62, 0.0  ;;  %v992_v58 = vsel %vm939_vm1, %v980_v63, 0.0  ;;  %v994_v5 = vsel %vm939_vm1, %v981_v3, 0.0 }
 0x39e   :  { %v996_v9 = vsel %vm939_vm1, %v982_v50, 0.0  ;;  %v985_v11 = vmul.f32 %v975_v57, %v975_v57  ;;  %v998_v12 = vsel %vm939_vm1, %v983_v4, 0.0  ;;  %v986_v14 = vmul.f32 %v976_v59, %v976_v59 }
 0x39f   :  { %v991_v44 = vadd.f32 %v990_v35, %v989_v32  ;;  %v1000_v15 = vsel %vm939_vm1, %v984_v7, 0.0 }
 0x3a0   :  { %v1002_v17 = vsel %vm939_vm1, %v985_v11, 0.0  ;;  %v1004_v19 = vsel %vm939_vm1, %v986_v14, 0.0 }
 0x3a1   :  { %v993_v2 = vadd.f32 %v992_v58, %v991_v44 }
 0x3a3   :  { %v995_v6 = vadd.f32 %v994_v5, %v993_v2 }
 0x3a5   :  { %v997_v10 = vadd.f32 %v996_v9, %v995_v6 }
 0x3a7   :  { %v999_v13 = vadd.f32 %v998_v12, %v997_v10 }
 0x3a9   :  { %v1001_v16 = vadd.f32 %v1000_v15, %v999_v13 }
 0x3ab   :  { %v1003_v18 = vadd.f32 %v1002_v17, %v1001_v16 }
 0x3ad   :  { %v1005_v20 = vadd.f32 %v1004_v19, %v1003_v18  ;;  %v1304_v18 = vld [vmem:[#allocation9 + $0x28] sm:$0xff]  ;;  %v1181_v19 = vld [vmem:[#allocation9] sm:$0xff] }
 0x3af   :  { %v1006_v21 = vrot.slane %v1005_v20, 4 }
 0x3b1   :  { %v1007_v22 = vadd.f32 %v1006_v21, %v1005_v20  ;;  %v1305_v20 = vld [vmem:[#allocation9 + $0x30] sm:$0xff]  ;;  %v1182_v21 = vld [vmem:[#allocation9 + $0x8] sm:$0xff] }
 0x3b3   :  { %v1008_v23 = vrot.slane %v1007_v22, 2 }
 0x3b5   :  { %v1009_v24 = vadd.f32 %v1008_v23, %v1007_v22  ;;  %v1306_v22 = vld [vmem:[#allocation9 + $0x38] sm:$0xff]  ;;  %v1183_v23 = vld [vmem:[#allocation9 + $0x10] sm:$0xff] }
 0x3b7   :  { %v1010_v25 = vrot.slane %v1009_v24, 1 }
 0x3b9   :  { %v1011_v29 = vadd.f32 %v1010_v25, %v1009_v24  ;;  %v1307_v24 = vld [vmem:[#allocation9 + $0x40] sm:$0xff]  ;;  %v1184_v25 = vld [vmem:[#allocation9 + $0x18] sm:$0xff] }
 0x3bb   :  { %v1012_v30 = vmul.f32 0.0125, %v1011_v29  ;;  %v1308_v29 = vld [vmem:[#allocation9 + $0x48] sm:$0xff] }
 0x3bd   :  { %v1013_v31 = vadd.f32 1e-05, %v1012_v30  ;;  %v1185_v30 = vld [vmem:[#allocation9 + $0x20] sm:$0xff] }
 0x3bf   :  { %9265 = vrsqrt.f32 %v1013_v31  ;;  %v1588_v31 = vld [vmem:[#allocation15] sm:$0xff] }
 0x3c9   :  { %v9266_v33 = vpop.eup %9265 }
 0x3ca   :  { %v1024_v34 = vmul.f32 %v9266_v33, %v976_v59  ;;  %v1015_v36 = vmul.f32 %v9266_v33, %v967_v27  ;;  %v1016_v37 = vmul.f32 %v9266_v33, %v968_v51  ;;  %v1017_v38 = vmul.f32 %v9266_v33, %v969_v52 }
 0x3cb   :  { %v1018_v39 = vmul.f32 %v9266_v33, %v970_v53  ;;  %v1019_v40 = vmul.f32 %v9266_v33, %v971_v54  ;;  %v1020_v41 = vmul.f32 %v9266_v33, %v972_v55  ;;  %v1021_v42 = vmul.f32 %v9266_v33, %v973_v26 }
 0x3cc   :  { %v1025_v43 = vmax.f32 %v1015_v36, 0.0  ;;  %v1026_v45 = vmax.f32 %v1016_v37, 0.0  ;;  %v1027_v46 = vmax.f32 %v1017_v38, 0.0  ;;  %v1022_v47 = vmul.f32 %v9266_v33, %v974_v56 }
 0x3cd   :  { %v1023_v28 = vmul.f32 %v9266_v33, %v975_v57  ;;  %v1028_v48 = vmax.f32 %v1018_v39, 0.0  ;;  %v1029_v49 = vmax.f32 %v1019_v40, 0.0  ;;  %v1030_v27 = vmax.f32 %v1020_v41, 0.0  ;;  %v1589_v33 = vld [vmem:[#allocation15 + $0x8] sm:$0xff] }
 0x3ce   :  { %7865 = vmatprep.mubr.msk.f32.mxu0 %vm939_vm1, %v1025_v43  ;;  %7882 = vmatprep.mubr.msk.f32.mxu1 %vm939_vm1, %v1025_v43  ;;  %v1031_v51 = vmax.f32 %v1021_v42, 0.0  ;;  %v1032_v52 = vmax.f32 %v1022_v47, 0.0  ;;  %v1034_v54 = vmax.f32 %v1024_v34, 0.0  ;;  %v9873_v55 = vmov 0.0   ;;  %v7133_v41 = vld [vmem:[#allocation12] ss:$0 sm:$0xff] }
 0x3cf   :  { %7866 = vmatmul.mubr.msk.f32.vlgmr.msra.gmra.mrb[20].mxu0 %vm939_vm1, %v1026_v45  ;;  %7883 = vmatmul.mubr.msk.f32.vlgmr.msra.gmra.mrb[20].mxu1 %vm939_vm1, %v1026_v45  ;;  %v1033_v53 = vmax.f32 %v1023_v28, 0.0  ;;  %v8869_v34 = vpack.c.bf16 %v1589_v33, %v1588_v31 }
 0x3d0   :  { %7868 = vmatprep.mubr.msk.f32.mxu0 %vm939_vm1, %v1027_v46  ;;  %7885 = vmatprep.mubr.msk.f32.mxu1 %vm939_vm1, %v1027_v46 }
 0x3d3   :  { %7869 = vmatmul.mubr.msk.f32.gmra.mrb[22].mxu0 %vm939_vm1, %v1028_v48  ;;  %7886 = vmatmul.mubr.msk.f32.gmra.mrb[22].mxu1 %vm939_vm1, %v1028_v48 }
 0x3d4   :  { %7871 = vmatprep.mubr.msk.f32.mxu0 %vm939_vm1, %v1029_v49  ;;  %7888 = vmatprep.mubr.msk.f32.mxu1 %vm939_vm1, %v1029_v49 }
 0x3d7   :  { %7872 = vmatmul.mubr.msk.f32.gmra.mrb[24].mxu0 %vm939_vm1, %v1030_v27  ;;  %7889 = vmatmul.mubr.msk.f32.gmra.mrb[24].mxu1 %vm939_vm1, %v1030_v27 }
 0x3d8   :  { %7874 = vmatprep.mubr.msk.f32.mxu0 %vm939_vm1, %v1031_v51  ;;  %7891 = vmatprep.mubr.msk.f32.mxu1 %vm939_vm1, %v1031_v51 }
 0x3db   :  { %7875 = vmatmul.mubr.msk.f32.gmra.mrb[26].mxu0 %vm939_vm1, %v1032_v52  ;;  %7892 = vmatmul.mubr.msk.f32.gmra.mrb[26].mxu1 %vm939_vm1, %v1032_v52 }
 0x3dc   :  { %7877 = vmatprep.mubr.msk.f32.mxu0 %vm939_vm1, %v1033_v53  ;;  %7894 = vmatprep.mubr.msk.f32.mxu1 %vm939_vm1, %v1033_v53 }
 0x3df   :  { %7878 = vmatmul.mubr.msk.f32.gmra.mrb[28].mxu0 %vm939_vm1, %v1034_v54  ;;  %7895 = vmatmul.mubr.msk.f32.gmra.mrb[28].mxu1 %vm939_vm1, %v1034_v54 }
 0x3e0   :  { %7917 = vmatprep.mubr.msk.f32.mxu0 %vm9872_vm2, %v9873_v55  ;;  %7952 = vmatprep.mubr.msk.f32.mxu1 %vm9872_vm2, %v9873_v55 }
 0x4a2   :  { %v7867_v26 = vpop.f32.mrb[20].mxu0  ;;  %v7884_v56 = vpop.f32.mrb[20].mxu1 }
 0x4a3   :  { %v1132_v57 = vpop.f32.mrb[21].mxu0  ;;  %v1254_v59 = vpop.f32.mrb[21].mxu1 }
 0x4a4   :  { %v8854_v60 = vpack.c.bf16 %v7867_v26, %v1132_v57  ;;  %v8839_v61 = vpack.c.bf16 %v7884_v56, %v1254_v59 }
 0x4a6   :  { %v7870_v62 = vpop.f32.mrb[22].mxu0  ;;  %v7887_v63 = vpop.f32.mrb[22].mxu1  ;;  %8840 = vmatpush3.bf16.msra.mxu0 %v8839_v61  ;;  %8855 = vmatpush3.bf16.msra.mxu1 %v8854_v60 }
 0x4a7   :  { %v1142_v0 = vpop.f32.mrb[23].mxu0  ;;  %v1264_v1 = vpop.f32.mrb[23].mxu1  ;;  %8841 = vmatprep.subr.bf16.mxu0 %v9871_v8  ;;  %8856 = vmatprep.subr.bf16.mxu1 %v9871_v8 }
 0x4a8   :  { %v8857_v32 = vpack.c.bf16 %v7870_v62, %v1142_v0  ;;  %v8842_v3 = vpack.c.bf16 %v7887_v63, %v1264_v1 }
 0x4aa   :  { %v7873_v35 = vpop.f32.mrb[24].mxu0  ;;  %v7890_v44 = vpop.f32.mrb[24].mxu1  ;;  %8843 = vmatpush3.bf16.msra.mxu0 %v8842_v3  ;;  %8858 = vmatpush3.bf16.msra.mxu1 %v8857_v32 }
 0x4ab   :  { %v1152_v50 = vpop.f32.mrb[25].mxu0  ;;  %v1274_v58 = vpop.f32.mrb[25].mxu1  ;;  %8844 = vmatprep.subr.bf16.mxu0 %v9871_v8  ;;  %8859 = vmatprep.subr.bf16.mxu1 %v9871_v8 }
 0x4ac   :  { %v8860_v2 = vpack.c.bf16 %v7873_v35, %v1152_v50  ;;  %v8845_v4 = vpack.c.bf16 %v7890_v44, %v1274_v58 }
 0x4ae   :  { %v7876_v5 = vpop.f32.mrb[26].mxu0  ;;  %v7893_v6 = vpop.f32.mrb[26].mxu1  ;;  %8846 = vmatpush3.bf16.msra.mxu0 %v8845_v4  ;;  %8861 = vmatpush3.bf16.msra.mxu1 %v8860_v2 }
 0x4af   :  { %v1162_v7 = vpop.f32.mrb[27].mxu0  ;;  %v1284_v9 = vpop.f32.mrb[27].mxu1  ;;  %8847 = vmatprep.subr.bf16.mxu0 %v9871_v8  ;;  %8862 = vmatprep.subr.bf16.mxu1 %v9871_v8 }
 0x4b0   :  { %v8863_v10 = vpack.c.bf16 %v7876_v5, %v1162_v7  ;;  %v8848_v11 = vpack.c.bf16 %v7893_v6, %v1284_v9 }
 0x4b2   :  { %v7879_v12 = vpop.f32.mrb[28].mxu0  ;;  %v7896_v13 = vpop.f32.mrb[28].mxu1  ;;  %8849 = vmatpush3.bf16.msra.mxu0 %v8848_v11  ;;  %8864 = vmatpush3.bf16.msra.mxu1 %v8863_v10 }
 0x4b3   :  { %v1172_v14 = vpop.f32.mrb[29].mxu0  ;;  %v1294_v15 = vpop.f32.mrb[29].mxu1  ;;  %8850 = vmatprep.subr.bf16.mxu0 %v9871_v8  ;;  %8865 = vmatprep.subr.bf16.mxu1 %v9871_v8 }
 0x4b4   :  { %v8866_v16 = vpack.c.bf16 %v7879_v12, %v1172_v14  ;;  %v8851_v17 = vpack.c.bf16 %v7896_v13, %v1294_v15 }
 0x4b6   :  { %8852 = vmatpush3.bf16.msra.mxu0 %v8851_v17  ;;  %8867 = vmatpush3.bf16.msra.mxu1 %v8866_v16 }
 0x4b7   :  { %9161 = vmatprep.subr.bf16.mxu1 %v9871_v8  ;;  %8868 = vmatprep.subr.bf16.mxu0 %v9871_v8 }
 0x4b9   :  { %7918 = vmatmul.mubr.msk.f32.vlgmr.msra.gmra.mrb[30].mxu0 %vm1309_vm3, %v1304_v18  ;;  %7953 = vmatmul.mubr.msk.f32.vlgmr.msra.gmra.mrb[30].mxu1 %vm1309_vm3, %v1181_v19 }
 0x4ba   :  { %7920 = vmatprep.mubr.msk.f32.mxu0 %vm9872_vm2, %v9873_v55  ;;  %7955 = vmatprep.mubr.msk.f32.mxu1 %vm9872_vm2, %v9873_v55 }
 0x4bb   :  { %9162 = vmatpush3.bf16.msra.mxu1 %v8869_v34  ;;  %8870 = vmatpush3.bf16.msra.mxu0 %v8869_v34 }
 0x4bc   :  { %8871 = vmatprep.subr.bf16.mxu1 %v9871_v8  ;;  %8874 = vmatprep.subr.bf16.mxu0 %v9871_v8 }
 0x4bd   :  { %7921 = vmatmul.mubr.msk.f32.gmra.mrb[32].mxu0 %vm1309_vm3, %v1305_v20  ;;  %7956 = vmatmul.mubr.msk.f32.gmra.mrb[32].mxu1 %vm1309_vm3, %v1182_v21 }
 0x4be   :  { %7923 = vmatprep.mubr.msk.f32.mxu0 %vm9872_vm2, %v9873_v55  ;;  %7958 = vmatprep.mubr.msk.f32.mxu1 %vm9872_vm2, %v9873_v55 }
 0x4c1   :  { %7924 = vmatmul.mubr.msk.f32.gmra.mrb[34].mxu0 %vm1309_vm3, %v1306_v22  ;;  %7959 = vmatmul.mubr.msk.f32.gmra.mrb[34].mxu1 %vm1309_vm3, %v1183_v23 }
 0x4c2   :  { %7926 = vmatprep.mubr.msk.f32.mxu0 %vm9872_vm2, %v9873_v55  ;;  %7961 = vmatprep.mubr.msk.f32.mxu1 %vm9872_vm2, %v9873_v55 }
 0x4c5   :  { %7927 = vmatmul.mubr.msk.f32.gmra.mrb[36].mxu0 %vm1309_vm3, %v1307_v24  ;;  %7962 = vmatmul.mubr.msk.f32.gmra.mrb[36].mxu1 %vm1309_vm3, %v1184_v25 }
 0x4c6   :  { %7929 = vmatprep.mubr.msk.f32.mxu0 %vm9872_vm2, %v9873_v55  ;;  %7964 = vmatprep.mubr.msk.f32.mxu1 %vm9872_vm2, %v9873_v55 }
 0x4c9   :  { %7930 = vmatmul.mubr.msk.f32.gmra.mrb[38].mxu0 %vm1309_vm3, %v1308_v29  ;;  %7965 = vmatmul.mubr.msk.f32.gmra.mrb[38].mxu1 %vm1309_vm3, %v1185_v30 }
 0x4ca   :  { %7971 = vmatprep.mubr.msk.f32.mxu0 %vm9872_vm2, %v9873_v55  ;;  %7983 = vmatprep.mubr.msk.f32.mxu1 %vm9872_vm2, %v9873_v55 }
 0x58c   :  { %v1391_v36 = vpop.f32.mrb[30].mxu0  ;;  %v1496_v37 = vpop.f32.mrb[30].mxu1 }
 0x58d   :  { %v1497_v38 = vadd.f32 %v1496_v37, %v1391_v36  ;;  %v7919_v39 = vpop.f32.mrb[31].mxu0  ;;  %v7954_v40 = vpop.f32.mrb[31].mxu1 }
 0x58f   :  { %v1527_v45 = vadd.f32 %v7133_v41, %v1497_v38 }
 0x590   :  { %v1396_v42 = vpop.f32.mrb[32].mxu0  ;;  %v1501_v43 = vpop.f32.mrb[32].mxu1 }
 0x591   :  { %v1502_v46 = vadd.f32 %v1501_v43, %v1396_v42  ;;  %v7922_v47 = vpop.f32.mrb[33].mxu0  ;;  %v7957_v28 = vpop.f32.mrb[33].mxu1  ;;  %v1533_v51 = vsel %vm1532_vm4, %v1527_v45, 0.0 }
 0x593   :  { %v1528_v48 = vadd.f32 %v7133_v41, %v1502_v46 }
 0x594   :  { %v1401_v49 = vpop.f32.mrb[34].mxu0  ;;  %v1506_v27 = vpop.f32.mrb[34].mxu1 }
 0x595   :  { %v1534_v52 = vsel %vm1532_vm4, %v1528_v48, 0.0  ;;  %v1507_v53 = vadd.f32 %v1506_v27, %v1401_v49  ;;  %v7925_v54 = vpop.f32.mrb[35].mxu0  ;;  %v7960_v26 = vpop.f32.mrb[35].mxu1  ;;  %v1700_v49 = vld [vmem:[#allocation15 + $0x18] sm:$0xff] }
 0x596   :  { %v1535_v56 = vadd.f32 %v1534_v52, %v1533_v51 }
 0x597   :  { %v1529_v57 = vadd.f32 %v7133_v41, %v1507_v53 }
 0x598   :  { %v1406_v59 = vpop.f32.mrb[36].mxu0  ;;  %v1511_v60 = vpop.f32.mrb[36].mxu1 }
 0x599   :  { %v1536_v61 = vsel %vm1532_vm4, %v1529_v57, 0.0  ;;  %v1512_v62 = vadd.f32 %v1511_v60, %v1406_v59  ;;  %v7928_v63 = vpop.f32.mrb[37].mxu0  ;;  %v7963_v0 = vpop.f32.mrb[37].mxu1 }
 0x59a   :  { %v1537_v1 = vadd.f32 %v1536_v61, %v1535_v56 }
 0x59b   :  { %v1530_v32 = vadd.f32 %v7133_v41, %v1512_v62 }
 0x59c   :  { %v1411_v3 = vpop.f32.mrb[38].mxu0  ;;  %v1516_v35 = vpop.f32.mrb[38].mxu1 }
 0x59d   :  { %v1538_v44 = vsel %vm1532_vm4, %v1530_v32, 0.0  ;;  %v1517_v50 = vadd.f32 %v1516_v35, %v1411_v3  ;;  %v7931_v58 = vpop.f32.mrb[39].mxu0  ;;  %v7966_v2 = vpop.f32.mrb[39].mxu1 }
 0x59e   :  { %v1539_v4 = vadd.f32 %v1538_v44, %v1537_v1 }
 0x59f   :  { %v1531_v5 = vadd.f32 %v7133_v41, %v1517_v50 }
 0x5a1   :  { %v1540_v6 = vsel %vm1532_vm4, %v1531_v5, 0.0 }
 0x5a2   :  { %v1541_v7 = vadd.f32 %v1540_v6, %v1539_v4 }
 0x5a4   :  { %v1542_v9 = vrot.slane %v1541_v7, 4 }
 0x5a6   :  { %v1543_v10 = vadd.f32 %v1542_v9, %v1541_v7 }
 0x5a8   :  { %v1544_v11 = vrot.slane %v1543_v10, 2 }
 0x5aa   :  { %v1545_v12 = vadd.f32 %v1544_v11, %v1543_v10 }
 0x5ac   :  { %v1546_v13 = vrot.slane %v1545_v12, 1 }
 0x5ae   :  { %v1547_v14 = vadd.f32 %v1546_v13, %v1545_v12 }
 0x5b0   :  { %v1549_v15 = vmul.f32 0.025, %v1547_v14 }
 0x5b2   :  { %v1550_v16 = vsub.f32 %v1527_v45, %v1549_v15  ;;  %v1551_v17 = vsub.f32 %v1528_v48, %v1549_v15  ;;  %v1552_v18 = vsub.f32 %v1529_v57, %v1549_v15  ;;  %v1553_v19 = vsub.f32 %v1530_v32, %v1549_v15  ;;  %v1699_v48 = vld [vmem:[#allocation15 + $0x10] sm:$0xff] }
 0x5b3   :  { %v1554_v20 = vsub.f32 %v1531_v5, %v1549_v15  ;;  %v8872_v26 = vpack.c.bf16 %v1700_v49, %v1699_v48  ;;  %v7150_v49 = vld [vmem:[#allocation17] ss:$0 sm:$0xff] }
 0x5b4   :  { %v1555_v21 = vmul.f32 %v1550_v16, %v1550_v16  ;;  %v1556_v22 = vmul.f32 %v1551_v17, %v1551_v17  ;;  %v1557_v23 = vmul.f32 %v1552_v18, %v1552_v18  ;;  %v1558_v24 = vmul.f32 %v1553_v19, %v1553_v19 }
 0x5b5   :  { %v1559_v31 = vmul.f32 %v1554_v20, %v1554_v20 }
 0x5b6   :  { %v1560_v25 = vsel %vm1532_vm4, %v1555_v21, 0.0  ;;  %v1561_v29 = vsel %vm1532_vm4, %v1556_v22, 0.0  ;;  %v1563_v33 = vsel %vm1532_vm4, %v1557_v23, 0.0  ;;  %v1565_v36 = vsel %vm1532_vm4, %v1558_v24, 0.0  ;;  %v1696_v21 = vld [vmem:[#allocation14 + $0x8] sm:$0xff]  ;;  %v1793_v22 = vld [vmem:[#allocation14 + $0x20] sm:$0xff] }
 0x5b7   :  { %v1562_v30 = vadd.f32 %v1561_v29, %v1560_v25  ;;  %v1567_v38 = vsel %vm1532_vm4, %v1559_v31, 0.0  ;;  %v1697_v23 = vld [vmem:[#allocation14 + $0x10] sm:$0xf]  ;;  %v1794_v24 = vld [vmem:[#allocation14 + $0x28] sm:$0xf] }
 0x5b8   :  { %v2024_v25 = vld [vmem:[#allocation20] sm:$0xff]  ;;  %v2025_v29 = vld [vmem:[#allocation20 + $0x8] sm:$0xff] }
 0x5b9   :  { %v1564_v34 = vadd.f32 %v1563_v33, %v1562_v30  ;;  %v2119_v30 = vld [vmem:[#allocation20 + $0x20] sm:$0xff]  ;;  %v8887_v31 = vpack.c.bf16 %v2025_v29, %v2024_v25  ;;  %v2120_v33 = vld [vmem:[#allocation20 + $0x28] sm:$0xff] }
 0x5bb   :  { %v1566_v37 = vadd.f32 %v1565_v36, %v1564_v34  ;;  %v8893_v34 = vpack.c.bf16 %v2120_v33, %v2119_v30  ;;  %v2026_v36 = vld [vmem:[#allocation20 + $0x10] sm:$0xff] }
 0x5bd   :  { %v1568_v39 = vadd.f32 %v1567_v38, %v1566_v37  ;;  %v2027_v37 = vld [vmem:[#allocation20 + $0x18] sm:$0xff]  ;;  %v2121_v38 = vld [vmem:[#allocation20 + $0x30] sm:$0xff] }
 0x5bf   :  { %v1569_v40 = vrot.slane %v1568_v39, 4 }
 0x5c1   :  { %v1570_v41 = vadd.f32 %v1569_v40, %v1568_v39  ;;  %v8890_v39 = vpack.c.bf16 %v2027_v37, %v2026_v36  ;;  %v2122_v40 = vld [vmem:[#allocation20 + $0x38] sm:$0xff] }
 0x5c3   :  { %v1571_v42 = vrot.slane %v1570_v41, 2 }
 0x5c5   :  { %v1572_v43 = vadd.f32 %v1571_v42, %v1570_v41  ;;  %v8896_v41 = vpack.c.bf16 %v2122_v40, %v2121_v38 }
 0x5c7   :  { %v1573_v45 = vrot.slane %v1572_v43, 1 }
 0x5c9   :  { %v1574_v46 = vadd.f32 %v1573_v45, %v1572_v43 }
 0x5cb   :  { %v1575_v47 = vmul.f32 0.025, %v1574_v46 }
 0x5cd   :  { %v1576_v28 = vadd.f32 1e-05, %v1575_v47 }
 0x5cf   :  { %9267 = vrsqrt.f32 %v1576_v28 }
 0x5d9   :  { %v9268_v27 = vpop.eup %9267 }
 0x5da   :  { %v1582_v51 = vmul.f32 %v9268_v27, %v1554_v20  ;;  %v1578_v52 = vmul.f32 %v9268_v27, %v1550_v16  ;;  %v1579_v53 = vmul.f32 %v9268_v27, %v1551_v17  ;;  %v1580_v54 = vmul.f32 %v9268_v27, %v1552_v18  ;;  %v1695_v17 = vld [vmem:[#allocation14] sm:$0xff]  ;;  %v1792_v20 = vld [vmem:[#allocation14 + $0x18] sm:$0xff] }
 0x5db   :  { %v1581_v56 = vmul.f32 %v9268_v27, %v1553_v19 }
 0x5dc   :  { %v1587_v57 = vmax.f32 %v1582_v51, 0.0  ;;  %v1583_v59 = vmax.f32 %v1578_v52, 0.0  ;;  %v1584_v60 = vmax.f32 %v1579_v53, 0.0  ;;  %v1585_v61 = vmax.f32 %v1580_v54, 0.0 }
 0x5dd   :  { %v1586_v62 = vmax.f32 %v1581_v56, 0.0 }
 0x5de   :  { %7972 = vmatmul.mubr.msk.f32.vlgmr.msra.gmra.mrb[40].mxu0 %vm1532_vm4, %v1583_v59  ;;  %7984 = vmatmul.mubr.msk.f32.vlgmr.msra.gmra.mrb[40].mxu1 %vm1532_vm4, %v1587_v57 }
 0x5df   :  { %8873 = vmatpush3.bf16.msra.mxu1 %v8872_v26  ;;  %7974 = vmatprep.mubr.msk.f32.mxu0 %vm9872_vm2, %v9873_v55 }
 0x5e0   :  { %7990 = vmatprep.mubr.msk.f32.mxu1 %vm9872_vm2, %v9873_v55  ;;  %8880 = vmatprep.subr.bf16.mxu1 %v9871_v8 }
 0x5e2   :  { %7975 = vmatmul.mubr.msk.f32.gmra.mrb[42].mxu0 %vm1532_vm4, %v1584_v60  ;;  %7991 = vmatmul.mubr.msk.f32.vlgmr.msra.gmra.mrb[42].mxu1 %vm1532_vm4, %v1583_v59 }
 0x5e3   :  { %7977 = vmatprep.mubr.msk.f32.mxu0 %vm9872_vm2, %v9873_v55  ;;  %7993 = vmatprep.mubr.msk.f32.mxu1 %vm9872_vm2, %v9873_v55 }
 0x5e6   :  { %7978 = vmatmul.mubr.msk.f32.gmra.mrb[44].mxu0 %vm1532_vm4, %v1585_v61  ;;  %7994 = vmatmul.mubr.msk.f32.gmra.mrb[44].mxu1 %vm1532_vm4, %v1584_v60 }
 0x5e7   :  { %7980 = vmatprep.mubr.msk.f32.mxu0 %vm9872_vm2, %v9873_v55  ;;  %7996 = vmatprep.mubr.msk.f32.mxu1 %vm9872_vm2, %v9873_v55 }
 0x5ea   :  { %7981 = vmatmul.mubr.msk.f32.gmra.mrb[46].mxu0 %vm1532_vm4, %v1586_v62  ;;  %7997 = vmatmul.mubr.msk.f32.gmra.mrb[46].mxu1 %vm1532_vm4, %v1585_v61 }
 0x5eb   :  { %7999 = vmatprep.mubr.msk.f32.mxu1 %vm9872_vm2, %v9873_v55  ;;  %8015 = vmatprep.mubr.msk.f32.mxu0 %vm9872_vm2, %v9873_v55 }
 0x5ee   :  { %8000 = vmatmul.mubr.msk.f32.gmra.mrb[48].mxu1 %vm1532_vm4, %v1586_v62 }
 0x5ef   :  { %8002 = vmatprep.mubr.msk.f32.mxu1 %vm9872_vm2, %v9873_v55 }
 0x5f2   :  { %8003 = vmatmul.mubr.msk.f32.gmra.mrb[50].mxu1 %vm1532_vm4, %v1587_v57 }
 0x5f3   :  { %8034 = vmatprep.mubr.msk.f32.mxu1 %vm9872_vm2, %v9873_v55 }
 0x6b1   :  { %v1671_v63 = vpop.f32.mrb[40].mxu0  ;;  %v1691_v0 = vpop.f32.mrb[40].mxu1 }
 0x6b2   :  { %v7973_v1 = vpop.f32.mrb[41].mxu0  ;;  %v7985_v32 = vpop.f32.mrb[41].mxu1 }
 0x6b5   :  { %v1676_v3 = vpop.f32.mrb[42].mxu0  ;;  %v1767_v35 = vpop.f32.mrb[42].mxu1 }
 0x6b6   :  { %v8881_v44 = vpack.c.bf16 %v1676_v3, %v1671_v63  ;;  %v7976_v50 = vpop.f32.mrb[43].mxu0  ;;  %v7992_v58 = vpop.f32.mrb[43].mxu1 }
 0x6b8   :  { %8882 = vmatpush3.bf16.msra.mxu1 %v8881_v44 }
 0x6b9   :  { %v1681_v2 = vpop.f32.mrb[44].mxu0  ;;  %v1772_v4 = vpop.f32.mrb[44].mxu1  ;;  %8883 = vmatprep.subr.bf16.mxu1 %v9871_v8 }
 0x6ba   :  { %v8875_v5 = vpack.c.bf16 %v1772_v4, %v1767_v35  ;;  %v7979_v6 = vpop.f32.mrb[45].mxu0  ;;  %v7995_v7 = vpop.f32.mrb[45].mxu1 }
 0x6bc   :  { %8876 = vmatpush3.bf16.msra.mxu0 %v8875_v5 }
 0x6bd   :  { %v1686_v9 = vpop.f32.mrb[46].mxu0  ;;  %v1777_v10 = vpop.f32.mrb[46].mxu1  ;;  %8877 = vmatprep.subr.bf16.mxu0 %v9871_v8 }
 0x6be   :  { %v8884_v11 = vpack.c.bf16 %v1686_v9, %v1681_v2  ;;  %v7982_v12 = vpop.f32.mrb[47].mxu0  ;;  %v7998_v13 = vpop.f32.mrb[47].mxu1 }
 0x6c0   :  { %8885 = vmatpush3.bf16.msra.mxu1 %v8884_v11 }
 0x6c1   :  { %v1782_v14 = vpop.f32.mrb[48].mxu1  ;;  %8032 = vmatprep.subr.mxu1 %v9873_v55 }
 0x6c2   :  { %v8878_v15 = vpack.c.bf16 %v1782_v14, %v1777_v10  ;;  %v8001_v16 = vpop.f32.mrb[49].mxu1 }
 0x6c4   :  { %8879 = vmatpush3.bf16.msra.mxu0 %v8878_v15  ;;  %8033 = vmatpush3.msra.mxu1 %v1691_v0 }
 0x6c5   :  { %v1787_v18 = vpop.f32.mrb[50].mxu1  ;;  %8013 = vmatprep.subr.mxu0 %v9873_v55  ;;  %8035 = vmatmul.mubr.msk.f32.vlgmr.msra.gmra.mrb[52].mxu1 %vm1795_vm5, %v1695_v17 }
 0x6c6   :  { %v8004_v19 = vpop.f32.mrb[51].mxu1  ;;  %8037 = vmatprep.mubr.msk.f32.mxu1 %vm9872_vm2, %v9873_v55  ;;  %8892 = vmatprep.subr.bf16.mxu1 %v9871_v8 }
 0x6c7   :  { %8894 = vmatpush3.bf16.msra.mxu1 %v8893_v34 }
 0x6c8   :  { %8014 = vmatpush3.msra.mxu0 %v1787_v18  ;;  %8895 = vmatprep.subr.bf16.mxu1 %v9871_v8 }
 0x6c9   :  { %8016 = vmatmul.mubr.msk.f32.vlgmr.msra.gmra.mrb[48].mxu0 %vm1795_vm5, %v1792_v20  ;;  %8038 = vmatmul.mubr.msk.f32.gmra.mrb[54].mxu1 %vm1795_vm5, %v1696_v21 }
 0x6ca   :  { %8018 = vmatprep.mubr.msk.f32.mxu0 %vm9872_vm2, %v9873_v55  ;;  %8040 = vmatprep.mubr.msk.f32.mxu1 %vm9872_vm2, %v9873_v55 }
 0x6cb   :  { %8886 = vmatprep.subr.bf16.mxu0 %v9871_v8  ;;  %8897 = vmatpush3.bf16.msra.mxu1 %v8896_v41 }
 0x6cc   :  { %8888 = vmatpush3.bf16.msra.mxu0 %v8887_v31  ;;  %8901 = vmatprep.subr.bf16.mxu1 %v9871_v8 }
 0x6cd   :  { %8019 = vmatmul.mubr.msk.f32.gmra.mrb[50].mxu0 %vm1795_vm5, %v1793_v22  ;;  %8041 = vmatmul.mubr.msk.f32.gmra.mrb[56].mxu1 %vm1795_vm5, %v1697_v23 }
 0x6ce   :  { %8021 = vmatprep.mubr.msk.f32.mxu0 %vm9872_vm2, %v9873_v55  ;;  %8068 = vmatprep.mubr.msk.f32.mxu1 %vm9872_vm2, %v9873_v55 }
 0x6cf   :  { %8889 = vmatprep.subr.bf16.mxu0 %v9871_v8 }
 0x6d0   :  { %8891 = vmatpush3.bf16.msra.mxu0 %v8890_v39 }
 0x6d1   :  { %8022 = vmatmul.mubr.msk.f32.gmra.mrb[52].mxu0 %vm1795_vm5, %v1794_v24  ;;  %8898 = vmatprep.subr.bf16.mxu0 %v9871_v8 }
 0x6d2   :  { %8051 = vmatprep.mubr.msk.f32.mxu0 %vm9872_vm2, %v9873_v55 }
 0x798   :  { %v1960_v42 = vpop.f32.mrb[52].mxu1 }
 0x799   :  { %v8036_v43 = vpop.f32.mrb[53].mxu1 }
 0x79c   :  { %v1871_v45 = vpop.f32.mrb[48].mxu0  ;;  %v1965_v46 = vpop.f32.mrb[54].mxu1 }
 0x79d   :  { %v1961_v47 = vadd.f32 %v1960_v42, %v1871_v45  ;;  %v8017_v28 = vpop.f32.mrb[49].mxu0  ;;  %v8039_v48 = vpop.f32.mrb[55].mxu1 }
 0x79f   :  { %v1981_v52 = vadd.f32 %v7150_v49, %v1961_v47 }
 0x7a0   :  { %v1876_v27 = vpop.f32.mrb[50].mxu0  ;;  %v1970_v51 = vpop.f32.mrb[56].mxu1 }
 0x7a1   :  { %v1966_v53 = vadd.f32 %v1965_v46, %v1876_v27  ;;  %v8020_v54 = vpop.f32.mrb[51].mxu0  ;;  %v8042_v26 = vpop.f32.mrb[57].mxu1  ;;  %v1984_v59 = vsel %vm631_vm0, %v1981_v52, 0.0 }
 0x7a2   :  { %v2392_v54 = vld [vmem:[%s11514_s18 + $0x8] sm:$0xff]  ;;  %v7163_v26 = vld [vmem:[%s11514_s18 + $0x40] sm:$0xff] }
 0x7a3   :  { %v1982_v56 = vadd.f32 %v7150_v49, %v1966_v53  ;;  %v2391_v53 = vld [vmem:[%s11514_s18] sm:$0xff] }
 0x7a4   :  { %v1881_v57 = vpop.f32.mrb[52].mxu0 }
 0x7a5   :  { %v1985_v60 = vsel %vm631_vm0, %v1982_v56, 0.0  ;;  %v1971_v61 = vadd.f32 %v1970_v51, %v1881_v57  ;;  %v8023_v62 = vpop.f32.mrb[53].mxu0  ;;  %v2204_v51 = vld [vmem:[#allocation18 + $0x8] sm:$0xff]  ;;  %v7164_v57 = vld [vmem:[%s11514_s18 + $0x48] sm:$0xff] }
 0x7a6   :  { %v1986_v63 = vadd.f32 %v1985_v60, %v1984_v59  ;;  %v8917_v59 = vpack.c.bf16 %v7164_v57, %v7163_v26  ;;  %v2393_v60 = vld [vmem:[%s11514_s18 + $0x10] sm:$0xff] }
 0x7a7   :  { %v1983_v0 = vadd.f32 %v7150_v49, %v1971_v61  ;;  %v2394_v61 = vld [vmem:[%s11514_s18 + $0x18] sm:$0xff]  ;;  %v7165_v62 = vld [vmem:[%s11514_s18 + $0x50] sm:$0xff] }
 0x7a8   :  { %v2473_v57 = vld [vmem:[#allocation23 + $0x8] sm:$0xff] }
 0x7a9   :  { %v1988_v1 = vsel %vm1987_vm6, %v1983_v0, 0.0 }
 0x7aa   :  { %v1989_v32 = vadd.f32 %v1988_v1, %v1986_v63  ;;  %v8908_v63 = vpack.c.bf16 %v2394_v61, %v2393_v60  ;;  %v7183_v60 = vld [vmem:[%s11514_s18 + $0xa8] sm:$0xff] }
 0x7ac   :  { %v1990_v3 = vrot.slane %v1989_v32, 4 }
 0x7ae   :  { %v1991_v35 = vadd.f32 %v1990_v3, %v1989_v32  ;;  %v2395_v32 = vld [vmem:[%s11514_s18 + $0x20] sm:$0xff]  ;;  %v2396_v3 = vld [vmem:[%s11514_s18 + $0x28] sm:$0xff] }
 0x7b0   :  { %v1992_v44 = vrot.slane %v1991_v35, 2 }
 0x7b2   :  { %v1993_v50 = vadd.f32 %v1992_v44, %v1991_v35  ;;  %v7167_v35 = vld [vmem:[%s11514_s18 + $0x60] sm:$0xff]  ;;  %v8911_v44 = vpack.c.bf16 %v2396_v3, %v2395_v32 }
 0x7b4   :  { %v1994_v58 = vrot.slane %v1993_v50, 1 }
 0x7b6   :  { %v1995_v2 = vadd.f32 %v1994_v58, %v1993_v50  ;;  %v7168_v50 = vld [vmem:[%s11514_s18 + $0x68] sm:$0xff] }
 0x7b7   :  { %v8923_v58 = vpack.c.bf16 %v7168_v50, %v7167_v35 }
 0x7b8   :  { %v1997_v4 = vmul.f32 0.05, %v1995_v2  ;;  %v2397_v2 = vld [vmem:[%s11514_s18 + $0x30] sm:$0xff] }
 0x7ba   :  { %v1998_v5 = vsub.f32 %v1981_v52, %v1997_v4  ;;  %v1999_v6 = vsub.f32 %v1982_v56, %v1997_v4  ;;  %v2000_v7 = vsub.f32 %v1983_v0, %v1997_v4  ;;  %v2117_v52 = vld [vmem:[#allocation18] sm:$0xff]  ;;  %v8905_v56 = vpack.c.bf16 %v2392_v54, %v2391_v53 }
 0x7bb   :  { %v7166_v0 = vld [vmem:[%s11514_s18 + $0x58] sm:$0xff] }
 0x7bc   :  { %v2001_v9 = vmul.f32 %v1998_v5, %v1998_v5  ;;  %v2002_v10 = vmul.f32 %v1999_v6, %v1999_v6  ;;  %v2003_v11 = vmul.f32 %v2000_v7, %v2000_v7  ;;  %v8920_v1 = vpack.c.bf16 %v7166_v0, %v7165_v62  ;;  %v2398_v4 = vld [vmem:[%s11514_s18 + $0x38] sm:$0xff]  ;;  %v2557_v62 = vld [vmem:[#allocation23 + $0x28] sm:$0xf]  ;;  %v7184_v0 = vld [vmem:[%s11514_s18 + $0xb0] sm:$0xff] }
 0x7be   :  { %v2004_v12 = vsel %vm631_vm0, %v2001_v9, 0.0  ;;  %v2005_v13 = vsel %vm631_vm0, %v2002_v10, 0.0  ;;  %v2007_v15 = vsel %vm1987_vm6, %v2003_v11, 0.0 }
 0x7bf   :  { %v2006_v14 = vadd.f32 %v2005_v13, %v2004_v12  ;;  %v7161_v12 = vld [vmem:[#allocation21] ss:$0 sm:$0xff] }
 0x7c1   :  { %v2008_v16 = vadd.f32 %v2007_v15, %v2006_v14 }
 0x7c3   :  { %v2009_v17 = vrot.slane %v2008_v16, 4 }
 0x7c5   :  { %v2010_v18 = vadd.f32 %v2009_v17, %v2008_v16 }
 0x7c7   :  { %v2011_v19 = vrot.slane %v2010_v18, 2 }
 0x7c9   :  { %v2012_v20 = vadd.f32 %v2011_v19, %v2010_v18 }
 0x7cb   :  { %v2013_v21 = vrot.slane %v2012_v20, 1 }
 0x7cd   :  { %v2014_v22 = vadd.f32 %v2013_v21, %v2012_v20 }
 0x7cf   :  { %v2015_v23 = vmul.f32 0.05, %v2014_v22 }
 0x7d1   :  { %v2016_v24 = vadd.f32 1e-05, %v2015_v23 }
 0x7d3   :  { %9269 = vrsqrt.f32 %v2016_v24 }
 0x7dd   :  { %v9270_v25 = vpop.eup %9269 }
 0x7de   :  { %v2018_v29 = vmul.f32 %v9270_v25, %v1998_v5  ;;  %v2020_v30 = vmul.f32 %v9270_v25, %v2000_v7  ;;  %v2019_v31 = vmul.f32 %v9270_v25, %v1999_v6  ;;  %v7169_v5 = vld [vmem:[%s11514_s18 + $0x70] sm:$0xff]  ;;  %v8914_v6 = vpack.c.bf16 %v2398_v4, %v2397_v2  ;;  %v7170_v7 = vld [vmem:[%s11514_s18 + $0x78] sm:$0xff] }
 0x7df   :  { %v8926_v9 = vpack.c.bf16 %v7170_v7, %v7169_v5 }
 0x7e0   :  { %v2021_v33 = vmax.f32 %v2018_v29, 0.0  ;;  %v2022_v34 = vmax.f32 %v2019_v31, 0.0  ;;  %v2023_v36 = vmax.f32 %v2020_v30, 0.0 }
 0x7e2   :  { %8052 = vmatmul.mubr.msk.f32.vlgmr.msra.gmra.mrb[54].mxu0 %vm631_vm0, %v2021_v33  ;;  %8069 = vmatmul.mubr.msk.f32.vlgmr.msra.gmra.mrb[58].mxu1 %vm631_vm0, %v2021_v33 }
 0x7e3   :  { %8054 = vmatprep.mubr.msk.f32.mxu0 %vm9872_vm2, %v9873_v55  ;;  %8071 = vmatprep.mubr.msk.f32.mxu1 %vm9872_vm2, %v9873_v55 }
 0x7e6   :  { %8055 = vmatmul.mubr.msk.f32.gmra.mrb[56].mxu0 %vm631_vm0, %v2022_v34  ;;  %8072 = vmatmul.mubr.msk.f32.gmra.mrb[60].mxu1 %vm631_vm0, %v2022_v34 }
 0x7e7   :  { %8057 = vmatprep.mubr.msk.f32.mxu0 %vm9872_vm2, %v9873_v55  ;;  %8074 = vmatprep.mubr.msk.f32.mxu1 %vm9872_vm2, %v9873_v55 }
 0x7ea   :  { %8058 = vmatmul.mubr.msk.f32.gmra.mrb[58].mxu0 %vm631_vm0, %v2023_v36  ;;  %8075 = vmatmul.mubr.msk.f32.gmra.mrb[62].mxu1 %vm631_vm0, %v2023_v36 }
 0x7eb   :  { %8083 = vmatprep.mubr.msk.f32.mxu0 %vm9872_vm2, %v9873_v55  ;;  %8092 = vmatprep.mubr.msk.f32.mxu1 %vm9872_vm2, %v9873_v55 }
 0x8b5   :  { %v2103_v37 = vpop.f32.mrb[54].mxu0  ;;  %v2189_v38 = vpop.f32.mrb[58].mxu1 }
 0x8b6   :  { %v8053_v39 = vpop.f32.mrb[55].mxu0  ;;  %v8070_v40 = vpop.f32.mrb[59].mxu1 }
 0x8b9   :  { %v2108_v41 = vpop.f32.mrb[56].mxu0  ;;  %v2194_v42 = vpop.f32.mrb[60].mxu1 }
 0x8ba   :  { %v8902_v43 = vpack.c.bf16 %v2108_v41, %v2103_v37  ;;  %v8899_v45 = vpack.c.bf16 %v2194_v42, %v2189_v38  ;;  %v8056_v46 = vpop.f32.mrb[57].mxu0  ;;  %v8073_v47 = vpop.f32.mrb[61].mxu1 }
 0x8bb   :  { %v7179_v46 = vld [vmem:[%s11514_s18 + $0x88] sm:$0xff]  ;;  %v2555_v47 = vld [vmem:[#allocation23 + $0x18] sm:$0xff] }
 0x8bc   :  { %8900 = vmatpush3.bf16.msra.mxu0 %v8899_v45  ;;  %8903 = vmatpush3.bf16.msra.mxu1 %v8902_v43  ;;  %v7178_v45 = vld [vmem:[%s11514_s18 + $0x80] sm:$0xff] }
 0x8bd   :  { %v2113_v28 = vpop.f32.mrb[58].mxu0  ;;  %v2199_v48 = vpop.f32.mrb[62].mxu1  ;;  %8081 = vmatprep.subr.mxu0 %v9873_v55  ;;  %8090 = vmatprep.subr.mxu1 %v9873_v55 }
 0x8be   :  { %v8059_v49 = vpop.f32.mrb[59].mxu0  ;;  %v8076_v27 = vpop.f32.mrb[63].mxu1 }
 0x8bf   :  { %v2472_v27 = vld [vmem:[#allocation23] sm:$0xff] }
 0x8c0   :  { %8082 = vmatpush3.msk.msra.mxu0 %vm2209_vm7, %v2199_v48  ;;  %8091 = vmatpush3.msk.msra.mxu1 %vm2209_vm7, %v2113_v28  ;;  %v8929_v28 = vpack.c.bf16 %v7179_v46, %v7178_v45 }
 0x8c1   :  { %8084 = vmatmul.mubr.msk.f32.vlgmr.msra.gmra.mrb[60].mxu0 %vm2205_vm8, %v2204_v51  ;;  %8093 = vmatmul.mubr.msk.f32.vlgmr.msra.gmra.mrb[64].mxu1 %vm2205_vm8, %v2117_v52  ;;  %v7180_v51 = vld [vmem:[%s11514_s18 + $0x90] sm:$0xff]  ;;  %v7181_v52 = vld [vmem:[%s11514_s18 + $0x98] sm:$0xff] }
 0x8c2   :  { %8904 = vmatprep.subr.bf16.mxu0 %v9871_v8  ;;  %8916 = vmatprep.subr.bf16.mxu1 %v9871_v8  ;;  %v8932_v26 = vpack.c.bf16 %v7181_v52, %v7180_v51 }
 0x8c3   :  { %8111 = vmatprep.mubr.msk.f32.mxu0 %vm9872_vm2, %v9873_v55  ;;  %8130 = vmatprep.mubr.msk.f32.mxu1 %vm9872_vm2, %v9873_v55 }
 0x8c4   :  { %8906 = vmatpush3.bf16.msra.mxu0 %v8905_v56  ;;  %8918 = vmatpush3.bf16.msra.mxu1 %v8917_v59  ;;  %v2556_v56 = vld [vmem:[#allocation23 + $0x20] sm:$0xff] }
 0x8c5   :  { %8907 = vmatprep.subr.bf16.mxu0 %v9871_v8  ;;  %8919 = vmatprep.subr.bf16.mxu1 %v9871_v8  ;;  %v7182_v59 = vld [vmem:[%s11514_s18 + $0xa0] sm:$0xff] }
 0x8c6   :  { %v8935_v61 = vpack.c.bf16 %v7183_v60, %v7182_v59 }
 0x8c8   :  { %8909 = vmatpush3.bf16.msra.mxu0 %v8908_v63  ;;  %8921 = vmatpush3.bf16.msra.mxu1 %v8920_v1  ;;  %v2474_v63 = vld [vmem:[#allocation23 + $0x10] sm:$0xf]  ;;  %v7185_v1 = vld [vmem:[%s11514_s18 + $0xb8] sm:$0xff] }
 0x8c9   :  { %8910 = vmatprep.subr.bf16.mxu0 %v9871_v8  ;;  %8922 = vmatprep.subr.bf16.mxu1 %v9871_v8  ;;  %v8938_v32 = vpack.c.bf16 %v7185_v1, %v7184_v0 }
 0x8cc   :  { %8912 = vmatpush3.bf16.msra.mxu0 %v8911_v44  ;;  %8924 = vmatpush3.bf16.msra.mxu1 %v8923_v58 }
 0x8cd   :  { %8913 = vmatprep.subr.bf16.mxu0 %v9871_v8  ;;  %8925 = vmatprep.subr.bf16.mxu1 %v9871_v8 }
 0x8d0   :  { %8915 = vmatpush3.bf16.msra.mxu0 %v8914_v6  ;;  %8927 = vmatpush3.bf16.msra.mxu1 %v8926_v9 }
 0x8d1   :  { %8133 = vmatprep.subr.mxu0 %v9873_v55  ;;  %8144 = vmatprep.subr.mxu1 %v9873_v55 }
 0x994   :  { %v2279_v10 = vpop.f32.mrb[60].mxu0  ;;  %v2355_v11 = vpop.f32.mrb[64].mxu1 }
 0x995   :  { %v2356_v13 = vadd.f32 %v2355_v11, %v2279_v10  ;;  %v8085_v14 = vpop.f32.mrb[61].mxu0  ;;  %v8094_v15 = vpop.f32.mrb[65].mxu1 }
 0x996   :  { %v2816_v14 = vld [vmem:[#allocation23 + $0x30] sm:$0xff] }
 0x997   :  { %v2366_v16 = vadd.f32 %v7161_v12, %v2356_v13 }
 0x999   :  { %v2368_v17 = vsel %vm2367_vm9, %v2366_v16, 0.0 }
 0x99a   :  { %v2369_v18 = vrot.slane %v2368_v17, 4 }
 0x99c   :  { %v2370_v19 = vadd.f32 %v2369_v18, %v2368_v17  ;;  %v2817_v17 = vld [vmem:[#allocation23 + $0x38] sm:$0xff]  ;;  %v2818_v18 = vld [vmem:[#allocation23 + $0x40] sm:$0xf] }
 0x99e   :  { %v2371_v20 = vrot.slane %v2370_v19, 2 }
 0x9a0   :  { %v2372_v21 = vadd.f32 %v2371_v20, %v2370_v19  ;;  %v2959_v19 = vld [vmem:[#allocation27] sm:$0xff]  ;;  %v2960_v20 = vld [vmem:[#allocation27 + $0x8] sm:$0xff] }
 0x9a2   :  { %v2373_v22 = vrot.slane %v2372_v21, 1 }
 0x9a4   :  { %v2374_v23 = vadd.f32 %v2373_v22, %v2372_v21  ;;  %v3059_v21 = vld [vmem:[#allocation27 + $0x20] sm:$0xff]  ;;  %v8941_v22 = vpack.c.bf16 %v2960_v20, %v2959_v19 }
 0x9a6   :  { %v2376_v24 = vmul.f32 0.125, %v2374_v23  ;;  %v3060_v23 = vld [vmem:[#allocation27 + $0x28] sm:$0xff] }
 0x9a8   :  { %v2377_v25 = vsub.f32 %v2366_v16, %v2376_v24  ;;  %v8947_v24 = vpack.c.bf16 %v3060_v23, %v3059_v21  ;;  %v3385_v21 = vld [vmem:[#allocation27 + $0x50] sm:$0xff] }
 0x9aa   :  { %v2378_v29 = vmul.f32 %v2377_v25, %v2377_v25 }
 0x9ac   :  { %v2379_v30 = vsel %vm2367_vm9, %v2378_v29, 0.0  ;;  %v2962_v29 = vld [vmem:[#allocation27 + $0x18] sm:$0xff] }
 0x9ad   :  { %v2380_v31 = vrot.slane %v2379_v30, 4 }
 0x9af   :  { %v2381_v33 = vadd.f32 %v2380_v31, %v2379_v30  ;;  %v3061_v30 = vld [vmem:[#allocation27 + $0x30] sm:$0xff] }
 0x9b1   :  { %v2382_v34 = vrot.slane %v2381_v33, 2 }
 0x9b3   :  { %v2383_v36 = vadd.f32 %v2382_v34, %v2381_v33  ;;  %v3062_v33 = vld [vmem:[#allocation27 + $0x38] sm:$0xff] }
 0x9b4   :  { %v8950_v34 = vpack.c.bf16 %v3062_v33, %v3061_v30 }
 0x9b5   :  { %v2384_v37 = vrot.slane %v2383_v36, 1 }
 0x9b7   :  { %v2385_v38 = vadd.f32 %v2384_v37, %v2383_v36 }
 0x9b9   :  { %v2386_v39 = vmul.f32 0.125, %v2385_v38 }
 0x9bb   :  { %v2387_v40 = vadd.f32 1e-05, %v2386_v39  ;;  %v7190_v39 = vld [vmem:[#allocation24] ss:$0 sm:$0xff] }
 0x9bd   :  { %9271 = vrsqrt.f32 %v2387_v40 }
 0x9c7   :  { %v9272_v41 = vpop.eup %9271 }
 0x9c8   :  { %v2389_v42 = vmul.f32 %v9272_v41, %v2377_v25  ;;  %v2961_v25 = vld [vmem:[#allocation27 + $0x10] sm:$0xff] }
 0x9c9   :  { %v8944_v31 = vpack.c.bf16 %v2962_v29, %v2961_v25  ;;  %v3144_v29 = vld [vmem:[#allocation26 + $0x30] sm:$0xff] }
 0x9ca   :  { %v2390_v43 = vmax.f32 %v2389_v42, 0.0 }
 0x9cc   :  { %8112 = vmatmul.mubr.msk.f32.vlgmr.msra.gmra.mrb[62].mxu0 %vm2367_vm9, %v2390_v43  ;;  %8131 = vmatmul.mubr.msk.f32.vlgmr.msra.gmra.mrb[66].mxu1 %vm2367_vm9, %v2390_v43 }
 0x9cd   :  { %8135 = vmatprep.mubr.msk.f32.mxu0 %vm9872_vm2, %v9873_v55  ;;  %8146 = vmatprep.mubr.msk.f32.mxu1 %vm9872_vm2, %v9873_v55 }
 0xa9f   :  { %v2468_v48 = vpop.f32.mrb[62].mxu0  ;;  %v2550_v49 = vpop.f32.mrb[66].mxu1 }
 0xaa0   :  { %v8113_v53 = vpop.f32.mrb[63].mxu0  ;;  %v8132_v54 = vpop.f32.mrb[67].mxu1  ;;  %8134 = vmatpush3.msra.mxu0 %v2550_v49  ;;  %8145 = vmatpush3.msra.mxu1 %v2468_v48 }
 0xaa1   :  { %8136 = vmatmul.mubr.msk.f32.vlgmr.msra.gmra.mrb[64].mxu0 %vm939_vm1, %v2555_v47  ;;  %8928 = vmatprep.subr.bf16.mxu0 %v9871_v8 }
 0xaa2   :  { %8147 = vmatmul.mubr.msk.f32.vlgmr.msra.gmra.mrb[68].mxu1 %vm939_vm1, %v2472_v27  ;;  %8930 = vmatpush3.bf16.msra.mxu0 %v8929_v28 }
 0xaa3   :  { %8931 = vmatprep.subr.bf16.mxu0 %v9871_v8  ;;  %8138 = vmatprep.mubr.msk.f32.mxu0 %vm9872_vm2, %v9873_v55 }
 0xaa4   :  { %8149 = vmatprep.mubr.msk.f32.mxu1 %vm9872_vm2, %v9873_v55  ;;  %8174 = vmatprep.subr.mxu1 %v9873_v55 }
 0xaa5   :  { %8139 = vmatmul.mubr.msk.f32.gmra.mrb[66].mxu0 %vm939_vm1, %v2556_v56 }
 0xaa6   :  { %8933 = vmatpush3.bf16.msra.mxu0 %v8932_v26  ;;  %8150 = vmatmul.mubr.msk.f32.gmra.mrb[70].mxu1 %vm939_vm1, %v2473_v57 }
 0xaa7   :  { %8934 = vmatprep.subr.bf16.mxu0 %v9871_v8  ;;  %8141 = vmatprep.mubr.msk.f32.mxu0 %vm9872_vm2, %v9873_v55 }
 0xaa8   :  { %8152 = vmatprep.mubr.msk.f32.mxu1 %vm9872_vm2, %v9873_v55 }
 0xaa9   :  { %8142 = vmatmul.mubr.msk.f32.gmra.mrb[68].mxu0 %vm939_vm1, %v2557_v62 }
 0xaaa   :  { %8936 = vmatpush3.bf16.msra.mxu0 %v8935_v61  ;;  %8153 = vmatmul.mubr.msk.f32.gmra.mrb[72].mxu1 %vm939_vm1, %v2474_v63 }
 0xaab   :  { %8937 = vmatprep.subr.bf16.mxu0 %v9871_v8  ;;  %8171 = vmatprep.mubr.msk.f32.mxu0 %vm9872_vm2, %v9873_v55 }
 0xaac   :  { %8176 = vmatprep.mubr.msk.f32.mxu1 %vm9872_vm2, %v9873_v55 }
 0xaae   :  { %8939 = vmatpush3.bf16.msra.mxu0 %v8938_v32 }
 0xaaf   :  { %8940 = vmatprep.subr.bf16.mxu0 %v9871_v8 }
 0xab1   :  { %8172 = vmatmul.mubr.msk.f32.vlgmr.msra.gmra.mrb[70].mxu0 %vm2367_vm9, %v2390_v43 }
 0xab2   :  { %8193 = vmatprep.mubr.msk.f32.mxu0 %vm9872_vm2, %v9873_v55  ;;  %8942 = vmatpush3.bf16.msra.mxu0 %v8941_v22  ;;  %v3386_v22 = vld [vmem:[#allocation27 + $0x58] sm:$0xff] }
 0xab3   :  { %8943 = vmatprep.subr.bf16.mxu0 %v9871_v8 }
 0xab6   :  { %8945 = vmatpush3.bf16.msra.mxu0 %v8944_v31 }
 0xb74   :  { %v2633_v3 = vpop.f32.mrb[64].mxu0 }
 0xb75   :  { %v8137_v35 = vpop.f32.mrb[65].mxu0  ;;  %v2722_v44 = vpop.f32.mrb[68].mxu1 }
 0xb76   :  { %v2723_v50 = vadd.f32 %v2722_v44, %v2633_v3  ;;  %v8148_v58 = vpop.f32.mrb[69].mxu1 }
 0xb78   :  { %v2638_v2 = vpop.f32.mrb[66].mxu0 }
 0xb79   :  { %v8140_v4 = vpop.f32.mrb[67].mxu0  ;;  %v2727_v5 = vpop.f32.mrb[70].mxu1 }
 0xb7a   :  { %v2728_v6 = vadd.f32 %v2727_v5, %v2638_v2  ;;  %v8151_v7 = vpop.f32.mrb[71].mxu1 }
 0xb7c   :  { %v2643_v9 = vpop.f32.mrb[68].mxu0 }
 0xb7d   :  { %v8143_v10 = vpop.f32.mrb[69].mxu0  ;;  %v2732_v11 = vpop.f32.mrb[72].mxu1 }
 0xb7e   :  { %v2733_v12 = vadd.f32 %v2732_v11, %v2643_v9  ;;  %v8154_v13 = vpop.f32.mrb[73].mxu1 }
 0xb84   :  { %v2811_v15 = vpop.f32.mrb[70].mxu0 }
 0xb85   :  { %v8173_v16 = vpop.f32.mrb[71].mxu0  ;;  %8175 = vmatpush3.msra.mxu1 %v2811_v15  ;;  %v3384_v15 = vld [vmem:[#allocation27 + $0x48] sm:$0xff] }
 0xb86   :  { %8177 = vmatmul.mubr.msk.f32.vlgmr.msra.gmra.mrb[74].mxu1 %vm939_vm1, %v2816_v14  ;;  %8946 = vmatprep.subr.bf16.mxu1 %v9871_v8  ;;  %v3383_v14 = vld [vmem:[#allocation27 + $0x40] sm:$0xff] }
 0xb87   :  { %8179 = vmatprep.mubr.msk.f32.mxu1 %vm9872_vm2, %v9873_v55  ;;  %8948 = vmatpush3.bf16.msra.mxu1 %v8947_v24  ;;  %v8961_v20 = vpack.c.bf16 %v3384_v15, %v3383_v14  ;;  %v8964_v24 = vpack.c.bf16 %v3386_v22, %v3385_v21 }
 0xb88   :  { %8949 = vmatprep.subr.bf16.mxu1 %v9871_v8 }
 0xb8a   :  { %8180 = vmatmul.mubr.msk.f32.gmra.mrb[76].mxu1 %vm939_vm1, %v2817_v17 }
 0xb8b   :  { %8182 = vmatprep.mubr.msk.f32.mxu1 %vm9872_vm2, %v9873_v55  ;;  %8951 = vmatpush3.bf16.msra.mxu1 %v8950_v34 }
 0xb8c   :  { %8960 = vmatprep.subr.bf16.mxu1 %v9871_v8 }
 0xb8e   :  { %8183 = vmatmul.mubr.msk.f32.gmra.mrb[78].mxu1 %vm939_vm1, %v2818_v18 }
 0xb8f   :  { %8210 = vmatprep.mubr.msk.f32.mxu1 %vm9872_vm2, %v9873_v55 }
 0xc59   :  { %v2894_v36 = vpop.f32.mrb[74].mxu1 }
 0xc5a   :  { %v2908_v37 = vadd.f32 %v2894_v36, %v2723_v50  ;;  %v8178_v38 = vpop.f32.mrb[75].mxu1 }
 0xc5c   :  { %v2918_v41 = vadd.f32 %v7190_v39, %v2908_v37 }
 0xc5d   :  { %v2899_v40 = vpop.f32.mrb[76].mxu1 }
 0xc5e   :  { %v2909_v42 = vadd.f32 %v2899_v40, %v2728_v6  ;;  %v8181_v43 = vpop.f32.mrb[77].mxu1  ;;  %v2921_v47 = vsel %vm631_vm0, %v2918_v41, 0.0 }
 0xc60   :  { %v2919_v45 = vadd.f32 %v7190_v39, %v2909_v42 }
 0xc61   :  { %v2904_v46 = vpop.f32.mrb[78].mxu1 }
 0xc62   :  { %v2922_v28 = vsel %vm631_vm0, %v2919_v45, 0.0  ;;  %v2910_v48 = vadd.f32 %v2904_v46, %v2733_v12  ;;  %v8184_v49 = vpop.f32.mrb[79].mxu1 }
 0xc63   :  { %v2923_v27 = vadd.f32 %v2922_v28, %v2921_v47  ;;  %v3145_v47 = vld [vmem:[#allocation26 + $0x38] sm:$0xff]  ;;  %v3146_v28 = vld [vmem:[#allocation26 + $0x40] sm:$0xff] }
 0xc64   :  { %v2920_v51 = vadd.f32 %v7190_v39, %v2910_v48 }
 0xc66   :  { %v2924_v52 = vsel %vm1987_vm6, %v2920_v51, 0.0 }
 0xc67   :  { %v2925_v53 = vadd.f32 %v2924_v52, %v2923_v27  ;;  %v3147_v27 = vld [vmem:[#allocation26 + $0x48] sm:$0xff] }
 0xc69   :  { %v2926_v54 = vrot.slane %v2925_v53, 4 }
 0xc6b   :  { %v2927_v26 = vadd.f32 %v2926_v54, %v2925_v53 }
 0xc6d   :  { %v2928_v56 = vrot.slane %v2927_v26, 2 }
 0xc6f   :  { %v2929_v57 = vadd.f32 %v2928_v56, %v2927_v26  ;;  %v3149_v26 = vld [vmem:[#allocation26 + $0x58] sm:$0xf]  ;;  %v3052_v56 = vld [vmem:[#allocation26] sm:$0xff] }
 0xc71   :  { %v2930_v59 = vrot.slane %v2929_v57, 1 }
 0xc73   :  { %v2931_v60 = vadd.f32 %v2930_v59, %v2929_v57 }
 0xc75   :  { %v2932_v61 = vmul.f32 0.05, %v2931_v60  ;;  %v3053_v60 = vld [vmem:[#allocation26 + $0x8] sm:$0xff] }
 0xc77   :  { %v2933_v62 = vsub.f32 %v2918_v41, %v2932_v61  ;;  %v2934_v63 = vsub.f32 %v2919_v45, %v2932_v61  ;;  %v2935_v0 = vsub.f32 %v2920_v51, %v2932_v61  ;;  %v3148_v51 = vld [vmem:[#allocation26 + $0x50] sm:$0xff] }
 0xc78   :  { %v3054_v61 = vld [vmem:[#allocation26 + $0x10] sm:$0xff] }
 0xc79   :  { %v2936_v1 = vmul.f32 %v2933_v62, %v2933_v62  ;;  %v2937_v32 = vmul.f32 %v2934_v63, %v2934_v63  ;;  %v2938_v3 = vmul.f32 %v2935_v0, %v2935_v0 }
 0xc7b   :  { %v2939_v35 = vsel %vm631_vm0, %v2936_v1, 0.0  ;;  %v2940_v44 = vsel %vm631_vm0, %v2937_v32, 0.0  ;;  %v2942_v58 = vsel %vm1987_vm6, %v2938_v3, 0.0  ;;  %v3468_v1 = vld [vmem:[#allocation26 + $0x60] sm:$0xff]  ;;  %v3469_v32 = vld [vmem:[#allocation26 + $0x68] sm:$0xff]  ;;  %v3470_v3 = vld [vmem:[#allocation26 + $0x70] sm:$0xff] }
 0xc7c   :  { %v2941_v50 = vadd.f32 %v2940_v44, %v2939_v35  ;;  %v3471_v35 = vld [vmem:[#allocation26 + $0x78] sm:$0xff]  ;;  %v3472_v44 = vld [vmem:[#allocation26 + $0x80] sm:$0xff] }
 0xc7e   :  { %v2943_v2 = vadd.f32 %v2942_v58, %v2941_v50  ;;  %v3473_v50 = vld [vmem:[#allocation26 + $0x88] sm:$0xf]  ;;  %v3673_v58 = vld [vmem:[#allocation32] sm:$0xff] }
 0xc80   :  { %v2944_v4 = vrot.slane %v2943_v2, 4 }
 0xc82   :  { %v2945_v5 = vadd.f32 %v2944_v4, %v2943_v2  ;;  %v3674_v2 = vld [vmem:[#allocation32 + $0x8] sm:$0xff] }
 0xc83   :  { %v8970_v4 = vpack.c.bf16 %v3674_v2, %v3673_v58 }
 0xc84   :  { %v2946_v6 = vrot.slane %v2945_v5, 2 }
 0xc86   :  { %v2947_v7 = vadd.f32 %v2946_v6, %v2945_v5  ;;  %v3801_v5 = vld [vmem:[#allocation32 + $0x10] sm:$0xff]  ;;  %v3802_v6 = vld [vmem:[#allocation32 + $0x18] sm:$0xff] }
 0xc88   :  { %v2948_v9 = vrot.slane %v2947_v7, 1 }
 0xc8a   :  { %v2949_v10 = vadd.f32 %v2948_v9, %v2947_v7  ;;  %v10645_v7 = vpack.c.bf16 %v3802_v6, %v3801_v5  ;;  %v7221_v9 = vld [vmem:[#allocation29] ss:$0 sm:$0xff] }
 0xc8c   :  { %v2950_v11 = vmul.f32 0.05, %v2949_v10 }
 0xc8e   :  { %v2951_v12 = vadd.f32 1e-05, %v2950_v11 }
 0xc90   :  { %9273 = vrsqrt.f32 %v2951_v12 }
 0xc9a   :  { %v9274_v13 = vpop.eup %9273 }
 0xc9b   :  { %v2955_v16 = vmul.f32 %v9274_v13, %v2935_v0  ;;  %v2953_v17 = vmul.f32 %v9274_v13, %v2933_v62  ;;  %v2954_v18 = vmul.f32 %v9274_v13, %v2934_v63  ;;  %v3055_v62 = vld [vmem:[#allocation26 + $0x18] sm:$0xff]  ;;  %v3056_v63 = vld [vmem:[#allocation26 + $0x20] sm:$0xff]  ;;  %v3057_v0 = vld [vmem:[#allocation26 + $0x28] sm:$0xf] }
 0xc9d   :  { %v2956_v19 = vmax.f32 %v2953_v17, 0.0  ;;  %v2957_v23 = vmax.f32 %v2954_v18, 0.0  ;;  %v2958_v25 = vmax.f32 %v2955_v16, 0.0 }
 0xc9f   :  { %8194 = vmatmul.mubr.msk.f32.vlgmr.msra.gmra.mrb[72].mxu0 %vm631_vm0, %v2956_v19  ;;  %8211 = vmatmul.mubr.msk.f32.vlgmr.msra.gmra.mrb[80].mxu1 %vm631_vm0, %v2956_v19 }
 0xca0   :  { %8196 = vmatprep.mubr.msk.f32.mxu0 %vm9872_vm2, %v9873_v55  ;;  %8213 = vmatprep.mubr.msk.f32.mxu1 %vm9872_vm2, %v9873_v55 }
 0xca1   :  { %8962 = vmatpush3.bf16.msra.mxu1 %v8961_v20 }
 0xca2   :  { %8963 = vmatprep.subr.bf16.mxu1 %v9871_v8 }
 0xca3   :  { %8197 = vmatmul.mubr.msk.f32.gmra.mrb[74].mxu0 %vm631_vm0, %v2957_v23  ;;  %8214 = vmatmul.mubr.msk.f32.gmra.mrb[82].mxu1 %vm631_vm0, %v2957_v23 }
 0xca4   :  { %8199 = vmatprep.mubr.msk.f32.mxu0 %vm9872_vm2, %v9873_v55  ;;  %8216 = vmatprep.mubr.msk.f32.mxu1 %vm9872_vm2, %v9873_v55 }
 0xca5   :  { %8965 = vmatpush3.bf16.msra.mxu1 %v8964_v24 }
 0xca6   :  { %8971 = vmatprep.subr.bf16.mxu1 %v8970_v4 }
 0xca7   :  { %8200 = vmatmul.mubr.msk.f32.gmra.mrb[76].mxu0 %vm631_vm0, %v2958_v25  ;;  %8217 = vmatmul.mubr.msk.f32.gmra.mrb[84].mxu1 %vm631_vm0, %v2958_v25 }
 0xca8   :  { %8257 = vmatprep.mubr.msk.f32.mxu1 %vm9872_vm2, %v9873_v55  ;;  %8225 = vmatprep.mubr.msk.f32.mxu0 %vm2205_vm8, %v3144_v29 }
 0xcab   :  { %8258 = vmatmul.mubr.msk.f32.vlgmr.msra.gmra.mrb[86].mxu1 %vm631_vm0, %v2956_v19 }
 0xcac   :  { %8260 = vmatprep.mubr.msk.f32.mxu1 %vm9872_vm2, %v9873_v55  ;;  %8973 = vmatpush3.bf16.msra.mxu1 %v8970_v4 }
 0xcad   :  { %8975 = vmatprep.subr.bf16.mxu1 %v10645_v7 }
 0xcaf   :  { %8261 = vmatmul.mubr.msk.f32.gmra.mrb[88].mxu1 %vm631_vm0, %v2957_v23 }
 0xcb0   :  { %8263 = vmatprep.mubr.msk.f32.mxu1 %vm9872_vm2, %v9873_v55 }
 0xcb3   :  { %8264 = vmatmul.mubr.msk.f32.gmra.mrb[90].mxu1 %vm631_vm0, %v2958_v25  ;;  %vm6253_vm0 = vcmask 457728  }
 0xd72   :  { %v3038_v30 = vpop.f32.mrb[72].mxu0  ;;  %v3129_v31 = vpop.f32.mrb[80].mxu1 }
 0xd73   :  { %v8195_v33 = vpop.f32.mrb[73].mxu0  ;;  %v8212_v34 = vpop.f32.mrb[81].mxu1 }
 0xd76   :  { %v3043_v36 = vpop.f32.mrb[74].mxu0  ;;  %v3134_v37 = vpop.f32.mrb[82].mxu1 }
 0xd77   :  { %v8956_v38 = vpack.c.bf16 %v3043_v36, %v3038_v30  ;;  %v8952_v39 = vpack.c.bf16 %v3134_v37, %v3129_v31  ;;  %v8198_v40 = vpop.f32.mrb[75].mxu0  ;;  %v8215_v41 = vpop.f32.mrb[83].mxu1 }
 0xd79   :  { %8953 = vmatprep.subr.bf16.mxu0 %v8952_v39 }
 0xd7a   :  { %v3048_v42 = vpop.f32.mrb[76].mxu0  ;;  %v3139_v43 = vpop.f32.mrb[84].mxu1  ;;  %8955 = vmatpush3.bf16.msra.mxu0 %v8952_v39 }
 0xd7b   :  { %v8201_v45 = vpop.f32.mrb[77].mxu0  ;;  %v8218_v46 = vpop.f32.mrb[85].mxu1  ;;  %8223 = vmatprep.subr.msk.mxu0 %vm2209_vm7, %v3139_v43 }
 0xd7e   :  { %8224 = vmatpush3.msk.msra.mxu0 %vm2209_vm7, %v3139_v43  ;;  %v3453_v48 = vpop.f32.mrb[86].mxu1 }
 0xd7f   :  { %8226 = vmatmul.mubr.msk.f32.vlgmr.msra.gmra.mrb[78].mxu0 %vm2205_vm8, %v3145_v47  ;;  %8957 = vmatprep.subr.bf16.mxu0 %v8956_v38  ;;  %v8259_v49 = vpop.f32.mrb[87].mxu1 }
 0xd80   :  { %8959 = vmatpush3.bf16.msra.mxu0 %v8956_v38  ;;  %8228 = vmatprep.mubr.msk.f32.mxu0 %vm2205_vm8, %v3146_v28 }
 0xd81   :  { %8238 = vmatprep.subr.msk.mxu0 %vm2209_vm7, %v3048_v42 }
 0xd82   :  { %v3458_v52 = vpop.f32.mrb[88].mxu1 }
 0xd83   :  { %v8966_v53 = vpack.c.bf16 %v3458_v52, %v3453_v48  ;;  %8229 = vmatmul.mubr.msk.f32.gmra.mrb[80].mxu0 %vm2205_vm8, %v3147_v27  ;;  %v8262_v54 = vpop.f32.mrb[89].mxu1 }
 0xd84   :  { %8239 = vmatpush3.msk.msra.mxu0 %vm2209_vm7, %v3048_v42  ;;  %8231 = vmatprep.mubr.msk.f32.mxu0 %vm2205_vm8, %v3148_v51 }
 0xd85   :  { %8967 = vmatprep.subr.bf16.mxu0 %v8966_v53 }
 0xd86   :  { %v3463_v57 = vpop.f32.mrb[90].mxu1 }
 0xd87   :  { %8232 = vmatmul.mubr.msk.f32.gmra.mrb[82].mxu0 %vm2205_vm8, %v3149_v26  ;;  %v8265_v59 = vpop.f32.mrb[91].mxu1 }
 0xd88   :  { %8240 = vmatprep.mubr.msk.f32.mxu0 %vm2205_vm8, %v3052_v56 }
 0xd8b   :  { %8241 = vmatmul.mubr.msk.f32.vlgmr.msra.gmra.mrb[78].mxu0 %vm2205_vm8, %v3053_v60 }
 0xd8c   :  { %8969 = vmatpush3.bf16.msra.mxu0 %v8966_v53  ;;  %8243 = vmatprep.mubr.msk.f32.mxu0 %vm2205_vm8, %v3054_v61 }
 0xd8d   :  { %8270 = vmatprep.subr.msk.mxu0 %vm2209_vm7, %v3463_v57 }
 0xd8f   :  { %8244 = vmatmul.mubr.msk.f32.gmra.mrb[80].mxu0 %vm2205_vm8, %v3055_v62 }
 0xd90   :  { %8271 = vmatpush3.msk.msra.mxu0 %vm2209_vm7, %v3463_v57  ;;  %8246 = vmatprep.mubr.msk.f32.mxu0 %vm2205_vm8, %v3056_v63 }
 0xd93   :  { %8247 = vmatmul.mubr.msk.f32.gmra.mrb[82].mxu0 %vm2205_vm8, %v3057_v0 }
 0xd94   :  { %8272 = vmatprep.mubr.msk.f32.mxu0 %vm2205_vm8, %v3468_v1 }
 0xd97   :  { %8273 = vmatmul.mubr.msk.f32.vlgmr.msra.gmra.mrb[78].mxu0 %vm2205_vm8, %v3469_v32 }
 0xd98   :  { %8275 = vmatprep.mubr.msk.f32.mxu0 %vm2205_vm8, %v3470_v3 }
 0xd9b   :  { %8276 = vmatmul.mubr.msk.f32.gmra.mrb[80].mxu0 %vm2205_vm8, %v3471_v35 }
 0xd9c   :  { %8278 = vmatprep.mubr.msk.f32.mxu0 %vm2205_vm8, %v3472_v44 }
 0xd9f   :  { %8279 = vmatmul.mubr.msk.f32.gmra.mrb[82].mxu0 %vm2205_vm8, %v3473_v50 }
 0xe6a   :  { %v8274_v10 = vpop.f32.mrb[78].mxu0 }
 0xe6b   :  { %v3604_v11 = vadd.f32 %v8274_v10, %v7221_v9  ;;  %v3561_v12 = vpop.f32.mrb[79].mxu0 }
 0xe6c   :  { %v3603_v13 = vadd.f32 %v7221_v9, %v3561_v12 }
 0xe6d   :  { %v3610_v14 = vsel %vm1532_vm4, %v3604_v11, 0.0 }
 0xe6e   :  { %v3609_v15 = vsel %vm1532_vm4, %v3603_v13, 0.0  ;;  %v8277_v16 = vpop.f32.mrb[80].mxu0 }
 0xe6f   :  { %v3611_v17 = vadd.f32 %v3610_v14, %v3609_v15  ;;  %v3571_v18 = vpop.f32.mrb[81].mxu0  ;;  %v3606_v19 = vadd.f32 %v8277_v16, %v7221_v9  ;;  %v4241_v15 = vld [vmem:[#allocation32 + $0x20] sm:$0xff]  ;;  %v4242_v16 = vld [vmem:[#allocation32 + $0x28] sm:$0xff] }
 0xe70   :  { %v3605_v20 = vadd.f32 %v7221_v9, %v3571_v18 }
 0xe71   :  { %v3614_v25 = vsel %vm1532_vm4, %v3606_v19, 0.0 }
 0xe72   :  { %v3612_v21 = vsel %vm1532_vm4, %v3605_v20, 0.0  ;;  %v8280_v22 = vpop.f32.mrb[82].mxu0 }
 0xe73   :  { %v3613_v23 = vadd.f32 %v3612_v21, %v3611_v17  ;;  %v3581_v24 = vpop.f32.mrb[83].mxu0  ;;  %v3608_v29 = vadd.f32 %v8280_v22, %v7221_v9  ;;  %v9006_v21 = vpack.c.bf16 %v4242_v16, %v4241_v15  ;;  %v3799_v15 = vld [vmem:[#allocation30 + $0x58] sm:$0xf]  ;;  %v4339_v16 = vld [vmem:[#allocation30 + $0xc0] sm:$0xff] }
 0xe74   :  { %v3607_v30 = vadd.f32 %v7221_v9, %v3581_v24 }
 0xe75   :  { %v3615_v31 = vadd.f32 %v3614_v25, %v3613_v23  ;;  %v3619_v36 = vsel %vm3618_vm10, %v3608_v29, 0.0 }
 0xe76   :  { %v3616_v33 = vsel %vm1532_vm4, %v3607_v30, 0.0 }
 0xe77   :  { %v3617_v34 = vadd.f32 %v3616_v33, %v3615_v31 }
 0xe79   :  { %v3620_v37 = vadd.f32 %v3619_v36, %v3617_v34 }
 0xe7b   :  { %v3621_v38 = vrot.slane %v3620_v37, 4 }
 0xe7d   :  { %v3622_v39 = vadd.f32 %v3621_v38, %v3620_v37 }
 0xe7f   :  { %v3623_v40 = vrot.slane %v3622_v39, 2 }
 0xe81   :  { %v3624_v41 = vadd.f32 %v3623_v40, %v3622_v39 }
 0xe83   :  { %v3625_v42 = vrot.slane %v3624_v41, 1 }
 0xe85   :  { %v3626_v43 = vadd.f32 %v3625_v42, %v3624_v41 }
 0xe87   :  { %v3628_v45 = vmul.f32 0.022727273, %v3626_v43 }
 0xe89   :  { %v3629_v46 = vsub.f32 %v3603_v13, %v3628_v45  ;;  %v3630_v47 = vsub.f32 %v3604_v11, %v3628_v45  ;;  %v3631_v28 = vsub.f32 %v3605_v20, %v3628_v45  ;;  %v3632_v48 = vsub.f32 %v3606_v19, %v3628_v45 }
 0xe8a   :  { %v3633_v49 = vsub.f32 %v3607_v30, %v3628_v45  ;;  %v3634_v27 = vsub.f32 %v3608_v29, %v3628_v45 }
 0xe8b   :  { %v3635_v51 = vmul.f32 %v3629_v46, %v3629_v46  ;;  %v3636_v52 = vmul.f32 %v3630_v47, %v3630_v47  ;;  %v3637_v53 = vmul.f32 %v3631_v28, %v3631_v28  ;;  %v3638_v54 = vmul.f32 %v3632_v48, %v3632_v48 }
 0xe8c   :  { %v3639_v59 = vmul.f32 %v3633_v49, %v3633_v49  ;;  %v3640_v62 = vmul.f32 %v3634_v27, %v3634_v27 }
 0xe8d   :  { %v3641_v26 = vsel %vm1532_vm4, %v3635_v51, 0.0  ;;  %v3642_v56 = vsel %vm1532_vm4, %v3636_v52, 0.0  ;;  %v3644_v60 = vsel %vm1532_vm4, %v3637_v53, 0.0  ;;  %v3646_v63 = vsel %vm1532_vm4, %v3638_v54, 0.0  ;;  %v3900_v52 = vld [vmem:[#allocation30 + $0x68] sm:$0xff]  ;;  %v3901_v54 = vld [vmem:[#allocation30 + $0x70] sm:$0xff] }
 0xe8e   :  { %v3643_v57 = vadd.f32 %v3642_v56, %v3641_v26  ;;  %v3648_v1 = vsel %vm1532_vm4, %v3639_v59, 0.0  ;;  %v3650_v3 = vsel %vm3618_vm10, %v3640_v62, 0.0 }
 0xe90   :  { %v3645_v61 = vadd.f32 %v3644_v60, %v3643_v57  ;;  %v3902_v57 = vld [vmem:[#allocation30 + $0x78] sm:$0xff]  ;;  %v3903_v60 = vld [vmem:[#allocation30 + $0x80] sm:$0xff] }
 0xe92   :  { %v3647_v0 = vadd.f32 %v3646_v63, %v3645_v61  ;;  %v3904_v63 = vld [vmem:[#allocation30 + $0x88] sm:$0xff] }
 0xe94   :  { %v3649_v32 = vadd.f32 %v3648_v1, %v3647_v0  ;;  %v3905_v1 = vld [vmem:[#allocation30 + $0x90] sm:$0xff] }
 0xe96   :  { %v3651_v35 = vadd.f32 %v3650_v3, %v3649_v32  ;;  %v3906_v32 = vld [vmem:[#allocation30 + $0x98] sm:$0xff]  ;;  %v3907_v3 = vld [vmem:[#allocation30 + $0xa0] sm:$0xff] }
 0xe98   :  { %v3652_v44 = vrot.slane %v3651_v35, 4 }
 0xe9a   :  { %v3653_v50 = vadd.f32 %v3652_v44, %v3651_v35  ;;  %v3908_v35 = vld [vmem:[#allocation30 + $0xa8] sm:$0xff]  ;;  %v3909_v44 = vld [vmem:[#allocation30 + $0xb0] sm:$0xff] }
 0xe9c   :  { %v3654_v58 = vrot.slane %v3653_v50, 2 }
 0xe9e   :  { %v3655_v2 = vadd.f32 %v3654_v58, %v3653_v50  ;;  %v3910_v50 = vld [vmem:[#allocation30 + $0xb8] sm:$0xf]  ;;  %v3788_v58 = vld [vmem:[#allocation30] sm:$0xff] }
 0xea0   :  { %v3656_v4 = vrot.slane %v3655_v2, 1 }
 0xea2   :  { %v3657_v5 = vadd.f32 %v3656_v4, %v3655_v2  ;;  %v3789_v2 = vld [vmem:[#allocation30 + $0x8] sm:$0xff]  ;;  %v3790_v4 = vld [vmem:[#allocation30 + $0x10] sm:$0xff] }
 0xea4   :  { %v3658_v6 = vmul.f32 0.022727273, %v3657_v5  ;;  %v3791_v5 = vld [vmem:[#allocation30 + $0x18] sm:$0xff] }
 0xea6   :  { %v3659_v9 = vadd.f32 1e-05, %v3658_v6  ;;  %v3792_v6 = vld [vmem:[#allocation30 + $0x20] sm:$0xff] }
 0xea8   :  { %9275 = vrsqrt.f32 %v3659_v9  ;;  %v3793_v9 = vld [vmem:[#allocation30 + $0x28] sm:$0xff] }
 0xeb2   :  { %v9276_v10 = vpop.eup %9275 }
 0xeb3   :  { %v3665_v11 = vmul.f32 %v9276_v10, %v3633_v49  ;;  %v3661_v12 = vmul.f32 %v9276_v10, %v3629_v46  ;;  %v3662_v13 = vmul.f32 %v9276_v10, %v3630_v47  ;;  %v3663_v14 = vmul.f32 %v9276_v10, %v3631_v28 }
 0xeb4   :  { %v3664_v17 = vmul.f32 %v9276_v10, %v3632_v48  ;;  %v3666_v18 = vmul.f32 %v9276_v10, %v3634_v27  ;;  %v3794_v10 = vld [vmem:[#allocation30 + $0x30] sm:$0xff]  ;;  %v4827_v48 = vld [vmem:[#allocation33 + $0x38] sm:$0xff] }
 0xeb5   :  { %v3667_v19 = vmax.f32 %v3661_v12, 0.0  ;;  %v3668_v20 = vmax.f32 %v3662_v13, 0.0  ;;  %v3669_v22 = vmax.f32 %v3663_v14, 0.0  ;;  %v3671_v24 = vmax.f32 %v3665_v11, 0.0  ;;  %v3795_v11 = vld [vmem:[#allocation30 + $0x38] sm:$0xff]  ;;  %v3796_v12 = vld [vmem:[#allocation30 + $0x40] sm:$0xff] }
 0xeb6   :  { %v3670_v23 = vmax.f32 %v3664_v17, 0.0  ;;  %v3672_v25 = vmax.f32 %v3666_v18, 0.0  ;;  %v3797_v13 = vld [vmem:[#allocation30 + $0x48] sm:$0xff]  ;;  %v3798_v14 = vld [vmem:[#allocation30 + $0x50] sm:$0xff] }
 0xeb7   :  { %8285 = vmatprep.mubr.msk.f32.mxu1 %vm1532_vm4, %v3667_v19  ;;  %v4340_v17 = vld [vmem:[#allocation30 + $0xc8] sm:$0xff]  ;;  %v4341_v18 = vld [vmem:[#allocation30 + $0xd0] sm:$0xff] }
 0xeb8   :  { %8286 = vmatmul.mubr.msk.f32.vlgmr.msra.gmra.mrb[92].mxu1 %vm1532_vm4, %v3668_v20 }
 0xeb9   :  { %8288 = vmatprep.mubr.msk.f32.mxu1 %vm1532_vm4, %v3669_v22  ;;  %8977 = vmatpush3.bf16.msra.mxu1 %v10645_v7  ;;  %v3899_v7 = vld [vmem:[#allocation30 + $0x60] sm:$0xff] }
 0xeba   :  { %9007 = vmatprep.subr.bf16.mxu1 %v9006_v21  ;;  %8319 = vmatprep.mubr.msk.f32.mxu0 %vm3911_vm11, %v3899_v7  ;;  %v4349_v7 = vld [vmem:[#allocation30 + $0x110] sm:$0xff] }
 0xebc   :  { %8289 = vmatmul.mubr.msk.f32.gmra.mrb[94].mxu1 %vm1532_vm4, %v3670_v23 }
 0xebd   :  { %8291 = vmatprep.mubr.msk.f32.mxu1 %vm1532_vm4, %v3671_v24 }
 0xec0   :  { %8292 = vmatmul.mubr.msk.f32.gmra.mrb[96].mxu1 %vm1532_vm4, %v3672_v25 }
 0xec1   :  { %8298 = vmatprep.mubr.msk.f32.mxu1 %vm1532_vm4, %v3667_v19 }
 0xec4   :  { %8299 = vmatmul.mubr.msk.f32.vlgmr.msra.gmra.mrb[98].mxu1 %vm1532_vm4, %v3668_v20 }
 0xec5   :  { %8301 = vmatprep.mubr.msk.f32.mxu1 %vm1532_vm4, %v3669_v22  ;;  %9009 = vmatpush3.bf16.msra.mxu1 %v9006_v21  ;;  %v4344_v21 = vld [vmem:[#allocation30 + $0xe8] sm:$0xff] }
 0xec8   :  { %8302 = vmatmul.mubr.msk.f32.gmra.mrb[100].mxu1 %vm1532_vm4, %v3670_v23 }
 0xec9   :  { %8304 = vmatprep.mubr.msk.f32.mxu1 %vm1532_vm4, %v3671_v24 }
 0xecc   :  { %8305 = vmatmul.mubr.msk.f32.gmra.mrb[102].mxu1 %vm1532_vm4, %v3672_v25 }
 0xecd   :  { %8371 = vmatprep.mubr.msk.f32.mxu1 %vm1532_vm4, %v3667_v19  ;;  %v4342_v19 = vld [vmem:[#allocation30 + $0xd8] sm:$0xff] }
 0xed0   :  { %8372 = vmatmul.mubr.msk.f32.vlgmr.msra.gmra.mrb[104].mxu1 %vm1532_vm4, %v3668_v20  ;;  %v4343_v20 = vld [vmem:[#allocation30 + $0xe0] sm:$0xff] }
 0xed1   :  { %8374 = vmatprep.mubr.msk.f32.mxu1 %vm1532_vm4, %v3669_v22  ;;  %v4345_v22 = vld [vmem:[#allocation30 + $0xf0] sm:$0xff] }
 0xed4   :  { %8375 = vmatmul.mubr.msk.f32.gmra.mrb[106].mxu1 %vm1532_vm4, %v3670_v23  ;;  %v4346_v23 = vld [vmem:[#allocation30 + $0xf8] sm:$0xff] }
 0xed5   :  { %8377 = vmatprep.mubr.msk.f32.mxu1 %vm1532_vm4, %v3671_v24  ;;  %v4347_v24 = vld [vmem:[#allocation30 + $0x100] sm:$0xff] }
 0xed8   :  { %8378 = vmatmul.mubr.msk.f32.gmra.mrb[108].mxu1 %vm1532_vm4, %v3672_v25  ;;  %v4348_v25 = vld [vmem:[#allocation30 + $0x108] sm:$0xff] }
 0xf8b   :  { %v8287_v29 = vpop.f32.mrb[92].mxu1 }
 0xf8c   :  { %v3759_v30 = vpop.f32.mrb[93].mxu1 }
 0xf8d   :  { %v8992_v31 = vpack.c.bf16 %v8287_v29, %v3759_v30  ;;  %v4350_v29 = vld [vmem:[#allocation30 + $0x118] sm:$0xf]  ;;  %v4658_v30 = vld [vmem:[%s11517_s2] sm:$0xff] }
 0xf8e   :  { %8410 = vmatprep.subr.mxu1 %v4658_v30 }
 0xf8f   :  { %v8290_v33 = vpop.f32.mrb[94].mxu1  ;;  %8411 = vmatpush3.msra.mxu1 %v4658_v30 }
 0xf90   :  { %v3769_v34 = vpop.f32.mrb[95].mxu1 }
 0xf91   :  { %v8996_v36 = vpack.c.bf16 %v8290_v33, %v3769_v34  ;;  %v7279_v33 = vld [vmem:[%s11518_s13] ss:$0 sm:$0xff] }
 0xf93   :  { %v8293_v37 = vpop.f32.mrb[96].mxu1 }
 0xf94   :  { %v3779_v38 = vpop.f32.mrb[97].mxu1 }
 0xf95   :  { %v9000_v39 = vpack.c.bf16 %v8293_v37, %v3779_v38 }
 0xf97   :  { %v8300_v40 = vpop.f32.mrb[98].mxu1 }
 0xf98   :  { %v3869_v41 = vpop.f32.mrb[99].mxu1 }
 0xf99   :  { %v8978_v42 = vpack.c.bf16 %v8300_v40, %v3869_v41 }
 0xf9b   :  { %v8303_v43 = vpop.f32.mrb[100].mxu1  ;;  %8979 = vmatprep.subr.bf16.mxu0 %v8978_v42 }
 0xf9c   :  { %v3879_v45 = vpop.f32.mrb[101].mxu1  ;;  %8981 = vmatpush3.bf16.msra.mxu0 %v8978_v42 }
 0xf9d   :  { %v8982_v46 = vpack.c.bf16 %v8303_v43, %v3879_v45 }
 0xf9f   :  { %v8306_v47 = vpop.f32.mrb[102].mxu1  ;;  %8983 = vmatprep.subr.bf16.mxu0 %v8982_v46 }
 0xfa0   :  { %v3889_v28 = vpop.f32.mrb[103].mxu1  ;;  %8985 = vmatpush3.bf16.msra.mxu0 %v8982_v46 }
 0xfa1   :  { %v8986_v49 = vpack.c.bf16 %v8306_v47, %v3889_v28 }
 0xfa3   :  { %8988 = vmatprep.subr.msk.bf16.mxu0 %vm10681_vm13, %v8986_v49  ;;  %v8373_v27 = vpop.f32.mrb[104].mxu1 }
 0xfa4   :  { %8991 = vmatpush3.bf16.msk.msra.mxu0 %vm10681_vm13, %v8986_v49  ;;  %v4309_v51 = vpop.f32.mrb[105].mxu1 }
 0xfa5   :  { %v9010_v53 = vpack.c.bf16 %v8373_v27, %v4309_v51  ;;  %8993 = vmatprep.subr.bf16.mxu0 %v8992_v31 }
 0xfa7   :  { %8320 = vmatmul.mubr.msk.f32.vlgmr.msra.gmra.mrb[84].mxu0 %vm3911_vm11, %v3900_v52  ;;  %v8376_v26 = vpop.f32.mrb[106].mxu1 }
 0xfa8   :  { %8995 = vmatpush3.bf16.msra.mxu0 %v8992_v31  ;;  %v4319_v56 = vpop.f32.mrb[107].mxu1  ;;  %8322 = vmatprep.mubr.msk.f32.mxu0 %vm3911_vm11, %v3901_v54  ;;  %v10737_v31 = vld [vmem:[%s11517_s2 + $0x8] sm:$0xff] }
 0xfa9   :  { %v9014_v59 = vpack.c.bf16 %v8376_v26, %v4319_v56  ;;  %8997 = vmatprep.subr.bf16.mxu0 %v8996_v36  ;;  %8430 = vmatprep.subr.mxu1 %v10737_v31 }
 0xfab   :  { %8323 = vmatmul.mubr.msk.f32.gmra.mrb[86].mxu0 %vm3911_vm11, %v3902_v57  ;;  %v8379_v61 = vpop.f32.mrb[108].mxu1 }
 0xfac   :  { %8999 = vmatpush3.bf16.msra.mxu0 %v8996_v36  ;;  %v4329_v62 = vpop.f32.mrb[109].mxu1  ;;  %8325 = vmatprep.mubr.msk.f32.mxu0 %vm3911_vm11, %v3903_v60 }
 0xfad   :  { %v9018_v0 = vpack.c.bf16 %v8379_v61, %v4329_v62  ;;  %9002 = vmatprep.subr.msk.bf16.mxu0 %vm10681_vm13, %v9000_v39 }
 0xfaf   :  { %8326 = vmatmul.mubr.msk.f32.gmra.mrb[88].mxu0 %vm3911_vm11, %v3904_v63 }
 0xfb0   :  { %9005 = vmatpush3.bf16.msk.msra.mxu0 %vm10681_vm13, %v9000_v39  ;;  %8328 = vmatprep.mubr.msk.f32.mxu0 %vm3911_vm11, %v3905_v1 }
 0xfb1   :  { %9011 = vmatprep.subr.bf16.mxu0 %v9010_v53 }
 0xfb3   :  { %8329 = vmatmul.mubr.msk.f32.gmra.mrb[90].mxu0 %vm3911_vm11, %v3906_v32 }
 0xfb4   :  { %8331 = vmatprep.mubr.msk.f32.mxu0 %vm3911_vm11, %v3907_v3 }
 0xfb7   :  { %8332 = vmatmul.mubr.msk.f32.gmra.mrb[92].mxu0 %vm3911_vm11, %v3908_v35 }
 0xfb8   :  { %8334 = vmatprep.mubr.msk.f32.mxu0 %vm3911_vm11, %v3909_v44 }
 0xfbb   :  { %8335 = vmatmul.mubr.msk.f32.gmra.mrb[94].mxu0 %vm3911_vm11, %v3910_v50 }
 0xfbc   :  { %8349 = vmatprep.mubr.msk.f32.mxu0 %vm3911_vm11, %v3788_v58 }
 0xfbf   :  { %8350 = vmatmul.mubr.msk.f32.vlgmr.msra.gmra.mrb[84].mxu0 %vm3911_vm11, %v3789_v2 }
 0xfc0   :  { %9013 = vmatpush3.bf16.msra.mxu0 %v9010_v53  ;;  %8352 = vmatprep.mubr.msk.f32.mxu0 %vm3911_vm11, %v3790_v4 }
 0xfc1   :  { %9015 = vmatprep.subr.bf16.mxu0 %v9014_v59 }
 0xfc3   :  { %8353 = vmatmul.mubr.msk.f32.gmra.mrb[86].mxu0 %vm3911_vm11, %v3791_v5 }
 0xfc4   :  { %9017 = vmatpush3.bf16.msra.mxu0 %v9014_v59  ;;  %8355 = vmatprep.mubr.msk.f32.mxu0 %vm3911_vm11, %v3792_v6 }
 0xfc5   :  { %9020 = vmatprep.subr.msk.bf16.mxu0 %vm10681_vm13, %v9018_v0 }
 0xfc7   :  { %8356 = vmatmul.mubr.msk.f32.gmra.mrb[88].mxu0 %vm3911_vm11, %v3793_v9 }
 0xfc8   :  { %9023 = vmatpush3.bf16.msk.msra.mxu0 %vm10681_vm13, %v9018_v0  ;;  %8358 = vmatprep.mubr.msk.f32.mxu0 %vm3911_vm11, %v3794_v10 }
 0xfc9   :  { %9043 = vmatprep.subr.bf16.mxu0 %v9871_v8 }
 0xfcb   :  { %8359 = vmatmul.mubr.msk.f32.gmra.mrb[90].mxu0 %vm3911_vm11, %v3795_v11 }
 0xfcc   :  { %8361 = vmatprep.mubr.msk.f32.mxu0 %vm3911_vm11, %v3796_v12 }
 0xfcf   :  { %8362 = vmatmul.mubr.msk.f32.gmra.mrb[92].mxu0 %vm3911_vm11, %v3797_v13 }
 0xfd0   :  { %8364 = vmatprep.mubr.msk.f32.mxu0 %vm3911_vm11, %v3798_v14 }
 0xfd3   :  { %8365 = vmatmul.mubr.msk.f32.gmra.mrb[94].mxu0 %vm3911_vm11, %v3799_v15 }
 0xfd4   :  { %8392 = vmatprep.mubr.msk.f32.mxu0 %vm3911_vm11, %v4339_v16 }
 0xfd7   :  { %8393 = vmatmul.mubr.msk.f32.vlgmr.msra.gmra.mrb[84].mxu0 %vm3911_vm11, %v4340_v17 }
 0xfd8   :  { %8395 = vmatprep.mubr.msk.f32.mxu0 %vm3911_vm11, %v4341_v18 }
 0xfdb   :  { %8396 = vmatmul.mubr.msk.f32.gmra.mrb[86].mxu0 %vm3911_vm11, %v4342_v19 }
 0xfdc   :  { %8398 = vmatprep.mubr.msk.f32.mxu0 %vm3911_vm11, %v4343_v20 }
 0xfdf   :  { %8399 = vmatmul.mubr.msk.f32.gmra.mrb[88].mxu0 %vm3911_vm11, %v4344_v21 }
 0xfe0   :  { %8401 = vmatprep.mubr.msk.f32.mxu0 %vm3911_vm11, %v4345_v22 }
 0xfe3   :  { %8402 = vmatmul.mubr.msk.f32.gmra.mrb[90].mxu0 %vm3911_vm11, %v4346_v23 }
 0xfe4   :  { %8404 = vmatprep.mubr.msk.f32.mxu0 %vm3911_vm11, %v4347_v24 }
 0xfe7   :  { %8405 = vmatmul.mubr.msk.f32.gmra.mrb[92].mxu0 %vm3911_vm11, %v4348_v25 }
 0xfe8   :  { %8407 = vmatprep.mubr.msk.f32.mxu0 %vm3911_vm11, %v4349_v7 }
 0xfeb   :  { %8408 = vmatmul.mubr.msk.f32.gmra.mrb[94].mxu0 %vm3911_vm11, %v4350_v29 }
 0xfec   :  { %8567 = vmatprep.mubr.msk.f32.mxu0 %vm9872_vm2, %v9873_v55 }
0x10aa   :  { %v8394_v34 = vpop.f32.mrb[84].mxu0 }
0x10ab   :  { %v4535_v36 = vadd.f32 %v8394_v34, %v7279_v33  ;;  %v4456_v37 = vpop.f32.mrb[85].mxu0 }
0x10ac   :  { %v4534_v38 = vadd.f32 %v7279_v33, %v4456_v37 }
0x10ad   :  { %v4547_v39 = vsel %vm939_vm1, %v4535_v36, 0.0 }
0x10ae   :  { %v4546_v40 = vsel %vm939_vm1, %v4534_v38, 0.0  ;;  %v8397_v41 = vpop.f32.mrb[86].mxu0 }
0x10af   :  { %v4548_v42 = vadd.f32 %v4547_v39, %v4546_v40  ;;  %v4466_v43 = vpop.f32.mrb[87].mxu0  ;;  %v4537_v45 = vadd.f32 %v8397_v41, %v7279_v33 }
0x10b0   :  { %v4536_v46 = vadd.f32 %v7279_v33, %v4466_v43 }
0x10b1   :  { %v4551_v51 = vsel %vm939_vm1, %v4537_v45, 0.0 }
0x10b2   :  { %v4549_v47 = vsel %vm939_vm1, %v4536_v46, 0.0  ;;  %v8400_v28 = vpop.f32.mrb[88].mxu0 }
0x10b3   :  { %v4550_v49 = vadd.f32 %v4549_v47, %v4548_v42  ;;  %v4476_v27 = vpop.f32.mrb[89].mxu0  ;;  %v4539_v52 = vadd.f32 %v8400_v28, %v7279_v33 }
0x10b4   :  { %v4538_v53 = vadd.f32 %v7279_v33, %v4476_v27 }
0x10b5   :  { %v4552_v54 = vadd.f32 %v4551_v51, %v4550_v49  ;;  %v4555_v60 = vsel %vm939_vm1, %v4539_v52, 0.0 }
0x10b6   :  { %v4553_v26 = vsel %vm939_vm1, %v4538_v53, 0.0  ;;  %v8403_v56 = vpop.f32.mrb[90].mxu0 }
0x10b7   :  { %v4554_v57 = vadd.f32 %v4553_v26, %v4552_v54  ;;  %v4486_v59 = vpop.f32.mrb[91].mxu0  ;;  %v4541_v61 = vadd.f32 %v8403_v56, %v7279_v33 }
0x10b8   :  { %v4540_v62 = vadd.f32 %v7279_v33, %v4486_v59 }
0x10b9   :  { %v4556_v63 = vadd.f32 %v4555_v60, %v4554_v57  ;;  %v4559_v35 = vsel %vm939_vm1, %v4541_v61, 0.0 }
0x10ba   :  { %v4557_v0 = vsel %vm939_vm1, %v4540_v62, 0.0  ;;  %v8406_v1 = vpop.f32.mrb[92].mxu0 }
0x10bb   :  { %v4558_v32 = vadd.f32 %v4557_v0, %v4556_v63  ;;  %v4496_v3 = vpop.f32.mrb[93].mxu0  ;;  %v4543_v44 = vadd.f32 %v8406_v1, %v7279_v33 }
0x10bc   :  { %v4542_v50 = vadd.f32 %v7279_v33, %v4496_v3 }
0x10bd   :  { %v4560_v58 = vadd.f32 %v4559_v35, %v4558_v32  ;;  %v4563_v9 = vsel %vm939_vm1, %v4543_v44, 0.0 }
0x10be   :  { %v4561_v2 = vsel %vm939_vm1, %v4542_v50, 0.0  ;;  %v8409_v4 = vpop.f32.mrb[94].mxu0 }
0x10bf   :  { %v4562_v5 = vadd.f32 %v4561_v2, %v4560_v58  ;;  %v4506_v6 = vpop.f32.mrb[95].mxu0  ;;  %v4545_v10 = vadd.f32 %v8409_v4, %v7279_v33 }
0x10c0   :  { %v4544_v11 = vadd.f32 %v7279_v33, %v4506_v6 }
0x10c1   :  { %v4564_v12 = vadd.f32 %v4563_v9, %v4562_v5  ;;  %v4568_v15 = vsel %vm4567_vm14, %v4545_v10, 0.0 }
0x10c2   :  { %v4565_v13 = vsel %vm939_vm1, %v4544_v11, 0.0 }
0x10c3   :  { %v4566_v14 = vadd.f32 %v4565_v13, %v4564_v12 }
0x10c5   :  { %v4569_v16 = vadd.f32 %v4568_v15, %v4566_v14 }
0x10c7   :  { %v4570_v17 = vrot.slane %v4569_v16, 4 }
0x10c9   :  { %v4571_v18 = vadd.f32 %v4570_v17, %v4569_v16 }
0x10cb   :  { %v4572_v19 = vrot.slane %v4571_v18, 2 }
0x10cd   :  { %v4573_v20 = vadd.f32 %v4572_v19, %v4571_v18 }
0x10cf   :  { %v4574_v21 = vrot.slane %v4573_v20, 1 }
0x10d1   :  { %v4575_v22 = vadd.f32 %v4574_v21, %v4573_v20 }
0x10d3   :  { %v4577_v23 = vmul.f32 0.010869565, %v4575_v22 }
0x10d5   :  { %v4578_v24 = vsub.f32 %v4534_v38, %v4577_v23  ;;  %v4579_v25 = vsub.f32 %v4535_v36, %v4577_v23  ;;  %v4580_v7 = vsub.f32 %v4536_v46, %v4577_v23  ;;  %v4581_v29 = vsub.f32 %v4537_v45, %v4577_v23 }
0x10d6   :  { %v4582_v30 = vsub.f32 %v4538_v53, %v4577_v23  ;;  %v4583_v33 = vsub.f32 %v4539_v52, %v4577_v23  ;;  %v4584_v34 = vsub.f32 %v4540_v62, %v4577_v23  ;;  %v4585_v37 = vsub.f32 %v4541_v61, %v4577_v23 }
0x10d7   :  { %v4586_v39 = vsub.f32 %v4542_v50, %v4577_v23  ;;  %v4587_v40 = vsub.f32 %v4543_v44, %v4577_v23  ;;  %v4588_v41 = vsub.f32 %v4544_v11, %v4577_v23  ;;  %v4589_v42 = vsub.f32 %v4545_v10, %v4577_v23 }
0x10d8   :  { %v4590_v43 = vmul.f32 %v4578_v24, %v4578_v24  ;;  %v4591_v47 = vmul.f32 %v4579_v25, %v4579_v25  ;;  %v4592_v28 = vmul.f32 %v4580_v7, %v4580_v7  ;;  %v4593_v49 = vmul.f32 %v4581_v29, %v4581_v29 }
0x10d9   :  { %v4594_v36 = vmul.f32 %v4582_v30, %v4582_v30  ;;  %v4595_v52 = vmul.f32 %v4583_v33, %v4583_v33  ;;  %v4596_v26 = vmul.f32 %v4584_v34, %v4584_v34  ;;  %v4597_v59 = vmul.f32 %v4585_v37, %v4585_v37 }
0x10da   :  { %v4602_v27 = vsel %vm939_vm1, %v4590_v43, 0.0  ;;  %v4603_v51 = vsel %vm939_vm1, %v4591_v47, 0.0  ;;  %v4605_v45 = vsel %vm939_vm1, %v4592_v28, 0.0  ;;  %v4607_v53 = vsel %vm939_vm1, %v4593_v49, 0.0 }
0x10db   :  { %v4604_v38 = vadd.f32 %v4603_v51, %v4602_v27  ;;  %v4609_v56 = vsel %vm939_vm1, %v4594_v36, 0.0  ;;  %v4611_v60 = vsel %vm939_vm1, %v4595_v52, 0.0  ;;  %v4598_v62 = vmul.f32 %v4586_v39, %v4586_v39 }
0x10dc   :  { %v4613_v63 = vsel %vm939_vm1, %v4596_v26, 0.0  ;;  %v4599_v1 = vmul.f32 %v4587_v40, %v4587_v40  ;;  %v4615_v32 = vsel %vm939_vm1, %v4597_v59, 0.0  ;;  %v4600_v35 = vmul.f32 %v4588_v41, %v4588_v41 }
0x10dd   :  { %v4606_v46 = vadd.f32 %v4605_v45, %v4604_v38  ;;  %v4617_v44 = vsel %vm939_vm1, %v4598_v62, 0.0  ;;  %v4601_v58 = vmul.f32 %v4589_v42, %v4589_v42 }
0x10de   :  { %v4619_v2 = vsel %vm939_vm1, %v4599_v1, 0.0  ;;  %v4621_v5 = vsel %vm939_vm1, %v4600_v35, 0.0 }
0x10df   :  { %v4608_v54 = vadd.f32 %v4607_v53, %v4606_v46  ;;  %v4623_v9 = vsel %vm4567_vm14, %v4601_v58, 0.0 }
0x10e1   :  { %v4610_v57 = vadd.f32 %v4609_v56, %v4608_v54 }
0x10e3   :  { %v4612_v61 = vadd.f32 %v4611_v60, %v4610_v57 }
0x10e5   :  { %v4614_v0 = vadd.f32 %v4613_v63, %v4612_v61 }
0x10e7   :  { %v4616_v3 = vadd.f32 %v4615_v32, %v4614_v0 }
0x10e9   :  { %v4618_v50 = vadd.f32 %v4617_v44, %v4616_v3  ;;  %v4820_v44 = vld [vmem:[#allocation33] sm:$0xff] }
0x10eb   :  { %v4620_v4 = vadd.f32 %v4619_v2, %v4618_v50 }
0x10ed   :  { %v4622_v6 = vadd.f32 %v4621_v5, %v4620_v4  ;;  %v4821_v4 = vld [vmem:[#allocation33 + $0x8] sm:$0xff] }
0x10ef   :  { %v4624_v10 = vadd.f32 %v4623_v9, %v4622_v6 }
0x10f1   :  { %v4625_v11 = vrot.slane %v4624_v10, 4 }
0x10f3   :  { %v4626_v12 = vadd.f32 %v4625_v11, %v4624_v10  ;;  %v4822_v10 = vld [vmem:[#allocation33 + $0x10] sm:$0xff] }
0x10f5   :  { %v4627_v13 = vrot.slane %v4626_v12, 2 }
0x10f7   :  { %v4628_v14 = vadd.f32 %v4627_v13, %v4626_v12 }
0x10f9   :  { %v4629_v15 = vrot.slane %v4628_v14, 1 }
0x10fb   :  { %v4630_v16 = vadd.f32 %v4629_v15, %v4628_v14  ;;  %v4823_v14 = vld [vmem:[#allocation33 + $0x18] sm:$0xff] }
0x10fd   :  { %v4631_v17 = vmul.f32 0.010869565, %v4630_v16 }
0x10ff   :  { %v4632_v18 = vadd.f32 1e-05, %v4631_v17 }
0x1101   :  { %9277 = vrsqrt.f32 %v4632_v18  ;;  %v4824_v18 = vld [vmem:[#allocation33 + $0x20] sm:$0xff] }
0x110b   :  { %v9278_v19 = vpop.eup %9277 }
0x110c   :  { %v4644_v20 = vmul.f32 %v9278_v19, %v4588_v41  ;;  %v4634_v21 = vmul.f32 %v9278_v19, %v4578_v24  ;;  %v4635_v22 = vmul.f32 %v9278_v19, %v4579_v25  ;;  %v4636_v23 = vmul.f32 %v9278_v19, %v4580_v7 }
0x110d   :  { %v4637_v43 = vmul.f32 %v9278_v19, %v4581_v29  ;;  %v4638_v47 = vmul.f32 %v9278_v19, %v4582_v30  ;;  %v4639_v28 = vmul.f32 %v9278_v19, %v4583_v33  ;;  %v4640_v49 = vmul.f32 %v9278_v19, %v4584_v34 }
0x110e   :  { %v4646_v27 = vmax.f32 %v4634_v21, 0.0  ;;  %v4647_v51 = vmax.f32 %v4635_v22, 0.0  ;;  %v4648_v38 = vmax.f32 %v4636_v23, 0.0  ;;  %v4641_v36 = vmul.f32 %v9278_v19, %v4585_v37  ;;  %v4825_v22 = vld [vmem:[#allocation33 + $0x28] sm:$0xff] }
0x110f   :  { %v4642_v45 = vmul.f32 %v9278_v19, %v4586_v39  ;;  %v4643_v46 = vmul.f32 %v9278_v19, %v4587_v40  ;;  %v4645_v52 = vmul.f32 %v9278_v19, %v4589_v42  ;;  %v4649_v24 = vmax.f32 %v4637_v43, 0.0 }
0x1110   :  { %8412 = vmatprep.mubr.msk.f32.mxu1 %vm939_vm1, %v4646_v27  ;;  %v4650_v25 = vmax.f32 %v4638_v47, 0.0  ;;  %v4651_v7 = vmax.f32 %v4639_v28, 0.0  ;;  %v4652_v29 = vmax.f32 %v4640_v49, 0.0  ;;  %v4653_v30 = vmax.f32 %v4641_v36, 0.0  ;;  %v4971_v47 = vld [vmem:[#allocation33 + $0xb8] sm:$0xff]  ;;  %v4826_v28 = vld [vmem:[#allocation33 + $0x30] sm:$0xff] }
0x1111   :  { %8413 = vmatmul.mubr.msk.f32.vlgmr.msra.gmra.mrb[110].mxu1 %vm939_vm1, %v4647_v51  ;;  %v4654_v33 = vmax.f32 %v4642_v45, 0.0  ;;  %v4656_v34 = vmax.f32 %v4644_v20, 0.0  ;;  %v4657_v37 = vmax.f32 %v4645_v52, 0.0  ;;  %v4972_v49 = vld [vmem:[#allocation33 + $0xc0] sm:$0xff]  ;;  %v4829_v36 = vld [vmem:[#allocation33 + $0x48] sm:$0xff]  ;;  %v4975_v45 = vld [vmem:[#allocation33 + $0xd8] sm:$0xff] }
0x1112   :  { %8415 = vmatprep.mubr.msk.f32.mxu1 %vm939_vm1, %v4648_v38  ;;  %8431 = vmatpush3.msra.mxu1 %v10737_v31  ;;  %v4655_v31 = vmax.f32 %v4643_v46, 0.0  ;;  %v4830_v46 = vld [vmem:[#allocation33 + $0x50] sm:$0xff]  ;;  %v4976_v52 = vld [vmem:[#allocation33 + $0xe0] sm:$0xff] }
0x1113   :  { %9024 = vmatprep.subr.bf16.mxu1 %v9871_v8 }
0x1115   :  { %8416 = vmatmul.mubr.msk.f32.gmra.mrb[112].mxu1 %vm939_vm1, %v4649_v24 }
0x1116   :  { %8418 = vmatprep.mubr.msk.f32.mxu1 %vm939_vm1, %v4650_v25 }
0x1119   :  { %8419 = vmatmul.mubr.msk.f32.gmra.mrb[114].mxu1 %vm939_vm1, %v4651_v7 }
0x111a   :  { %8421 = vmatprep.mubr.msk.f32.mxu1 %vm939_vm1, %v4652_v29 }
0x111d   :  { %8422 = vmatmul.mubr.msk.f32.gmra.mrb[116].mxu1 %vm939_vm1, %v4653_v30 }
0x111e   :  { %8424 = vmatprep.mubr.msk.f32.mxu1 %vm939_vm1, %v4654_v33 }
0x1121   :  { %8425 = vmatmul.mubr.msk.f32.gmra.mrb[118].mxu1 %vm939_vm1, %v4655_v31 }
0x1122   :  { %8427 = vmatprep.mubr.msk.f32.mxu1 %vm939_vm1, %v4656_v34 }
0x1125   :  { %8428 = vmatmul.mubr.msk.f32.gmra.mrb[120].mxu1 %vm939_vm1, %v4657_v37 }
0x1126   :  { %8432 = vmatprep.mubr.msk.f32.mxu1 %vm939_vm1, %v4646_v27  ;;  %v4973_v27 = vld [vmem:[#allocation33 + $0xc8] sm:$0xff] }
0x1129   :  { %8433 = vmatmul.mubr.msk.f32.vlgmr.msra.gmra.mrb[122].mxu1 %vm939_vm1, %v4647_v51  ;;  %v4828_v51 = vld [vmem:[#allocation33 + $0x40] sm:$0xff] }
0x112a   :  { %8435 = vmatprep.mubr.msk.f32.mxu1 %vm939_vm1, %v4648_v38  ;;  %v4974_v38 = vld [vmem:[#allocation33 + $0xd0] sm:$0xff] }
0x112d   :  { %8436 = vmatmul.mubr.msk.f32.gmra.mrb[124].mxu1 %vm939_vm1, %v4649_v24  ;;  %v4831_v24 = vld [vmem:[#allocation33 + $0x58] sm:$0xff] }
0x112e   :  { %8438 = vmatprep.mubr.msk.f32.mxu1 %vm939_vm1, %v4650_v25  ;;  %v4977_v25 = vld [vmem:[#allocation33 + $0xe8] sm:$0xff] }
0x1131   :  { %8439 = vmatmul.mubr.msk.f32.gmra.mrb[126].mxu1 %vm939_vm1, %v4651_v7  ;;  %v4832_v7 = vld [vmem:[#allocation33 + $0x60] sm:$0xff] }
0x1132   :  { %8441 = vmatprep.mubr.msk.f32.mxu1 %vm939_vm1, %v4652_v29  ;;  %v4978_v29 = vld [vmem:[#allocation33 + $0xf0] sm:$0xff] }
0x1135   :  { %8442 = vmatmul.mubr.msk.f32.gmra.mrb[128].mxu1 %vm939_vm1, %v4653_v30  ;;  %v4833_v30 = vld [vmem:[#allocation33 + $0x68] sm:$0xff] }
0x1136   :  { %8444 = vmatprep.mubr.msk.f32.mxu1 %vm939_vm1, %v4654_v33  ;;  %v4979_v33 = vld [vmem:[#allocation33 + $0xf8] sm:$0xff] }
0x1139   :  { %8445 = vmatmul.mubr.msk.f32.gmra.mrb[130].mxu1 %vm939_vm1, %v4655_v31  ;;  %v4834_v31 = vld [vmem:[#allocation33 + $0x70] sm:$0xff] }
0x113a   :  { %8447 = vmatprep.mubr.msk.f32.mxu1 %vm939_vm1, %v4656_v34  ;;  %v4980_v34 = vld [vmem:[#allocation33 + $0x100] sm:$0xff] }
0x113d   :  { %8448 = vmatmul.mubr.msk.f32.gmra.mrb[132].mxu1 %vm939_vm1, %v4657_v37  ;;  %v4835_v37 = vld [vmem:[#allocation33 + $0x78] sm:$0xff] }
0x113e   :  { %8474 = vmatprep.mubr.msk.f32.mxu1 %vm9872_vm2, %v9873_v55 }
0x11e4   :  { %v8414_v39 = vpop.f32.mrb[110].mxu1 }
0x11e5   :  { %v4761_v40 = vpop.f32.mrb[111].mxu1 }
0x11e6   :  { %v9044_v41 = vpack.c.bf16 %v8414_v39, %v4761_v40  ;;  %v4981_v39 = vld [vmem:[#allocation33 + $0x108] sm:$0xff]  ;;  %v4836_v40 = vld [vmem:[#allocation33 + $0x80] sm:$0xff] }
0x11e8   :  { %v8417_v42 = vpop.f32.mrb[112].mxu1  ;;  %9045 = vmatpush3.bf16.msra.mxu0 %v9044_v41  ;;  %v4982_v41 = vld [vmem:[#allocation33 + $0x110] sm:$0xff] }
0x11e9   :  { %v4771_v53 = vpop.f32.mrb[113].mxu1  ;;  %9046 = vmatprep.subr.bf16.mxu0 %v9871_v8 }
0x11ea   :  { %v9047_v54 = vpack.c.bf16 %v8417_v42, %v4771_v53  ;;  %v4837_v42 = vld [vmem:[#allocation33 + $0x88] sm:$0xff]  ;;  %v4983_v53 = vld [vmem:[#allocation33 + $0x118] sm:$0xff] }
0x11ec   :  { %v8420_v26 = vpop.f32.mrb[114].mxu1  ;;  %9048 = vmatpush3.bf16.msra.mxu0 %v9047_v54  ;;  %v4838_v54 = vld [vmem:[#allocation33 + $0x90] sm:$0xff] }
0x11ed   :  { %v4781_v56 = vpop.f32.mrb[115].mxu1  ;;  %9049 = vmatprep.subr.bf16.mxu0 %v9871_v8 }
0x11ee   :  { %v9050_v57 = vpack.c.bf16 %v8420_v26, %v4781_v56  ;;  %v4984_v26 = vld [vmem:[#allocation33 + $0x120] sm:$0xff]  ;;  %v4839_v56 = vld [vmem:[#allocation33 + $0x98] sm:$0xff] }
0x11f0   :  { %v8423_v59 = vpop.f32.mrb[116].mxu1  ;;  %9051 = vmatpush3.bf16.msra.mxu0 %v9050_v57  ;;  %v4985_v57 = vld [vmem:[#allocation33 + $0x128] sm:$0xff] }
0x11f1   :  { %v4791_v60 = vpop.f32.mrb[117].mxu1  ;;  %9052 = vmatprep.subr.bf16.mxu0 %v9871_v8 }
0x11f2   :  { %v9053_v61 = vpack.c.bf16 %v8423_v59, %v4791_v60  ;;  %v4840_v59 = vld [vmem:[#allocation33 + $0xa0] sm:$0xff]  ;;  %v4986_v60 = vld [vmem:[#allocation33 + $0x130] sm:$0xff] }
0x11f4   :  { %v8426_v62 = vpop.f32.mrb[118].mxu1  ;;  %9054 = vmatpush3.bf16.msra.mxu0 %v9053_v61  ;;  %v4841_v61 = vld [vmem:[#allocation33 + $0xa8] sm:$0xff] }
0x11f5   :  { %v4801_v63 = vpop.f32.mrb[119].mxu1  ;;  %9055 = vmatprep.subr.bf16.mxu0 %v9871_v8 }
0x11f6   :  { %v9056_v0 = vpack.c.bf16 %v8426_v62, %v4801_v63  ;;  %v4987_v62 = vld [vmem:[#allocation33 + $0x138] sm:$0xff]  ;;  %v4842_v63 = vld [vmem:[#allocation33 + $0xb0] sm:$0xff] }
0x11f8   :  { %v8429_v1 = vpop.f32.mrb[120].mxu1  ;;  %9057 = vmatpush3.bf16.msra.mxu0 %v9056_v0  ;;  %v4988_v0 = vld [vmem:[#allocation33 + $0x140] sm:$0xff] }
0x11f9   :  { %v4811_v32 = vpop.f32.mrb[121].mxu1  ;;  %9058 = vmatprep.subr.bf16.mxu0 %v9871_v8 }
0x11fa   :  { %v9059_v3 = vpack.c.bf16 %v8429_v1, %v4811_v32  ;;  %v4989_v1 = vld [vmem:[#allocation33 + $0x148] sm:$0xff]  ;;  %v4990_v32 = vld [vmem:[#allocation33 + $0x150] sm:$0xff] }
0x11fc   :  { %v8434_v35 = vpop.f32.mrb[122].mxu1  ;;  %9061 = vmatpush3.bf16.msk.msra.mxu0 %vm10681_vm13, %v9059_v3  ;;  %v4991_v3 = vld [vmem:[#allocation33 + $0x158] sm:$0xff] }
0x11fd   :  { %v4911_v50 = vpop.f32.mrb[123].mxu1  ;;  %8707 = vmatprep.subr.mxu0 %v9873_v55 }
0x11fe   :  { %v9025_v58 = vpack.c.bf16 %v8434_v35, %v4911_v50  ;;  %v4992_v35 = vld [vmem:[#allocation33 + $0x160] sm:$0xff] }
0x11ff   :  { %8568 = vmatmul.mubr.msk.f32.vlgmr.msra.gmra.mrb[96].mxu0 %vm4994_vm15, %v4820_v44  ;;  %v4993_v44 = vld [vmem:[#allocation33 + $0x168] sm:$0xff] }
0x1200   :  { %v8437_v2 = vpop.f32.mrb[124].mxu1  ;;  %9026 = vmatpush3.bf16.msra.mxu1 %v9025_v58  ;;  %8570 = vmatprep.mubr.msk.f32.mxu0 %vm9872_vm2, %v9873_v55 }
0x1201   :  { %v4921_v5 = vpop.f32.mrb[125].mxu1  ;;  %9027 = vmatprep.subr.bf16.mxu1 %v9871_v8 }
0x1202   :  { %v9028_v6 = vpack.c.bf16 %v8437_v2, %v4921_v5 }
0x1203   :  { %8571 = vmatmul.mubr.msk.f32.gmra.mrb[98].mxu0 %vm4994_vm15, %v4821_v4 }
0x1204   :  { %v8440_v9 = vpop.f32.mrb[126].mxu1  ;;  %9029 = vmatpush3.bf16.msra.mxu1 %v9028_v6  ;;  %8573 = vmatprep.mubr.msk.f32.mxu0 %vm9872_vm2, %v9873_v55 }
0x1205   :  { %v4931_v11 = vpop.f32.mrb[127].mxu1  ;;  %9030 = vmatprep.subr.bf16.mxu1 %v9871_v8 }
0x1206   :  { %v9031_v12 = vpack.c.bf16 %v8440_v9, %v4931_v11 }
0x1207   :  { %8574 = vmatmul.mubr.msk.f32.gmra.mrb[100].mxu0 %vm4994_vm15, %v4822_v10 }
0x1208   :  { %v8443_v13 = vpop.f32.mrb[128].mxu1  ;;  %9032 = vmatpush3.bf16.msra.mxu1 %v9031_v12  ;;  %8576 = vmatprep.mubr.msk.f32.mxu0 %vm9872_vm2, %v9873_v55 }
0x1209   :  { %v4941_v15 = vpop.f32.mrb[129].mxu1  ;;  %9033 = vmatprep.subr.bf16.mxu1 %v9871_v8 }
0x120a   :  { %v9034_v16 = vpack.c.bf16 %v8443_v13, %v4941_v15 }
0x120b   :  { %8577 = vmatmul.mubr.msk.f32.gmra.mrb[102].mxu0 %vm4994_vm15, %v4823_v14 }
0x120c   :  { %v8446_v17 = vpop.f32.mrb[130].mxu1  ;;  %9035 = vmatpush3.bf16.msra.mxu1 %v9034_v16  ;;  %8579 = vmatprep.mubr.msk.f32.mxu0 %vm9872_vm2, %v9873_v55 }
0x120d   :  { %v4951_v19 = vpop.f32.mrb[131].mxu1  ;;  %9036 = vmatprep.subr.bf16.mxu1 %v9871_v8 }
0x120e   :  { %v9037_v20 = vpack.c.bf16 %v8446_v17, %v4951_v19 }
0x120f   :  { %8580 = vmatmul.mubr.msk.f32.gmra.mrb[104].mxu0 %vm4994_vm15, %v4824_v18 }
0x1210   :  { %v8449_v21 = vpop.f32.mrb[132].mxu1  ;;  %9038 = vmatpush3.bf16.msra.mxu1 %v9037_v20  ;;  %8582 = vmatprep.mubr.msk.f32.mxu0 %vm9872_vm2, %v9873_v55  ;;  %v10948_v20 = vld [vmem:[%s11519_s24] ss:$0 sm:$0xff] }
0x1211   :  { %v4961_v23 = vpop.f32.mrb[133].mxu1  ;;  %9039 = vmatprep.subr.bf16.mxu1 %v9871_v8 }
0x1212   :  { %v9040_v43 = vpack.c.bf16 %v8449_v21, %v4961_v23 }
0x1213   :  { %8583 = vmatmul.mubr.msk.f32.gmra.mrb[106].mxu0 %vm4994_vm15, %v4825_v22 }
0x1214   :  { %9042 = vmatpush3.bf16.msk.msra.mxu1 %vm10681_vm13, %v9040_v43  ;;  %8585 = vmatprep.mubr.msk.f32.mxu0 %vm9872_vm2, %v9873_v55 }
0x1215   :  { %8636 = vmatprep.subr.mxu1 %v9873_v55 }
0x1217   :  { %8475 = vmatmul.mubr.msk.f32.vlgmr.msra.gmra.mrb[134].mxu1 %vm4994_vm15, %v4971_v47  ;;  %8586 = vmatmul.mubr.msk.f32.gmra.mrb[108].mxu0 %vm4994_vm15, %v4826_v28 }
0x1218   :  { %8477 = vmatprep.mubr.msk.f32.mxu1 %vm9872_vm2, %v9873_v55  ;;  %8588 = vmatprep.mubr.msk.f32.mxu0 %vm9872_vm2, %v9873_v55 }
0x121b   :  { %8478 = vmatmul.mubr.msk.f32.gmra.mrb[136].mxu1 %vm4994_vm15, %v4972_v49  ;;  %8589 = vmatmul.mubr.msk.f32.gmra.mrb[110].mxu0 %vm4994_vm15, %v4827_v48 }
0x121c   :  { %8480 = vmatprep.mubr.msk.f32.mxu1 %vm9872_vm2, %v9873_v55  ;;  %8591 = vmatprep.mubr.msk.f32.mxu0 %vm9872_vm2, %v9873_v55 }
0x121f   :  { %8481 = vmatmul.mubr.msk.f32.gmra.mrb[138].mxu1 %vm4994_vm15, %v4973_v27  ;;  %8592 = vmatmul.mubr.msk.f32.gmra.mrb[112].mxu0 %vm4994_vm15, %v4828_v51 }
0x1220   :  { %8483 = vmatprep.mubr.msk.f32.mxu1 %vm9872_vm2, %v9873_v55  ;;  %8594 = vmatprep.mubr.msk.f32.mxu0 %vm9872_vm2, %v9873_v55 }
0x1223   :  { %8484 = vmatmul.mubr.msk.f32.gmra.mrb[140].mxu1 %vm4994_vm15, %v4974_v38  ;;  %8595 = vmatmul.mubr.msk.f32.gmra.mrb[114].mxu0 %vm4994_vm15, %v4829_v36 }
0x1224   :  { %8486 = vmatprep.mubr.msk.f32.mxu1 %vm9872_vm2, %v9873_v55  ;;  %8597 = vmatprep.mubr.msk.f32.mxu0 %vm9872_vm2, %v9873_v55 }
0x1227   :  { %8487 = vmatmul.mubr.msk.f32.gmra.mrb[142].mxu1 %vm4994_vm15, %v4975_v45  ;;  %8598 = vmatmul.mubr.msk.f32.gmra.mrb[116].mxu0 %vm4994_vm15, %v4830_v46 }
0x1228   :  { %8489 = vmatprep.mubr.msk.f32.mxu1 %vm9872_vm2, %v9873_v55  ;;  %8600 = vmatprep.mubr.msk.f32.mxu0 %vm9872_vm2, %v9873_v55 }
0x122b   :  { %8490 = vmatmul.mubr.msk.f32.gmra.mrb[144].mxu1 %vm4994_vm15, %v4976_v52  ;;  %8601 = vmatmul.mubr.msk.f32.gmra.mrb[118].mxu0 %vm4994_vm15, %v4831_v24 }
0x122c   :  { %8492 = vmatprep.mubr.msk.f32.mxu1 %vm9872_vm2, %v9873_v55  ;;  %8603 = vmatprep.mubr.msk.f32.mxu0 %vm9872_vm2, %v9873_v55 }
0x122f   :  { %8493 = vmatmul.mubr.msk.f32.gmra.mrb[146].mxu1 %vm4994_vm15, %v4977_v25  ;;  %8604 = vmatmul.mubr.msk.f32.gmra.mrb[120].mxu0 %vm4994_vm15, %v4832_v7 }
0x1230   :  { %8495 = vmatprep.mubr.msk.f32.mxu1 %vm9872_vm2, %v9873_v55  ;;  %8606 = vmatprep.mubr.msk.f32.mxu0 %vm9872_vm2, %v9873_v55 }
0x1233   :  { %8496 = vmatmul.mubr.msk.f32.gmra.mrb[148].mxu1 %vm4994_vm15, %v4978_v29  ;;  %8607 = vmatmul.mubr.msk.f32.gmra.mrb[122].mxu0 %vm4994_vm15, %v4833_v30 }
0x1234   :  { %8498 = vmatprep.mubr.msk.f32.mxu1 %vm9872_vm2, %v9873_v55  ;;  %8609 = vmatprep.mubr.msk.f32.mxu0 %vm9872_vm2, %v9873_v55 }
0x1237   :  { %8499 = vmatmul.mubr.msk.f32.gmra.mrb[150].mxu1 %vm4994_vm15, %v4979_v33  ;;  %8610 = vmatmul.mubr.msk.f32.gmra.mrb[124].mxu0 %vm4994_vm15, %v4834_v31 }
0x1238   :  { %8501 = vmatprep.mubr.msk.f32.mxu1 %vm9872_vm2, %v9873_v55  ;;  %8612 = vmatprep.mubr.msk.f32.mxu0 %vm9872_vm2, %v9873_v55 }
0x123b   :  { %8502 = vmatmul.mubr.msk.f32.gmra.mrb[152].mxu1 %vm4994_vm15, %v4980_v34  ;;  %8613 = vmatmul.mubr.msk.f32.gmra.mrb[126].mxu0 %vm4994_vm15, %v4835_v37 }
0x123c   :  { %8504 = vmatprep.mubr.msk.f32.mxu1 %vm9872_vm2, %v9873_v55  ;;  %8615 = vmatprep.mubr.msk.f32.mxu0 %vm9872_vm2, %v9873_v55 }
0x123f   :  { %8505 = vmatmul.mubr.msk.f32.gmra.mrb[154].mxu1 %vm4994_vm15, %v4981_v39  ;;  %8616 = vmatmul.mubr.msk.f32.gmra.mrb[128].mxu0 %vm4994_vm15, %v4836_v40 }
0x1240   :  { %8507 = vmatprep.mubr.msk.f32.mxu1 %vm9872_vm2, %v9873_v55  ;;  %8618 = vmatprep.mubr.msk.f32.mxu0 %vm9872_vm2, %v9873_v55 }
0x1243   :  { %8508 = vmatmul.mubr.msk.f32.gmra.mrb[156].mxu1 %vm4994_vm15, %v4982_v41  ;;  %8619 = vmatmul.mubr.msk.f32.gmra.mrb[130].mxu0 %vm4994_vm15, %v4837_v42 }
0x1244   :  { %8510 = vmatprep.mubr.msk.f32.mxu1 %vm9872_vm2, %v9873_v55  ;;  %8621 = vmatprep.mubr.msk.f32.mxu0 %vm9872_vm2, %v9873_v55 }
0x1247   :  { %8511 = vmatmul.mubr.msk.f32.gmra.mrb[158].mxu1 %vm4994_vm15, %v4983_v53  ;;  %8622 = vmatmul.mubr.msk.f32.gmra.mrb[132].mxu0 %vm4994_vm15, %v4838_v54 }
0x1248   :  { %8513 = vmatprep.mubr.msk.f32.mxu1 %vm9872_vm2, %v9873_v55  ;;  %8624 = vmatprep.mubr.msk.f32.mxu0 %vm9872_vm2, %v9873_v55 }
0x124b   :  { %8514 = vmatmul.mubr.msk.f32.gmra.mrb[160].mxu1 %vm4994_vm15, %v4984_v26  ;;  %8625 = vmatmul.mubr.msk.f32.gmra.mrb[134].mxu0 %vm4994_vm15, %v4839_v56 }
0x124c   :  { %8516 = vmatprep.mubr.msk.f32.mxu1 %vm9872_vm2, %v9873_v55  ;;  %8627 = vmatprep.mubr.msk.f32.mxu0 %vm9872_vm2, %v9873_v55 }
0x124f   :  { %8517 = vmatmul.mubr.msk.f32.gmra.mrb[162].mxu1 %vm4994_vm15, %v4985_v57  ;;  %8628 = vmatmul.mubr.msk.f32.gmra.mrb[136].mxu0 %vm4994_vm15, %v4840_v59 }
0x1250   :  { %8519 = vmatprep.mubr.msk.f32.mxu1 %vm9872_vm2, %v9873_v55  ;;  %8630 = vmatprep.mubr.msk.f32.mxu0 %vm9872_vm2, %v9873_v55 }
0x1253   :  { %8520 = vmatmul.mubr.msk.f32.gmra.mrb[164].mxu1 %vm4994_vm15, %v4986_v60  ;;  %8631 = vmatmul.mubr.msk.f32.gmra.mrb[138].mxu0 %vm4994_vm15, %v4841_v61 }
0x1254   :  { %8522 = vmatprep.mubr.msk.f32.mxu1 %vm9872_vm2, %v9873_v55  ;;  %8633 = vmatprep.mubr.msk.f32.mxu0 %vm9872_vm2, %v9873_v55 }
0x1257   :  { %8523 = vmatmul.mubr.msk.f32.gmra.mrb[166].mxu1 %vm4994_vm15, %v4987_v62  ;;  %8634 = vmatmul.mubr.msk.f32.gmra.mrb[140].mxu0 %vm4994_vm15, %v4842_v63 }
0x1258   :  { %8525 = vmatprep.mubr.msk.f32.mxu1 %vm9872_vm2, %v9873_v55  ;;  %8709 = vmatprep.mubr.msk.f32.mxu0 %vm9872_vm2, %v9873_v55 }
0x125b   :  { %8526 = vmatmul.mubr.msk.f32.gmra.mrb[168].mxu1 %vm4994_vm15, %v4988_v0 }
0x125c   :  { %8528 = vmatprep.mubr.msk.f32.mxu1 %vm9872_vm2, %v9873_v55 }
0x125f   :  { %8529 = vmatmul.mubr.msk.f32.gmra.mrb[170].mxu1 %vm4994_vm15, %v4989_v1 }
0x1260   :  { %8531 = vmatprep.mubr.msk.f32.mxu1 %vm9872_vm2, %v9873_v55 }
0x1263   :  { %8532 = vmatmul.mubr.msk.f32.gmra.mrb[172].mxu1 %vm4994_vm15, %v4990_v32 }
0x1264   :  { %8534 = vmatprep.mubr.msk.f32.mxu1 %vm9872_vm2, %v9873_v55 }
0x1267   :  { %8535 = vmatmul.mubr.msk.f32.gmra.mrb[174].mxu1 %vm4994_vm15, %v4991_v3 }
0x1268   :  { %8537 = vmatprep.mubr.msk.f32.mxu1 %vm9872_vm2, %v9873_v55 }
0x126b   :  { %8538 = vmatmul.mubr.msk.f32.gmra.mrb[176].mxu1 %vm4994_vm15, %v4992_v35 }
0x126c   :  { %8540 = vmatprep.mubr.msk.f32.mxu1 %vm9872_vm2, %v9873_v55 }
0x126f   :  { %8541 = vmatmul.mubr.msk.f32.gmra.mrb[178].mxu1 %vm4994_vm15, %v4993_v44 }
0x1270   :  { %8638 = vmatprep.mubr.msk.f32.mxu1 %vm9872_vm2, %v9873_v55 }
0x12d2   :  { %v5385_v50 = vpop.f32.mrb[96].mxu0 }
0x12d3   :  { %v8569_v58 = vpop.f32.mrb[97].mxu0 }
0x12d6   :  { %v5390_v2 = vpop.f32.mrb[98].mxu0 }
0x12d7   :  { %v8572_v4 = vpop.f32.mrb[99].mxu0 }
0x12da   :  { %v5395_v5 = vpop.f32.mrb[100].mxu0 }
0x12db   :  { %v8575_v6 = vpop.f32.mrb[101].mxu0 }
0x12de   :  { %v5400_v9 = vpop.f32.mrb[102].mxu0 }
0x12df   :  { %v8578_v10 = vpop.f32.mrb[103].mxu0 }
0x12e2   :  { %v5405_v11 = vpop.f32.mrb[104].mxu0 }
0x12e3   :  { %v8581_v12 = vpop.f32.mrb[105].mxu0 }
0x12e6   :  { %v5410_v13 = vpop.f32.mrb[106].mxu0 }
0x12e7   :  { %v8584_v14 = vpop.f32.mrb[107].mxu0 }
0x12ea   :  { %v5133_v15 = vpop.f32.mrb[134].mxu1  ;;  %v5415_v16 = vpop.f32.mrb[108].mxu0 }
0x12eb   :  { %v5386_v17 = vadd.f32 %v5385_v50, %v5133_v15  ;;  %v8476_v18 = vpop.f32.mrb[135].mxu1  ;;  %v8587_v19 = vpop.f32.mrb[109].mxu0 }
0x12ed   :  { %v10951_v23 = vadd.f32 %v10948_v20, %v5386_v17 }
0x12ee   :  { %v5138_v21 = vpop.f32.mrb[136].mxu1  ;;  %v5420_v22 = vpop.f32.mrb[110].mxu0 }
0x12ef   :  { %v5391_v43 = vadd.f32 %v5390_v2, %v5138_v21  ;;  %v8479_v47 = vpop.f32.mrb[137].mxu1  ;;  %v8590_v28 = vpop.f32.mrb[111].mxu0  ;;  %v5529_v51 = vsel %vm939_vm1, %v10951_v23, 0.0 }
0x12f1   :  { %v10954_v49 = vadd.f32 %v10948_v20, %v5391_v43 }
0x12f2   :  { %v5143_v48 = vpop.f32.mrb[138].mxu1  ;;  %v5425_v27 = vpop.f32.mrb[112].mxu0 }
0x12f3   :  { %v5530_v38 = vsel %vm939_vm1, %v10954_v49, 0.0  ;;  %v5396_v36 = vadd.f32 %v5395_v5, %v5143_v48  ;;  %v8482_v45 = vpop.f32.mrb[139].mxu1  ;;  %v8593_v46 = vpop.f32.mrb[113].mxu0 }
0x12f4   :  { %v5531_v52 = vadd.f32 %v5530_v38, %v5529_v51 }
0x12f5   :  { %v10961_v24 = vadd.f32 %v10948_v20, %v5396_v36 }
0x12f6   :  { %v5148_v25 = vpop.f32.mrb[140].mxu1  ;;  %v5430_v7 = vpop.f32.mrb[114].mxu0 }
0x12f7   :  { %v5532_v29 = vsel %vm939_vm1, %v10961_v24, 0.0  ;;  %v5401_v30 = vadd.f32 %v5400_v9, %v5148_v25  ;;  %v8485_v33 = vpop.f32.mrb[141].mxu1  ;;  %v8596_v31 = vpop.f32.mrb[115].mxu0 }
0x12f8   :  { %v5533_v34 = vadd.f32 %v5532_v29, %v5531_v52 }
0x12f9   :  { %v10966_v37 = vadd.f32 %v10948_v20, %v5401_v30 }
0x12fa   :  { %v5153_v39 = vpop.f32.mrb[142].mxu1  ;;  %v5435_v40 = vpop.f32.mrb[116].mxu0 }
0x12fb   :  { %v5534_v41 = vsel %vm939_vm1, %v10966_v37, 0.0  ;;  %v5406_v42 = vadd.f32 %v5405_v11, %v5153_v39  ;;  %v8488_v53 = vpop.f32.mrb[143].mxu1  ;;  %v8599_v54 = vpop.f32.mrb[117].mxu0 }
0x12fc   :  { %v5535_v26 = vadd.f32 %v5534_v41, %v5533_v34 }
0x12fd   :  { %v10971_v56 = vadd.f32 %v10948_v20, %v5406_v42 }
0x12fe   :  { %v5158_v57 = vpop.f32.mrb[144].mxu1  ;;  %v5440_v59 = vpop.f32.mrb[118].mxu0 }
0x12ff   :  { %v5536_v60 = vsel %vm939_vm1, %v10971_v56, 0.0  ;;  %v5411_v61 = vadd.f32 %v5410_v13, %v5158_v57  ;;  %v8491_v62 = vpop.f32.mrb[145].mxu1  ;;  %v8602_v63 = vpop.f32.mrb[119].mxu0 }
0x1300   :  { %v5537_v0 = vadd.f32 %v5536_v60, %v5535_v26 }
0x1301   :  { %v10976_v1 = vadd.f32 %v10948_v20, %v5411_v61 }
0x1302   :  { %v5163_v32 = vpop.f32.mrb[146].mxu1  ;;  %v5445_v3 = vpop.f32.mrb[120].mxu0 }
0x1303   :  { %v5538_v35 = vsel %vm939_vm1, %v10976_v1, 0.0  ;;  %v5416_v44 = vadd.f32 %v5415_v16, %v5163_v32  ;;  %v8494_v50 = vpop.f32.mrb[147].mxu1  ;;  %v8605_v58 = vpop.f32.mrb[121].mxu0 }
0x1304   :  { %v5539_v2 = vadd.f32 %v5538_v35, %v5537_v0 }
0x1305   :  { %v10981_v4 = vadd.f32 %v10948_v20, %v5416_v44 }
0x1306   :  { %v5168_v5 = vpop.f32.mrb[148].mxu1  ;;  %v5450_v6 = vpop.f32.mrb[122].mxu0 }
0x1307   :  { %v5540_v9 = vsel %vm939_vm1, %v10981_v4, 0.0  ;;  %v5421_v10 = vadd.f32 %v5420_v22, %v5168_v5  ;;  %v8497_v11 = vpop.f32.mrb[149].mxu1  ;;  %v8608_v12 = vpop.f32.mrb[123].mxu0 }
0x1308   :  { %v5541_v13 = vadd.f32 %v5540_v9, %v5539_v2 }
0x1309   :  { %v10986_v14 = vadd.f32 %v10948_v20, %v5421_v10 }
0x130a   :  { %v5173_v15 = vpop.f32.mrb[150].mxu1  ;;  %v5455_v16 = vpop.f32.mrb[124].mxu0 }
0x130b   :  { %v5542_v17 = vsel %vm939_vm1, %v10986_v14, 0.0  ;;  %v5426_v18 = vadd.f32 %v5425_v27, %v5173_v15  ;;  %v8500_v19 = vpop.f32.mrb[151].mxu1  ;;  %v8611_v21 = vpop.f32.mrb[125].mxu0 }
0x130c   :  { %v5543_v43 = vadd.f32 %v5542_v17, %v5541_v13 }
0x130d   :  { %v10991_v47 = vadd.f32 %v10948_v20, %v5426_v18 }
0x130e   :  { %v5178_v28 = vpop.f32.mrb[152].mxu1  ;;  %v5460_v22 = vpop.f32.mrb[126].mxu0 }
0x130f   :  { %v5544_v48 = vsel %vm939_vm1, %v10991_v47, 0.0  ;;  %v5431_v51 = vadd.f32 %v5430_v7, %v5178_v28  ;;  %v8503_v38 = vpop.f32.mrb[153].mxu1  ;;  %v8614_v36 = vpop.f32.mrb[127].mxu0 }
0x1310   :  { %v5545_v45 = vadd.f32 %v5544_v48, %v5543_v43 }
0x1311   :  { %v10996_v46 = vadd.f32 %v10948_v20, %v5431_v51 }
0x1312   :  { %v5183_v52 = vpop.f32.mrb[154].mxu1  ;;  %v5465_v27 = vpop.f32.mrb[128].mxu0 }
0x1313   :  { %v5546_v25 = vsel %vm939_vm1, %v10996_v46, 0.0  ;;  %v5436_v29 = vadd.f32 %v5435_v40, %v5183_v52  ;;  %v8506_v30 = vpop.f32.mrb[155].mxu1  ;;  %v8617_v33 = vpop.f32.mrb[129].mxu0 }
0x1314   :  { %v5547_v31 = vadd.f32 %v5546_v25, %v5545_v45 }
0x1315   :  { %v11001_v34 = vadd.f32 %v10948_v20, %v5436_v29 }
0x1316   :  { %v5188_v39 = vpop.f32.mrb[156].mxu1  ;;  %v5470_v7 = vpop.f32.mrb[130].mxu0 }
0x1317   :  { %v5548_v41 = vsel %vm939_vm1, %v11001_v34, 0.0  ;;  %v5441_v42 = vadd.f32 %v5440_v59, %v5188_v39  ;;  %v8509_v53 = vpop.f32.mrb[157].mxu1  ;;  %v8620_v54 = vpop.f32.mrb[131].mxu0  ;;  %v5728_v39 = vld [vmem:[%s11520_s23] sm:$0xff] }
0x1318   :  { %v5549_v26 = vadd.f32 %v5548_v41, %v5547_v31  ;;  %8637 = vmatpush3.msra.mxu1 %v5728_v39 }
0x1319   :  { %v11006_v57 = vadd.f32 %v10948_v20, %v5441_v42  ;;  %9062 = vmatprep.subr.bf16.mxu1 %v9871_v8 }
0x131a   :  { %v5193_v60 = vpop.f32.mrb[158].mxu1  ;;  %v5475_v40 = vpop.f32.mrb[132].mxu0 }
0x131b   :  { %v5550_v61 = vsel %vm939_vm1, %v11006_v57, 0.0  ;;  %v5446_v62 = vadd.f32 %v5445_v3, %v5193_v60  ;;  %v8512_v63 = vpop.f32.mrb[159].mxu1  ;;  %v8623_v0 = vpop.f32.mrb[133].mxu0 }
0x131c   :  { %v5551_v32 = vadd.f32 %v5550_v61, %v5549_v26 }
0x131d   :  { %v11011_v35 = vadd.f32 %v10948_v20, %v5446_v62 }
0x131e   :  { %v5198_v44 = vpop.f32.mrb[160].mxu1  ;;  %v5480_v59 = vpop.f32.mrb[134].mxu0 }
0x131f   :  { %v5552_v50 = vsel %vm939_vm1, %v11011_v35, 0.0  ;;  %v5451_v58 = vadd.f32 %v5450_v6, %v5198_v44  ;;  %v8515_v2 = vpop.f32.mrb[161].mxu1  ;;  %v8626_v5 = vpop.f32.mrb[135].mxu0 }
0x1320   :  { %v5553_v9 = vadd.f32 %v5552_v50, %v5551_v32 }
0x1321   :  { %v11016_v10 = vadd.f32 %v10948_v20, %v5451_v58 }
0x1322   :  { %v5203_v11 = vpop.f32.mrb[162].mxu1  ;;  %v5485_v3 = vpop.f32.mrb[136].mxu0 }
0x1323   :  { %v5554_v12 = vsel %vm939_vm1, %v11016_v10, 0.0  ;;  %v5456_v13 = vadd.f32 %v5455_v16, %v5203_v11  ;;  %v8518_v15 = vpop.f32.mrb[163].mxu1  ;;  %v8629_v17 = vpop.f32.mrb[137].mxu0 }
0x1324   :  { %v5555_v18 = vadd.f32 %v5554_v12, %v5553_v9 }
0x1325   :  { %v11021_v19 = vadd.f32 %v10948_v20, %v5456_v13 }
0x1326   :  { %v5208_v21 = vpop.f32.mrb[164].mxu1  ;;  %v5490_v6 = vpop.f32.mrb[138].mxu0 }
0x1327   :  { %v5556_v43 = vsel %vm939_vm1, %v11021_v19, 0.0  ;;  %v5461_v28 = vadd.f32 %v5460_v22, %v5208_v21  ;;  %v8521_v48 = vpop.f32.mrb[165].mxu1  ;;  %v8632_v51 = vpop.f32.mrb[139].mxu0  ;;  %v7377_v22 = vld [vmem:[%s11520_s23 + $0x8] sm:$0xff] }
0x1328   :  { %v5557_v38 = vadd.f32 %v5556_v43, %v5555_v18  ;;  %8708 = vmatpush3.msra.mxu0 %v7377_v22 }
0x1329   :  { %v11026_v36 = vadd.f32 %v10948_v20, %v5461_v28  ;;  %9095 = vmatprep.subr.bf16.mxu0 %v9871_v8 }
0x132a   :  { %v5213_v16 = vpop.f32.mrb[166].mxu1  ;;  %v5495_v45 = vpop.f32.mrb[140].mxu0 }
0x132b   :  { %v5558_v52 = vsel %vm939_vm1, %v11026_v36, 0.0  ;;  %v5466_v25 = vadd.f32 %v5465_v27, %v5213_v16  ;;  %v8524_v29 = vpop.f32.mrb[167].mxu1  ;;  %v8635_v30 = vpop.f32.mrb[141].mxu0 }
0x132c   :  { %v5559_v33 = vadd.f32 %v5558_v52, %v5557_v38 }
0x132d   :  { %v11031_v31 = vadd.f32 %v10948_v20, %v5466_v25 }
0x132e   :  { %v5218_v41 = vpop.f32.mrb[168].mxu1 }
0x132f   :  { %v5560_v42 = vsel %vm939_vm1, %v11031_v31, 0.0  ;;  %v5471_v53 = vadd.f32 %v5470_v7, %v5218_v41  ;;  %v8527_v54 = vpop.f32.mrb[169].mxu1 }
0x1330   :  { %v5561_v27 = vadd.f32 %v5560_v42, %v5559_v33 }
0x1331   :  { %v5523_v26 = vadd.f32 %v10948_v20, %v5471_v53 }
0x1332   :  { %v5223_v60 = vpop.f32.mrb[170].mxu1 }
0x1333   :  { %v5562_v61 = vsel %vm939_vm1, %v5523_v26, 0.0  ;;  %v5476_v62 = vadd.f32 %v5475_v40, %v5223_v60  ;;  %v8530_v63 = vpop.f32.mrb[171].mxu1 }
0x1334   :  { %v5563_v0 = vadd.f32 %v5562_v61, %v5561_v27 }
0x1335   :  { %v5524_v32 = vadd.f32 %v10948_v20, %v5476_v62 }
0x1336   :  { %v5228_v44 = vpop.f32.mrb[172].mxu1 }
0x1337   :  { %v5564_v50 = vsel %vm939_vm1, %v5524_v32, 0.0  ;;  %v5481_v7 = vadd.f32 %v5480_v59, %v5228_v44  ;;  %v8533_v58 = vpop.f32.mrb[173].mxu1 }
0x1338   :  { %v5565_v2 = vadd.f32 %v5564_v50, %v5563_v0 }
0x1339   :  { %v5525_v5 = vadd.f32 %v10948_v20, %v5481_v7 }
0x133a   :  { %v5233_v9 = vpop.f32.mrb[174].mxu1 }
0x133b   :  { %v5566_v11 = vsel %vm939_vm1, %v5525_v5, 0.0  ;;  %v5486_v12 = vadd.f32 %v5485_v3, %v5233_v9  ;;  %v8536_v13 = vpop.f32.mrb[175].mxu1 }
0x133c   :  { %v5567_v15 = vadd.f32 %v5566_v11, %v5565_v2 }
0x133d   :  { %v5526_v40 = vadd.f32 %v10948_v20, %v5486_v12 }
0x133e   :  { %v5238_v17 = vpop.f32.mrb[176].mxu1 }
0x133f   :  { %v5568_v18 = vsel %vm939_vm1, %v5526_v40, 0.0  ;;  %v5491_v21 = vadd.f32 %v5490_v6, %v5238_v17  ;;  %v8539_v43 = vpop.f32.mrb[177].mxu1 }
0x1340   :  { %v5569_v28 = vadd.f32 %v5568_v18, %v5567_v15 }
0x1341   :  { %v5527_v59 = vadd.f32 %v10948_v20, %v5491_v21 }
0x1342   :  { %v5243_v48 = vpop.f32.mrb[178].mxu1 }
0x1343   :  { %v5570_v51 = vsel %vm939_vm1, %v5527_v59, 0.0  ;;  %v5496_v38 = vadd.f32 %v5495_v45, %v5243_v48  ;;  %v8542_v16 = vpop.f32.mrb[179].mxu1 }
0x1344   :  { %v5571_v52 = vadd.f32 %v5570_v51, %v5569_v28 }
0x1345   :  { %v5528_v3 = vadd.f32 %v10948_v20, %v5496_v38 }
0x1347   :  { %v5572_v25 = vsel %vm939_vm1, %v5528_v3, 0.0 }
0x1348   :  { %v5573_v29 = vadd.f32 %v5572_v25, %v5571_v52 }
0x134a   :  { %v5574_v30 = vrot.slane %v5573_v29, 4 }
0x134c   :  { %v5575_v33 = vadd.f32 %v5574_v30, %v5573_v29 }
0x134e   :  { %v5576_v39 = vrot.slane %v5575_v33, 2 }
0x1350   :  { %v5577_v22 = vadd.f32 %v5576_v39, %v5575_v33 }
0x1352   :  { %v5578_v6 = vrot.slane %v5577_v22, 1 }
0x1354   :  { %v5579_v41 = vadd.f32 %v5578_v6, %v5577_v22 }
0x1356   :  { %v5581_v42 = vmul.f32 0.0054347827, %v5579_v41 }
0x1358   :  { %v11052_v53 = vsub.f32 %v10951_v23, %v5581_v42  ;;  %v11055_v54 = vsub.f32 %v10954_v49, %v5581_v42  ;;  %v11058_v45 = vsub.f32 %v10961_v24, %v5581_v42  ;;  %v11061_v20 = vsub.f32 %v10966_v37, %v5581_v42 }
0x1359   :  { %v11064_v27 = vsub.f32 %v10971_v56, %v5581_v42  ;;  %v11067_v60 = vsub.f32 %v10976_v1, %v5581_v42  ;;  %v11070_v61 = vsub.f32 %v10981_v4, %v5581_v42  ;;  %v11073_v23 = vsub.f32 %v10986_v14, %v5581_v42 }
0x135a   :  { %v11076_v49 = vsub.f32 %v10991_v47, %v5581_v42  ;;  %v11079_v24 = vsub.f32 %v10996_v46, %v5581_v42  ;;  %v11082_v37 = vsub.f32 %v11001_v34, %v5581_v42  ;;  %v11085_v56 = vsub.f32 %v11006_v57, %v5581_v42 }
0x135b   :  { %v11088_v1 = vsub.f32 %v11011_v35, %v5581_v42  ;;  %v11091_v4 = vsub.f32 %v11016_v10, %v5581_v42  ;;  %v11094_v14 = vsub.f32 %v11021_v19, %v5581_v42  ;;  %v11097_v47 = vsub.f32 %v11026_v36, %v5581_v42 }
0x135c   :  { %v11100_v46 = vsub.f32 %v11031_v31, %v5581_v42  ;;  %v11102_v34 = vsub.f32 %v5523_v26, %v5581_v42  ;;  %v11104_v62 = vsub.f32 %v5524_v32, %v5581_v42  ;;  %v11106_v57 = vsub.f32 %v5525_v5, %v5581_v42 }
0x135d   :  { %v11108_v35 = vsub.f32 %v5526_v40, %v5581_v42  ;;  %v11110_v63 = vsub.f32 %v5527_v59, %v5581_v42  ;;  %v11112_v10 = vsub.f32 %v5528_v3, %v5581_v42  ;;  %v5605_v19 = vmul.f32 %v11052_v53, %v11052_v53 }
0x135e   :  { %v5606_v36 = vmul.f32 %v11055_v54, %v11055_v54  ;;  %v5607_v31 = vmul.f32 %v11058_v45, %v11058_v45  ;;  %v5608_v26 = vmul.f32 %v11061_v20, %v11061_v20  ;;  %v5609_v50 = vmul.f32 %v11064_v27, %v11064_v27 }
0x135f   :  { %v5628_v0 = vsel %vm939_vm1, %v5605_v19, 0.0  ;;  %v5610_v2 = vmul.f32 %v11067_v60, %v11067_v60  ;;  %v5611_v11 = vmul.f32 %v11070_v61, %v11070_v61  ;;  %v5612_v15 = vmul.f32 %v11073_v23, %v11073_v23 }
0x1360   :  { %v5629_v32 = vsel %vm939_vm1, %v5606_v36, 0.0  ;;  %v5631_v7 = vsel %vm939_vm1, %v5607_v31, 0.0  ;;  %v5633_v5 = vsel %vm939_vm1, %v5608_v26, 0.0  ;;  %v5635_v12 = vsel %vm939_vm1, %v5609_v50, 0.0 }
0x1361   :  { %v5630_v44 = vadd.f32 %v5629_v32, %v5628_v0  ;;  %v5637_v40 = vsel %vm939_vm1, %v5610_v2, 0.0  ;;  %v5613_v18 = vmul.f32 %v11076_v49, %v11076_v49  ;;  %v5639_v21 = vsel %vm939_vm1, %v5611_v11, 0.0 }
0x1362   :  { %v5614_v28 = vmul.f32 %v11079_v24, %v11079_v24  ;;  %v5641_v59 = vsel %vm939_vm1, %v5612_v15, 0.0  ;;  %v5615_v51 = vmul.f32 %v11082_v37, %v11082_v37  ;;  %v5616_v52 = vmul.f32 %v11085_v56, %v11085_v56 }
0x1363   :  { %v5632_v58 = vadd.f32 %v5631_v7, %v5630_v44  ;;  %v5643_v38 = vsel %vm939_vm1, %v5613_v18, 0.0  ;;  %v5617_v29 = vmul.f32 %v11088_v1, %v11088_v1  ;;  %v5618_v39 = vmul.f32 %v11091_v4, %v11091_v4 }
0x1364   :  { %v5645_v3 = vsel %vm939_vm1, %v5614_v28, 0.0  ;;  %v5647_v30 = vsel %vm939_vm1, %v5615_v51, 0.0  ;;  %v5649_v22 = vsel %vm939_vm1, %v5616_v52, 0.0  ;;  %v5619_v41 = vmul.f32 %v11094_v14, %v11094_v14 }
0x1365   :  { %v5634_v9 = vadd.f32 %v5633_v5, %v5632_v58  ;;  %v5651_v42 = vsel %vm939_vm1, %v5617_v29, 0.0  ;;  %v5620_v36 = vmul.f32 %v11097_v47, %v11097_v47  ;;  %v5653_v31 = vsel %vm939_vm1, %v5618_v39, 0.0 }
0x1366   :  { %v5621_v0 = vmul.f32 %v11100_v46, %v11100_v46  ;;  %v5655_v32 = vsel %vm939_vm1, %v5619_v41, 0.0  ;;  %v5622_v50 = vmul.f32 %v11102_v34, %v11102_v34  ;;  %v5623_v2 = vmul.f32 %v11104_v62, %v11104_v62 }
0x1367   :  { %v5636_v13 = vadd.f32 %v5635_v12, %v5634_v9  ;;  %v5657_v7 = vsel %vm939_vm1, %v5620_v36, 0.0  ;;  %v5624_v11 = vmul.f32 %v11106_v57, %v11106_v57  ;;  %v5625_v15 = vmul.f32 %v11108_v35, %v11108_v35 }
0x1368   :  { %v5659_v5 = vsel %vm939_vm1, %v5621_v0, 0.0  ;;  %v5661_v12 = vsel %vm939_vm1, %v5622_v50, 0.0  ;;  %v5626_v18 = vmul.f32 %v11110_v63, %v11110_v63  ;;  %v5627_v28 = vmul.f32 %v11112_v10, %v11112_v10 }
0x1369   :  { %v5638_v17 = vadd.f32 %v5637_v40, %v5636_v13  ;;  %v5663_v40 = vsel %vm939_vm1, %v5623_v2, 0.0 }
0x136a   :  { %v5669_v51 = vsel %vm939_vm1, %v5626_v18, 0.0 }
0x136b   :  { %v5640_v43 = vadd.f32 %v5639_v21, %v5638_v17  ;;  %v5665_v21 = vsel %vm939_vm1, %v5624_v11, 0.0 }
0x136d   :  { %v5642_v48 = vadd.f32 %v5641_v59, %v5640_v43  ;;  %v5667_v59 = vsel %vm939_vm1, %v5625_v15, 0.0 }
0x136f   :  { %v5644_v16 = vadd.f32 %v5643_v38, %v5642_v48 }
0x1371   :  { %v5646_v25 = vadd.f32 %v5645_v3, %v5644_v16  ;;  %v5671_v16 = vsel %vm939_vm1, %v5627_v28, 0.0 }
0x1373   :  { %v5648_v33 = vadd.f32 %v5647_v30, %v5646_v25 }
0x1375   :  { %v5650_v6 = vadd.f32 %v5649_v22, %v5648_v33 }
0x1377   :  { %v5652_v19 = vadd.f32 %v5651_v42, %v5650_v6 }
0x1379   :  { %v5654_v26 = vadd.f32 %v5653_v31, %v5652_v19 }
0x137b   :  { %v5656_v44 = vadd.f32 %v5655_v32, %v5654_v26 }
0x137d   :  { %v5658_v58 = vadd.f32 %v5657_v7, %v5656_v44 }
0x137f   :  { %v5660_v9 = vadd.f32 %v5659_v5, %v5658_v58 }
0x1381   :  { %v5662_v13 = vadd.f32 %v5661_v12, %v5660_v9 }
0x1383   :  { %v5664_v17 = vadd.f32 %v5663_v40, %v5662_v13 }
0x1385   :  { %v5666_v43 = vadd.f32 %v5665_v21, %v5664_v17 }
0x1387   :  { %v5668_v48 = vadd.f32 %v5667_v59, %v5666_v43  ;;  %v6208_v59 = vld [vmem:[#allocation35 + $0x178] sm:$0xff] }
0x1389   :  { %v5670_v38 = vadd.f32 %v5669_v51, %v5668_v48  ;;  %v5979_v48 = vld [vmem:[#allocation35 + $0x8] sm:$0xff] }
0x138b   :  { %v5672_v52 = vadd.f32 %v5671_v16, %v5670_v38 }
0x138d   :  { %v5673_v3 = vrot.slane %v5672_v52, 4 }
0x138f   :  { %v5674_v25 = vadd.f32 %v5673_v3, %v5672_v52 }
0x1391   :  { %v5675_v29 = vrot.slane %v5674_v25, 2 }
0x1393   :  { %v5676_v30 = vadd.f32 %v5675_v29, %v5674_v25 }
0x1395   :  { %v5677_v33 = vrot.slane %v5676_v30, 1 }
0x1397   :  { %v5678_v39 = vadd.f32 %v5677_v33, %v5676_v30 }
0x1399   :  { %v5679_v22 = vmul.f32 0.0054347827, %v5678_v39 }
0x139b   :  { %v5680_v6 = vadd.f32 1e-05, %v5679_v22 }
0x139d   :  { %9279 = vrsqrt.f32 %v5680_v6 }
0x13a7   :  { %v11183_v41 = vpop.eup %9279 }
0x13a8   :  { %v5682_v42 = vmul.f32 %v11183_v41, %v11052_v53  ;;  %v5683_v36 = vmul.f32 %v11183_v41, %v11055_v54  ;;  %v5684_v26 = vmul.f32 %v11183_v41, %v11058_v45  ;;  %v5685_v54 = vmul.f32 %v11183_v41, %v11061_v20 }
0x13a9   :  { %v5686_v0 = vmul.f32 %v11183_v41, %v11064_v27  ;;  %v5687_v32 = vmul.f32 %v11183_v41, %v11067_v60  ;;  %v5688_v44 = vmul.f32 %v11183_v41, %v11070_v61  ;;  %v5689_v50 = vmul.f32 %v11183_v41, %v11073_v23 }
0x13aa   :  { %v5705_v19 = vmax.f32 %v5682_v42, 0.0  ;;  %v5706_v31 = vmax.f32 %v5683_v36, 0.0  ;;  %v5707_v53 = vmax.f32 %v5684_v26, 0.0  ;;  %v5708_v45 = vmax.f32 %v5685_v54, 0.0 }
0x13ab   :  { %v5709_v20 = vmax.f32 %v5686_v0, 0.0  ;;  %v5710_v27 = vmax.f32 %v5687_v32, 0.0  ;;  %v5711_v60 = vmax.f32 %v5688_v44, 0.0  ;;  %v5712_v61 = vmax.f32 %v5689_v50, 0.0 }
0x13ac   :  { %8639 = vmatmul.mubr.msk.f32.vlgmr.msra.gmra.mrb[180].mxu1 %vm939_vm1, %v5705_v19  ;;  %8710 = vmatmul.mubr.msk.f32.vlgmr.msra.gmra.mrb[142].mxu0 %vm939_vm1, %v5705_v19  ;;  %v5690_v7 = vmul.f32 %v11183_v41, %v11076_v49  ;;  %v5691_v58 = vmul.f32 %v11183_v41, %v11079_v24  ;;  %v5692_v2 = vmul.f32 %v11183_v41, %v11082_v37 }
0x13ad   :  { %8641 = vmatprep.mubr.msk.f32.mxu1 %vm9872_vm2, %v9873_v55  ;;  %8712 = vmatprep.mubr.msk.f32.mxu0 %vm9872_vm2, %v9873_v55  ;;  %v5693_v5 = vmul.f32 %v11183_v41, %v11085_v56  ;;  %v5694_v9 = vmul.f32 %v11183_v41, %v11088_v1  ;;  %v5695_v11 = vmul.f32 %v11183_v41, %v11091_v4 }
0x13ae   :  { %v5713_v23 = vmax.f32 %v5690_v7, 0.0  ;;  %v5714_v49 = vmax.f32 %v5691_v58, 0.0  ;;  %v5715_v24 = vmax.f32 %v5692_v2, 0.0  ;;  %v5696_v12 = vmul.f32 %v11183_v41, %v11094_v14 }
0x13af   :  { %v5716_v37 = vmax.f32 %v5693_v5, 0.0  ;;  %v5717_v56 = vmax.f32 %v5694_v9, 0.0  ;;  %v5718_v1 = vmax.f32 %v5695_v11, 0.0  ;;  %v5697_v13 = vmul.f32 %v11183_v41, %v11097_v47 }
0x13b0   :  { %8642 = vmatmul.mubr.msk.f32.gmra.mrb[182].mxu1 %vm939_vm1, %v5706_v31  ;;  %8713 = vmatmul.mubr.msk.f32.gmra.mrb[144].mxu0 %vm939_vm1, %v5706_v31  ;;  %v5719_v4 = vmax.f32 %v5696_v12, 0.0  ;;  %v5698_v15 = vmul.f32 %v11183_v41, %v11100_v46  ;;  %v5699_v40 = vmul.f32 %v11183_v41, %v11102_v34  ;;  %v5700_v17 = vmul.f32 %v11183_v41, %v11104_v62 }
0x13b1   :  { %8644 = vmatprep.mubr.msk.f32.mxu1 %vm9872_vm2, %v9873_v55  ;;  %8715 = vmatprep.mubr.msk.f32.mxu0 %vm9872_vm2, %v9873_v55  ;;  %v5720_v14 = vmax.f32 %v5697_v13, 0.0  ;;  %v5701_v18 = vmul.f32 %v11183_v41, %v11106_v57  ;;  %v5702_v21 = vmul.f32 %v11183_v41, %v11108_v35  ;;  %v5703_v43 = vmul.f32 %v11183_v41, %v11110_v63 }
0x13b2   :  { %v5721_v47 = vmax.f32 %v5698_v15, 0.0  ;;  %v5722_v46 = vmax.f32 %v5699_v40, 0.0  ;;  %v5723_v34 = vmax.f32 %v5700_v17, 0.0  ;;  %v5704_v35 = vmul.f32 %v11183_v41, %v11112_v10 }
0x13b3   :  { %v5724_v62 = vmax.f32 %v5701_v18, 0.0  ;;  %v5725_v57 = vmax.f32 %v5702_v21, 0.0  ;;  %v5726_v28 = vmax.f32 %v5703_v43, 0.0 }
0x13b4   :  { %8645 = vmatmul.mubr.msk.f32.gmra.mrb[184].mxu1 %vm939_vm1, %v5707_v53  ;;  %8716 = vmatmul.mubr.msk.f32.gmra.mrb[146].mxu0 %vm939_vm1, %v5707_v53  ;;  %v5727_v63 = vmax.f32 %v5704_v35, 0.0 }
0x13b5   :  { %8647 = vmatprep.mubr.msk.f32.mxu1 %vm9872_vm2, %v9873_v55  ;;  %8718 = vmatprep.mubr.msk.f32.mxu0 %vm9872_vm2, %v9873_v55 }
0x13b8   :  { %8648 = vmatmul.mubr.msk.f32.gmra.mrb[186].mxu1 %vm939_vm1, %v5708_v45  ;;  %8719 = vmatmul.mubr.msk.f32.gmra.mrb[148].mxu0 %vm939_vm1, %v5708_v45 }
0x13b9   :  { %8650 = vmatprep.mubr.msk.f32.mxu1 %vm9872_vm2, %v9873_v55  ;;  %8721 = vmatprep.mubr.msk.f32.mxu0 %vm9872_vm2, %v9873_v55 }
0x13bc   :  { %8651 = vmatmul.mubr.msk.f32.gmra.mrb[188].mxu1 %vm939_vm1, %v5709_v20  ;;  %8722 = vmatmul.mubr.msk.f32.gmra.mrb[150].mxu0 %vm939_vm1, %v5709_v20 }
0x13bd   :  { %8653 = vmatprep.mubr.msk.f32.mxu1 %vm9872_vm2, %v9873_v55  ;;  %8724 = vmatprep.mubr.msk.f32.mxu0 %vm9872_vm2, %v9873_v55 }
0x13c0   :  { %8654 = vmatmul.mubr.msk.f32.gmra.mrb[190].mxu1 %vm939_vm1, %v5710_v27  ;;  %8725 = vmatmul.mubr.msk.f32.gmra.mrb[152].mxu0 %vm939_vm1, %v5710_v27 }
0x13c1   :  { %8656 = vmatprep.mubr.msk.f32.mxu1 %vm9872_vm2, %v9873_v55  ;;  %8727 = vmatprep.mubr.msk.f32.mxu0 %vm9872_vm2, %v9873_v55 }
0x13c4   :  { %8657 = vmatmul.mubr.msk.f32.gmra.mrb[192].mxu1 %vm939_vm1, %v5711_v60  ;;  %8728 = vmatmul.mubr.msk.f32.gmra.mrb[154].mxu0 %vm939_vm1, %v5711_v60 }
0x13c5   :  { %8659 = vmatprep.mubr.msk.f32.mxu1 %vm9872_vm2, %v9873_v55  ;;  %8730 = vmatprep.mubr.msk.f32.mxu0 %vm9872_vm2, %v9873_v55 }
0x13c8   :  { %8660 = vmatmul.mubr.msk.f32.gmra.mrb[194].mxu1 %vm939_vm1, %v5712_v61  ;;  %8731 = vmatmul.mubr.msk.f32.gmra.mrb[156].mxu0 %vm939_vm1, %v5712_v61 }
0x13c9   :  { %8662 = vmatprep.mubr.msk.f32.mxu1 %vm9872_vm2, %v9873_v55  ;;  %8733 = vmatprep.mubr.msk.f32.mxu0 %vm9872_vm2, %v9873_v55 }
0x13cc   :  { %8663 = vmatmul.mubr.msk.f32.gmra.mrb[196].mxu1 %vm939_vm1, %v5713_v23  ;;  %8734 = vmatmul.mubr.msk.f32.gmra.mrb[158].mxu0 %vm939_vm1, %v5713_v23 }
0x13cd   :  { %8665 = vmatprep.mubr.msk.f32.mxu1 %vm9872_vm2, %v9873_v55  ;;  %8736 = vmatprep.mubr.msk.f32.mxu0 %vm9872_vm2, %v9873_v55 }
0x13d0   :  { %8666 = vmatmul.mubr.msk.f32.gmra.mrb[198].mxu1 %vm939_vm1, %v5714_v49  ;;  %8737 = vmatmul.mubr.msk.f32.gmra.mrb[160].mxu0 %vm939_vm1, %v5714_v49 }
0x13d1   :  { %8668 = vmatprep.mubr.msk.f32.mxu1 %vm9872_vm2, %v9873_v55  ;;  %8739 = vmatprep.mubr.msk.f32.mxu0 %vm9872_vm2, %v9873_v55 }
0x13d4   :  { %8669 = vmatmul.mubr.msk.f32.gmra.mrb[200].mxu1 %vm939_vm1, %v5715_v24  ;;  %8740 = vmatmul.mubr.msk.f32.gmra.mrb[162].mxu0 %vm939_vm1, %v5715_v24 }
0x13d5   :  { %8671 = vmatprep.mubr.msk.f32.mxu1 %vm9872_vm2, %v9873_v55  ;;  %8742 = vmatprep.mubr.msk.f32.mxu0 %vm9872_vm2, %v9873_v55 }
0x13d8   :  { %8672 = vmatmul.mubr.msk.f32.gmra.mrb[202].mxu1 %vm939_vm1, %v5716_v37  ;;  %8743 = vmatmul.mubr.msk.f32.gmra.mrb[164].mxu0 %vm939_vm1, %v5716_v37 }
0x13d9   :  { %8674 = vmatprep.mubr.msk.f32.mxu1 %vm9872_vm2, %v9873_v55  ;;  %8745 = vmatprep.mubr.msk.f32.mxu0 %vm9872_vm2, %v9873_v55 }
0x13dc   :  { %8675 = vmatmul.mubr.msk.f32.gmra.mrb[204].mxu1 %vm939_vm1, %v5717_v56  ;;  %8746 = vmatmul.mubr.msk.f32.gmra.mrb[166].mxu0 %vm939_vm1, %v5717_v56 }
0x13dd   :  { %8677 = vmatprep.mubr.msk.f32.mxu1 %vm9872_vm2, %v9873_v55  ;;  %8748 = vmatprep.mubr.msk.f32.mxu0 %vm9872_vm2, %v9873_v55 }
0x13e0   :  { %8678 = vmatmul.mubr.msk.f32.gmra.mrb[206].mxu1 %vm939_vm1, %v5718_v1  ;;  %8749 = vmatmul.mubr.msk.f32.gmra.mrb[168].mxu0 %vm939_vm1, %v5718_v1 }
0x13e1   :  { %8680 = vmatprep.mubr.msk.f32.mxu1 %vm9872_vm2, %v9873_v55  ;;  %8751 = vmatprep.mubr.msk.f32.mxu0 %vm9872_vm2, %v9873_v55 }
0x13e4   :  { %8681 = vmatmul.mubr.msk.f32.gmra.mrb[208].mxu1 %vm939_vm1, %v5719_v4  ;;  %8752 = vmatmul.mubr.msk.f32.gmra.mrb[170].mxu0 %vm939_vm1, %v5719_v4 }
0x13e5   :  { %8683 = vmatprep.mubr.msk.f32.mxu1 %vm9872_vm2, %v9873_v55  ;;  %8754 = vmatprep.mubr.msk.f32.mxu0 %vm9872_vm2, %v9873_v55 }
0x13e8   :  { %8684 = vmatmul.mubr.msk.f32.gmra.mrb[210].mxu1 %vm939_vm1, %v5720_v14  ;;  %8755 = vmatmul.mubr.msk.f32.gmra.mrb[172].mxu0 %vm939_vm1, %v5720_v14 }
0x13e9   :  { %8686 = vmatprep.mubr.msk.f32.mxu1 %vm9872_vm2, %v9873_v55  ;;  %8757 = vmatprep.mubr.msk.f32.mxu0 %vm9872_vm2, %v9873_v55 }
0x13ec   :  { %8687 = vmatmul.mubr.msk.f32.gmra.mrb[212].mxu1 %vm939_vm1, %v5721_v47  ;;  %8758 = vmatmul.mubr.msk.f32.gmra.mrb[174].mxu0 %vm939_vm1, %v5721_v47 }
0x13ed   :  { %8689 = vmatprep.mubr.msk.f32.mxu1 %vm9872_vm2, %v9873_v55  ;;  %8760 = vmatprep.mubr.msk.f32.mxu0 %vm9872_vm2, %v9873_v55 }
0x13f0   :  { %8690 = vmatmul.mubr.msk.f32.gmra.mrb[214].mxu1 %vm939_vm1, %v5722_v46  ;;  %8761 = vmatmul.mubr.msk.f32.gmra.mrb[176].mxu0 %vm939_vm1, %v5722_v46 }
0x13f1   :  { %8692 = vmatprep.mubr.msk.f32.mxu1 %vm9872_vm2, %v9873_v55  ;;  %8763 = vmatprep.mubr.msk.f32.mxu0 %vm9872_vm2, %v9873_v55 }
0x13f4   :  { %8693 = vmatmul.mubr.msk.f32.gmra.mrb[216].mxu1 %vm939_vm1, %v5723_v34  ;;  %8764 = vmatmul.mubr.msk.f32.gmra.mrb[178].mxu0 %vm939_vm1, %v5723_v34 }
0x13f5   :  { %8695 = vmatprep.mubr.msk.f32.mxu1 %vm9872_vm2, %v9873_v55  ;;  %8766 = vmatprep.mubr.msk.f32.mxu0 %vm9872_vm2, %v9873_v55 }
0x13f8   :  { %8696 = vmatmul.mubr.msk.f32.gmra.mrb[218].mxu1 %vm939_vm1, %v5724_v62  ;;  %8767 = vmatmul.mubr.msk.f32.gmra.mrb[180].mxu0 %vm939_vm1, %v5724_v62 }
0x13f9   :  { %8698 = vmatprep.mubr.msk.f32.mxu1 %vm9872_vm2, %v9873_v55  ;;  %8769 = vmatprep.mubr.msk.f32.mxu0 %vm9872_vm2, %v9873_v55 }
0x13fc   :  { %8699 = vmatmul.mubr.msk.f32.gmra.mrb[220].mxu1 %vm939_vm1, %v5725_v57  ;;  %8770 = vmatmul.mubr.msk.f32.gmra.mrb[182].mxu0 %vm939_vm1, %v5725_v57 }
0x13fd   :  { %8701 = vmatprep.mubr.msk.f32.mxu1 %vm9872_vm2, %v9873_v55  ;;  %8772 = vmatprep.mubr.msk.f32.mxu0 %vm9872_vm2, %v9873_v55 }
0x1400   :  { %8702 = vmatmul.mubr.msk.f32.gmra.mrb[222].mxu1 %vm939_vm1, %v5726_v28  ;;  %8773 = vmatmul.mubr.msk.f32.gmra.mrb[184].mxu0 %vm939_vm1, %v5726_v28 }
0x1401   :  { %8704 = vmatprep.mubr.msk.f32.mxu1 %vm9872_vm2, %v9873_v55  ;;  %8775 = vmatprep.mubr.msk.f32.mxu0 %vm9872_vm2, %v9873_v55  ;;  %vm7022_vm2 = vcmask 322560  }
0x1404   :  { %8705 = vmatmul.mubr.msk.f32.gmra.mrb[224].mxu1 %vm939_vm1, %v5727_v63  ;;  %8776 = vmatmul.mubr.msk.f32.gmra.mrb[186].mxu0 %vm939_vm1, %v5727_v63  ;;  %vm6946_vm1 = vcmask 424960  }
0x1405   :  { %7401 = vmatprep.mubr.msk.f32.mxu1 %vm6253_vm0, %v6208_v59  ;;  %7424 = vmatprep.mubr.msk.f32.mxu0 %vm6253_vm0, %v5979_v48 }
0x147f   :  { %v5864_v10 = vpop.f32.mrb[180].mxu1  ;;  %v6092_v51 = vpop.f32.mrb[142].mxu0 }
0x1480   :  { %v8640_v38 = vpop.f32.mrb[181].mxu1  ;;  %v8711_v16 = vpop.f32.mrb[143].mxu0 }
0x1483   :  { %v5869_v52 = vpop.f32.mrb[182].mxu1  ;;  %v6097_v3 = vpop.f32.mrb[144].mxu0 }
0x1484   :  { %v9096_v25 = vpack.c.bf16 %v5869_v52, %v5864_v10  ;;  %v9063_v29 = vpack.c.bf16 %v6097_v3, %v6092_v51  ;;  %v8643_v30 = vpop.f32.mrb[183].mxu1  ;;  %v8714_v33 = vpop.f32.mrb[145].mxu0 }
0x1486   :  { %9064 = vmatpush1.bf16.msra.mxu1 %v9063_v29  ;;  %9097 = vmatpush1.bf16.msra.mxu0 %v9096_v25 }
0x1487   :  { %v5874_v39 = vpop.f32.mrb[184].mxu1  ;;  %v6102_v22 = vpop.f32.mrb[146].mxu0  ;;  %9065 = vmatprep.subr.bf16.mxu1 %v9871_v8  ;;  %9098 = vmatprep.subr.bf16.mxu0 %v9871_v8 }
0x1488   :  { %v8646_v6 = vpop.f32.mrb[185].mxu1  ;;  %v8717_v41 = vpop.f32.mrb[147].mxu0 }
0x148b   :  { %v5879_v42 = vpop.f32.mrb[186].mxu1  ;;  %v6107_v19 = vpop.f32.mrb[148].mxu0 }
0x148c   :  { %v9099_v36 = vpack.c.bf16 %v5879_v42, %v5874_v39  ;;  %v9066_v31 = vpack.c.bf16 %v6107_v19, %v6102_v22  ;;  %v8649_v26 = vpop.f32.mrb[187].mxu1  ;;  %v8720_v53 = vpop.f32.mrb[149].mxu0 }
0x148e   :  { %9067 = vmatpush1.bf16.msra.mxu1 %v9066_v31  ;;  %9100 = vmatpush1.bf16.msra.mxu0 %v9099_v36 }
0x148f   :  { %v5884_v54 = vpop.f32.mrb[188].mxu1  ;;  %v6112_v45 = vpop.f32.mrb[150].mxu0  ;;  %9068 = vmatprep.subr.bf16.mxu1 %v9871_v8  ;;  %9101 = vmatprep.subr.bf16.mxu0 %v9871_v8 }
0x1490   :  { %v8652_v0 = vpop.f32.mrb[189].mxu1  ;;  %v8723_v20 = vpop.f32.mrb[151].mxu0 }
0x1493   :  { %v5889_v32 = vpop.f32.mrb[190].mxu1  ;;  %v6117_v27 = vpop.f32.mrb[152].mxu0 }
0x1494   :  { %v9102_v44 = vpack.c.bf16 %v5889_v32, %v5884_v54  ;;  %v9069_v60 = vpack.c.bf16 %v6117_v27, %v6112_v45  ;;  %v8655_v50 = vpop.f32.mrb[191].mxu1  ;;  %v8726_v61 = vpop.f32.mrb[153].mxu0 }
0x1496   :  { %9070 = vmatpush1.bf16.msra.mxu1 %v9069_v60  ;;  %9103 = vmatpush1.bf16.msra.mxu0 %v9102_v44 }
0x1497   :  { %v5894_v7 = vpop.f32.mrb[192].mxu1  ;;  %v6122_v23 = vpop.f32.mrb[154].mxu0  ;;  %9071 = vmatprep.subr.bf16.mxu1 %v9871_v8  ;;  %9104 = vmatprep.subr.bf16.mxu0 %v9871_v8 }
0x1498   :  { %v8658_v58 = vpop.f32.mrb[193].mxu1  ;;  %v8729_v49 = vpop.f32.mrb[155].mxu0 }
0x149b   :  { %v5899_v2 = vpop.f32.mrb[194].mxu1  ;;  %v6127_v24 = vpop.f32.mrb[156].mxu0 }
0x149c   :  { %v9105_v5 = vpack.c.bf16 %v5899_v2, %v5894_v7  ;;  %v9072_v37 = vpack.c.bf16 %v6127_v24, %v6122_v23  ;;  %v8661_v9 = vpop.f32.mrb[195].mxu1  ;;  %v8732_v56 = vpop.f32.mrb[157].mxu0 }
0x149e   :  { %9073 = vmatpush1.bf16.msra.mxu1 %v9072_v37  ;;  %9106 = vmatpush1.bf16.msra.mxu0 %v9105_v5 }
0x149f   :  { %v5904_v11 = vpop.f32.mrb[196].mxu1  ;;  %v6132_v1 = vpop.f32.mrb[158].mxu0  ;;  %9074 = vmatprep.subr.bf16.mxu1 %v9871_v8  ;;  %9107 = vmatprep.subr.bf16.mxu0 %v9871_v8 }
0x14a0   :  { %v8664_v12 = vpop.f32.mrb[197].mxu1  ;;  %v8735_v4 = vpop.f32.mrb[159].mxu0 }
0x14a3   :  { %v5909_v13 = vpop.f32.mrb[198].mxu1  ;;  %v6137_v14 = vpop.f32.mrb[160].mxu0 }
0x14a4   :  { %v9108_v15 = vpack.c.bf16 %v5909_v13, %v5904_v11  ;;  %v9075_v47 = vpack.c.bf16 %v6137_v14, %v6132_v1  ;;  %v8667_v40 = vpop.f32.mrb[199].mxu1  ;;  %v8738_v46 = vpop.f32.mrb[161].mxu0 }
0x14a6   :  { %9076 = vmatpush1.bf16.msra.mxu1 %v9075_v47  ;;  %9109 = vmatpush1.bf16.msra.mxu0 %v9108_v15 }
0x14a7   :  { %v5914_v17 = vpop.f32.mrb[200].mxu1  ;;  %v6142_v34 = vpop.f32.mrb[162].mxu0  ;;  %9077 = vmatprep.subr.bf16.mxu1 %v9871_v8  ;;  %9110 = vmatprep.subr.bf16.mxu0 %v9871_v8 }
0x14a8   :  { %v8670_v18 = vpop.f32.mrb[201].mxu1  ;;  %v8741_v62 = vpop.f32.mrb[163].mxu0 }
0x14a9   :  { %v6207_v18 = vld [vmem:[#allocation35 + $0x170] sm:$0xff]  ;;  %v5978_v62 = vld [vmem:[#allocation35] sm:$0xff] }
0x14ab   :  { %v5919_v21 = vpop.f32.mrb[202].mxu1  ;;  %v6147_v57 = vpop.f32.mrb[164].mxu0 }
0x14ac   :  { %v9111_v43 = vpack.c.bf16 %v5919_v21, %v5914_v17  ;;  %v9078_v35 = vpack.c.bf16 %v6147_v57, %v6142_v34  ;;  %v8673_v28 = vpop.f32.mrb[203].mxu1  ;;  %v8744_v63 = vpop.f32.mrb[165].mxu0  ;;  %v6210_v21 = vld [vmem:[#allocation35 + $0x188] sm:$0xff]  ;;  %v5981_v57 = vld [vmem:[#allocation35 + $0x18] sm:$0xff] }
0x14ad   :  { %v6212_v28 = vld [vmem:[#allocation35 + $0x198] sm:$0xff]  ;;  %v5983_v63 = vld [vmem:[#allocation35 + $0x28] sm:$0xff] }
0x14ae   :  { %9079 = vmatpush1.bf16.msra.mxu1 %v9078_v35  ;;  %9112 = vmatpush1.bf16.msra.mxu0 %v9111_v43  ;;  %v6209_v43 = vld [vmem:[#allocation35 + $0x180] sm:$0xff]  ;;  %v5980_v35 = vld [vmem:[#allocation35 + $0x10] sm:$0xff] }
0x14af   :  { %v5924_v59 = vpop.f32.mrb[204].mxu1  ;;  %v6152_v48 = vpop.f32.mrb[166].mxu0  ;;  %9080 = vmatprep.subr.bf16.mxu1 %v9871_v8  ;;  %9113 = vmatprep.subr.bf16.mxu0 %v9871_v8 }
0x14b0   :  { %v8676_v10 = vpop.f32.mrb[205].mxu1  ;;  %v8747_v51 = vpop.f32.mrb[167].mxu0 }
0x14b1   :  { %v6214_v10 = vld [vmem:[#allocation35 + $0x1a8] sm:$0xff]  ;;  %v5985_v51 = vld [vmem:[#allocation35 + $0x38] sm:$0xff] }
0x14b3   :  { %v5929_v38 = vpop.f32.mrb[206].mxu1  ;;  %v6157_v16 = vpop.f32.mrb[168].mxu0 }
0x14b4   :  { %v9114_v52 = vpack.c.bf16 %v5929_v38, %v5924_v59  ;;  %v9081_v3 = vpack.c.bf16 %v6157_v16, %v6152_v48  ;;  %v8679_v25 = vpop.f32.mrb[207].mxu1  ;;  %v8750_v29 = vpop.f32.mrb[169].mxu0  ;;  %v6211_v59 = vld [vmem:[#allocation35 + $0x190] sm:$0xff]  ;;  %v5982_v48 = vld [vmem:[#allocation35 + $0x20] sm:$0xff] }
0x14b5   :  { %v6213_v38 = vld [vmem:[#allocation35 + $0x1a0] sm:$0xff]  ;;  %v5984_v16 = vld [vmem:[#allocation35 + $0x30] sm:$0xff] }
0x14b6   :  { %9082 = vmatpush1.bf16.msra.mxu1 %v9081_v3  ;;  %9115 = vmatpush1.bf16.msra.mxu0 %v9114_v52  ;;  %v6216_v52 = vld [vmem:[#allocation35 + $0x1b8] sm:$0xff]  ;;  %v5987_v3 = vld [vmem:[#allocation35 + $0x48] sm:$0xff]  ;;  %v6215_v25 = vld [vmem:[#allocation35 + $0x1b0] sm:$0xff] }
0x14b7   :  { %v5934_v30 = vpop.f32.mrb[208].mxu1  ;;  %v6162_v33 = vpop.f32.mrb[170].mxu0  ;;  %9083 = vmatprep.subr.bf16.mxu1 %v9871_v8  ;;  %9116 = vmatprep.subr.bf16.mxu0 %v9871_v8  ;;  %v5986_v29 = vld [vmem:[#allocation35 + $0x40] sm:$0xff] }
0x14b8   :  { %v8682_v39 = vpop.f32.mrb[209].mxu1  ;;  %v8753_v22 = vpop.f32.mrb[171].mxu0 }
0x14b9   :  { %v6217_v39 = vld [vmem:[#allocation35 + $0x1c0] sm:$0xff]  ;;  %v5988_v22 = vld [vmem:[#allocation35 + $0x50] sm:$0xff] }
0x14bb   :  { %v5939_v6 = vpop.f32.mrb[210].mxu1  ;;  %v6167_v41 = vpop.f32.mrb[172].mxu0 }
0x14bc   :  { %v9117_v42 = vpack.c.bf16 %v5939_v6, %v5934_v30  ;;  %v9084_v19 = vpack.c.bf16 %v6167_v41, %v6162_v33  ;;  %v8685_v36 = vpop.f32.mrb[211].mxu1  ;;  %v8756_v31 = vpop.f32.mrb[173].mxu0  ;;  %v6218_v30 = vld [vmem:[#allocation35 + $0x1c8] sm:$0xff]  ;;  %v5989_v33 = vld [vmem:[#allocation35 + $0x58] sm:$0xff] }
0x14bd   :  { %v6220_v6 = vld [vmem:[#allocation35 + $0x1d8] sm:$0xff]  ;;  %v5991_v41 = vld [vmem:[#allocation35 + $0x68] sm:$0xff] }
0x14be   :  { %9085 = vmatpush1.bf16.msra.mxu1 %v9084_v19  ;;  %9118 = vmatpush1.bf16.msra.mxu0 %v9117_v42  ;;  %v6219_v42 = vld [vmem:[#allocation35 + $0x1d0] sm:$0xff]  ;;  %v5990_v19 = vld [vmem:[#allocation35 + $0x60] sm:$0xff]  ;;  %v6222_v36 = vld [vmem:[#allocation35 + $0x1e8] sm:$0xff] }
0x14bf   :  { %v5944_v26 = vpop.f32.mrb[212].mxu1  ;;  %v6172_v53 = vpop.f32.mrb[174].mxu0  ;;  %9086 = vmatprep.subr.bf16.mxu1 %v9871_v8  ;;  %9119 = vmatprep.subr.bf16.mxu0 %v9871_v8  ;;  %v5993_v31 = vld [vmem:[#allocation35 + $0x78] sm:$0xff] }
0x14c0   :  { %v8688_v54 = vpop.f32.mrb[213].mxu1  ;;  %v8759_v45 = vpop.f32.mrb[175].mxu0 }
0x14c1   :  { %v6224_v54 = vld [vmem:[#allocation35 + $0x1f8] sm:$0xff]  ;;  %v5995_v45 = vld [vmem:[#allocation35 + $0x88] sm:$0xff] }
0x14c3   :  { %v5949_v0 = vpop.f32.mrb[214].mxu1  ;;  %v6177_v20 = vpop.f32.mrb[176].mxu0 }
0x14c4   :  { %v9120_v32 = vpack.c.bf16 %v5949_v0, %v5944_v26  ;;  %v9087_v27 = vpack.c.bf16 %v6177_v20, %v6172_v53  ;;  %v8691_v44 = vpop.f32.mrb[215].mxu1  ;;  %v8762_v60 = vpop.f32.mrb[177].mxu0  ;;  %v6221_v26 = vld [vmem:[#allocation35 + $0x1e0] sm:$0xff]  ;;  %v5992_v53 = vld [vmem:[#allocation35 + $0x70] sm:$0xff] }
0x14c5   :  { %v6223_v0 = vld [vmem:[#allocation35 + $0x1f0] sm:$0xff]  ;;  %v5994_v20 = vld [vmem:[#allocation35 + $0x80] sm:$0xff] }
0x14c6   :  { %9088 = vmatpush1.bf16.msra.mxu1 %v9087_v27  ;;  %9121 = vmatpush1.bf16.msra.mxu0 %v9120_v32  ;;  %v6226_v32 = vld [vmem:[#allocation35 + $0x208] sm:$0xff]  ;;  %v5997_v27 = vld [vmem:[#allocation35 + $0x98] sm:$0xff]  ;;  %v6225_v44 = vld [vmem:[#allocation35 + $0x200] sm:$0xff] }
0x14c7   :  { %v5954_v50 = vpop.f32.mrb[216].mxu1  ;;  %v6182_v61 = vpop.f32.mrb[178].mxu0  ;;  %9089 = vmatprep.subr.bf16.mxu1 %v9871_v8  ;;  %9122 = vmatprep.subr.bf16.mxu0 %v9871_v8  ;;  %v5996_v60 = vld [vmem:[#allocation35 + $0x90] sm:$0xff] }
0x14c8   :  { %v8694_v7 = vpop.f32.mrb[217].mxu1  ;;  %v8765_v23 = vpop.f32.mrb[179].mxu0 }
0x14c9   :  { %v6227_v7 = vld [vmem:[#allocation35 + $0x210] sm:$0xff]  ;;  %v5998_v23 = vld [vmem:[#allocation35 + $0xa0] sm:$0xff] }
0x14cb   :  { %v5959_v58 = vpop.f32.mrb[218].mxu1  ;;  %v6187_v49 = vpop.f32.mrb[180].mxu0 }
0x14cc   :  { %v9123_v2 = vpack.c.bf16 %v5959_v58, %v5954_v50  ;;  %v9090_v24 = vpack.c.bf16 %v6187_v49, %v6182_v61  ;;  %v8697_v5 = vpop.f32.mrb[219].mxu1  ;;  %v8768_v37 = vpop.f32.mrb[181].mxu0  ;;  %v6228_v50 = vld [vmem:[#allocation35 + $0x218] sm:$0xff]  ;;  %v5999_v61 = vld [vmem:[#allocation35 + $0xa8] sm:$0xff] }
0x14cd   :  { %v6230_v58 = vld [vmem:[#allocation35 + $0x228] sm:$0xff]  ;;  %v6001_v49 = vld [vmem:[#allocation35 + $0xb8] sm:$0xff] }
0x14ce   :  { %9091 = vmatpush1.bf16.msra.mxu1 %v9090_v24  ;;  %9124 = vmatpush1.bf16.msra.mxu0 %v9123_v2  ;;  %v6229_v2 = vld [vmem:[#allocation35 + $0x220] sm:$0xff]  ;;  %v6000_v24 = vld [vmem:[#allocation35 + $0xb0] sm:$0xff]  ;;  %v6232_v5 = vld [vmem:[#allocation35 + $0x238] sm:$0xff] }
0x14cf   :  { %v5964_v9 = vpop.f32.mrb[220].mxu1  ;;  %v6192_v56 = vpop.f32.mrb[182].mxu0  ;;  %9092 = vmatprep.subr.bf16.mxu1 %v9871_v8  ;;  %9125 = vmatprep.subr.bf16.mxu0 %v9871_v8  ;;  %v6003_v37 = vld [vmem:[#allocation35 + $0xc8] sm:$0xff] }
0x14d0   :  { %v8700_v11 = vpop.f32.mrb[221].mxu1  ;;  %v8771_v1 = vpop.f32.mrb[183].mxu0 }
0x14d1   :  { %v6234_v11 = vld [vmem:[#allocation35 + $0x248] sm:$0xff]  ;;  %v6005_v1 = vld [vmem:[#allocation35 + $0xd8] sm:$0xff] }
0x14d3   :  { %v5969_v12 = vpop.f32.mrb[222].mxu1  ;;  %v6197_v4 = vpop.f32.mrb[184].mxu0 }
0x14d4   :  { %v9126_v13 = vpack.c.bf16 %v5969_v12, %v5964_v9  ;;  %v9093_v14 = vpack.c.bf16 %v6197_v4, %v6192_v56  ;;  %v8703_v15 = vpop.f32.mrb[223].mxu1  ;;  %v8774_v47 = vpop.f32.mrb[185].mxu0  ;;  %v6231_v9 = vld [vmem:[#allocation35 + $0x230] sm:$0xff]  ;;  %v6002_v56 = vld [vmem:[#allocation35 + $0xc0] sm:$0xff] }
0x14d5   :  { %v6233_v12 = vld [vmem:[#allocation35 + $0x240] sm:$0xff]  ;;  %v6004_v4 = vld [vmem:[#allocation35 + $0xd0] sm:$0xff] }
0x14d6   :  { %9094 = vmatpush1.bf16.msra.mxu1 %v9093_v14  ;;  %9127 = vmatpush1.bf16.msra.mxu0 %v9126_v13  ;;  %v6236_v13 = vld [vmem:[#allocation35 + $0x258] sm:$0xff]  ;;  %v6007_v14 = vld [vmem:[#allocation35 + $0xe8] sm:$0xff]  ;;  %v6235_v15 = vld [vmem:[#allocation35 + $0x250] sm:$0xff] }
0x14d7   :  { %v5974_v40 = vpop.f32.mrb[224].mxu1  ;;  %v6202_v46 = vpop.f32.mrb[186].mxu0  ;;  %6367 = vmatprep.subr.mxu1 %v9873_v55  ;;  %6616 = vmatprep.subr.mxu0 %v9873_v55  ;;  %v6006_v47 = vld [vmem:[#allocation35 + $0xe0] sm:$0xff] }
0x14d8   :  { %v8706_v17 = vpop.f32.mrb[225].mxu1  ;;  %v8777_v34 = vpop.f32.mrb[187].mxu0 }
0x14d9   :  { %v6237_v17 = vld [vmem:[#allocation35 + $0x260] sm:$0xff]  ;;  %v6008_v34 = vld [vmem:[#allocation35 + $0xf0] sm:$0xff] }
0x14da   :  { %6368 = vmatpush1.msra.mxu1 %v6202_v46  ;;  %6617 = vmatpush1.msra.mxu0 %v5974_v40  ;;  %v6238_v40 = vld [vmem:[#allocation35 + $0x268] sm:$0xff]  ;;  %v6009_v46 = vld [vmem:[#allocation35 + $0xf8] sm:$0xff] }
0x14db   :  { %6388 = vmatmul.mubr.f32.vlgmr.msra.gmra.mrb[226].mxu1 %v6207_v18  ;;  %6637 = vmatmul.mubr.f32.vlgmr.msra.gmra.mrb[188].mxu0 %v5978_v62  ;;  %v6240_v18 = vld [vmem:[#allocation35 + $0x278] sm:$0xff]  ;;  %v6011_v62 = vld [vmem:[#allocation35 + $0x108] sm:$0xff] }
0x14dc   :  { %7402 = vmatprep.mubr.msk.f32.mxu1 %vm6253_vm0, %v6210_v21  ;;  %7425 = vmatprep.mubr.msk.f32.mxu0 %vm6253_vm0, %v5981_v57  ;;  %v6239_v21 = vld [vmem:[#allocation35 + $0x270] sm:$0xff]  ;;  %v6010_v57 = vld [vmem:[#allocation35 + $0x100] sm:$0xff] }
0x14dd   :  { %9128 = vmatprep.subr.bf16.mxu1 %v9871_v8 }
0x14df   :  { %6393 = vmatmul.mubr.f32.gmra.mrb[228].mxu1 %v6209_v43  ;;  %6642 = vmatmul.mubr.f32.gmra.mrb[190].mxu0 %v5980_v35  ;;  %v6242_v43 = vld [vmem:[#allocation35 + $0x288] sm:$0xff]  ;;  %v6013_v35 = vld [vmem:[#allocation35 + $0x118] sm:$0xff] }
0x14e0   :  { %7403 = vmatprep.mubr.msk.f32.mxu1 %vm6253_vm0, %v6212_v28  ;;  %7426 = vmatprep.mubr.msk.f32.mxu0 %vm6253_vm0, %v5983_v63  ;;  %v6241_v28 = vld [vmem:[#allocation35 + $0x280] sm:$0xff]  ;;  %v6012_v63 = vld [vmem:[#allocation35 + $0x110] sm:$0xff] }
0x14e3   :  { %6398 = vmatmul.mubr.f32.gmra.mrb[230].mxu1 %v6211_v59  ;;  %6647 = vmatmul.mubr.f32.gmra.mrb[192].mxu0 %v5982_v48  ;;  %v6244_v59 = vld [vmem:[#allocation35 + $0x298] sm:$0xff]  ;;  %v6015_v48 = vld [vmem:[#allocation35 + $0x128] sm:$0xff] }
0x14e4   :  { %7404 = vmatprep.mubr.msk.f32.mxu1 %vm6253_vm0, %v6214_v10  ;;  %7427 = vmatprep.mubr.msk.f32.mxu0 %vm6253_vm0, %v5985_v51  ;;  %v6243_v10 = vld [vmem:[#allocation35 + $0x290] sm:$0xff]  ;;  %v6014_v51 = vld [vmem:[#allocation35 + $0x120] sm:$0xff] }
0x14e7   :  { %6403 = vmatmul.mubr.f32.gmra.mrb[232].mxu1 %v6213_v38  ;;  %6652 = vmatmul.mubr.f32.gmra.mrb[194].mxu0 %v5984_v16  ;;  %v6246_v38 = vld [vmem:[#allocation35 + $0x2a8] sm:$0xff]  ;;  %v6017_v16 = vld [vmem:[#allocation35 + $0x138] sm:$0xff] }
0x14e8   :  { %7405 = vmatprep.mubr.msk.f32.mxu1 %vm6253_vm0, %v6216_v52  ;;  %7428 = vmatprep.mubr.msk.f32.mxu0 %vm6253_vm0, %v5987_v3  ;;  %v6245_v52 = vld [vmem:[#allocation35 + $0x2a0] sm:$0xff]  ;;  %v6016_v3 = vld [vmem:[#allocation35 + $0x130] sm:$0xff] }
0x14eb   :  { %6408 = vmatmul.mubr.f32.gmra.mrb[234].mxu1 %v6215_v25  ;;  %6657 = vmatmul.mubr.f32.gmra.mrb[196].mxu0 %v5986_v29  ;;  %v6248_v25 = vld [vmem:[#allocation35 + $0x2b8] sm:$0xff]  ;;  %v6019_v29 = vld [vmem:[#allocation35 + $0x148] sm:$0xff] }
0x14ec   :  { %7406 = vmatprep.mubr.msk.f32.mxu1 %vm6253_vm0, %v6218_v30  ;;  %7429 = vmatprep.mubr.msk.f32.mxu0 %vm6253_vm0, %v5989_v33  ;;  %v6247_v30 = vld [vmem:[#allocation35 + $0x2b0] sm:$0xff]  ;;  %v6018_v33 = vld [vmem:[#allocation35 + $0x140] sm:$0xff] }
0x14ef   :  { %6413 = vmatmul.mubr.f32.gmra.mrb[236].mxu1 %v6217_v39  ;;  %6662 = vmatmul.mubr.f32.gmra.mrb[198].mxu0 %v5988_v22  ;;  %v6250_v39 = vld [vmem:[#allocation35 + $0x2c8] sm:$0xff]  ;;  %v6021_v22 = vld [vmem:[#allocation35 + $0x158] sm:$0xff] }
0x14f0   :  { %7407 = vmatprep.mubr.msk.f32.mxu1 %vm6253_vm0, %v6220_v6  ;;  %7430 = vmatprep.mubr.msk.f32.mxu0 %vm6253_vm0, %v5991_v41  ;;  %v6249_v6 = vld [vmem:[#allocation35 + $0x2c0] sm:$0xff]  ;;  %v6020_v41 = vld [vmem:[#allocation35 + $0x150] sm:$0xff] }
0x14f3   :  { %6418 = vmatmul.mubr.f32.gmra.mrb[238].mxu1 %v6219_v42  ;;  %6667 = vmatmul.mubr.f32.gmra.mrb[200].mxu0 %v5990_v19  ;;  %v6252_v42 = vld [vmem:[#allocation35 + $0x2d8] sm:$0xf]  ;;  %v6023_v19 = vld [vmem:[#allocation35 + $0x168] sm:$0xf] }
0x14f4   :  { %7408 = vmatprep.mubr.msk.f32.mxu1 %vm6253_vm0, %v6222_v36  ;;  %7431 = vmatprep.mubr.msk.f32.mxu0 %vm6253_vm0, %v5993_v31  ;;  %v6251_v36 = vld [vmem:[#allocation35 + $0x2d0] sm:$0xf]  ;;  %v6022_v31 = vld [vmem:[#allocation35 + $0x160] sm:$0xf] }
0x14f7   :  { %6423 = vmatmul.mubr.f32.gmra.mrb[240].mxu1 %v6221_v26  ;;  %6672 = vmatmul.mubr.f32.gmra.mrb[202].mxu0 %v5992_v53 }
0x14f8   :  { %7409 = vmatprep.mubr.msk.f32.mxu1 %vm6253_vm0, %v6224_v54  ;;  %7432 = vmatprep.mubr.msk.f32.mxu0 %vm6253_vm0, %v5995_v45  ;;  %v11434_v54 = vld [vmem:[#allocation2] ss:$0 sm:$0xff] }
0x14fb   :  { %6428 = vmatmul.mubr.f32.gmra.mrb[242].mxu1 %v6223_v0  ;;  %6677 = vmatmul.mubr.f32.gmra.mrb[204].mxu0 %v5994_v20 }
0x14fc   :  { %7410 = vmatprep.mubr.msk.f32.mxu1 %vm6253_vm0, %v6226_v32  ;;  %7433 = vmatprep.mubr.msk.f32.mxu0 %vm6253_vm0, %v5997_v27 }
0x14ff   :  { %6433 = vmatmul.mubr.f32.gmra.mrb[244].mxu1 %v6225_v44  ;;  %6682 = vmatmul.mubr.f32.gmra.mrb[206].mxu0 %v5996_v60 }
0x1500   :  { %7411 = vmatprep.mubr.msk.f32.mxu1 %vm6253_vm0, %v6228_v50  ;;  %7434 = vmatprep.mubr.msk.f32.mxu0 %vm6253_vm0, %v5999_v61 }
0x1503   :  { %6438 = vmatmul.mubr.f32.gmra.mrb[246].mxu1 %v6227_v7  ;;  %6687 = vmatmul.mubr.f32.gmra.mrb[208].mxu0 %v5998_v23 }
0x1504   :  { %7412 = vmatprep.mubr.msk.f32.mxu1 %vm6253_vm0, %v6230_v58  ;;  %7435 = vmatprep.mubr.msk.f32.mxu0 %vm6253_vm0, %v6001_v49 }
0x1507   :  { %6443 = vmatmul.mubr.f32.gmra.mrb[248].mxu1 %v6229_v2  ;;  %6692 = vmatmul.mubr.f32.gmra.mrb[210].mxu0 %v6000_v24 }
0x1508   :  { %7413 = vmatprep.mubr.msk.f32.mxu1 %vm6253_vm0, %v6232_v5  ;;  %7436 = vmatprep.mubr.msk.f32.mxu0 %vm6253_vm0, %v6003_v37 }
0x150b   :  { %6448 = vmatmul.mubr.f32.gmra.mrb[250].mxu1 %v6231_v9  ;;  %6697 = vmatmul.mubr.f32.gmra.mrb[212].mxu0 %v6002_v56 }
0x150c   :  { %7414 = vmatprep.mubr.msk.f32.mxu1 %vm6253_vm0, %v6234_v11  ;;  %7437 = vmatprep.mubr.msk.f32.mxu0 %vm6253_vm0, %v6005_v1 }
0x150f   :  { %6453 = vmatmul.mubr.f32.gmra.mrb[252].mxu1 %v6233_v12  ;;  %6702 = vmatmul.mubr.f32.gmra.mrb[214].mxu0 %v6004_v4 }
0x1510   :  { %7415 = vmatprep.mubr.msk.f32.mxu1 %vm6253_vm0, %v6236_v13  ;;  %7438 = vmatprep.mubr.msk.f32.mxu0 %vm6253_vm0, %v6007_v14 }
0x1513   :  { %6458 = vmatmul.mubr.f32.gmra.mrb[254].mxu1 %v6235_v15  ;;  %6707 = vmatmul.mubr.f32.gmra.mrb[216].mxu0 %v6006_v47 }
0x1514   :  { %7416 = vmatprep.mubr.msk.f32.mxu1 %vm6253_vm0, %v6238_v40  ;;  %7439 = vmatprep.mubr.msk.f32.mxu0 %vm6253_vm0, %v6009_v46 }
0x1517   :  { %6463 = vmatmul.mubr.f32.gmra.mrb[0].mxu1 %v6237_v17  ;;  %6712 = vmatmul.mubr.f32.gmra.mrb[218].mxu0 %v6008_v34 }
0x1518   :  { %7417 = vmatprep.mubr.msk.f32.mxu1 %vm6253_vm0, %v6240_v18  ;;  %7440 = vmatprep.mubr.msk.f32.mxu0 %vm6253_vm0, %v6011_v62 }
0x151b   :  { %6468 = vmatmul.mubr.f32.gmra.mrb[2].mxu1 %v6239_v21  ;;  %6717 = vmatmul.mubr.f32.gmra.mrb[220].mxu0 %v6010_v57 }
0x151c   :  { %7418 = vmatprep.mubr.msk.f32.mxu1 %vm6253_vm0, %v6242_v43  ;;  %7441 = vmatprep.mubr.msk.f32.mxu0 %vm6253_vm0, %v6013_v35 }
0x151f   :  { %6473 = vmatmul.mubr.f32.gmra.mrb[4].mxu1 %v6241_v28  ;;  %6722 = vmatmul.mubr.f32.gmra.mrb[222].mxu0 %v6012_v63 }
0x1520   :  { %7419 = vmatprep.mubr.msk.f32.mxu1 %vm6253_vm0, %v6244_v59  ;;  %7442 = vmatprep.mubr.msk.f32.mxu0 %vm6253_vm0, %v6015_v48 }
0x1523   :  { %6478 = vmatmul.mubr.f32.gmra.mrb[6].mxu1 %v6243_v10  ;;  %6727 = vmatmul.mubr.f32.gmra.mrb[224].mxu0 %v6014_v51 }
0x1524   :  { %7420 = vmatprep.mubr.msk.f32.mxu1 %vm6253_vm0, %v6246_v38  ;;  %7443 = vmatprep.mubr.msk.f32.mxu0 %vm6253_vm0, %v6017_v16 }
0x1527   :  { %6483 = vmatmul.mubr.f32.gmra.mrb[8].mxu1 %v6245_v52  ;;  %6732 = vmatmul.mubr.f32.gmra.mrb[226].mxu0 %v6016_v3 }
0x1528   :  { %7421 = vmatprep.mubr.msk.f32.mxu1 %vm6253_vm0, %v6248_v25  ;;  %7444 = vmatprep.mubr.msk.f32.mxu0 %vm6253_vm0, %v6019_v29 }
0x152b   :  { %6488 = vmatmul.mubr.f32.gmra.mrb[10].mxu1 %v6247_v30  ;;  %6737 = vmatmul.mubr.f32.gmra.mrb[228].mxu0 %v6018_v33 }
0x152c   :  { %7422 = vmatprep.mubr.msk.f32.mxu1 %vm6253_vm0, %v6250_v39  ;;  %7445 = vmatprep.mubr.msk.f32.mxu0 %vm6253_vm0, %v6021_v22 }
0x152f   :  { %6493 = vmatmul.mubr.f32.gmra.mrb[12].mxu1 %v6249_v6  ;;  %6742 = vmatmul.mubr.f32.gmra.mrb[230].mxu0 %v6020_v41 }
0x1530   :  { %7423 = vmatprep.mubr.msk.f32.mxu1 %vm6253_vm0, %v6252_v42  ;;  %7446 = vmatprep.mubr.msk.f32.mxu0 %vm6253_vm0, %v6023_v19 }
0x1533   :  { %6498 = vmatmul.mubr.f32.gmra.mrb[14].mxu1 %v6251_v36  ;;  %6747 = vmatmul.mubr.f32.gmra.mrb[232].mxu0 %v6022_v31 }
0x15ae   :  { %v6389_v26 = vpop.f32.mrb[226].mxu1  ;;  %v6638_v53 = vpop.f32.mrb[188].mxu0 }
0x15af   :  { %v6639_v45 = vadd.f32 %v6638_v53, %v6389_v26  ;;  %v6391_v0 = vpop.f32.mrb[227].mxu1  ;;  %v6640_v20 = vpop.f32.mrb[189].mxu0 }
0x15b1   :  { %v6759_v32 = vadd.f32 %v11434_v54, %v6639_v45 }
0x15b2   :  { %v6394_v27 = vpop.f32.mrb[228].mxu1  ;;  %v6643_v44 = vpop.f32.mrb[190].mxu0 }
0x15b3   :  { %v6644_v60 = vadd.f32 %v6643_v44, %v6394_v27  ;;  %v6645_v50 = vpop.f32.mrb[191].mxu0  ;;  %6808 = vperm.xlu0 %9262, %v6759_v32   ;;  %v6396_v61 = vpop.f32.mrb[229].mxu1 }
0x15b5   :  { %v6760_v7 = vadd.f32 %v11434_v54, %v6644_v60 }
0x15b6   :  { %v6399_v23 = vpop.f32.mrb[230].mxu1  ;;  %v6648_v58 = vpop.f32.mrb[192].mxu0 }
0x15b7   :  { %v6649_v49 = vadd.f32 %v6648_v58, %v6399_v23  ;;  %v6650_v2 = vpop.f32.mrb[193].mxu0  ;;  %6813 = vperm.xlu1 %9263, %v6760_v7   ;;  %v6401_v24 = vpop.f32.mrb[231].mxu1 }
0x15b9   :  { %v6761_v5 = vadd.f32 %v11434_v54, %v6649_v49 }
0x15ba   :  { %v6404_v37 = vpop.f32.mrb[232].mxu1  ;;  %v6653_v9 = vpop.f32.mrb[194].mxu0 }
0x15bb   :  { %v6654_v56 = vadd.f32 %v6653_v9, %v6404_v37  ;;  %v6655_v11 = vpop.f32.mrb[195].mxu0  ;;  %6818 = vperm.xlu0 %9262, %v6761_v5   ;;  %v6406_v1 = vpop.f32.mrb[233].mxu1 }
0x15bd   :  { %v6762_v12 = vadd.f32 %v11434_v54, %v6654_v56 }
0x15be   :  { %v6409_v4 = vpop.f32.mrb[234].mxu1  ;;  %v6658_v13 = vpop.f32.mrb[196].mxu0 }
0x15bf   :  { %v6659_v14 = vadd.f32 %v6658_v13, %v6409_v4  ;;  %v6660_v15 = vpop.f32.mrb[197].mxu0  ;;  %6823 = vperm.xlu1 %9263, %v6762_v12   ;;  %v6411_v47 = vpop.f32.mrb[235].mxu1 }
0x15c1   :  { %v6763_v40 = vadd.f32 %v11434_v54, %v6659_v14 }
0x15c2   :  { %v6414_v46 = vpop.f32.mrb[236].mxu1  ;;  %v6663_v17 = vpop.f32.mrb[198].mxu0 }
0x15c3   :  { %v6664_v34 = vadd.f32 %v6663_v17, %v6414_v46  ;;  %v6665_v18 = vpop.f32.mrb[199].mxu0  ;;  %6828 = vperm.xlu0 %9262, %v6763_v40   ;;  %v6416_v62 = vpop.f32.mrb[237].mxu1 }
0x15c5   :  { %v6764_v21 = vadd.f32 %v11434_v54, %v6664_v34 }
0x15c6   :  { %v6419_v57 = vpop.f32.mrb[238].mxu1  ;;  %v6668_v43 = vpop.f32.mrb[200].mxu0 }
0x15c7   :  { %v6669_v35 = vadd.f32 %v6668_v43, %v6419_v57  ;;  %v6670_v28 = vpop.f32.mrb[201].mxu0  ;;  %6833 = vperm.xlu1 %9263, %v6764_v21   ;;  %v6421_v63 = vpop.f32.mrb[239].mxu1 }
0x15c9   :  { %v6765_v59 = vadd.f32 %v11434_v54, %v6669_v35 }
0x15ca   :  { %v6424_v48 = vpop.f32.mrb[240].mxu1  ;;  %v6673_v10 = vpop.f32.mrb[202].mxu0 }
0x15cb   :  { %v6674_v51 = vadd.f32 %v6673_v10, %v6424_v48  ;;  %v6675_v38 = vpop.f32.mrb[203].mxu0  ;;  %6838 = vperm.xlu0 %9262, %v6765_v59   ;;  %v6426_v16 = vpop.f32.mrb[241].mxu1 }
0x15cd   :  { %v6766_v52 = vadd.f32 %v11434_v54, %v6674_v51 }
0x15ce   :  { %v6429_v3 = vpop.f32.mrb[242].mxu1  ;;  %v6678_v25 = vpop.f32.mrb[204].mxu0 }
0x15cf   :  { %v6679_v29 = vadd.f32 %v6678_v25, %v6429_v3  ;;  %v6680_v30 = vpop.f32.mrb[205].mxu0  ;;  %6843 = vperm.xlu1 %9263, %v6766_v52   ;;  %v6431_v33 = vpop.f32.mrb[243].mxu1 }
0x15d1   :  { %v6767_v39 = vadd.f32 %v11434_v54, %v6679_v29 }
0x15d2   :  { %v6434_v22 = vpop.f32.mrb[244].mxu1  ;;  %v6683_v6 = vpop.f32.mrb[206].mxu0 }
0x15d3   :  { %v6684_v41 = vadd.f32 %v6683_v6, %v6434_v22  ;;  %v6685_v42 = vpop.f32.mrb[207].mxu0  ;;  %6848 = vperm.xlu0 %9262, %v6767_v39   ;;  %v6436_v19 = vpop.f32.mrb[245].mxu1 }
0x15d5   :  { %v6768_v36 = vadd.f32 %v11434_v54, %v6684_v41 }
0x15d6   :  { %v6439_v31 = vpop.f32.mrb[246].mxu1  ;;  %v6688_v26 = vpop.f32.mrb[208].mxu0 }
0x15d7   :  { %v6689_v53 = vadd.f32 %v6688_v26, %v6439_v31  ;;  %v6690_v45 = vpop.f32.mrb[209].mxu0  ;;  %6853 = vperm.xlu1 %9263, %v6768_v36   ;;  %v6441_v0 = vpop.f32.mrb[247].mxu1 }
0x15d9   :  { %v6769_v20 = vadd.f32 %v11434_v54, %v6689_v53 }
0x15da   :  { %v6444_v32 = vpop.f32.mrb[248].mxu1  ;;  %v6693_v27 = vpop.f32.mrb[210].mxu0 }
0x15db   :  { %v6694_v44 = vadd.f32 %v6693_v27, %v6444_v32  ;;  %v6695_v60 = vpop.f32.mrb[211].mxu0  ;;  %6858 = vperm.xlu0 %9262, %v6769_v20   ;;  %v6446_v50 = vpop.f32.mrb[249].mxu1 }
0x15dd   :  { %v6770_v61 = vadd.f32 %v11434_v54, %v6694_v44 }
0x15de   :  { %v6449_v7 = vpop.f32.mrb[250].mxu1  ;;  %v6698_v23 = vpop.f32.mrb[212].mxu0 }
0x15df   :  { %v6699_v58 = vadd.f32 %v6698_v23, %v6449_v7  ;;  %v6700_v49 = vpop.f32.mrb[213].mxu0  ;;  %6863 = vperm.xlu1 %9263, %v6770_v61   ;;  %v6451_v2 = vpop.f32.mrb[251].mxu1 }
0x15e1   :  { %v6771_v24 = vadd.f32 %v11434_v54, %v6699_v58 }
0x15e2   :  { %v6454_v5 = vpop.f32.mrb[252].mxu1  ;;  %v6703_v37 = vpop.f32.mrb[214].mxu0 }
0x15e3   :  { %v6704_v9 = vadd.f32 %v6703_v37, %v6454_v5  ;;  %v6705_v56 = vpop.f32.mrb[215].mxu0  ;;  %6868 = vperm.xlu0 %9262, %v6771_v24   ;;  %v6456_v11 = vpop.f32.mrb[253].mxu1  ;;  %v11460_v24 = vld [vmem:[%s10022_s27] sm:$0xff]  ;;  %s9875_s27 = smov [#allocation38]  }
0x15e4   :  { %v6945_v5 = vcombine.high %v11460_v24, %v11460_v24  ;;  %v6783_v37 = vld [vmem:[#allocation36] sm:$0xff]  ;;  %v6784_v56 = vld [vmem:[#allocation36 + $0x8] sm:$0xff]  ;;  %s7030_s30 = sshll.u32 %s9875_s27, 4  ;;  %s7031_s30 = int_to_ptr.vmem [resolvable:$true] %s7030_s30 }
0x15e5   :  { %v6772_v1 = vadd.f32 %v11434_v54, %v6704_v9  ;;  %s9765_s29 = scalar_lea.vmem %s7031_s30, 64  ;;  %p9770_p9 = scmp.lt.s32.totalorder %s7031_s30, %s7031_s30 }
0x15e6   :  { %v6459_v12 = vpop.f32.mrb[254].mxu1  ;;  %v6708_v4 = vpop.f32.mrb[216].mxu0  ;;  %7449 = vmatprep.mubr.msk.f32.mxu1 %vm6946_vm1, %v6945_v5  ;;  %p9766_p8 = scmp.ne.s32.totalorder %s7031_s30, %s9765_s29  ;;  %p9771_p10 = scmp.lt.s32.totalorder %s9765_s29, %s9765_s29 }
0x15e7   :  { %v6709_v13 = vadd.f32 %v6708_v4, %v6459_v12  ;;  %v6710_v14 = vpop.f32.mrb[217].mxu0  ;;  %6873 = vperm.xlu1 %9263, %v6772_v1   ;;  %v6461_v15 = vpop.f32.mrb[255].mxu1 }
0x15e8   :  { %v6786_v15 = vld [vmem:[#allocation36 + $0x18] sm:$0xff]  ;;  %p9772_p11 = por %p9771_p10, %p9770_p9 }
0x15e9   :  { %v6773_v47 = vadd.f32 %v11434_v54, %v6709_v13  ;;  %v6785_v13 = vld [vmem:[#allocation36 + $0x10] sm:$0xff] }
0x15ea   :  { %v6464_v40 = vpop.f32.mrb[0].mxu1  ;;  %v6713_v46 = vpop.f32.mrb[218].mxu0  ;;  %p9773_p12 = pnand %p9772_p11, %p9766_p8 }
0x15eb   :  { %v6714_v17 = vadd.f32 %v6713_v46, %v6464_v40  ;;  %v6715_v34 = vpop.f32.mrb[219].mxu0  ;;  %6878 = vperm.xlu0 %9262, %v6773_v47   ;;  %v6466_v18 = vpop.f32.mrb[1].mxu1 }
0x15ec   :  { %v6788_v18 = vld [vmem:[#allocation36 + $0x28] sm:$0xff] }
0x15ed   :  { %v6774_v62 = vadd.f32 %v11434_v54, %v6714_v17  ;;  %v6787_v17 = vld [vmem:[#allocation36 + $0x20] sm:$0xff] }
0x15ee   :  { %v6469_v21 = vpop.f32.mrb[2].mxu1  ;;  %v6718_v57 = vpop.f32.mrb[220].mxu0 }
0x15ef   :  { %v6719_v43 = vadd.f32 %v6718_v57, %v6469_v21  ;;  %v6720_v35 = vpop.f32.mrb[221].mxu0  ;;  %6883 = vperm.xlu1 %9263, %v6774_v62   ;;  %v6471_v28 = vpop.f32.mrb[3].mxu1 }
0x15f0   :  { %v6789_v35 = vld [vmem:[#allocation36 + $0x30] sm:$0xff] }
0x15f1   :  { %v6775_v63 = vadd.f32 %v11434_v54, %v6719_v43 }
0x15f2   :  { %v6474_v59 = vpop.f32.mrb[4].mxu1  ;;  %v6723_v48 = vpop.f32.mrb[222].mxu0 }
0x15f3   :  { %v6724_v10 = vadd.f32 %v6723_v48, %v6474_v59  ;;  %v6725_v51 = vpop.f32.mrb[223].mxu0  ;;  %6888 = vperm.xlu0 %9262, %v6775_v63   ;;  %v6476_v38 = vpop.f32.mrb[5].mxu1  ;;  %v6790_v63 = vld [vmem:[#allocation36 + $0x38] sm:$0xff] }
0x15f4   :  { %v6791_v38 = vld [vmem:[#allocation36 + $0x40] sm:$0xff] }
0x15f5   :  { %v6776_v16 = vadd.f32 %v11434_v54, %v6724_v10 }
0x15f6   :  { %v6479_v52 = vpop.f32.mrb[6].mxu1  ;;  %v6728_v3 = vpop.f32.mrb[224].mxu0 }
0x15f7   :  { %v6729_v25 = vadd.f32 %v6728_v3, %v6479_v52  ;;  %v6730_v29 = vpop.f32.mrb[225].mxu0  ;;  %6893 = vperm.xlu1 %9263, %v6776_v16   ;;  %v6481_v30 = vpop.f32.mrb[7].mxu1  ;;  %v6792_v52 = vld [vmem:[#allocation36 + $0x48] sm:$0xff] }
0x15f9   :  { %v6777_v33 = vadd.f32 %v11434_v54, %v6729_v25 }
0x15fa   :  { %v6484_v39 = vpop.f32.mrb[8].mxu1  ;;  %v6733_v22 = vpop.f32.mrb[226].mxu0 }
0x15fb   :  { %v6734_v6 = vadd.f32 %v6733_v22, %v6484_v39  ;;  %v6735_v41 = vpop.f32.mrb[227].mxu0  ;;  %6898 = vperm.xlu0 %9262, %v6777_v33   ;;  %v6486_v42 = vpop.f32.mrb[9].mxu1  ;;  %v6793_v33 = vld [vmem:[#allocation36 + $0x50] sm:$0xff]  ;;  %v6794_v22 = vld [vmem:[#allocation36 + $0x58] sm:$0xff] }
0x15fd   :  { %v6778_v19 = vadd.f32 %v11434_v54, %v6734_v6 }
0x15fe   :  { %v6489_v36 = vpop.f32.mrb[10].mxu1  ;;  %v6738_v31 = vpop.f32.mrb[228].mxu0 }
0x15ff   :  { %v6739_v26 = vadd.f32 %v6738_v31, %v6489_v36  ;;  %v6740_v53 = vpop.f32.mrb[229].mxu0  ;;  %6903 = vperm.xlu1 %9263, %v6778_v19   ;;  %v6491_v45 = vpop.f32.mrb[11].mxu1  ;;  %v6795_v36 = vld [vmem:[#allocation36 + $0x60] sm:$0xff] }
0x1601   :  { %v6779_v0 = vadd.f32 %v11434_v54, %v6739_v26  ;;  %v6796_v26 = vld [vmem:[#allocation36 + $0x68] sm:$0xff] }
0x1602   :  { %v6494_v20 = vpop.f32.mrb[12].mxu1  ;;  %v6743_v32 = vpop.f32.mrb[230].mxu0 }
0x1603   :  { %v6744_v27 = vadd.f32 %v6743_v32, %v6494_v20  ;;  %v6745_v44 = vpop.f32.mrb[231].mxu0  ;;  %6908 = vperm.xlu0 %9262, %v6779_v0   ;;  %v6496_v60 = vpop.f32.mrb[13].mxu1  ;;  %v6797_v32 = vld [vmem:[#allocation36 + $0x70] sm:$0xff] }
0x1604   :  { %v6798_v44 = vld [vmem:[#allocation36 + $0x78] sm:$0xff] }
0x1605   :  { %v6780_v50 = vadd.f32 %v11434_v54, %v6744_v27 }
0x1606   :  { %v6499_v61 = vpop.f32.mrb[14].mxu1  ;;  %v6748_v7 = vpop.f32.mrb[232].mxu0 }
0x1607   :  { %v6749_v23 = vadd.f32 %v6748_v7, %v6499_v61  ;;  %6913 = vperm.xlu1 %9263, %v6780_v50   ;;  %v6501_v58 = vpop.f32.mrb[15].mxu1  ;;  %v6750_v49 = vpop.f32.mrb[233].mxu0 }
0x1608   :  { %v6800_v49 = vld [vmem:[#allocation36 + $0x88] sm:$0xff] }
0x1609   :  { %v6781_v2 = vadd.f32 %v11434_v54, %v6749_v23  ;;  %v6799_v23 = vld [vmem:[#allocation36 + $0x80] sm:$0xff] }
0x160b   :  { %6918 = vperm.xlu0 %9262, %v6781_v2  }
0x1632   :  { %v6809_v9 = vpop.permute.xlu0 %6808 }
0x1633   :  { %v6921_v1 = vmul.f32 %v6809_v9, %v6783_v37 }
0x1636   :  { %v6814_v11 = vpop.permute.xlu1 %6813 }
0x1637   :  { %v6922_v12 = vmul.f32 %v6814_v11, %v6784_v56  ;;  %v6801_v56 = vld [vmem:[#allocation36 + $0x90] sm:$0xff] }
0x1639   :  { %v9129_v4 = vpack.c.bf16 %v6922_v12, %v6921_v1  ;;  %v6802_v1 = vld [vmem:[#allocation36 + $0x98] sm:$0xff] }
0x163a   :  { %v6819_v14 = vpop.permute.xlu0 %6818 }
0x163b   :  { %9130 = vmatpush1.bf16.msra.mxu1 %v9129_v4  ;;  %v6923_v47 = vmul.f32 %v6819_v14, %v6785_v13 }
0x163c   :  { %9131 = vmatprep.subr.bf16.mxu1 %v9871_v8 }
0x163e   :  { %v6824_v54 = vpop.permute.xlu1 %6823 }
0x163f   :  { %v6924_v40 = vmul.f32 %v6824_v54, %v6786_v15  ;;  %v6803_v15 = vld [vmem:[#allocation36 + $0xa0] sm:$0xff] }
0x1641   :  { %v9132_v46 = vpack.c.bf16 %v6924_v40, %v6923_v47  ;;  %v6804_v47 = vld [vmem:[#allocation36 + $0xa8] sm:$0xff] }
0x1642   :  { %v6829_v34 = vpop.permute.xlu0 %6828 }
0x1643   :  { %9133 = vmatpush1.bf16.msra.mxu1 %v9132_v46  ;;  %v6925_v21 = vmul.f32 %v6829_v34, %v6787_v17 }
0x1644   :  { %9134 = vmatprep.subr.bf16.mxu1 %v9871_v8 }
0x1646   :  { %v6834_v62 = vpop.permute.xlu1 %6833 }
0x1647   :  { %v6926_v57 = vmul.f32 %v6834_v62, %v6788_v18  ;;  %v6805_v18 = vld [vmem:[#allocation36 + $0xb0] sm:$0xf] }
0x1649   :  { %v9135_v43 = vpack.c.bf16 %v6926_v57, %v6925_v21 }
0x164a   :  { %v6839_v28 = vpop.permute.xlu0 %6838 }
0x164b   :  { %9136 = vmatpush1.bf16.msra.mxu1 %v9135_v43  ;;  %v6927_v48 = vmul.f32 %v6839_v28, %v6789_v35 }
0x164c   :  { %9137 = vmatprep.subr.bf16.mxu1 %v9871_v8 }
0x164e   :  { %v6844_v59 = vpop.permute.xlu1 %6843 }
0x164f   :  { %v6928_v10 = vmul.f32 %v6844_v59, %v6790_v63 }
0x1651   :  { %v9138_v51 = vpack.c.bf16 %v6928_v10, %v6927_v48 }
0x1652   :  { %v6849_v16 = vpop.permute.xlu0 %6848 }
0x1653   :  { %9139 = vmatpush1.bf16.msra.mxu1 %v9138_v51  ;;  %v6929_v25 = vmul.f32 %v6849_v16, %v6791_v38 }
0x1654   :  { %9140 = vmatprep.subr.bf16.mxu1 %v9871_v8 }
0x1656   :  { %v6854_v3 = vpop.permute.xlu1 %6853 }
0x1657   :  { %v6930_v29 = vmul.f32 %v6854_v3, %v6792_v52 }
0x1659   :  { %v9141_v30 = vpack.c.bf16 %v6930_v29, %v6929_v25 }
0x165a   :  { %v6859_v39 = vpop.permute.xlu0 %6858 }
0x165b   :  { %9142 = vmatpush1.bf16.msra.mxu1 %v9141_v30  ;;  %v6931_v41 = vmul.f32 %v6859_v39, %v6793_v33 }
0x165c   :  { %9143 = vmatprep.subr.bf16.mxu1 %v9871_v8 }
0x165e   :  { %v6864_v6 = vpop.permute.xlu1 %6863 }
0x165f   :  { %v6932_v42 = vmul.f32 %v6864_v6, %v6794_v22 }
0x1661   :  { %v9144_v19 = vpack.c.bf16 %v6932_v42, %v6931_v41 }
0x1662   :  { %v6869_v31 = vpop.permute.xlu0 %6868 }
0x1663   :  { %9145 = vmatpush1.bf16.msra.mxu1 %v9144_v19  ;;  %v6933_v45 = vmul.f32 %v6869_v31, %v6795_v36 }
0x1664   :  { %9146 = vmatprep.subr.bf16.mxu1 %v9871_v8 }
0x1666   :  { %v6874_v53 = vpop.permute.xlu1 %6873 }
0x1667   :  { %v6934_v0 = vmul.f32 %v6874_v53, %v6796_v26 }
0x1669   :  { %v9147_v20 = vpack.c.bf16 %v6934_v0, %v6933_v45 }
0x166a   :  { %v6879_v27 = vpop.permute.xlu0 %6878 }
0x166b   :  { %9148 = vmatpush1.bf16.msra.mxu1 %v9147_v20  ;;  %v6935_v50 = vmul.f32 %v6879_v27, %v6797_v32 }
0x166c   :  { %9149 = vmatprep.subr.bf16.mxu1 %v9871_v8 }
0x166e   :  { %v6884_v60 = vpop.permute.xlu1 %6883 }
0x166f   :  { %v6936_v61 = vmul.f32 %v6884_v60, %v6798_v44 }
0x1671   :  { %v9150_v7 = vpack.c.bf16 %v6936_v61, %v6935_v50 }
0x1672   :  { %v6889_v58 = vpop.permute.xlu0 %6888 }
0x1673   :  { %9151 = vmatpush1.bf16.msra.mxu1 %v9150_v7  ;;  %v6937_v5 = vmul.f32 %v6889_v58, %v6799_v23 }
0x1674   :  { %9152 = vmatprep.subr.bf16.mxu1 %v9871_v8 }
0x1676   :  { %v6894_v2 = vpop.permute.xlu1 %6893 }
0x1677   :  { %v6938_v37 = vmul.f32 %v6894_v2, %v6800_v49 }
0x1679   :  { %v9153_v9 = vpack.c.bf16 %v6938_v37, %v6937_v5 }
0x167a   :  { %v6899_v11 = vpop.permute.xlu0 %6898 }
0x167b   :  { %9154 = vmatpush1.bf16.msra.mxu1 %v9153_v9  ;;  %v6939_v4 = vmul.f32 %v6899_v11, %v6801_v56 }
0x167c   :  { %9155 = vmatprep.subr.bf16.mxu1 %v9871_v8 }
0x167e   :  { %v6904_v12 = vpop.permute.xlu1 %6903 }
0x167f   :  { %v6940_v13 = vmul.f32 %v6904_v12, %v6802_v1 }
0x1681   :  { %v9156_v14 = vpack.c.bf16 %v6940_v13, %v6939_v4 }
0x1682   :  { %v6909_v54 = vpop.permute.xlu0 %6908 }
0x1683   :  { %9157 = vmatpush1.bf16.msra.mxu1 %v9156_v14  ;;  %v6941_v46 = vmul.f32 %v6909_v54, %v6803_v15 }
0x1684   :  { %9158 = vmatprep.subr.bf16.mxu1 %v9871_v8 }
0x1686   :  { %v6914_v40 = vpop.permute.xlu1 %6913 }
0x1687   :  { %v6942_v17 = vmul.f32 %v6914_v40, %v6804_v47 }
0x1689   :  { %v9159_v34 = vpack.c.bf16 %v6942_v17, %v6941_v46 }
0x168a   :  { %v6919_v62 = vpop.permute.xlu0 %6918 }
0x168b   :  { %9160 = vmatpush1.bf16.msra.mxu1 %v9159_v34  ;;  %v6943_v21 = vmul.f32 %v6919_v62, %v6805_v18 }
0x168c   :  { %6996 = vmatprep.subr.mxu1 %v9873_v55 }
0x168f   :  { %7448 = vmatpush1.msk.msra.mxu1 %vm2209_vm7, %v6943_v21 }
0x1690   :  { %7017 = vmatmul.mubr.f32.vlgmr.msra.gmra.mrb[16].mxu1 %v11460_v24 }
0x1763   :  { %v7018_v57 = vpop.f32.mrb[16].mxu1 }
0x1764   :  { %v7020_v8 = vpop.f32.mrb[17].mxu1  ;;  %7023 = vst.msk [vmem:[#allocation38] sm:$0xf] %vm7022_vm2, %v7018_v57 }
0x1765   :  { %9776 = shalt.err (!%p9773_p12)
}
0x1766   :  { %s9777_s20 = scalar_lea.hbm %s10032_s14, 64 }
0x1767   :  { %p9778_p13 = scmp.ne.s32.totalorder %s10032_s14, %s9777_s20  ;;  %p9781_p0 = scmp.lt.u32.totalorder %s9777_s20, %s10032_s14 }
0x1769   :  { %p9783_p1 = pnand %p9781_p0, %p9778_p13 }
0x176b   :  { %9786 = shalt.err (!%p9783_p1)
}
0x176c   :  { %7033 = dma.vmem_to_hbm [thread:$0]  %s7031_s30, 64, %s10032_s14, [#allocation5]  }
0x176d   :  { %9811 = dma.done.wait [#allocation5], 64  }
0x176e   :  { %9812 = vsyncadd [#allocation5], 4294967232 }
0x176f   :  { %7037 = vsyncpa [#allocation4], 1 }
0x1770   :  { %7038 = vsyncpa [#allocation7], 1 }
0x1771   :  { %7039 = vsyncpa [#allocation10], 1 }
0x1772   :  { %7040 = vsyncpa [#allocation13], 1 }
0x1773   :  { %7041 = vsyncpa [#allocation16], 1 }
0x1774   :  { %7042 = vsyncpa [#allocation19], 1 }
0x1775   :  { %7043 = vsyncpa [#allocation22], 1 }
0x1776   :  { %7044 = vsyncpa [#allocation25], 1 }
0x1777   :  { %7045 = vsyncpa [#allocation28], 1 }
0x1778   :  { %7046 = vsyncpa [#allocation31], 1 }
0x1779   :  { %7047 = vsyncpa [#allocation34], 1 }
0x177a   :  { %7048 = vsyncpa [#allocation37], 1 }
0x177b   :  { %7049 = vsyncpa [#allocation5], 1 }

</bundles_post_ra>
